<compile_context>
chip_gen: v7x
topology: tpu7x:2x2x1
jax: 0.10.0
libtpu: 0.0.40
codegen_flags: <defaults>
</compile_context>

<pallas_src>
import jax
import jax.numpy as jnp
from jax.experimental import pallas as pl
from jax.experimental.pallas import tpu as pltpu

EPS = 1e-4          # SPDRectified eigenvalue floor (spdnet default)
_LANE = 128         # TPU lane width
_MAX_UNROLL_L = 64  # Pallas path (fully unrolled L^2 inner loop) up to this L


def _reeig_kernel(u_ref, w_ref, o_ref, s_ref):
    """ReEig reconstruction for one batch-in-lanes block.

    u_ref: (L, L, TB) f32, [k, r, b] = U_b[r, k]  (component r of eigenvector k)
    w_ref: (L, TB)    f32, [k, b]    = w_b[k]
    o_ref: (L, L, TB),     [i, j, b] = out_b[i, j]
    s_ref: (L, L, TB) f32 VMEM scratch holding the scaled factors.
    """
    L = u_ref.shape[0]
    # Eigenvalue clamp + sqrt in f32 (sqrt lowers to the EUP slot).
    sqw = jnp.sqrt(jnp.maximum(w_ref[...].astype(jnp.float32), EPS))   # (L, TB)

    # s[k, r, b] = U_b[r, k] * sqrt(max(w_b[k], EPS))
    for k in range(L):
        s_ref[k] = u_ref[k].astype(jnp.float32) * sqw[k:k + 1, :]

    # rec[i, j, b] = sum_k s[k, i, b] * s[k, j, b]
    # Batch lives in the 128-lane axis -> unrolled VPU mul/adds, exactly
    # symmetric because (i, j) and (j, i) use the identical products/order.
    for i in range(L):
        acc = None
        for k in range(L):
            sk = s_ref[k]                              # (L, TB) VMEM load
            term = sk[i:i + 1, :] * sk                 # (1,TB) bcast * (L,TB)
            acc = term if acc is None else acc + term
        o_ref[i] = acc.astype(o_ref.dtype)


def _round_up(x: int, m: int) -> int:
    return -(-x // m) * m


def _choose_tb(batch: int, L: int) -> int:
    """Batch tile (lane dim): multiple of 128, sized so the (8,128)-padded
    double-buffered working set stays small while keeping a few grid steps."""
    if batch <= _LANE:
        return batch                                    # single block == full array
    per_elem = L * _round_up(L, 8) * 4                  # padded bytes per batch element
    tb_mem = max(_LANE, ((512 * 1024) // per_elem) // _LANE * _LANE)
    tb_steps = max(_LANE, (batch // 4) // _LANE * _LANE)  # >= 4 grid steps if possible
    return min(tb_mem, tb_steps, 4 * _LANE)


def _vmem_need_bytes(L: int, tb: int) -> int:
    """(8,128)-padded VMEM footprint: u(x2) + out(x2) + s scratch + w(x2)."""
    lp, tbp = _round_up(L, 8), _round_up(tb, _LANE)
    big = L * lp * tbp * 4
    return 5 * big + 2 * lp * tbp * 4


def spd_rectified(h_co: jax.Array) -> jax.Array:
    """Pallas implementation of SPDRectified (ReEig) on a (B, L, L) batch."""
    B, L, L2 = h_co.shape
    assert L == L2, "expected square SPD matrices"
    out_dtype = h_co.dtype

    # TODO(synk): batched symmetric eigendecomposition has no Pallas/Mosaic
    # primitive; it is computed with jnp.linalg.eigh (f32) in the wrapper and
    # dominates end-to-end time regardless of this kernel.
    w, u = jnp.linalg.eigh(h_co.astype(jnp.float32))    # (B, L), (B, L, L)

    if L > _MAX_UNROLL_L:
        # TODO(synk): large-L (>=128) MXU-tiled ReEig kernel (bf16 factors) not
        # implemented; fall back to XLA for the reconstruction.
        return jnp.einsum("bik,bk,bjk->bij", u, jnp.maximum(w, EPS), u).astype(out_dtype)

    # Batch-in-lanes layout: minor dim = batch, so DMAs / stores are lane-dense
    # and the reconstruction is elementwise VPU work.
    u_t = jnp.transpose(u, (2, 1, 0))       # (L, L, B): [k, r, b] = U_b[r, k]
    w_t = jnp.transpose(w, (1, 0))          # (L, B):    [k, b]

    tb = _choose_tb(B, L)
    assert _vmem_need_bytes(L, tb) <= 12 * 1024 * 1024  # fits all generations

    out_t = pl.pallas_call(
        _reeig_kernel,
        out_shape=jax.ShapeDtypeStruct((L, L, B), out_dtype),
        grid=(pl.cdiv(B, tb),),
        in_specs=[
            pl.BlockSpec((L, L, tb), lambda b: (0, 0, b)),
            pl.BlockSpec((L, tb), lambda b: (0, b)),
        ],
        out_specs=pl.BlockSpec((L, L, tb), lambda b: (0, 0, b)),
        scratch_shapes=[pltpu.VMEM((L, L, tb), jnp.float32)],
        compiler_params=pltpu.CompilerParams(
            dimension_semantics=("parallel",),
            vmem_limit_bytes=32 * 1024 * 1024,
        ),
    )(u_t, w_t)

    return jnp.transpose(out_t, (2, 0, 1))   # back to (B, L, L)


def spd_forward(h_co: jax.Array) -> jax.Array:
    """Equivalent of SPD.forward: h_hidden = SPDRectified(h_co)."""
    return spd_rectified(h_co)


if __name__ == "__main__":
    key = jax.random.PRNGKey(0)
    B, L = 256, 16

    # Deterministic PSD covariance-like inputs (small eigenvalues exercise the
    # clamp) with exact symmetry enforced.
    a = jax.random.normal(key, (B, L, L), dtype=jnp.float32)
    h_co = jnp.einsum("bij,bkj->bik", a, a) / L
    h_co = 0.5 * (h_co + jnp.swapaxes(h_co, -1, -2))

    out = jax.block_until_ready(spd_forward(h_co))

    # Pure-JAX reference of the ReEig semantics.
    w_ref, u_ref = jnp.linalg.eigh(h_co)
    ref = jnp.einsum("bik,bk,bjk->bij", u_ref, jnp.maximum(w_ref, EPS), u_ref)
    assert out.shape == (B, L, L)
    assert jnp.allclose(out, ref, atol=1e-4, rtol=1e-4), "mismatch vs reference"
    # Factorised reconstruction keeps the output exactly symmetric.
    assert jnp.allclose(out, jnp.swapaxes(out, -1, -2), atol=1e-6)

    # Small odd batch exercises the B < 128 single-full-block path.
    out_small = jax.block_until_ready(spd_forward(h_co[:12]))
    assert jnp.allclose(out_small, ref[:12], atol=1e-4, rtol=1e-4)

    print("KERNEL_OK")
</pallas_src>

<mosaic_0001>
module attributes {stable_mosaic.version = 11 : i64} {
  func.func @_reeig_kernel(%arg0: i32, %arg1: memref<16x16x128xf32, #tpu.memory_space<vmem>>, %arg2: memref<16x128xf32, #tpu.memory_space<vmem>>, %arg3: memref<16x16x128xf32, #tpu.memory_space<vmem>>, %arg4: memref<16x16x128xf32, #tpu.memory_space<vmem>>) attributes {dimension_semantics = [#tpu.dimension_semantics<parallel>], iteration_bounds = array<i64: 2>, scalar_prefetch = 0 : i64, scratch_operands = 1 : i64, tpu.core_type = #tpu.core_type<tc>, window_params = [{transform_indices = @transform_0, window_bounds = array<i64: 16, 16, 128>}, {transform_indices = @transform_1, window_bounds = array<i64: 16, 128>}, {transform_indices = @transform_2, window_bounds = array<i64: 16, 16, 128>}]} {
    %c0 = arith.constant 0 : index
    %c0_0 = arith.constant 0 : index
    %0 = vector.load %arg2[%c0, %c0_0] : memref<16x128xf32, #tpu.memory_space<vmem>>, vector<16x128xf32>
    %cst = arith.constant 9.99999974E-5 : f32
    %1 = vector.broadcast %cst : f32 to vector<16x128xf32>
    %2 = arith.maximumf %0, %1 : vector<16x128xf32>
    %3 = math.sqrt %2 : vector<16x128xf32>
    %c0_1 = arith.constant 0 : index
    %c0_2 = arith.constant 0 : index
    %c0_3 = arith.constant 0 : index
    %4 = vector.load %arg1[%c0_1, %c0_2, %c0_3] : memref<16x16x128xf32, #tpu.memory_space<vmem>>, vector<1x16x128xf32>
    %5 = vector.shape_cast %4 : vector<1x16x128xf32> to vector<16x128xf32>
    %6 = vector.extract_strided_slice %3 {offsets = [0, 0], sizes = [1, 128], strides = [1, 1]} : vector<16x128xf32> to vector<1x128xf32>
    %7 = vector.broadcast %6 : vector<1x128xf32> to vector<16x128xf32>
    %8 = arith.mulf %5, %7 : vector<16x128xf32>
    %c0_4 = arith.constant 0 : index
    %c0_5 = arith.constant 0 : index
    %c0_6 = arith.constant 0 : index
    %9 = vector.load %arg4[%c0_4, %c0_5, %c0_6] : memref<16x16x128xf32, #tpu.memory_space<vmem>>, vector<1x16x128xf32>
    %10 = vector.shape_cast %9 : vector<1x16x128xf32> to vector<16x128xf32>
    %11 = vector.shape_cast %8 : vector<16x128xf32> to vector<1x16x128xf32>
    tpu.vector_store %arg4[%c0_4, %c0_5, %c0_6], %11 {strides = array<i32>} : memref<16x16x128xf32, #tpu.memory_space<vmem>>, vector<1x16x128xf32>,
    %c1 = arith.constant 1 : index
    %c0_7 = arith.constant 0 : index
    %c0_8 = arith.constant 0 : index
    %12 = vector.load %arg1[%c1, %c0_7, %c0_8] : memref<16x16x128xf32, #tpu.memory_space<vmem>>, vector<1x16x128xf32>
    %13 = vector.shape_cast %12 : vector<1x16x128xf32> to vector<16x128xf32>
    %14 = vector.extract_strided_slice %3 {offsets = [1, 0], sizes = [1, 128], strides = [1, 1]} : vector<16x128xf32> to vector<1x128xf32>
    %15 = vector.broadcast %14 : vector<1x128xf32> to vector<16x128xf32>
    %16 = arith.mulf %13, %15 : vector<16x128xf32>
    %c1_9 = arith.constant 1 : index
    %c0_10 = arith.constant 0 : index
    %c0_11 = arith.constant 0 : index
    %17 = vector.load %arg4[%c1_9, %c0_10, %c0_11] : memref<16x16x128xf32, #tpu.memory_space<vmem>>, vector<1x16x128xf32>
    %18 = vector.shape_cast %17 : vector<1x16x128xf32> to vector<16x128xf32>
    %19 = vector.shape_cast %16 : vector<16x128xf32> to vector<1x16x128xf32>
    tpu.vector_store %arg4[%c1_9, %c0_10, %c0_11], %19 {strides = array<i32>} : memref<16x16x128xf32, #tpu.memory_space<vmem>>, vector<1x16x128xf32>,
    %c2 = arith.constant 2 : index
    %c0_12 = arith.constant 0 : index
    %c0_13 = arith.constant 0 : index
    %20 = vector.load %arg1[%c2, %c0_12, %c0_13] : memref<16x16x128xf32, #tpu.memory_space<vmem>>, vector<1x16x128xf32>
    %21 = vector.shape_cast %20 : vector<1x16x128xf32> to vector<16x128xf32>
    %22 = vector.extract_strided_slice %3 {offsets = [2, 0], sizes = [1, 128], strides = [1, 1]} : vector<16x128xf32> to vector<1x128xf32>
    %23 = vector.broadcast %22 : vector<1x128xf32> to vector<16x128xf32>
    %24 = arith.mulf %21, %23 : vector<16x128xf32>
    %c2_14 = arith.constant 2 : index
    %c0_15 = arith.constant 0 : index
    %c0_16 = arith.constant 0 : index
    %25 = vector.load %arg4[%c2_14, %c0_15, %c0_16] : memref<16x16x128xf32, #tpu.memory_space<vmem>>, vector<1x16x128xf32>
    %26 = vector.shape_cast %25 : vector<1x16x128xf32> to vector<16x128xf32>
    %27 = vector.shape_cast %24 : vector<16x128xf32> to vector<1x16x128xf32>
    tpu.vector_store %arg4[%c2_14, %c0_15, %c0_16], %27 {strides = array<i32>} : memref<16x16x128xf32, #tpu.memory_space<vmem>>, vector<1x16x128xf32>,
    %c3 = arith.constant 3 : index
    %c0_17 = arith.constant 0 : index
    %c0_18 = arith.constant 0 : index
    %28 = vector.load %arg1[%c3, %c0_17, %c0_18] : memref<16x16x128xf32, #tpu.memory_space<vmem>>, vector<1x16x128xf32>
    %29 = vector.shape_cast %28 : vector<1x16x128xf32> to vector<16x128xf32>
    %30 = vector.extract_strided_slice %3 {offsets = [3, 0], sizes = [1, 128], strides = [1, 1]} : vector<16x128xf32> to vector<1x128xf32>
    %31 = vector.broadcast %30 : vector<1x128xf32> to vector<16x128xf32>
    %32 = arith.mulf %29, %31 : vector<16x128xf32>
    %c3_19 = arith.constant 3 : index
    %c0_20 = arith.constant 0 : index
    %c0_21 = arith.constant 0 : index
    %33 = vector.load %arg4[%c3_19, %c0_20, %c0_21] : memref<16x16x128xf32, #tpu.memory_space<vmem>>, vector<1x16x128xf32>
    %34 = vector.shape_cast %33 : vector<1x16x128xf32> to vector<16x128xf32>
    %35 = vector.shape_cast %32 : vector<16x128xf32> to vector<1x16x128xf32>
    tpu.vector_store %arg4[%c3_19, %c0_20, %c0_21], %35 {strides = array<i32>} : memref<16x16x128xf32, #tpu.memory_space<vmem>>, vector<1x16x128xf32>,
    %c4 = arith.constant 4 : index
    %c0_22 = arith.constant 0 : index
    %c0_23 = arith.constant 0 : index
    %36 = vector.load %arg1[%c4, %c0_22, %c0_23] : memref<16x16x128xf32, #tpu.memory_space<vmem>>, vector<1x16x128xf32>
    %37 = vector.shape_cast %36 : vector<1x16x128xf32> to vector<16x128xf32>
    %38 = vector.extract_strided_slice %3 {offsets = [4, 0], sizes = [1, 128], strides = [1, 1]} : vector<16x128xf32> to vector<1x128xf32>
    %39 = vector.broadcast %38 : vector<1x128xf32> to vector<16x128xf32>
    %40 = arith.mulf %37, %39 : vector<16x128xf32>
    %c4_24 = arith.constant 4 : index
    %c0_25 = arith.constant 0 : index
    %c0_26 = arith.constant 0 : index
    %41 = vector.load %arg4[%c4_24, %c0_25, %c0_26] : memref<16x16x128xf32, #tpu.memory_space<vmem>>, vector<1x16x128xf32>
    %42 = vector.shape_cast %41 : vector<1x16x128xf32> to vector<16x128xf32>
    %43 = vector.shape_cast %40 : vector<16x128xf32> to vector<1x16x128xf32>
    tpu.vector_store %arg4[%c4_24, %c0_25, %c0_26], %43 {strides = array<i32>} : memref<16x16x128xf32, #tpu.memory_space<vmem>>, vector<1x16x128xf32>,
    %c5 = arith.constant 5 : index
    %c0_27 = arith.constant 0 : index
    %c0_28 = arith.constant 0 : index
    %44 = vector.load %arg1[%c5, %c0_27, %c0_28] : memref<16x16x128xf32, #tpu.memory_space<vmem>>, vector<1x16x128xf32>
    %45 = vector.shape_cast %44 : vector<1x16x128xf32> to vector<16x128xf32>
    %46 = vector.extract_strided_slice %3 {offsets = [5, 0], sizes = [1, 128], strides = [1, 1]} : vector<16x128xf32> to vector<1x128xf32>
    %47 = vector.broadcast %46 : vector<1x128xf32> to vector<16x128xf32>
    %48 = arith.mulf %45, %47 : vector<16x128xf32>
    %c5_29 = arith.constant 5 : index
    %c0_30 = arith.constant 0 : index
    %c0_31 = arith.constant 0 : index
    %49 = vector.load %arg4[%c5_29, %c0_30, %c0_31] : memref<16x16x128xf32, #tpu.memory_space<vmem>>, vector<1x16x128xf32>
    %50 = vector.shape_cast %49 : vector<1x16x128xf32> to vector<16x128xf32>
    %51 = vector.shape_cast %48 : vector<16x128xf32> to vector<1x16x128xf32>
    tpu.vector_store %arg4[%c5_29, %c0_30, %c0_31], %51 {strides = array<i32>} : memref<16x16x128xf32, #tpu.memory_space<vmem>>, vector<1x16x128xf32>,
    %c6 = arith.constant 6 : index
    %c0_32 = arith.constant 0 : index
    %c0_33 = arith.constant 0 : index
    %52 = vector.load %arg1[%c6, %c0_32, %c0_33] : memref<16x16x128xf32, #tpu.memory_space<vmem>>, vector<1x16x128xf32>
    %53 = vector.shape_cast %52 : vector<1x16x128xf32> to vector<16x128xf32>
    %54 = vector.extract_strided_slice %3 {offsets = [6, 0], sizes = [1, 128], strides = [1, 1]} : vector<16x128xf32> to vector<1x128xf32>
    %55 = vector.broadcast %54 : vector<1x128xf32> to vector<16x128xf32>
    %56 = arith.mulf %53, %55 : vector<16x128xf32>
    %c6_34 = arith.constant 6 : index
    %c0_35 = arith.constant 0 : index
    %c0_36 = arith.constant 0 : index
    %57 = vector.load %arg4[%c6_34, %c0_35, %c0_36] : memref<16x16x128xf32, #tpu.memory_space<vmem>>, vector<1x16x128xf32>
    %58 = vector.shape_cast %57 : vector<1x16x128xf32> to vector<16x128xf32>
    %59 = vector.shape_cast %56 : vector<16x128xf32> to vector<1x16x128xf32>
    tpu.vector_store %arg4[%c6_34, %c0_35, %c0_36], %59 {strides = array<i32>} : memref<16x16x128xf32, #tpu.memory_space<vmem>>, vector<1x16x128xf32>,
    %c7 = arith.constant 7 : index
    %c0_37 = arith.constant 0 : index
    %c0_38 = arith.constant 0 : index
    %60 = vector.load %arg1[%c7, %c0_37, %c0_38] : memref<16x16x128xf32, #tpu.memory_space<vmem>>, vector<1x16x128xf32>
    %61 = vector.shape_cast %60 : vector<1x16x128xf32> to vector<16x128xf32>
    %62 = vector.extract_strided_slice %3 {offsets = [7, 0], sizes = [1, 128], strides = [1, 1]} : vector<16x128xf32> to vector<1x128xf32>
    %63 = vector.broadcast %62 : vector<1x128xf32> to vector<16x128xf32>
    %64 = arith.mulf %61, %63 : vector<16x128xf32>
    %c7_39 = arith.constant 7 : index
    %c0_40 = arith.constant 0 : index
    %c0_41 = arith.constant 0 : index
    %65 = vector.load %arg4[%c7_39, %c0_40, %c0_41] : memref<16x16x128xf32, #tpu.memory_space<vmem>>, vector<1x16x128xf32>
    %66 = vector.shape_cast %65 : vector<1x16x128xf32> to vector<16x128xf32>
    %67 = vector.shape_cast %64 : vector<16x128xf32> to vector<1x16x128xf32>
    tpu.vector_store %arg4[%c7_39, %c0_40, %c0_41], %67 {strides = array<i32>} : memref<16x16x128xf32, #tpu.memory_space<vmem>>, vector<1x16x128xf32>,
    %c8 = arith.constant 8 : index
    %c0_42 = arith.constant 0 : index
    %c0_43 = arith.constant 0 : index
    %68 = vector.load %arg1[%c8, %c0_42, %c0_43] : memref<16x16x128xf32, #tpu.memory_space<vmem>>, vector<1x16x128xf32>
    %69 = vector.shape_cast %68 : vector<1x16x128xf32> to vector<16x128xf32>
    %70 = vector.extract_strided_slice %3 {offsets = [8, 0], sizes = [1, 128], strides = [1, 1]} : vector<16x128xf32> to vector<1x128xf32>
    %71 = vector.broadcast %70 : vector<1x128xf32> to vector<16x128xf32>
    %72 = arith.mulf %69, %71 : vector<16x128xf32>
    %c8_44 = arith.constant 8 : index
    %c0_45 = arith.constant 0 : index
    %c0_46 = arith.constant 0 : index
    %73 = vector.load %arg4[%c8_44, %c0_45, %c0_46] : memref<16x16x128xf32, #tpu.memory_space<vmem>>, vector<1x16x128xf32>
    %74 = vector.shape_cast %73 : vector<1x16x128xf32> to vector<16x128xf32>
    %75 = vector.shape_cast %72 : vector<16x128xf32> to vector<1x16x128xf32>
    tpu.vector_store %arg4[%c8_44, %c0_45, %c0_46], %75 {strides = array<i32>} : memref<16x16x128xf32, #tpu.memory_space<vmem>>, vector<1x16x128xf32>,
    %c9 = arith.constant 9 : index
    %c0_47 = arith.constant 0 : index
    %c0_48 = arith.constant 0 : index
    %76 = vector.load %arg1[%c9, %c0_47, %c0_48] : memref<16x16x128xf32, #tpu.memory_space<vmem>>, vector<1x16x128xf32>
    %77 = vector.shape_cast %76 : vector<1x16x128xf32> to vector<16x128xf32>
    %78 = vector.extract_strided_slice %3 {offsets = [9, 0], sizes = [1, 128], strides = [1, 1]} : vector<16x128xf32> to vector<1x128xf32>
    %79 = vector.broadcast %78 : vector<1x128xf32> to vector<16x128xf32>
    %80 = arith.mulf %77, %79 : vector<16x128xf32>
    %c9_49 = arith.constant 9 : index
    %c0_50 = arith.constant 0 : index
    %c0_51 = arith.constant 0 : index
    %81 = vector.load %arg4[%c9_49, %c0_50, %c0_51] : memref<16x16x128xf32, #tpu.memory_space<vmem>>, vector<1x16x128xf32>
    %82 = vector.shape_cast %81 : vector<1x16x128xf32> to vector<16x128xf32>
    %83 = vector.shape_cast %80 : vector<16x128xf32> to vector<1x16x128xf32>
    tpu.vector_store %arg4[%c9_49, %c0_50, %c0_51], %83 {strides = array<i32>} : memref<16x16x128xf32, #tpu.memory_space<vmem>>, vector<1x16x128xf32>,
    %c10 = arith.constant 10 : index
    %c0_52 = arith.constant 0 : index
    %c0_53 = arith.constant 0 : index
    %84 = vector.load %arg1[%c10, %c0_52, %c0_53] : memref<16x16x128xf32, #tpu.memory_space<vmem>>, vector<1x16x128xf32>
    %85 = vector.shape_cast %84 : vector<1x16x128xf32> to vector<16x128xf32>
    %86 = vector.extract_strided_slice %3 {offsets = [10, 0], sizes = [1, 128], strides = [1, 1]} : vector<16x128xf32> to vector<1x128xf32>
    %87 = vector.broadcast %86 : vector<1x128xf32> to vector<16x128xf32>
    %88 = arith.mulf %85, %87 : vector<16x128xf32>
    %c10_54 = arith.constant 10 : index
    %c0_55 = arith.constant 0 : index
    %c0_56 = arith.constant 0 : index
    %89 = vector.load %arg4[%c10_54, %c0_55, %c0_56] : memref<16x16x128xf32, #tpu.memory_space<vmem>>, vector<1x16x128xf32>
    %90 = vector.shape_cast %89 : vector<1x16x128xf32> to vector<16x128xf32>
    %91 = vector.shape_cast %88 : vector<16x128xf32> to vector<1x16x128xf32>
    tpu.vector_store %arg4[%c10_54, %c0_55, %c0_56], %91 {strides = array<i32>} : memref<16x16x128xf32, #tpu.memory_space<vmem>>, vector<1x16x128xf32>,
    %c11 = arith.constant 11 : index
    %c0_57 = arith.constant 0 : index
    %c0_58 = arith.constant 0 : index
    %92 = vector.load %arg1[%c11, %c0_57, %c0_58] : memref<16x16x128xf32, #tpu.memory_space<vmem>>, vector<1x16x128xf32>
    %93 = vector.shape_cast %92 : vector<1x16x128xf32> to vector<16x128xf32>
    %94 = vector.extract_strided_slice %3 {offsets = [11, 0], sizes = [1, 128], strides = [1, 1]} : vector<16x128xf32> to vector<1x128xf32>
    %95 = vector.broadcast %94 : vector<1x128xf32> to vector<16x128xf32>
    %96 = arith.mulf %93, %95 : vector<16x128xf32>
    %c11_59 = arith.constant 11 : index
    %c0_60 = arith.constant 0 : index
    %c0_61 = arith.constant 0 : index
    %97 = vector.load %arg4[%c11_59, %c0_60, %c0_61] : memref<16x16x128xf32, #tpu.memory_space<vmem>>, vector<1x16x128xf32>
    %98 = vector.shape_cast %97 : vector<1x16x128xf32> to vector<16x128xf32>
    %99 = vector.shape_cast %96 : vector<16x128xf32> to vector<1x16x128xf32>
    tpu.vector_store %arg4[%c11_59, %c0_60, %c0_61], %99 {strides = array<i32>} : memref<16x16x128xf32, #tpu.memory_space<vmem>>, vector<1x16x128xf32>,
    %c12 = arith.constant 12 : index
    %c0_62 = arith.constant 0 : index
    %c0_63 = arith.constant 0 : index
    %100 = vector.load %arg1[%c12, %c0_62, %c0_63] : memref<16x16x128xf32, #tpu.memory_space<vmem>>, vector<1x16x128xf32>
    %101 = vector.shape_cast %100 : vector<1x16x128xf32> to vector<16x128xf32>
    %102 = vector.extract_strided_slice %3 {offsets = [12, 0], sizes = [1, 128], strides = [1, 1]} : vector<16x128xf32> to vector<1x128xf32>
    %103 = vector.broadcast %102 : vector<1x128xf32> to vector<16x128xf32>
    %104 = arith.mulf %101, %103 : vector<16x128xf32>
    %c12_64 = arith.constant 12 : index
    %c0_65 = arith.constant 0 : index
    %c0_66 = arith.constant 0 : index
    %105 = vector.load %arg4[%c12_64, %c0_65, %c0_66] : memref<16x16x128xf32, #tpu.memory_space<vmem>>, vector<1x16x128xf32>
    %106 = vector.shape_cast %105 : vector<1x16x128xf32> to vector<16x128xf32>
    %107 = vector.shape_cast %104 : vector<16x128xf32> to vector<1x16x128xf32>
    tpu.vector_store %arg4[%c12_64, %c0_65, %c0_66], %107 {strides = array<i32>} : memref<16x16x128xf32, #tpu.memory_space<vmem>>, vector<1x16x128xf32>,
    %c13 = arith.constant 13 : index
    %c0_67 = arith.constant 0 : index
    %c0_68 = arith.constant 0 : index
    %108 = vector.load %arg1[%c13, %c0_67, %c0_68] : memref<16x16x128xf32, #tpu.memory_space<vmem>>, vector<1x16x128xf32>
    %109 = vector.shape_cast %108 : vector<1x16x128xf32> to vector<16x128xf32>
    %110 = vector.extract_strided_slice %3 {offsets = [13, 0], sizes = [1, 128], strides = [1, 1]} : vector<16x128xf32> to vector<1x128xf32>
    %111 = vector.broadcast %110 : vector<1x128xf32> to vector<16x128xf32>
    %112 = arith.mulf %109, %111 : vector<16x128xf32>
    %c13_69 = arith.constant 13 : index
    %c0_70 = arith.constant 0 : index
    %c0_71 = arith.constant 0 : index
    %113 = vector.load %arg4[%c13_69, %c0_70, %c0_71] : memref<16x16x128xf32, #tpu.memory_space<vmem>>, vector<1x16x128xf32>
    %114 = vector.shape_cast %113 : vector<1x16x128xf32> to vector<16x128xf32>
    %115 = vector.shape_cast %112 : vector<16x128xf32> to vector<1x16x128xf32>
    tpu.vector_store %arg4[%c13_69, %c0_70, %c0_71], %115 {strides = array<i32>} : memref<16x16x128xf32, #tpu.memory_space<vmem>>, vector<1x16x128xf32>,
    %c14 = arith.constant 14 : index
    %c0_72 = arith.constant 0 : index
    %c0_73 = arith.constant 0 : index
    %116 = vector.load %arg1[%c14, %c0_72, %c0_73] : memref<16x16x128xf32, #tpu.memory_space<vmem>>, vector<1x16x128xf32>
    %117 = vector.shape_cast %116 : vector<1x16x128xf32> to vector<16x128xf32>
    %118 = vector.extract_strided_slice %3 {offsets = [14, 0], sizes = [1, 128], strides = [1, 1]} : vector<16x128xf32> to vector<1x128xf32>
    %119 = vector.broadcast %118 : vector<1x128xf32> to vector<16x128xf32>
    %120 = arith.mulf %117, %119 : vector<16x128xf32>
    %c14_74 = arith.constant 14 : index
    %c0_75 = arith.constant 0 : index
    %c0_76 = arith.constant 0 : index
    %121 = vector.load %arg4[%c14_74, %c0_75, %c0_76] : memref<16x16x128xf32, #tpu.memory_space<vmem>>, vector<1x16x128xf32>
    %122 = vector.shape_cast %121 : vector<1x16x128xf32> to vector<16x128xf32>
    %123 = vector.shape_cast %120 : vector<16x128xf32> to vector<1x16x128xf32>
    tpu.vector_store %arg4[%c14_74, %c0_75, %c0_76], %123 {strides = array<i32>} : memref<16x16x128xf32, #tpu.memory_space<vmem>>, vector<1x16x128xf32>,
    %c15 = arith.constant 15 : index
    %c0_77 = arith.constant 0 : index
    %c0_78 = arith.constant 0 : index
    %124 = vector.load %arg1[%c15, %c0_77, %c0_78] : memref<16x16x128xf32, #tpu.memory_space<vmem>>, vector<1x16x128xf32>
    %125 = vector.shape_cast %124 : vector<1x16x128xf32> to vector<16x128xf32>
    %126 = vector.extract_strided_slice %3 {offsets = [15, 0], sizes = [1, 128], strides = [1, 1]} : vector<16x128xf32> to vector<1x128xf32>
    %127 = vector.broadcast %126 : vector<1x128xf32> to vector<16x128xf32>
    %128 = arith.mulf %125, %127 : vector<16x128xf32>
    %c15_79 = arith.constant 15 : index
    %c0_80 = arith.constant 0 : index
    %c0_81 = arith.constant 0 : index
    %129 = vector.load %arg4[%c15_79, %c0_80, %c0_81] : memref<16x16x128xf32, #tpu.memory_space<vmem>>, vector<1x16x128xf32>
    %130 = vector.shape_cast %129 : vector<1x16x128xf32> to vector<16x128xf32>
    %131 = vector.shape_cast %128 : vector<16x128xf32> to vector<1x16x128xf32>
    tpu.vector_store %arg4[%c15_79, %c0_80, %c0_81], %131 {strides = array<i32>} : memref<16x16x128xf32, #tpu.memory_space<vmem>>, vector<1x16x128xf32>,
    %c0_82 = arith.constant 0 : index
    %c0_83 = arith.constant 0 : index
    %c0_84 = arith.constant 0 : index
    %132 = vector.load %arg4[%c0_82, %c0_83, %c0_84] : memref<16x16x128xf32, #tpu.memory_space<vmem>>, vector<1x16x128xf32>
    %133 = vector.shape_cast %132 : vector<1x16x128xf32> to vector<16x128xf32>
    %134 = vector.extract_strided_slice %133 {offsets = [0, 0], sizes = [1, 128], strides = [1, 1]} : vector<16x128xf32> to vector<1x128xf32>
    %135 = vector.broadcast %134 : vector<1x128xf32> to vector<16x128xf32>
    %136 = arith.mulf %135, %133 : vector<16x128xf32>
    %c1_85 = arith.constant 1 : index
    %c0_86 = arith.constant 0 : index
    %c0_87 = arith.constant 0 : index
    %137 = vector.load %arg4[%c1_85, %c0_86, %c0_87] : memref<16x16x128xf32, #tpu.memory_space<vmem>>, vector<1x16x128xf32>
    %138 = vector.shape_cast %137 : vector<1x16x128xf32> to vector<16x128xf32>
    %139 = vector.extract_strided_slice %138 {offsets = [0, 0], sizes = [1, 128], strides = [1, 1]} : vector<16x128xf32> to vector<1x128xf32>
    %140 = vector.broadcast %139 : vector<1x128xf32> to vector<16x128xf32>
    %141 = arith.mulf %140, %138 : vector<16x128xf32>
    %142 = arith.addf %136, %141 : vector<16x128xf32>
    %c2_88 = arith.constant 2 : index
    %c0_89 = arith.constant 0 : index
    %c0_90 = arith.constant 0 : index
    %143 = vector.load %arg4[%c2_88, %c0_89, %c0_90] : memref<16x16x128xf32, #tpu.memory_space<vmem>>, vector<1x16x128xf32>
    %144 = vector.shape_cast %143 : vector<1x16x128xf32> to vector<16x128xf32>
    %145 = vector.extract_strided_slice %144 {offsets = [0, 0], sizes = [1, 128], strides = [1, 1]} : vector<16x128xf32> to vector<1x128xf32>
    %146 = vector.broadcast %145 : vector<1x128xf32> to vector<16x128xf32>
    %147 = arith.mulf %146, %144 : vector<16x128xf32>
    %148 = arith.addf %142, %147 : vector<16x128xf32>
    %c3_91 = arith.constant 3 : index
    %c0_92 = arith.constant 0 : index
    %c0_93 = arith.constant 0 : index
    %149 = vector.load %arg4[%c3_91, %c0_92, %c0_93] : memref<16x16x128xf32, #tpu.memory_space<vmem>>, vector<1x16x128xf32>
    %150 = vector.shape_cast %149 : vector<1x16x128xf32> to vector<16x128xf32>
    %151 = vector.extract_strided_slice %150 {offsets = [0, 0], sizes = [1, 128], strides = [1, 1]} : vector<16x128xf32> to vector<1x128xf32>
    %152 = vector.broadcast %151 : vector<1x128xf32> to vector<16x128xf32>
    %153 = arith.mulf %152, %150 : vector<16x128xf32>
    %154 = arith.addf %148, %153 : vector<16x128xf32>
    %c4_94 = arith.constant 4 : index
    %c0_95 = arith.constant 0 : index
    %c0_96 = arith.constant 0 : index
    %155 = vector.load %arg4[%c4_94, %c0_95, %c0_96] : memref<16x16x128xf32, #tpu.memory_space<vmem>>, vector<1x16x128xf32>
    %156 = vector.shape_cast %155 : vector<1x16x128xf32> to vector<16x128xf32>
    %157 = vector.extract_strided_slice %156 {offsets = [0, 0], sizes = [1, 128], strides = [1, 1]} : vector<16x128xf32> to vector<1x128xf32>
    %158 = vector.broadcast %157 : vector<1x128xf32> to vector<16x128xf32>
    %159 = arith.mulf %158, %156 : vector<16x128xf32>
    %160 = arith.addf %154, %159 : vector<16x128xf32>
    %c5_97 = arith.constant 5 : index
    %c0_98 = arith.constant 0 : index
    %c0_99 = arith.constant 0 : index
    %161 = vector.load %arg4[%c5_97, %c0_98, %c0_99] : memref<16x16x128xf32, #tpu.memory_space<vmem>>, vector<1x16x128xf32>
    %162 = vector.shape_cast %161 : vector<1x16x128xf32> to vector<16x128xf32>
    %163 = vector.extract_strided_slice %162 {offsets = [0, 0], sizes = [1, 128], strides = [1, 1]} : vector<16x128xf32> to vector<1x128xf32>
    %164 = vector.broadcast %163 : vector<1x128xf32> to vector<16x128xf32>
    %165 = arith.mulf %164, %162 : vector<16x128xf32>
    %166 = arith.addf %160, %165 : vector<16x128xf32>
    %c6_100 = arith.constant 6 : index
    %c0_101 = arith.constant 0 : index
    %c0_102 = arith.constant 0 : index
    %167 = vector.load %arg4[%c6_100, %c0_101, %c0_102] : memref<16x16x128xf32, #tpu.memory_space<vmem>>, vector<1x16x128xf32>
    %168 = vector.shape_cast %167 : vector<1x16x128xf32> to vector<16x128xf32>
    %169 = vector.extract_strided_slice %168 {offsets = [0, 0], sizes = [1, 128], strides = [1, 1]} : vector<16x128xf32> to vector<1x128xf32>
    %170 = vector.broadcast %169 : vector<1x128xf32> to vector<16x128xf32>
    %171 = arith.mulf %170, %168 : vector<16x128xf32>
    %172 = arith.addf %166, %171 : vector<16x128xf32>
    %c7_103 = arith.constant 7 : index
    %c0_104 = arith.constant 0 : index
    %c0_105 = arith.constant 0 : index
    %173 = vector.load %arg4[%c7_103, %c0_104, %c0_105] : memref<16x16x128xf32, #tpu.memory_space<vmem>>, vector<1x16x128xf32>
    %174 = vector.shape_cast %173 : vector<1x16x128xf32> to vector<16x128xf32>
    %175 = vector.extract_strided_slice %174 {offsets = [0, 0], sizes = [1, 128], strides = [1, 1]} : vector<16x128xf32> to vector<1x128xf32>
    %176 = vector.broadcast %175 : vector<1x128xf32> to vector<16x128xf32>
    %177 = arith.mulf %176, %174 : vector<16x128xf32>
    %178 = arith.addf %172, %177 : vector<16x128xf32>
    %c8_106 = arith.constant 8 : index
    %c0_107 = arith.constant 0 : index
    %c0_108 = arith.constant 0 : index
    %179 = vector.load %arg4[%c8_106, %c0_107, %c0_108] : memref<16x16x128xf32, #tpu.memory_space<vmem>>, vector<1x16x128xf32>
    %180 = vector.shape_cast %179 : vector<1x16x128xf32> to vector<16x128xf32>
    %181 = vector.extract_strided_slice %180 {offsets = [0, 0], sizes = [1, 128], strides = [1, 1]} : vector<16x128xf32> to vector<1x128xf32>
    %182 = vector.broadcast %181 : vector<1x128xf32> to vector<16x128xf32>
    %183 = arith.mulf %182, %180 : vector<16x128xf32>
    %184 = arith.addf %178, %183 : vector<16x128xf32>
    %c9_109 = arith.constant 9 : index
    %c0_110 = arith.constant 0 : index
    %c0_111 = arith.constant 0 : index
    %185 = vector.load %arg4[%c9_109, %c0_110, %c0_111] : memref<16x16x128xf32, #tpu.memory_space<vmem>>, vector<1x16x128xf32>
    %186 = vector.shape_cast %185 : vector<1x16x128xf32> to vector<16x128xf32>
    %187 = vector.extract_strided_slice %186 {offsets = [0, 0], sizes = [1, 128], strides = [1, 1]} : vector<16x128xf32> to vector<1x128xf32>
    %188 = vector.broadcast %187 : vector<1x128xf32> to vector<16x128xf32>
    %189 = arith.mulf %188, %186 : vector<16x128xf32>
    %190 = arith.addf %184, %189 : vector<16x128xf32>
    %c10_112 = arith.constant 10 : index
    %c0_113 = arith.constant 0 : index
    %c0_114 = arith.constant 0 : index
    %191 = vector.load %arg4[%c10_112, %c0_113, %c0_114] : memref<16x16x128xf32, #tpu.memory_space<vmem>>, vector<1x16x128xf32>
    %192 = vector.shape_cast %191 : vector<1x16x128xf32> to vector<16x128xf32>
    %193 = vector.extract_strided_slice %192 {offsets = [0, 0], sizes = [1, 128], strides = [1, 1]} : vector<16x128xf32> to vector<1x128xf32>
    %194 = vector.broadcast %193 : vector<1x128xf32> to vector<16x128xf32>
    %195 = arith.mulf %194, %192 : vector<16x128xf32>
    %196 = arith.addf %190, %195 : vector<16x128xf32>
    %c11_115 = arith.constant 11 : index
    %c0_116 = arith.constant 0 : index
    %c0_117 = arith.constant 0 : index
    %197 = vector.load %arg4[%c11_115, %c0_116, %c0_117] : memref<16x16x128xf32, #tpu.memory_space<vmem>>, vector<1x16x128xf32>
    %198 = vector.shape_cast %197 : vector<1x16x128xf32> to vector<16x128xf32>
    %199 = vector.extract_strided_slice %198 {offsets = [0, 0], sizes = [1, 128], strides = [1, 1]} : vector<16x128xf32> to vector<1x128xf32>
    %200 = vector.broadcast %199 : vector<1x128xf32> to vector<16x128xf32>
    %201 = arith.mulf %200, %198 : vector<16x128xf32>
    %202 = arith.addf %196, %201 : vector<16x128xf32>
    %c12_118 = arith.constant 12 : index
    %c0_119 = arith.constant 0 : index
    %c0_120 = arith.constant 0 : index
    %203 = vector.load %arg4[%c12_118, %c0_119, %c0_120] : memref<16x16x128xf32, #tpu.memory_space<vmem>>, vector<1x16x128xf32>
    %204 = vector.shape_cast %203 : vector<1x16x128xf32> to vector<16x128xf32>
    %205 = vector.extract_strided_slice %204 {offsets = [0, 0], sizes = [1, 128], strides = [1, 1]} : vector<16x128xf32> to vector<1x128xf32>
    %206 = vector.broadcast %205 : vector<1x128xf32> to vector<16x128xf32>
    %207 = arith.mulf %206, %204 : vector<16x128xf32>
    %208 = arith.addf %202, %207 : vector<16x128xf32>
    %c13_121 = arith.constant 13 : index
    %c0_122 = arith.constant 0 : index
    %c0_123 = arith.constant 0 : index
    %209 = vector.load %arg4[%c13_121, %c0_122, %c0_123] : memref<16x16x128xf32, #tpu.memory_space<vmem>>, vector<1x16x128xf32>
    %210 = vector.shape_cast %209 : vector<1x16x128xf32> to vector<16x128xf32>
    %211 = vector.extract_strided_slice %210 {offsets = [0, 0], sizes = [1, 128], strides = [1, 1]} : vector<16x128xf32> to vector<1x128xf32>
    %212 = vector.broadcast %211 : vector<1x128xf32> to vector<16x128xf32>
    %213 = arith.mulf %212, %210 : vector<16x128xf32>
    %214 = arith.addf %208, %213 : vector<16x128xf32>
    %c14_124 = arith.constant 14 : index
    %c0_125 = arith.constant 0 : index
    %c0_126 = arith.constant 0 : index
    %215 = vector.load %arg4[%c14_124, %c0_125, %c0_126] : memref<16x16x128xf32, #tpu.memory_space<vmem>>, vector<1x16x128xf32>
    %216 = vector.shape_cast %215 : vector<1x16x128xf32> to vector<16x128xf32>
    %217 = vector.extract_strided_slice %216 {offsets = [0, 0], sizes = [1, 128], strides = [1, 1]} : vector<16x128xf32> to vector<1x128xf32>
    %218 = vector.broadcast %217 : vector<1x128xf32> to vector<16x128xf32>
    %219 = arith.mulf %218, %216 : vector<16x128xf32>
    %220 = arith.addf %214, %219 : vector<16x128xf32>
    %c15_127 = arith.constant 15 : index
    %c0_128 = arith.constant 0 : index
    %c0_129 = arith.constant 0 : index
    %221 = vector.load %arg4[%c15_127, %c0_128, %c0_129] : memref<16x16x128xf32, #tpu.memory_space<vmem>>, vector<1x16x128xf32>
    %222 = vector.shape_cast %221 : vector<1x16x128xf32> to vector<16x128xf32>
    %223 = vector.extract_strided_slice %222 {offsets = [0, 0], sizes = [1, 128], strides = [1, 1]} : vector<16x128xf32> to vector<1x128xf32>
    %224 = vector.broadcast %223 : vector<1x128xf32> to vector<16x128xf32>
    %225 = arith.mulf %224, %222 : vector<16x128xf32>
    %226 = arith.addf %220, %225 : vector<16x128xf32>
    %c0_130 = arith.constant 0 : index
    %c0_131 = arith.constant 0 : index
    %c0_132 = arith.constant 0 : index
    %227 = vector.load %arg3[%c0_130, %c0_131, %c0_132] : memref<16x16x128xf32, #tpu.memory_space<vmem>>, vector<1x16x128xf32>
    %228 = vector.shape_cast %227 : vector<1x16x128xf32> to vector<16x128xf32>
    %229 = vector.shape_cast %226 : vector<16x128xf32> to vector<1x16x128xf32>
    tpu.vector_store %arg3[%c0_130, %c0_131, %c0_132], %229 {strides = array<i32>} : memref<16x16x128xf32, #tpu.memory_space<vmem>>, vector<1x16x128xf32>,
    %c0_133 = arith.constant 0 : index
    %c0_134 = arith.constant 0 : index
    %c0_135 = arith.constant 0 : index
    %230 = vector.load %arg4[%c0_133, %c0_134, %c0_135] : memref<16x16x128xf32, #tpu.memory_space<vmem>>, vector<1x16x128xf32>
    %231 = vector.shape_cast %230 : vector<1x16x128xf32> to vector<16x128xf32>
    %232 = vector.extract_strided_slice %231 {offsets = [1, 0], sizes = [1, 128], strides = [1, 1]} : vector<16x128xf32> to vector<1x128xf32>
    %233 = vector.broadcast %232 : vector<1x128xf32> to vector<16x128xf32>
    %234 = arith.mulf %233, %231 : vector<16x128xf32>
    %c1_136 = arith.constant 1 : index
    %c0_137 = arith.constant 0 : index
    %c0_138 = arith.constant 0 : index
    %235 = vector.load %arg4[%c1_136, %c0_137, %c0_138] : memref<16x16x128xf32, #tpu.memory_space<vmem>>, vector<1x16x128xf32>
    %236 = vector.shape_cast %235 : vector<1x16x128xf32> to vector<16x128xf32>
    %237 = vector.extract_strided_slice %236 {offsets = [1, 0], sizes = [1, 128], strides = [1, 1]} : vector<16x128xf32> to vector<1x128xf32>
    %238 = vector.broadcast %237 : vector<1x128xf32> to vector<16x128xf32>
    %239 = arith.mulf %238, %236 : vector<16x128xf32>
    %240 = arith.addf %234, %239 : vector<16x128xf32>
    %c2_139 = arith.constant 2 : index
    %c0_140 = arith.constant 0 : index
    %c0_141 = arith.constant 0 : index
    %241 = vector.load %arg4[%c2_139, %c0_140, %c0_141] : memref<16x16x128xf32, #tpu.memory_space<vmem>>, vector<1x16x128xf32>
    %242 = vector.shape_cast %241 : vector<1x16x128xf32> to vector<16x128xf32>
    %243 = vector.extract_strided_slice %242 {offsets = [1, 0], sizes = [1, 128], strides = [1, 1]} : vector<16x128xf32> to vector<1x128xf32>
    %244 = vector.broadcast %243 : vector<1x128xf32> to vector<16x128xf32>
    %245 = arith.mulf %244, %242 : vector<16x128xf32>
    %246 = arith.addf %240, %245 : vector<16x128xf32>
    %c3_142 = arith.constant 3 : index
    %c0_143 = arith.constant 0 : index
    %c0_144 = arith.constant 0 : index
    %247 = vector.load %arg4[%c3_142, %c0_143, %c0_144] : memref<16x16x128xf32, #tpu.memory_space<vmem>>, vector<1x16x128xf32>
    %248 = vector.shape_cast %247 : vector<1x16x128xf32> to vector<16x128xf32>
    %249 = vector.extract_strided_slice %248 {offsets = [1, 0], sizes = [1, 128], strides = [1, 1]} : vector<16x128xf32> to vector<1x128xf32>
    %250 = vector.broadcast %249 : vector<1x128xf32> to vector<16x128xf32>
    %251 = arith.mulf %250, %248 : vector<16x128xf32>
    %252 = arith.addf %246, %251 : vector<16x128xf32>
    %c4_145 = arith.constant 4 : index
    %c0_146 = arith.constant 0 : index
    %c0_147 = arith.constant 0 : index
    %253 = vector.load %arg4[%c4_145, %c0_146, %c0_147] : memref<16x16x128xf32, #tpu.memory_space<vmem>>, vector<1x16x128xf32>
    %254 = vector.shape_cast %253 : vector<1x16x128xf32> to vector<16x128xf32>
    %255 = vector.extract_strided_slice %254 {offsets = [1, 0], sizes = [1, 128], strides = [1, 1]} : vector<16x128xf32> to vector<1x128xf32>
    %256 = vector.broadcast %255 : vector<1x128xf32> to vector<16x128xf32>
    %257 = arith.mulf %256, %254 : vector<16x128xf32>
    %258 = arith.addf %252, %257 : vector<16x128xf32>
    %c5_148 = arith.constant 5 : index
    %c0_149 = arith.constant 0 : index
    %c0_150 = arith.constant 0 : index
    %259 = vector.load %arg4[%c5_148, %c0_149, %c0_150] : memref<16x16x128xf32, #tpu.memory_space<vmem>>, vector<1x16x128xf32>
    %260 = vector.shape_cast %259 : vector<1x16x128xf32> to vector<16x128xf32>
    %261 = vector.extract_strided_slice %260 {offsets = [1, 0], sizes = [1, 128], strides = [1, 1]} : vector<16x128xf32> to vector<1x128xf32>
    %262 = vector.broadcast %261 : vector<1x128xf32> to vector<16x128xf32>
    %263 = arith.mulf %262, %260 : vector<16x128xf32>
    %264 = arith.addf %258, %263 : vector<16x128xf32>
    %c6_151 = arith.constant 6 : index
    %c0_152 = arith.constant 0 : index
    %c0_153 = arith.constant 0 : index
    %265 = vector.load %arg4[%c6_151, %c0_152, %c0_153] : memref<16x16x128xf32, #tpu.memory_space<vmem>>, vector<1x16x128xf32>
    %266 = vector.shape_cast %265 : vector<1x16x128xf32> to vector<16x128xf32>
    %267 = vector.extract_strided_slice %266 {offsets = [1, 0], sizes = [1, 128], strides = [1, 1]} : vector<16x128xf32> to vector<1x128xf32>
    %268 = vector.broadcast %267 : vector<1x128xf32> to vector<16x128xf32>
    %269 = arith.mulf %268, %266 : vector<16x128xf32>
    %270 = arith.addf %264, %269 : vector<16x128xf32>
    %c7_154 = arith.constant 7 : index
    %c0_155 = arith.constant 0 : index
    %c0_156 = arith.constant 0 : index
    %271 = vector.load %arg4[%c7_154, %c0_155, %c0_156] : memref<16x16x128xf32, #tpu.memory_space<vmem>>, vector<1x16x128xf32>
    %272 = vector.shape_cast %271 : vector<1x16x128xf32> to vector<16x128xf32>
    %273 = vector.extract_strided_slice %272 {offsets = [1, 0], sizes = [1, 128], strides = [1, 1]} : vector<16x128xf32> to vector<1x128xf32>
    %274 = vector.broadcast %273 : vector<1x128xf32> to vector<16x128xf32>
    %275 = arith.mulf %274, %272 : vector<16x128xf32>
    %276 = arith.addf %270, %275 : vector<16x128xf32>
    %c8_157 = arith.constant 8 : index
    %c0_158 = arith.constant 0 : index
    %c0_159 = arith.constant 0 : index
    %277 = vector.load %arg4[%c8_157, %c0_158, %c0_159] : memref<16x16x128xf32, #tpu.memory_space<vmem>>, vector<1x16x128xf32>
    %278 = vector.shape_cast %277 : vector<1x16x128xf32> to vector<16x128xf32>
    %279 = vector.extract_strided_slice %278 {offsets = [1, 0], sizes = [1, 128], strides = [1, 1]} : vector<16x128xf32> to vector<1x128xf32>
    %280 = vector.broadcast %279 : vector<1x128xf32> to vector<16x128xf32>
    %281 = arith.mulf %280, %278 : vector<16x128xf32>
    %282 = arith.addf %276, %281 : vector<16x128xf32>
    %c9_160 = arith.constant 9 : index
    %c0_161 = arith.constant 0 : index
    %c0_162 = arith.constant 0 : index
    %283 = vector.load %arg4[%c9_160, %c0_161, %c0_162] : memref<16x16x128xf32, #tpu.memory_space<vmem>>, vector<1x16x128xf32>
    %284 = vector.shape_cast %283 : vector<1x16x128xf32> to vector<16x128xf32>
    %285 = vector.extract_strided_slice %284 {offsets = [1, 0], sizes = [1, 128], strides = [1, 1]} : vector<16x128xf32> to vector<1x128xf32>
    %286 = vector.broadcast %285 : vector<1x128xf32> to vector<16x128xf32>
    %287 = arith.mulf %286, %284 : vector<16x128xf32>
    %288 = arith.addf %282, %287 : vector<16x128xf32>
    %c10_163 = arith.constant 10 : index
    %c0_164 = arith.constant 0 : index
    %c0_165 = arith.constant 0 : index
    %289 = vector.load %arg4[%c10_163, %c0_164, %c0_165] : memref<16x16x128xf32, #tpu.memory_space<vmem>>, vector<1x16x128xf32>
    %290 = vector.shape_cast %289 : vector<1x16x128xf32> to vector<16x128xf32>
    %291 = vector.extract_strided_slice %290 {offsets = [1, 0], sizes = [1, 128], strides = [1, 1]} : vector<16x128xf32> to vector<1x128xf32>
    %292 = vector.broadcast %291 : vector<1x128xf32> to vector<16x128xf32>
    %293 = arith.mulf %292, %290 : vector<16x128xf32>
    %294 = arith.addf %288, %293 : vector<16x128xf32>
    %c11_166 = arith.constant 11 : index
    %c0_167 = arith.constant 0 : index
    %c0_168 = arith.constant 0 : index
    %295 = vector.load %arg4[%c11_166, %c0_167, %c0_168] : memref<16x16x128xf32, #tpu.memory_space<vmem>>, vector<1x16x128xf32>
    %296 = vector.shape_cast %295 : vector<1x16x128xf32> to vector<16x128xf32>
    %297 = vector.extract_strided_slice %296 {offsets = [1, 0], sizes = [1, 128], strides = [1, 1]} : vector<16x128xf32> to vector<1x128xf32>
    %298 = vector.broadcast %297 : vector<1x128xf32> to vector<16x128xf32>
    %299 = arith.mulf %298, %296 : vector<16x128xf32>
    %300 = arith.addf %294, %299 : vector<16x128xf32>
    %c12_169 = arith.constant 12 : index
    %c0_170 = arith.constant 0 : index
    %c0_171 = arith.constant 0 : index
    %301 = vector.load %arg4[%c12_169, %c0_170, %c0_171] : memref<16x16x128xf32, #tpu.memory_space<vmem>>, vector<1x16x128xf32>
    %302 = vector.shape_cast %301 : vector<1x16x128xf32> to vector<16x128xf32>
    %303 = vector.extract_strided_slice %302 {offsets = [1, 0], sizes = [1, 128], strides = [1, 1]} : vector<16x128xf32> to vector<1x128xf32>
    %304 = vector.broadcast %303 : vector<1x128xf32> to vector<16x128xf32>
    %305 = arith.mulf %304, %302 : vector<16x128xf32>
    %306 = arith.addf %300, %305 : vector<16x128xf32>
    %c13_172 = arith.constant 13 : index
    %c0_173 = arith.constant 0 : index
    %c0_174 = arith.constant 0 : index
    %307 = vector.load %arg4[%c13_172, %c0_173, %c0_174] : memref<16x16x128xf32, #tpu.memory_space<vmem>>, vector<1x16x128xf32>
    %308 = vector.shape_cast %307 : vector<1x16x128xf32> to vector<16x128xf32>
    %309 = vector.extract_strided_slice %308 {offsets = [1, 0], sizes = [1, 128], strides = [1, 1]} : vector<16x128xf32> to vector<1x128xf32>
    %310 = vector.broadcast %309 : vector<1x128xf32> to vector<16x128xf32>
    %311 = arith.mulf %310, %308 : vector<16x128xf32>
    %312 = arith.addf %306, %311 : vector<16x128xf32>
    %c14_175 = arith.constant 14 : index
    %c0_176 = arith.constant 0 : index
    %c0_177 = arith.constant 0 : index
    %313 = vector.load %arg4[%c14_175, %c0_176, %c0_177] : memref<16x16x128xf32, #tpu.memory_space<vmem>>, vector<1x16x128xf32>
    %314 = vector.shape_cast %313 : vector<1x16x128xf32> to vector<16x128xf32>
    %315 = vector.extract_strided_slice %314 {offsets = [1, 0], sizes = [1, 128], strides = [1, 1]} : vector<16x128xf32> to vector<1x128xf32>
    %316 = vector.broadcast %315 : vector<1x128xf32> to vector<16x128xf32>
    %317 = arith.mulf %316, %314 : vector<16x128xf32>
    %318 = arith.addf %312, %317 : vector<16x128xf32>
    %c15_178 = arith.constant 15 : index
    %c0_179 = arith.constant 0 : index
    %c0_180 = arith.constant 0 : index
    %319 = vector.load %arg4[%c15_178, %c0_179, %c0_180] : memref<16x16x128xf32, #tpu.memory_space<vmem>>, vector<1x16x128xf32>
    %320 = vector.shape_cast %319 : vector<1x16x128xf32> to vector<16x128xf32>
    %321 = vector.extract_strided_slice %320 {offsets = [1, 0], sizes = [1, 128], strides = [1, 1]} : vector<16x128xf32> to vector<1x128xf32>
    %322 = vector.broadcast %321 : vector<1x128xf32> to vector<16x128xf32>
    %323 = arith.mulf %322, %320 : vector<16x128xf32>
    %324 = arith.addf %318, %323 : vector<16x128xf32>
    %c1_181 = arith.constant 1 : index
    %c0_182 = arith.constant 0 : index
    %c0_183 = arith.constant 0 : index
    %325 = vector.load %arg3[%c1_181, %c0_182, %c0_183] : memref<16x16x128xf32, #tpu.memory_space<vmem>>, vector<1x16x128xf32>
    %326 = vector.shape_cast %325 : vector<1x16x128xf32> to vector<16x128xf32>
    %327 = vector.shape_cast %324 : vector<16x128xf32> to vector<1x16x128xf32>
    tpu.vector_store %arg3[%c1_181, %c0_182, %c0_183], %327 {strides = array<i32>} : memref<16x16x128xf32, #tpu.memory_space<vmem>>, vector<1x16x128xf32>,
    %c0_184 = arith.constant 0 : index
    %c0_185 = arith.constant 0 : index
    %c0_186 = arith.constant 0 : index
    %328 = vector.load %arg4[%c0_184, %c0_185, %c0_186] : memref<16x16x128xf32, #tpu.memory_space<vmem>>, vector<1x16x128xf32>
    %329 = vector.shape_cast %328 : vector<1x16x128xf32> to vector<16x128xf32>
    %330 = vector.extract_strided_slice %329 {offsets = [2, 0], sizes = [1, 128], strides = [1, 1]} : vector<16x128xf32> to vector<1x128xf32>
    %331 = vector.broadcast %330 : vector<1x128xf32> to vector<16x128xf32>
    %332 = arith.mulf %331, %329 : vector<16x128xf32>
    %c1_187 = arith.constant 1 : index
    %c0_188 = arith.constant 0 : index
    %c0_189 = arith.constant 0 : index
    %333 = vector.load %arg4[%c1_187, %c0_188, %c0_189] : memref<16x16x128xf32, #tpu.memory_space<vmem>>, vector<1x16x128xf32>
    %334 = vector.shape_cast %333 : vector<1x16x128xf32> to vector<16x128xf32>
    %335 = vector.extract_strided_slice %334 {offsets = [2, 0], sizes = [1, 128], strides = [1, 1]} : vector<16x128xf32> to vector<1x128xf32>
    %336 = vector.broadcast %335 : vector<1x128xf32> to vector<16x128xf32>
    %337 = arith.mulf %336, %334 : vector<16x128xf32>
    %338 = arith.addf %332, %337 : vector<16x128xf32>
    %c2_190 = arith.constant 2 : index
    %c0_191 = arith.constant 0 : index
    %c0_192 = arith.constant 0 : index
    %339 = vector.load %arg4[%c2_190, %c0_191, %c0_192] : memref<16x16x128xf32, #tpu.memory_space<vmem>>, vector<1x16x128xf32>
    %340 = vector.shape_cast %339 : vector<1x16x128xf32> to vector<16x128xf32>
    %341 = vector.extract_strided_slice %340 {offsets = [2, 0], sizes = [1, 128], strides = [1, 1]} : vector<16x128xf32> to vector<1x128xf32>
    %342 = vector.broadcast %341 : vector<1x128xf32> to vector<16x128xf32>
    %343 = arith.mulf %342, %340 : vector<16x128xf32>
    %344 = arith.addf %338, %343 : vector<16x128xf32>
    %c3_193 = arith.constant 3 : index
    %c0_194 = arith.constant 0 : index
    %c0_195 = arith.constant 0 : index
    %345 = vector.load %arg4[%c3_193, %c0_194, %c0_195] : memref<16x16x128xf32, #tpu.memory_space<vmem>>, vector<1x16x128xf32>
    %346 = vector.shape_cast %345 : vector<1x16x128xf32> to vector<16x128xf32>
    %347 = vector.extract_strided_slice %346 {offsets = [2, 0], sizes = [1, 128], strides = [1, 1]} : vector<16x128xf32> to vector<1x128xf32>
    %348 = vector.broadcast %347 : vector<1x128xf32> to vector<16x128xf32>
    %349 = arith.mulf %348, %346 : vector<16x128xf32>
    %350 = arith.addf %344, %349 : vector<16x128xf32>
    %c4_196 = arith.constant 4 : index
    %c0_197 = arith.constant 0 : index
    %c0_198 = arith.constant 0 : index
    %351 = vector.load %arg4[%c4_196, %c0_197, %c0_198] : memref<16x16x128xf32, #tpu.memory_space<vmem>>, vector<1x16x128xf32>
    %352 = vector.shape_cast %351 : vector<1x16x128xf32> to vector<16x128xf32>
    %353 = vector.extract_strided_slice %352 {offsets = [2, 0], sizes = [1, 128], strides = [1, 1]} : vector<16x128xf32> to vector<1x128xf32>
    %354 = vector.broadcast %353 : vector<1x128xf32> to vector<16x128xf32>
    %355 = arith.mulf %354, %352 : vector<16x128xf32>
    %356 = arith.addf %350, %355 : vector<16x128xf32>
    %c5_199 = arith.constant 5 : index
    %c0_200 = arith.constant 0 : index
    %c0_201 = arith.constant 0 : index
    %357 = vector.load %arg4[%c5_199, %c0_200, %c0_201] : memref<16x16x128xf32, #tpu.memory_space<vmem>>, vector<1x16x128xf32>
    %358 = vector.shape_cast %357 : vector<1x16x128xf32> to vector<16x128xf32>
    %359 = vector.extract_strided_slice %358 {offsets = [2, 0], sizes = [1, 128], strides = [1, 1]} : vector<16x128xf32> to vector<1x128xf32>
    %360 = vector.broadcast %359 : vector<1x128xf32> to vector<16x128xf32>
    %361 = arith.mulf %360, %358 : vector<16x128xf32>
    %362 = arith.addf %356, %361 : vector<16x128xf32>
    %c6_202 = arith.constant 6 : index
    %c0_203 = arith.constant 0 : index
    %c0_204 = arith.constant 0 : index
    %363 = vector.load %arg4[%c6_202, %c0_203, %c0_204] : memref<16x16x128xf32, #tpu.memory_space<vmem>>, vector<1x16x128xf32>
    %364 = vector.shape_cast %363 : vector<1x16x128xf32> to vector<16x128xf32>
    %365 = vector.extract_strided_slice %364 {offsets = [2, 0], sizes = [1, 128], strides = [1, 1]} : vector<16x128xf32> to vector<1x128xf32>
    %366 = vector.broadcast %365 : vector<1x128xf32> to vector<16x128xf32>
    %367 = arith.mulf %366, %364 : vector<16x128xf32>
    %368 = arith.addf %362, %367 : vector<16x128xf32>
    %c7_205 = arith.constant 7 : index
    %c0_206 = arith.constant 0 : index
    %c0_207 = arith.constant 0 : index
    %369 = vector.load %arg4[%c7_205, %c0_206, %c0_207] : memref<16x16x128xf32, #tpu.memory_space<vmem>>, vector<1x16x128xf32>
    %370 = vector.shape_cast %369 : vector<1x16x128xf32> to vector<16x128xf32>
    %371 = vector.extract_strided_slice %370 {offsets = [2, 0], sizes = [1, 128], strides = [1, 1]} : vector<16x128xf32> to vector<1x128xf32>
    %372 = vector.broadcast %371 : vector<1x128xf32> to vector<16x128xf32>
    %373 = arith.mulf %372, %370 : vector<16x128xf32>
    %374 = arith.addf %368, %373 : vector<16x128xf32>
    %c8_208 = arith.constant 8 : index
    %c0_209 = arith.constant 0 : index
    %c0_210 = arith.constant 0 : index
    %375 = vector.load %arg4[%c8_208, %c0_209, %c0_210] : memref<16x16x128xf32, #tpu.memory_space<vmem>>, vector<1x16x128xf32>
    %376 = vector.shape_cast %375 : vector<1x16x128xf32> to vector<16x128xf32>
    %377 = vector.extract_strided_slice %376 {offsets = [2, 0], sizes = [1, 128], strides = [1, 1]} : vector<16x128xf32> to vector<1x128xf32>
    %378 = vector.broadcast %377 : vector<1x128xf32> to vector<16x128xf32>
    %379 = arith.mulf %378, %376 : vector<16x128xf32>
    %380 = arith.addf %374, %379 : vector<16x128xf32>
    %c9_211 = arith.constant 9 : index
    %c0_212 = arith.constant 0 : index
    %c0_213 = arith.constant 0 : index
    %381 = vector.load %arg4[%c9_211, %c0_212, %c0_213] : memref<16x16x128xf32, #tpu.memory_space<vmem>>, vector<1x16x128xf32>
    %382 = vector.shape_cast %381 : vector<1x16x128xf32> to vector<16x128xf32>
    %383 = vector.extract_strided_slice %382 {offsets = [2, 0], sizes = [1, 128], strides = [1, 1]} : vector<16x128xf32> to vector<1x128xf32>
    %384 = vector.broadcast %383 : vector<1x128xf32> to vector<16x128xf32>
    %385 = arith.mulf %384, %382 : vector<16x128xf32>
    %386 = arith.addf %380, %385 : vector<16x128xf32>
    %c10_214 = arith.constant 10 : index
    %c0_215 = arith.constant 0 : index
    %c0_216 = arith.constant 0 : index
    %387 = vector.load %arg4[%c10_214, %c0_215, %c0_216] : memref<16x16x128xf32, #tpu.memory_space<vmem>>, vector<1x16x128xf32>
    %388 = vector.shape_cast %387 : vector<1x16x128xf32> to vector<16x128xf32>
    %389 = vector.extract_strided_slice %388 {offsets = [2, 0], sizes = [1, 128], strides = [1, 1]} : vector<16x128xf32> to vector<1x128xf32>
    %390 = vector.broadcast %389 : vector<1x128xf32> to vector<16x128xf32>
    %391 = arith.mulf %390, %388 : vector<16x128xf32>
    %392 = arith.addf %386, %391 : vector<16x128xf32>
    %c11_217 = arith.constant 11 : index
    %c0_218 = arith.constant 0 : index
    %c0_219 = arith.constant 0 : index
    %393 = vector.load %arg4[%c11_217, %c0_218, %c0_219] : memref<16x16x128xf32, #tpu.memory_space<vmem>>, vector<1x16x128xf32>
    %394 = vector.shape_cast %393 : vector<1x16x128xf32> to vector<16x128xf32>
    %395 = vector.extract_strided_slice %394 {offsets = [2, 0], sizes = [1, 128], strides = [1, 1]} : vector<16x128xf32> to vector<1x128xf32>
    %396 = vector.broadcast %395 : vector<1x128xf32> to vector<16x128xf32>
    %397 = arith.mulf %396, %394 : vector<16x128xf32>
    %398 = arith.addf %392, %397 : vector<16x128xf32>
    %c12_220 = arith.constant 12 : index
    %c0_221 = arith.constant 0 : index
    %c0_222 = arith.constant 0 : index
    %399 = vector.load %arg4[%c12_220, %c0_221, %c0_222] : memref<16x16x128xf32, #tpu.memory_space<vmem>>, vector<1x16x128xf32>
    %400 = vector.shape_cast %399 : vector<1x16x128xf32> to vector<16x128xf32>
    %401 = vector.extract_strided_slice %400 {offsets = [2, 0], sizes = [1, 128], strides = [1, 1]} : vector<16x128xf32> to vector<1x128xf32>
    %402 = vector.broadcast %401 : vector<1x128xf32> to vector<16x128xf32>
    %403 = arith.mulf %402, %400 : vector<16x128xf32>
    %404 = arith.addf %398, %403 : vector<16x128xf32>
    %c13_223 = arith.constant 13 : index
    %c0_224 = arith.constant 0 : index
    %c0_225 = arith.constant 0 : index
    %405 = vector.load %arg4[%c13_223, %c0_224, %c0_225] : memref<16x16x128xf32, #tpu.memory_space<vmem>>, vector<1x16x128xf32>
    %406 = vector.shape_cast %405 : vector<1x16x128xf32> to vector<16x128xf32>
    %407 = vector.extract_strided_slice %406 {offsets = [2, 0], sizes = [1, 128], strides = [1, 1]} : vector<16x128xf32> to vector<1x128xf32>
    %408 = vector.broadcast %407 : vector<1x128xf32> to vector<16x128xf32>
    %409 = arith.mulf %408, %406 : vector<16x128xf32>
    %410 = arith.addf %404, %409 : vector<16x128xf32>
    %c14_226 = arith.constant 14 : index
    %c0_227 = arith.constant 0 : index
    %c0_228 = arith.constant 0 : index
    %411 = vector.load %arg4[%c14_226, %c0_227, %c0_228] : memref<16x16x128xf32, #tpu.memory_space<vmem>>, vector<1x16x128xf32>
    %412 = vector.shape_cast %411 : vector<1x16x128xf32> to vector<16x128xf32>
    %413 = vector.extract_strided_slice %412 {offsets = [2, 0], sizes = [1, 128], strides = [1, 1]} : vector<16x128xf32> to vector<1x128xf32>
    %414 = vector.broadcast %413 : vector<1x128xf32> to vector<16x128xf32>
    %415 = arith.mulf %414, %412 : vector<16x128xf32>
    %416 = arith.addf %410, %415 : vector<16x128xf32>
    %c15_229 = arith.constant 15 : index
    %c0_230 = arith.constant 0 : index
    %c0_231 = arith.constant 0 : index
    %417 = vector.load %arg4[%c15_229, %c0_230, %c0_231] : memref<16x16x128xf32, #tpu.memory_space<vmem>>, vector<1x16x128xf32>
    %418 = vector.shape_cast %417 : vector<1x16x128xf32> to vector<16x128xf32>
    %419 = vector.extract_strided_slice %418 {offsets = [2, 0], sizes = [1, 128], strides = [1, 1]} : vector<16x128xf32> to vector<1x128xf32>
    %420 = vector.broadcast %419 : vector<1x128xf32> to vector<16x128xf32>
    %421 = arith.mulf %420, %418 : vector<16x128xf32>
    %422 = arith.addf %416, %421 : vector<16x128xf32>
    %c2_232 = arith.constant 2 : index
    %c0_233 = arith.constant 0 : index
    %c0_234 = arith.constant 0 : index
    %423 = vector.load %arg3[%c2_232, %c0_233, %c0_234] : memref<16x16x128xf32, #tpu.memory_space<vmem>>, vector<1x16x128xf32>
    %424 = vector.shape_cast %423 : vector<1x16x128xf32> to vector<16x128xf32>
    %425 = vector.shape_cast %422 : vector<16x128xf32> to vector<1x16x128xf32>
    tpu.vector_store %arg3[%c2_232, %c0_233, %c0_234], %425 {strides = array<i32>} : memref<16x16x128xf32, #tpu.memory_space<vmem>>, vector<1x16x128xf32>,
    %c0_235 = arith.constant 0 : index
    %c0_236 = arith.constant 0 : index
    %c0_237 = arith.constant 0 : index
    %426 = vector.load %arg4[%c0_235, %c0_236, %c0_237] : memref<16x16x128xf32, #tpu.memory_space<vmem>>, vector<1x16x128xf32>
    %427 = vector.shape_cast %426 : vector<1x16x128xf32> to vector<16x128xf32>
    %428 = vector.extract_strided_slice %427 {offsets = [3, 0], sizes = [1, 128], strides = [1, 1]} : vector<16x128xf32> to vector<1x128xf32>
    %429 = vector.broadcast %428 : vector<1x128xf32> to vector<16x128xf32>
    %430 = arith.mulf %429, %427 : vector<16x128xf32>
    %c1_238 = arith.constant 1 : index
    %c0_239 = arith.constant 0 : index
    %c0_240 = arith.constant 0 : index
    %431 = vector.load %arg4[%c1_238, %c0_239, %c0_240] : memref<16x16x128xf32, #tpu.memory_space<vmem>>, vector<1x16x128xf32>
    %432 = vector.shape_cast %431 : vector<1x16x128xf32> to vector<16x128xf32>
    %433 = vector.extract_strided_slice %432 {offsets = [3, 0], sizes = [1, 128], strides = [1, 1]} : vector<16x128xf32> to vector<1x128xf32>
    %434 = vector.broadcast %433 : vector<1x128xf32> to vector<16x128xf32>
    %435 = arith.mulf %434, %432 : vector<16x128xf32>
    %436 = arith.addf %430, %435 : vector<16x128xf32>
    %c2_241 = arith.constant 2 : index
    %c0_242 = arith.constant 0 : index
    %c0_243 = arith.constant 0 : index
    %437 = vector.load %arg4[%c2_241, %c0_242, %c0_243] : memref<16x16x128xf32, #tpu.memory_space<vmem>>, vector<1x16x128xf32>
    %438 = vector.shape_cast %437 : vector<1x16x128xf32> to vector<16x128xf32>
    %439 = vector.extract_strided_slice %438 {offsets = [3, 0], sizes = [1, 128], strides = [1, 1]} : vector<16x128xf32> to vector<1x128xf32>
    %440 = vector.broadcast %439 : vector<1x128xf32> to vector<16x128xf32>
    %441 = arith.mulf %440, %438 : vector<16x128xf32>
    %442 = arith.addf %436, %441 : vector<16x128xf32>
    %c3_244 = arith.constant 3 : index
    %c0_245 = arith.constant 0 : index
    %c0_246 = arith.constant 0 : index
    %443 = vector.load %arg4[%c3_244, %c0_245, %c0_246] : memref<16x16x128xf32, #tpu.memory_space<vmem>>, vector<1x16x128xf32>
    %444 = vector.shape_cast %443 : vector<1x16x128xf32> to vector<16x128xf32>
    %445 = vector.extract_strided_slice %444 {offsets = [3, 0], sizes = [1, 128], strides = [1, 1]} : vector<16x128xf32> to vector<1x128xf32>
    %446 = vector.broadcast %445 : vector<1x128xf32> to vector<16x128xf32>
    %447 = arith.mulf %446, %444 : vector<16x128xf32>
    %448 = arith.addf %442, %447 : vector<16x128xf32>
    %c4_247 = arith.constant 4 : index
    %c0_248 = arith.constant 0 : index
    %c0_249 = arith.constant 0 : index
    %449 = vector.load %arg4[%c4_247, %c0_248, %c0_249] : memref<16x16x128xf32, #tpu.memory_space<vmem>>, vector<1x16x128xf32>
    %450 = vector.shape_cast %449 : vector<1x16x128xf32> to vector<16x128xf32>
    %451 = vector.extract_strided_slice %450 {offsets = [3, 0], sizes = [1, 128], strides = [1, 1]} : vector<16x128xf32> to vector<1x128xf32>
    %452 = vector.broadcast %451 : vector<1x128xf32> to vector<16x128xf32>
    %453 = arith.mulf %452, %450 : vector<16x128xf32>
    %454 = arith.addf %448, %453 : vector<16x128xf32>
    %c5_250 = arith.constant 5 : index
    %c0_251 = arith.constant 0 : index
    %c0_252 = arith.constant 0 : index
    %455 = vector.load %arg4[%c5_250, %c0_251, %c0_252] : memref<16x16x128xf32, #tpu.memory_space<vmem>>, vector<1x16x128xf32>
    %456 = vector.shape_cast %455 : vector<1x16x128xf32> to vector<16x128xf32>
    %457 = vector.extract_strided_slice %456 {offsets = [3, 0], sizes = [1, 128], strides = [1, 1]} : vector<16x128xf32> to vector<1x128xf32>
    %458 = vector.broadcast %457 : vector<1x128xf32> to vector<16x128xf32>
    %459 = arith.mulf %458, %456 : vector<16x128xf32>
    %460 = arith.addf %454, %459 : vector<16x128xf32>
    %c6_253 = arith.constant 6 : index
    %c0_254 = arith.constant 0 : index
    %c0_255 = arith.constant 0 : index
    %461 = vector.load %arg4[%c6_253, %c0_254, %c0_255] : memref<16x16x128xf32, #tpu.memory_space<vmem>>, vector<1x16x128xf32>
    %462 = vector.shape_cast %461 : vector<1x16x128xf32> to vector<16x128xf32>
    %463 = vector.extract_strided_slice %462 {offsets = [3, 0], sizes = [1, 128], strides = [1, 1]} : vector<16x128xf32> to vector<1x128xf32>
    %464 = vector.broadcast %463 : vector<1x128xf32> to vector<16x128xf32>
    %465 = arith.mulf %464, %462 : vector<16x128xf32>
    %466 = arith.addf %460, %465 : vector<16x128xf32>
    %c7_256 = arith.constant 7 : index
    %c0_257 = arith.constant 0 : index
    %c0_258 = arith.constant 0 : index
    %467 = vector.load %arg4[%c7_256, %c0_257, %c0_258] : memref<16x16x128xf32, #tpu.memory_space<vmem>>, vector<1x16x128xf32>
    %468 = vector.shape_cast %467 : vector<1x16x128xf32> to vector<16x128xf32>
    %469 = vector.extract_strided_slice %468 {offsets = [3, 0], sizes = [1, 128], strides = [1, 1]} : vector<16x128xf32> to vector<1x128xf32>
    %470 = vector.broadcast %469 : vector<1x128xf32> to vector<16x128xf32>
    %471 = arith.mulf %470, %468 : vector<16x128xf32>
    %472 = arith.addf %466, %471 : vector<16x128xf32>
    %c8_259 = arith.constant 8 : index
    %c0_260 = arith.constant 0 : index
    %c0_261 = arith.constant 0 : index
    %473 = vector.load %arg4[%c8_259, %c0_260, %c0_261] : memref<16x16x128xf32, #tpu.memory_space<vmem>>, vector<1x16x128xf32>
    %474 = vector.shape_cast %473 : vector<1x16x128xf32> to vector<16x128xf32>
    %475 = vector.extract_strided_slice %474 {offsets = [3, 0], sizes = [1, 128], strides = [1, 1]} : vector<16x128xf32> to vector<1x128xf32>
    %476 = vector.broadcast %475 : vector<1x128xf32> to vector<16x128xf32>
    %477 = arith.mulf %476, %474 : vector<16x128xf32>
    %478 = arith.addf %472, %477 : vector<16x128xf32>
    %c9_262 = arith.constant 9 : index
    %c0_263 = arith.constant 0 : index
    %c0_264 = arith.constant 0 : index
    %479 = vector.load %arg4[%c9_262, %c0_263, %c0_264] : memref<16x16x128xf32, #tpu.memory_space<vmem>>, vector<1x16x128xf32>
    %480 = vector.shape_cast %479 : vector<1x16x128xf32> to vector<16x128xf32>
    %481 = vector.extract_strided_slice %480 {offsets = [3, 0], sizes = [1, 128], strides = [1, 1]} : vector<16x128xf32> to vector<1x128xf32>
    %482 = vector.broadcast %481 : vector<1x128xf32> to vector<16x128xf32>
    %483 = arith.mulf %482, %480 : vector<16x128xf32>
    %484 = arith.addf %478, %483 : vector<16x128xf32>
    %c10_265 = arith.constant 10 : index
    %c0_266 = arith.constant 0 : index
    %c0_267 = arith.constant 0 : index
    %485 = vector.load %arg4[%c10_265, %c0_266, %c0_267] : memref<16x16x128xf32, #tpu.memory_space<vmem>>, vector<1x16x128xf32>
    %486 = vector.shape_cast %485 : vector<1x16x128xf32> to vector<16x128xf32>
    %487 = vector.extract_strided_slice %486 {offsets = [3, 0], sizes = [1, 128], strides = [1, 1]} : vector<16x128xf32> to vector<1x128xf32>
    %488 = vector.broadcast %487 : vector<1x128xf32> to vector<16x128xf32>
    %489 = arith.mulf %488, %486 : vector<16x128xf32>
    %490 = arith.addf %484, %489 : vector<16x128xf32>
    %c11_268 = arith.constant 11 : index
    %c0_269 = arith.constant 0 : index
    %c0_270 = arith.constant 0 : index
    %491 = vector.load %arg4[%c11_268, %c0_269, %c0_270] : memref<16x16x128xf32, #tpu.memory_space<vmem>>, vector<1x16x128xf32>
    %492 = vector.shape_cast %491 : vector<1x16x128xf32> to vector<16x128xf32>
    %493 = vector.extract_strided_slice %492 {offsets = [3, 0], sizes = [1, 128], strides = [1, 1]} : vector<16x128xf32> to vector<1x128xf32>
    %494 = vector.broadcast %493 : vector<1x128xf32> to vector<16x128xf32>
    %495 = arith.mulf %494, %492 : vector<16x128xf32>
    %496 = arith.addf %490, %495 : vector<16x128xf32>
    %c12_271 = arith.constant 12 : index
    %c0_272 = arith.constant 0 : index
    %c0_273 = arith.constant 0 : index
    %497 = vector.load %arg4[%c12_271, %c0_272, %c0_273] : memref<16x16x128xf32, #tpu.memory_space<vmem>>, vector<1x16x128xf32>
    %498 = vector.shape_cast %497 : vector<1x16x128xf32> to vector<16x128xf32>
    %499 = vector.extract_strided_slice %498 {offsets = [3, 0], sizes = [1, 128], strides = [1, 1]} : vector<16x128xf32> to vector<1x128xf32>
    %500 = vector.broadcast %499 : vector<1x128xf32> to vector<16x128xf32>
    %501 = arith.mulf %500, %498 : vector<16x128xf32>
    %502 = arith.addf %496, %501 : vector<16x128xf32>
    %c13_274 = arith.constant 13 : index
    %c0_275 = arith.constant 0 : index
    %c0_276 = arith.constant 0 : index
    %503 = vector.load %arg4[%c13_274, %c0_275, %c0_276] : memref<16x16x128xf32, #tpu.memory_space<vmem>>, vector<1x16x128xf32>
    %504 = vector.shape_cast %503 : vector<1x16x128xf32> to vector<16x128xf32>
    %505 = vector.extract_strided_slice %504 {offsets = [3, 0], sizes = [1, 128], strides = [1, 1]} : vector<16x128xf32> to vector<1x128xf32>
    %506 = vector.broadcast %505 : vector<1x128xf32> to vector<16x128xf32>
    %507 = arith.mulf %506, %504 : vector<16x128xf32>
    %508 = arith.addf %502, %507 : vector<16x128xf32>
    %c14_277 = arith.constant 14 : index
    %c0_278 = arith.constant 0 : index
    %c0_279 = arith.constant 0 : index
    %509 = vector.load %arg4[%c14_277, %c0_278, %c0_279] : memref<16x16x128xf32, #tpu.memory_space<vmem>>, vector<1x16x128xf32>
    %510 = vector.shape_cast %509 : vector<1x16x128xf32> to vector<16x128xf32>
    %511 = vector.extract_strided_slice %510 {offsets = [3, 0], sizes = [1, 128], strides = [1, 1]} : vector<16x128xf32> to vector<1x128xf32>
    %512 = vector.broadcast %511 : vector<1x128xf32> to vector<16x128xf32>
    %513 = arith.mulf %512, %510 : vector<16x128xf32>
    %514 = arith.addf %508, %513 : vector<16x128xf32>
    %c15_280 = arith.constant 15 : index
    %c0_281 = arith.constant 0 : index
    %c0_282 = arith.constant 0 : index
    %515 = vector.load %arg4[%c15_280, %c0_281, %c0_282] : memref<16x16x128xf32, #tpu.memory_space<vmem>>, vector<1x16x128xf32>
    %516 = vector.shape_cast %515 : vector<1x16x128xf32> to vector<16x128xf32>
    %517 = vector.extract_strided_slice %516 {offsets = [3, 0], sizes = [1, 128], strides = [1, 1]} : vector<16x128xf32> to vector<1x128xf32>
    %518 = vector.broadcast %517 : vector<1x128xf32> to vector<16x128xf32>
    %519 = arith.mulf %518, %516 : vector<16x128xf32>
    %520 = arith.addf %514, %519 : vector<16x128xf32>
    %c3_283 = arith.constant 3 : index
    %c0_284 = arith.constant 0 : index
    %c0_285 = arith.constant 0 : index
    %521 = vector.load %arg3[%c3_283, %c0_284, %c0_285] : memref<16x16x128xf32, #tpu.memory_space<vmem>>, vector<1x16x128xf32>
    %522 = vector.shape_cast %521 : vector<1x16x128xf32> to vector<16x128xf32>
    %523 = vector.shape_cast %520 : vector<16x128xf32> to vector<1x16x128xf32>
    tpu.vector_store %arg3[%c3_283, %c0_284, %c0_285], %523 {strides = array<i32>} : memref<16x16x128xf32, #tpu.memory_space<vmem>>, vector<1x16x128xf32>,
    %c0_286 = arith.constant 0 : index
    %c0_287 = arith.constant 0 : index
    %c0_288 = arith.constant 0 : index
    %524 = vector.load %arg4[%c0_286, %c0_287, %c0_288] : memref<16x16x128xf32, #tpu.memory_space<vmem>>, vector<1x16x128xf32>
    %525 = vector.shape_cast %524 : vector<1x16x128xf32> to vector<16x128xf32>
    %526 = vector.extract_strided_slice %525 {offsets = [4, 0], sizes = [1, 128], strides = [1, 1]} : vector<16x128xf32> to vector<1x128xf32>
    %527 = vector.broadcast %526 : vector<1x128xf32> to vector<16x128xf32>
    %528 = arith.mulf %527, %525 : vector<16x128xf32>
    %c1_289 = arith.constant 1 : index
    %c0_290 = arith.constant 0 : index
    %c0_291 = arith.constant 0 : index
    %529 = vector.load %arg4[%c1_289, %c0_290, %c0_291] : memref<16x16x128xf32, #tpu.memory_space<vmem>>, vector<1x16x128xf32>
    %530 = vector.shape_cast %529 : vector<1x16x128xf32> to vector<16x128xf32>
    %531 = vector.extract_strided_slice %530 {offsets = [4, 0], sizes = [1, 128], strides = [1, 1]} : vector<16x128xf32> to vector<1x128xf32>
    %532 = vector.broadcast %531 : vector<1x128xf32> to vector<16x128xf32>
    %533 = arith.mulf %532, %530 : vector<16x128xf32>
    %534 = arith.addf %528, %533 : vector<16x128xf32>
    %c2_292 = arith.constant 2 : index
    %c0_293 = arith.constant 0 : index
    %c0_294 = arith.constant 0 : index
    %535 = vector.load %arg4[%c2_292, %c0_293, %c0_294] : memref<16x16x128xf32, #tpu.memory_space<vmem>>, vector<1x16x128xf32>
    %536 = vector.shape_cast %535 : vector<1x16x128xf32> to vector<16x128xf32>
    %537 = vector.extract_strided_slice %536 {offsets = [4, 0], sizes = [1, 128], strides = [1, 1]} : vector<16x128xf32> to vector<1x128xf32>
    %538 = vector.broadcast %537 : vector<1x128xf32> to vector<16x128xf32>
    %539 = arith.mulf %538, %536 : vector<16x128xf32>
    %540 = arith.addf %534, %539 : vector<16x128xf32>
    %c3_295 = arith.constant 3 : index
    %c0_296 = arith.constant 0 : index
    %c0_297 = arith.constant 0 : index
    %541 = vector.load %arg4[%c3_295, %c0_296, %c0_297] : memref<16x16x128xf32, #tpu.memory_space<vmem>>, vector<1x16x128xf32>
    %542 = vector.shape_cast %541 : vector<1x16x128xf32> to vector<16x128xf32>
    %543 = vector.extract_strided_slice %542 {offsets = [4, 0], sizes = [1, 128], strides = [1, 1]} : vector<16x128xf32> to vector<1x128xf32>
    %544 = vector.broadcast %543 : vector<1x128xf32> to vector<16x128xf32>
    %545 = arith.mulf %544, %542 : vector<16x128xf32>
    %546 = arith.addf %540, %545 : vector<16x128xf32>
    %c4_298 = arith.constant 4 : index
    %c0_299 = arith.constant 0 : index
    %c0_300 = arith.constant 0 : index
    %547 = vector.load %arg4[%c4_298, %c0_299, %c0_300] : memref<16x16x128xf32, #tpu.memory_space<vmem>>, vector<1x16x128xf32>
    %548 = vector.shape_cast %547 : vector<1x16x128xf32> to vector<16x128xf32>
    %549 = vector.extract_strided_slice %548 {offsets = [4, 0], sizes = [1, 128], strides = [1, 1]} : vector<16x128xf32> to vector<1x128xf32>
    %550 = vector.broadcast %549 : vector<1x128xf32> to vector<16x128xf32>
    %551 = arith.mulf %550, %548 : vector<16x128xf32>
    %552 = arith.addf %546, %551 : vector<16x128xf32>
    %c5_301 = arith.constant 5 : index
    %c0_302 = arith.constant 0 : index
    %c0_303 = arith.constant 0 : index
    %553 = vector.load %arg4[%c5_301, %c0_302, %c0_303] : memref<16x16x128xf32, #tpu.memory_space<vmem>>, vector<1x16x128xf32>
    %554 = vector.shape_cast %553 : vector<1x16x128xf32> to vector<16x128xf32>
    %555 = vector.extract_strided_slice %554 {offsets = [4, 0], sizes = [1, 128], strides = [1, 1]} : vector<16x128xf32> to vector<1x128xf32>
    %556 = vector.broadcast %555 : vector<1x128xf32> to vector<16x128xf32>
    %557 = arith.mulf %556, %554 : vector<16x128xf32>
    %558 = arith.addf %552, %557 : vector<16x128xf32>
    %c6_304 = arith.constant 6 : index
    %c0_305 = arith.constant 0 : index
    %c0_306 = arith.constant 0 : index
    %559 = vector.load %arg4[%c6_304, %c0_305, %c0_306] : memref<16x16x128xf32, #tpu.memory_space<vmem>>, vector<1x16x128xf32>
    %560 = vector.shape_cast %559 : vector<1x16x128xf32> to vector<16x128xf32>
    %561 = vector.extract_strided_slice %560 {offsets = [4, 0], sizes = [1, 128], strides = [1, 1]} : vector<16x128xf32> to vector<1x128xf32>
    %562 = vector.broadcast %561 : vector<1x128xf32> to vector<16x128xf32>
    %563 = arith.mulf %562, %560 : vector<16x128xf32>
    %564 = arith.addf %558, %563 : vector<16x128xf32>
    %c7_307 = arith.constant 7 : index
    %c0_308 = arith.constant 0 : index
    %c0_309 = arith.constant 0 : index
    %565 = vector.load %arg4[%c7_307, %c0_308, %c0_309] : memref<16x16x128xf32, #tpu.memory_space<vmem>>, vector<1x16x128xf32>
    %566 = vector.shape_cast %565 : vector<1x16x128xf32> to vector<16x128xf32>
    %567 = vector.extract_strided_slice %566 {offsets = [4, 0], sizes = [1, 128], strides = [1, 1]} : vector<16x128xf32> to vector<1x128xf32>
    %568 = vector.broadcast %567 : vector<1x128xf32> to vector<16x128xf32>
    %569 = arith.mulf %568, %566 : vector<16x128xf32>
    %570 = arith.addf %564, %569 : vector<16x128xf32>
    %c8_310 = arith.constant 8 : index
    %c0_311 = arith.constant 0 : index
    %c0_312 = arith.constant 0 : index
    %571 = vector.load %arg4[%c8_310, %c0_311, %c0_312] : memref<16x16x128xf32, #tpu.memory_space<vmem>>, vector<1x16x128xf32>
    %572 = vector.shape_cast %571 : vector<1x16x128xf32> to vector<16x128xf32>
    %573 = vector.extract_strided_slice %572 {offsets = [4, 0], sizes = [1, 128], strides = [1, 1]} : vector<16x128xf32> to vector<1x128xf32>
    %574 = vector.broadcast %573 : vector<1x128xf32> to vector<16x128xf32>
    %575 = arith.mulf %574, %572 : vector<16x128xf32>
    %576 = arith.addf %570, %575 : vector<16x128xf32>
    %c9_313 = arith.constant 9 : index
    %c0_314 = arith.constant 0 : index
    %c0_315 = arith.constant 0 : index
    %577 = vector.load %arg4[%c9_313, %c0_314, %c0_315] : memref<16x16x128xf32, #tpu.memory_space<vmem>>, vector<1x16x128xf32>
    %578 = vector.shape_cast %577 : vector<1x16x128xf32> to vector<16x128xf32>
    %579 = vector.extract_strided_slice %578 {offsets = [4, 0], sizes = [1, 128], strides = [1, 1]} : vector<16x128xf32> to vector<1x128xf32>
    %580 = vector.broadcast %579 : vector<1x128xf32> to vector<16x128xf32>
    %581 = arith.mulf %580, %578 : vector<16x128xf32>
    %582 = arith.addf %576, %581 : vector<16x128xf32>
    %c10_316 = arith.constant 10 : index
    %c0_317 = arith.constant 0 : index
    %c0_318 = arith.constant 0 : index
    %583 = vector.load %arg4[%c10_316, %c0_317, %c0_318] : memref<16x16x128xf32, #tpu.memory_space<vmem>>, vector<1x16x128xf32>
    %584 = vector.shape_cast %583 : vector<1x16x128xf32> to vector<16x128xf32>
    %585 = vector.extract_strided_slice %584 {offsets = [4, 0], sizes = [1, 128], strides = [1, 1]} : vector<16x128xf32> to vector<1x128xf32>
    %586 = vector.broadcast %585 : vector<1x128xf32> to vector<16x128xf32>
    %587 = arith.mulf %586, %584 : vector<16x128xf32>
    %588 = arith.addf %582, %587 : vector<16x128xf32>
    %c11_319 = arith.constant 11 : index
    %c0_320 = arith.constant 0 : index
    %c0_321 = arith.constant 0 : index
    %589 = vector.load %arg4[%c11_319, %c0_320, %c0_321] : memref<16x16x128xf32, #tpu.memory_space<vmem>>, vector<1x16x128xf32>
    %590 = vector.shape_cast %589 : vector<1x16x128xf32> to vector<16x128xf32>
    %591 = vector.extract_strided_slice %590 {offsets = [4, 0], sizes = [1, 128], strides = [1, 1]} : vector<16x128xf32> to vector<1x128xf32>
    %592 = vector.broadcast %591 : vector<1x128xf32> to vector<16x128xf32>
    %593 = arith.mulf %592, %590 : vector<16x128xf32>
    %594 = arith.addf %588, %593 : vector<16x128xf32>
    %c12_322 = arith.constant 12 : index
    %c0_323 = arith.constant 0 : index
    %c0_324 = arith.constant 0 : index
    %595 = vector.load %arg4[%c12_322, %c0_323, %c0_324] : memref<16x16x128xf32, #tpu.memory_space<vmem>>, vector<1x16x128xf32>
    %596 = vector.shape_cast %595 : vector<1x16x128xf32> to vector<16x128xf32>
    %597 = vector.extract_strided_slice %596 {offsets = [4, 0], sizes = [1, 128], strides = [1, 1]} : vector<16x128xf32> to vector<1x128xf32>
    %598 = vector.broadcast %597 : vector<1x128xf32> to vector<16x128xf32>
    %599 = arith.mulf %598, %596 : vector<16x128xf32>
    %600 = arith.addf %594, %599 : vector<16x128xf32>
    %c13_325 = arith.constant 13 : index
    %c0_326 = arith.constant 0 : index
    %c0_327 = arith.constant 0 : index
    %601 = vector.load %arg4[%c13_325, %c0_326, %c0_327] : memref<16x16x128xf32, #tpu.memory_space<vmem>>, vector<1x16x128xf32>
    %602 = vector.shape_cast %601 : vector<1x16x128xf32> to vector<16x128xf32>
    %603 = vector.extract_strided_slice %602 {offsets = [4, 0], sizes = [1, 128], strides = [1, 1]} : vector<16x128xf32> to vector<1x128xf32>
    %604 = vector.broadcast %603 : vector<1x128xf32> to vector<16x128xf32>
    %605 = arith.mulf %604, %602 : vector<16x128xf32>
    %606 = arith.addf %600, %605 : vector<16x128xf32>
    %c14_328 = arith.constant 14 : index
    %c0_329 = arith.constant 0 : index
    %c0_330 = arith.constant 0 : index
    %607 = vector.load %arg4[%c14_328, %c0_329, %c0_330] : memref<16x16x128xf32, #tpu.memory_space<vmem>>, vector<1x16x128xf32>
    %608 = vector.shape_cast %607 : vector<1x16x128xf32> to vector<16x128xf32>
    %609 = vector.extract_strided_slice %608 {offsets = [4, 0], sizes = [1, 128], strides = [1, 1]} : vector<16x128xf32> to vector<1x128xf32>
    %610 = vector.broadcast %609 : vector<1x128xf32> to vector<16x128xf32>
    %611 = arith.mulf %610, %608 : vector<16x128xf32>
    %612 = arith.addf %606, %611 : vector<16x128xf32>
    %c15_331 = arith.constant 15 : index
    %c0_332 = arith.constant 0 : index
    %c0_333 = arith.constant 0 : index
    %613 = vector.load %arg4[%c15_331, %c0_332, %c0_333] : memref<16x16x128xf32, #tpu.memory_space<vmem>>, vector<1x16x128xf32>
    %614 = vector.shape_cast %613 : vector<1x16x128xf32> to vector<16x128xf32>
    %615 = vector.extract_strided_slice %614 {offsets = [4, 0], sizes = [1, 128], strides = [1, 1]} : vector<16x128xf32> to vector<1x128xf32>
    %616 = vector.broadcast %615 : vector<1x128xf32> to vector<16x128xf32>
    %617 = arith.mulf %616, %614 : vector<16x128xf32>
    %618 = arith.addf %612, %617 : vector<16x128xf32>
    %c4_334 = arith.constant 4 : index
    %c0_335 = arith.constant 0 : index
    %c0_336 = arith.constant 0 : index
    %619 = vector.load %arg3[%c4_334, %c0_335, %c0_336] : memref<16x16x128xf32, #tpu.memory_space<vmem>>, vector<1x16x128xf32>
    %620 = vector.shape_cast %619 : vector<1x16x128xf32> to vector<16x128xf32>
    %621 = vector.shape_cast %618 : vector<16x128xf32> to vector<1x16x128xf32>
    tpu.vector_store %arg3[%c4_334, %c0_335, %c0_336], %621 {strides = array<i32>} : memref<16x16x128xf32, #tpu.memory_space<vmem>>, vector<1x16x128xf32>,
    %c0_337 = arith.constant 0 : index
    %c0_338 = arith.constant 0 : index
    %c0_339 = arith.constant 0 : index
    %622 = vector.load %arg4[%c0_337, %c0_338, %c0_339] : memref<16x16x128xf32, #tpu.memory_space<vmem>>, vector<1x16x128xf32>
    %623 = vector.shape_cast %622 : vector<1x16x128xf32> to vector<16x128xf32>
    %624 = vector.extract_strided_slice %623 {offsets = [5, 0], sizes = [1, 128], strides = [1, 1]} : vector<16x128xf32> to vector<1x128xf32>
    %625 = vector.broadcast %624 : vector<1x128xf32> to vector<16x128xf32>
    %626 = arith.mulf %625, %623 : vector<16x128xf32>
    %c1_340 = arith.constant 1 : index
    %c0_341 = arith.constant 0 : index
    %c0_342 = arith.constant 0 : index
    %627 = vector.load %arg4[%c1_340, %c0_341, %c0_342] : memref<16x16x128xf32, #tpu.memory_space<vmem>>, vector<1x16x128xf32>
    %628 = vector.shape_cast %627 : vector<1x16x128xf32> to vector<16x128xf32>
    %629 = vector.extract_strided_slice %628 {offsets = [5, 0], sizes = [1, 128], strides = [1, 1]} : vector<16x128xf32> to vector<1x128xf32>
    %630 = vector.broadcast %629 : vector<1x128xf32> to vector<16x128xf32>
    %631 = arith.mulf %630, %628 : vector<16x128xf32>
    %632 = arith.addf %626, %631 : vector<16x128xf32>
    %c2_343 = arith.constant 2 : index
    %c0_344 = arith.constant 0 : index
    %c0_345 = arith.constant 0 : index
    %633 = vector.load %arg4[%c2_343, %c0_344, %c0_345] : memref<16x16x128xf32, #tpu.memory_space<vmem>>, vector<1x16x128xf32>
    %634 = vector.shape_cast %633 : vector<1x16x128xf32> to vector<16x128xf32>
    %635 = vector.extract_strided_slice %634 {offsets = [5, 0], sizes = [1, 128], strides = [1, 1]} : vector<16x128xf32> to vector<1x128xf32>
    %636 = vector.broadcast %635 : vector<1x128xf32> to vector<16x128xf32>
    %637 = arith.mulf %636, %634 : vector<16x128xf32>
    %638 = arith.addf %632, %637 : vector<16x128xf32>
    %c3_346 = arith.constant 3 : index
    %c0_347 = arith.constant 0 : index
    %c0_348 = arith.constant 0 : index
    %639 = vector.load %arg4[%c3_346, %c0_347, %c0_348] : memref<16x16x128xf32, #tpu.memory_space<vmem>>, vector<1x16x128xf32>
    %640 = vector.shape_cast %639 : vector<1x16x128xf32> to vector<16x128xf32>
    %641 = vector.extract_strided_slice %640 {offsets = [5, 0], sizes = [1, 128], strides = [1, 1]} : vector<16x128xf32> to vector<1x128xf32>
    %642 = vector.broadcast %641 : vector<1x128xf32> to vector<16x128xf32>
    %643 = arith.mulf %642, %640 : vector<16x128xf32>
    %644 = arith.addf %638, %643 : vector<16x128xf32>
    %c4_349 = arith.constant 4 : index
    %c0_350 = arith.constant 0 : index
    %c0_351 = arith.constant 0 : index
    %645 = vector.load %arg4[%c4_349, %c0_350, %c0_351] : memref<16x16x128xf32, #tpu.memory_space<vmem>>, vector<1x16x128xf32>
    %646 = vector.shape_cast %645 : vector<1x16x128xf32> to vector<16x128xf32>
    %647 = vector.extract_strided_slice %646 {offsets = [5, 0], sizes = [1, 128], strides = [1, 1]} : vector<16x128xf32> to vector<1x128xf32>
    %648 = vector.broadcast %647 : vector<1x128xf32> to vector<16x128xf32>
    %649 = arith.mulf %648, %646 : vector<16x128xf32>
    %650 = arith.addf %644, %649 : vector<16x128xf32>
    %c5_352 = arith.constant 5 : index
    %c0_353 = arith.constant 0 : index
    %c0_354 = arith.constant 0 : index
    %651 = vector.load %arg4[%c5_352, %c0_353, %c0_354] : memref<16x16x128xf32, #tpu.memory_space<vmem>>, vector<1x16x128xf32>
    %652 = vector.shape_cast %651 : vector<1x16x128xf32> to vector<16x128xf32>
    %653 = vector.extract_strided_slice %652 {offsets = [5, 0], sizes = [1, 128], strides = [1, 1]} : vector<16x128xf32> to vector<1x128xf32>
    %654 = vector.broadcast %653 : vector<1x128xf32> to vector<16x128xf32>
    %655 = arith.mulf %654, %652 : vector<16x128xf32>
    %656 = arith.addf %650, %655 : vector<16x128xf32>
    %c6_355 = arith.constant 6 : index
    %c0_356 = arith.constant 0 : index
    %c0_357 = arith.constant 0 : index
    %657 = vector.load %arg4[%c6_355, %c0_356, %c0_357] : memref<16x16x128xf32, #tpu.memory_space<vmem>>, vector<1x16x128xf32>
    %658 = vector.shape_cast %657 : vector<1x16x128xf32> to vector<16x128xf32>
    %659 = vector.extract_strided_slice %658 {offsets = [5, 0], sizes = [1, 128], strides = [1, 1]} : vector<16x128xf32> to vector<1x128xf32>
    %660 = vector.broadcast %659 : vector<1x128xf32> to vector<16x128xf32>
    %661 = arith.mulf %660, %658 : vector<16x128xf32>
    %662 = arith.addf %656, %661 : vector<16x128xf32>
    %c7_358 = arith.constant 7 : index
    %c0_359 = arith.constant 0 : index
    %c0_360 = arith.constant 0 : index
    %663 = vector.load %arg4[%c7_358, %c0_359, %c0_360] : memref<16x16x128xf32, #tpu.memory_space<vmem>>, vector<1x16x128xf32>
    %664 = vector.shape_cast %663 : vector<1x16x128xf32> to vector<16x128xf32>
    %665 = vector.extract_strided_slice %664 {offsets = [5, 0], sizes = [1, 128], strides = [1, 1]} : vector<16x128xf32> to vector<1x128xf32>
    %666 = vector.broadcast %665 : vector<1x128xf32> to vector<16x128xf32>
    %667 = arith.mulf %666, %664 : vector<16x128xf32>
    %668 = arith.addf %662, %667 : vector<16x128xf32>
    %c8_361 = arith.constant 8 : index
    %c0_362 = arith.constant 0 : index
    %c0_363 = arith.constant 0 : index
    %669 = vector.load %arg4[%c8_361, %c0_362, %c0_363] : memref<16x16x128xf32, #tpu.memory_space<vmem>>, vector<1x16x128xf32>
    %670 = vector.shape_cast %669 : vector<1x16x128xf32> to vector<16x128xf32>
    %671 = vector.extract_strided_slice %670 {offsets = [5, 0], sizes = [1, 128], strides = [1, 1]} : vector<16x128xf32> to vector<1x128xf32>
    %672 = vector.broadcast %671 : vector<1x128xf32> to vector<16x128xf32>
    %673 = arith.mulf %672, %670 : vector<16x128xf32>
    %674 = arith.addf %668, %673 : vector<16x128xf32>
    %c9_364 = arith.constant 9 : index
    %c0_365 = arith.constant 0 : index
    %c0_366 = arith.constant 0 : index
    %675 = vector.load %arg4[%c9_364, %c0_365, %c0_366] : memref<16x16x128xf32, #tpu.memory_space<vmem>>, vector<1x16x128xf32>
    %676 = vector.shape_cast %675 : vector<1x16x128xf32> to vector<16x128xf32>
    %677 = vector.extract_strided_slice %676 {offsets = [5, 0], sizes = [1, 128], strides = [1, 1]} : vector<16x128xf32> to vector<1x128xf32>
    %678 = vector.broadcast %677 : vector<1x128xf32> to vector<16x128xf32>
    %679 = arith.mulf %678, %676 : vector<16x128xf32>
    %680 = arith.addf %674, %679 : vector<16x128xf32>
    %c10_367 = arith.constant 10 : index
    %c0_368 = arith.constant 0 : index
    %c0_369 = arith.constant 0 : index
    %681 = vector.load %arg4[%c10_367, %c0_368, %c0_369] : memref<16x16x128xf32, #tpu.memory_space<vmem>>, vector<1x16x128xf32>
    %682 = vector.shape_cast %681 : vector<1x16x128xf32> to vector<16x128xf32>
    %683 = vector.extract_strided_slice %682 {offsets = [5, 0], sizes = [1, 128], strides = [1, 1]} : vector<16x128xf32> to vector<1x128xf32>
    %684 = vector.broadcast %683 : vector<1x128xf32> to vector<16x128xf32>
    %685 = arith.mulf %684, %682 : vector<16x128xf32>
    %686 = arith.addf %680, %685 : vector<16x128xf32>
    %c11_370 = arith.constant 11 : index
    %c0_371 = arith.constant 0 : index
    %c0_372 = arith.constant 0 : index
    %687 = vector.load %arg4[%c11_370, %c0_371, %c0_372] : memref<16x16x128xf32, #tpu.memory_space<vmem>>, vector<1x16x128xf32>
    %688 = vector.shape_cast %687 : vector<1x16x128xf32> to vector<16x128xf32>
    %689 = vector.extract_strided_slice %688 {offsets = [5, 0], sizes = [1, 128], strides = [1, 1]} : vector<16x128xf32> to vector<1x128xf32>
    %690 = vector.broadcast %689 : vector<1x128xf32> to vector<16x128xf32>
    %691 = arith.mulf %690, %688 : vector<16x128xf32>
    %692 = arith.addf %686, %691 : vector<16x128xf32>
    %c12_373 = arith.constant 12 : index
    %c0_374 = arith.constant 0 : index
    %c0_375 = arith.constant 0 : index
    %693 = vector.load %arg4[%c12_373, %c0_374, %c0_375] : memref<16x16x128xf32, #tpu.memory_space<vmem>>, vector<1x16x128xf32>
    %694 = vector.shape_cast %693 : vector<1x16x128xf32> to vector<16x128xf32>
    %695 = vector.extract_strided_slice %694 {offsets = [5, 0], sizes = [1, 128], strides = [1, 1]} : vector<16x128xf32> to vector<1x128xf32>
    %696 = vector.broadcast %695 : vector<1x128xf32> to vector<16x128xf32>
    %697 = arith.mulf %696, %694 : vector<16x128xf32>
    %698 = arith.addf %692, %697 : vector<16x128xf32>
    %c13_376 = arith.constant 13 : index
    %c0_377 = arith.constant 0 : index
    %c0_378 = arith.constant 0 : index
    %699 = vector.load %arg4[%c13_376, %c0_377, %c0_378] : memref<16x16x128xf32, #tpu.memory_space<vmem>>, vector<1x16x128xf32>
    %700 = vector.shape_cast %699 : vector<1x16x128xf32> to vector<16x128xf32>
    %701 = vector.extract_strided_slice %700 {offsets = [5, 0], sizes = [1, 128], strides = [1, 1]} : vector<16x128xf32> to vector<1x128xf32>
    %702 = vector.broadcast %701 : vector<1x128xf32> to vector<16x128xf32>
    %703 = arith.mulf %702, %700 : vector<16x128xf32>
    %704 = arith.addf %698, %703 : vector<16x128xf32>
    %c14_379 = arith.constant 14 : index
    %c0_380 = arith.constant 0 : index
    %c0_381 = arith.constant 0 : index
    %705 = vector.load %arg4[%c14_379, %c0_380, %c0_381] : memref<16x16x128xf32, #tpu.memory_space<vmem>>, vector<1x16x128xf32>
    %706 = vector.shape_cast %705 : vector<1x16x128xf32> to vector<16x128xf32>
    %707 = vector.extract_strided_slice %706 {offsets = [5, 0], sizes = [1, 128], strides = [1, 1]} : vector<16x128xf32> to vector<1x128xf32>
    %708 = vector.broadcast %707 : vector<1x128xf32> to vector<16x128xf32>
    %709 = arith.mulf %708, %706 : vector<16x128xf32>
    %710 = arith.addf %704, %709 : vector<16x128xf32>
    %c15_382 = arith.constant 15 : index
    %c0_383 = arith.constant 0 : index
    %c0_384 = arith.constant 0 : index
    %711 = vector.load %arg4[%c15_382, %c0_383, %c0_384] : memref<16x16x128xf32, #tpu.memory_space<vmem>>, vector<1x16x128xf32>
    %712 = vector.shape_cast %711 : vector<1x16x128xf32> to vector<16x128xf32>
    %713 = vector.extract_strided_slice %712 {offsets = [5, 0], sizes = [1, 128], strides = [1, 1]} : vector<16x128xf32> to vector<1x128xf32>
    %714 = vector.broadcast %713 : vector<1x128xf32> to vector<16x128xf32>
    %715 = arith.mulf %714, %712 : vector<16x128xf32>
    %716 = arith.addf %710, %715 : vector<16x128xf32>
    %c5_385 = arith.constant 5 : index
    %c0_386 = arith.constant 0 : index
    %c0_387 = arith.constant 0 : index
    %717 = vector.load %arg3[%c5_385, %c0_386, %c0_387] : memref<16x16x128xf32, #tpu.memory_space<vmem>>, vector<1x16x128xf32>
    %718 = vector.shape_cast %717 : vector<1x16x128xf32> to vector<16x128xf32>
    %719 = vector.shape_cast %716 : vector<16x128xf32> to vector<1x16x128xf32>
    tpu.vector_store %arg3[%c5_385, %c0_386, %c0_387], %719 {strides = array<i32>} : memref<16x16x128xf32, #tpu.memory_space<vmem>>, vector<1x16x128xf32>,
    %c0_388 = arith.constant 0 : index
    %c0_389 = arith.constant 0 : index
    %c0_390 = arith.constant 0 : index
    %720 = vector.load %arg4[%c0_388, %c0_389, %c0_390] : memref<16x16x128xf32, #tpu.memory_space<vmem>>, vector<1x16x128xf32>
    %721 = vector.shape_cast %720 : vector<1x16x128xf32> to vector<16x128xf32>
    %722 = vector.extract_strided_slice %721 {offsets = [6, 0], sizes = [1, 128], strides = [1, 1]} : vector<16x128xf32> to vector<1x128xf32>
    %723 = vector.broadcast %722 : vector<1x128xf32> to vector<16x128xf32>
    %724 = arith.mulf %723, %721 : vector<16x128xf32>
    %c1_391 = arith.constant 1 : index
    %c0_392 = arith.constant 0 : index
    %c0_393 = arith.constant 0 : index
    %725 = vector.load %arg4[%c1_391, %c0_392, %c0_393] : memref<16x16x128xf32, #tpu.memory_space<vmem>>, vector<1x16x128xf32>
    %726 = vector.shape_cast %725 : vector<1x16x128xf32> to vector<16x128xf32>
    %727 = vector.extract_strided_slice %726 {offsets = [6, 0], sizes = [1, 128], strides = [1, 1]} : vector<16x128xf32> to vector<1x128xf32>
    %728 = vector.broadcast %727 : vector<1x128xf32> to vector<16x128xf32>
    %729 = arith.mulf %728, %726 : vector<16x128xf32>
    %730 = arith.addf %724, %729 : vector<16x128xf32>
    %c2_394 = arith.constant 2 : index
    %c0_395 = arith.constant 0 : index
    %c0_396 = arith.constant 0 : index
    %731 = vector.load %arg4[%c2_394, %c0_395, %c0_396] : memref<16x16x128xf32, #tpu.memory_space<vmem>>, vector<1x16x128xf32>
    %732 = vector.shape_cast %731 : vector<1x16x128xf32> to vector<16x128xf32>
    %733 = vector.extract_strided_slice %732 {offsets = [6, 0], sizes = [1, 128], strides = [1, 1]} : vector<16x128xf32> to vector<1x128xf32>
    %734 = vector.broadcast %733 : vector<1x128xf32> to vector<16x128xf32>
    %735 = arith.mulf %734, %732 : vector<16x128xf32>
    %736 = arith.addf %730, %735 : vector<16x128xf32>
    %c3_397 = arith.constant 3 : index
    %c0_398 = arith.constant 0 : index
    %c0_399 = arith.constant 0 : index
    %737 = vector.load %arg4[%c3_397, %c0_398, %c0_399] : memref<16x16x128xf32, #tpu.memory_space<vmem>>, vector<1x16x128xf32>
    %738 = vector.shape_cast %737 : vector<1x16x128xf32> to vector<16x128xf32>
    %739 = vector.extract_strided_slice %738 {offsets = [6, 0], sizes = [1, 128], strides = [1, 1]} : vector<16x128xf32> to vector<1x128xf32>
    %740 = vector.broadcast %739 : vector<1x128xf32> to vector<16x128xf32>
    %741 = arith.mulf %740, %738 : vector<16x128xf32>
    %742 = arith.addf %736, %741 : vector<16x128xf32>
    %c4_400 = arith.constant 4 : index
    %c0_401 = arith.constant 0 : index
    %c0_402 = arith.constant 0 : index
    %743 = vector.load %arg4[%c4_400, %c0_401, %c0_402] : memref<16x16x128xf32, #tpu.memory_space<vmem>>, vector<1x16x128xf32>
    %744 = vector.shape_cast %743 : vector<1x16x128xf32> to vector<16x128xf32>
    %745 = vector.extract_strided_slice %744 {offsets = [6, 0], sizes = [1, 128], strides = [1, 1]} : vector<16x128xf32> to vector<1x128xf32>
    %746 = vector.broadcast %745 : vector<1x128xf32> to vector<16x128xf32>
    %747 = arith.mulf %746, %744 : vector<16x128xf32>
    %748 = arith.addf %742, %747 : vector<16x128xf32>
    %c5_403 = arith.constant 5 : index
    %c0_404 = arith.constant 0 : index
    %c0_405 = arith.constant 0 : index
    %749 = vector.load %arg4[%c5_403, %c0_404, %c0_405] : memref<16x16x128xf32, #tpu.memory_space<vmem>>, vector<1x16x128xf32>
    %750 = vector.shape_cast %749 : vector<1x16x128xf32> to vector<16x128xf32>
    %751 = vector.extract_strided_slice %750 {offsets = [6, 0], sizes = [1, 128], strides = [1, 1]} : vector<16x128xf32> to vector<1x128xf32>
    %752 = vector.broadcast %751 : vector<1x128xf32> to vector<16x128xf32>
    %753 = arith.mulf %752, %750 : vector<16x128xf32>
    %754 = arith.addf %748, %753 : vector<16x128xf32>
    %c6_406 = arith.constant 6 : index
    %c0_407 = arith.constant 0 : index
    %c0_408 = arith.constant 0 : index
    %755 = vector.load %arg4[%c6_406, %c0_407, %c0_408] : memref<16x16x128xf32, #tpu.memory_space<vmem>>, vector<1x16x128xf32>
    %756 = vector.shape_cast %755 : vector<1x16x128xf32> to vector<16x128xf32>
    %757 = vector.extract_strided_slice %756 {offsets = [6, 0], sizes = [1, 128], strides = [1, 1]} : vector<16x128xf32> to vector<1x128xf32>
    %758 = vector.broadcast %757 : vector<1x128xf32> to vector<16x128xf32>
    %759 = arith.mulf %758, %756 : vector<16x128xf32>
    %760 = arith.addf %754, %759 : vector<16x128xf32>
    %c7_409 = arith.constant 7 : index
    %c0_410 = arith.constant 0 : index
    %c0_411 = arith.constant 0 : index
    %761 = vector.load %arg4[%c7_409, %c0_410, %c0_411] : memref<16x16x128xf32, #tpu.memory_space<vmem>>, vector<1x16x128xf32>
    %762 = vector.shape_cast %761 : vector<1x16x128xf32> to vector<16x128xf32>
    %763 = vector.extract_strided_slice %762 {offsets = [6, 0], sizes = [1, 128], strides = [1, 1]} : vector<16x128xf32> to vector<1x128xf32>
    %764 = vector.broadcast %763 : vector<1x128xf32> to vector<16x128xf32>
    %765 = arith.mulf %764, %762 : vector<16x128xf32>
    %766 = arith.addf %760, %765 : vector<16x128xf32>
    %c8_412 = arith.constant 8 : index
    %c0_413 = arith.constant 0 : index
    %c0_414 = arith.constant 0 : index
    %767 = vector.load %arg4[%c8_412, %c0_413, %c0_414] : memref<16x16x128xf32, #tpu.memory_space<vmem>>, vector<1x16x128xf32>
    %768 = vector.shape_cast %767 : vector<1x16x128xf32> to vector<16x128xf32>
    %769 = vector.extract_strided_slice %768 {offsets = [6, 0], sizes = [1, 128], strides = [1, 1]} : vector<16x128xf32> to vector<1x128xf32>
    %770 = vector.broadcast %769 : vector<1x128xf32> to vector<16x128xf32>
    %771 = arith.mulf %770, %768 : vector<16x128xf32>
    %772 = arith.addf %766, %771 : vector<16x128xf32>
    %c9_415 = arith.constant 9 : index
    %c0_416 = arith.constant 0 : index
    %c0_417 = arith.constant 0 : index
    %773 = vector.load %arg4[%c9_415, %c0_416, %c0_417] : memref<16x16x128xf32, #tpu.memory_space<vmem>>, vector<1x16x128xf32>
    %774 = vector.shape_cast %773 : vector<1x16x128xf32> to vector<16x128xf32>
    %775 = vector.extract_strided_slice %774 {offsets = [6, 0], sizes = [1, 128], strides = [1, 1]} : vector<16x128xf32> to vector<1x128xf32>
    %776 = vector.broadcast %775 : vector<1x128xf32> to vector<16x128xf32>
    %777 = arith.mulf %776, %774 : vector<16x128xf32>
    %778 = arith.addf %772, %777 : vector<16x128xf32>
    %c10_418 = arith.constant 10 : index
    %c0_419 = arith.constant 0 : index
    %c0_420 = arith.constant 0 : index
    %779 = vector.load %arg4[%c10_418, %c0_419, %c0_420] : memref<16x16x128xf32, #tpu.memory_space<vmem>>, vector<1x16x128xf32>
    %780 = vector.shape_cast %779 : vector<1x16x128xf32> to vector<16x128xf32>
    %781 = vector.extract_strided_slice %780 {offsets = [6, 0], sizes = [1, 128], strides = [1, 1]} : vector<16x128xf32> to vector<1x128xf32>
    %782 = vector.broadcast %781 : vector<1x128xf32> to vector<16x128xf32>
    %783 = arith.mulf %782, %780 : vector<16x128xf32>
    %784 = arith.addf %778, %783 : vector<16x128xf32>
    %c11_421 = arith.constant 11 : index
    %c0_422 = arith.constant 0 : index
    %c0_423 = arith.constant 0 : index
    %785 = vector.load %arg4[%c11_421, %c0_422, %c0_423] : memref<16x16x128xf32, #tpu.memory_space<vmem>>, vector<1x16x128xf32>
    %786 = vector.shape_cast %785 : vector<1x16x128xf32> to vector<16x128xf32>
    %787 = vector.extract_strided_slice %786 {offsets = [6, 0], sizes = [1, 128], strides = [1, 1]} : vector<16x128xf32> to vector<1x128xf32>
    %788 = vector.broadcast %787 : vector<1x128xf32> to vector<16x128xf32>
    %789 = arith.mulf %788, %786 : vector<16x128xf32>
    %790 = arith.addf %784, %789 : vector<16x128xf32>
    %c12_424 = arith.constant 12 : index
    %c0_425 = arith.constant 0 : index
    %c0_426 = arith.constant 0 : index
    %791 = vector.load %arg4[%c12_424, %c0_425, %c0_426] : memref<16x16x128xf32, #tpu.memory_space<vmem>>, vector<1x16x128xf32>
    %792 = vector.shape_cast %791 : vector<1x16x128xf32> to vector<16x128xf32>
    %793 = vector.extract_strided_slice %792 {offsets = [6, 0], sizes = [1, 128], strides = [1, 1]} : vector<16x128xf32> to vector<1x128xf32>
    %794 = vector.broadcast %793 : vector<1x128xf32> to vector<16x128xf32>
    %795 = arith.mulf %794, %792 : vector<16x128xf32>
    %796 = arith.addf %790, %795 : vector<16x128xf32>
    %c13_427 = arith.constant 13 : index
    %c0_428 = arith.constant 0 : index
    %c0_429 = arith.constant 0 : index
    %797 = vector.load %arg4[%c13_427, %c0_428, %c0_429] : memref<16x16x128xf32, #tpu.memory_space<vmem>>, vector<1x16x128xf32>
    %798 = vector.shape_cast %797 : vector<1x16x128xf32> to vector<16x128xf32>
    %799 = vector.extract_strided_slice %798 {offsets = [6, 0], sizes = [1, 128], strides = [1, 1]} : vector<16x128xf32> to vector<1x128xf32>
    %800 = vector.broadcast %799 : vector<1x128xf32> to vector<16x128xf32>
    %801 = arith.mulf %800, %798 : vector<16x128xf32>
    %802 = arith.addf %796, %801 : vector<16x128xf32>
    %c14_430 = arith.constant 14 : index
    %c0_431 = arith.constant 0 : index
    %c0_432 = arith.constant 0 : index
    %803 = vector.load %arg4[%c14_430, %c0_431, %c0_432] : memref<16x16x128xf32, #tpu.memory_space<vmem>>, vector<1x16x128xf32>
    %804 = vector.shape_cast %803 : vector<1x16x128xf32> to vector<16x128xf32>
    %805 = vector.extract_strided_slice %804 {offsets = [6, 0], sizes = [1, 128], strides = [1, 1]} : vector<16x128xf32> to vector<1x128xf32>
    %806 = vector.broadcast %805 : vector<1x128xf32> to vector<16x128xf32>
    %807 = arith.mulf %806, %804 : vector<16x128xf32>
    %808 = arith.addf %802, %807 : vector<16x128xf32>
    %c15_433 = arith.constant 15 : index
    %c0_434 = arith.constant 0 : index
    %c0_435 = arith.constant 0 : index
    %809 = vector.load %arg4[%c15_433, %c0_434, %c0_435] : memref<16x16x128xf32, #tpu.memory_space<vmem>>, vector<1x16x128xf32>
    %810 = vector.shape_cast %809 : vector<1x16x128xf32> to vector<16x128xf32>
    %811 = vector.extract_strided_slice %810 {offsets = [6, 0], sizes = [1, 128], strides = [1, 1]} : vector<16x128xf32> to vector<1x128xf32>
    %812 = vector.broadcast %811 : vector<1x128xf32> to vector<16x128xf32>
    %813 = arith.mulf %812, %810 : vector<16x128xf32>
    %814 = arith.addf %808, %813 : vector<16x128xf32>
    %c6_436 = arith.constant 6 : index
    %c0_437 = arith.constant 0 : index
    %c0_438 = arith.constant 0 : index
    %815 = vector.load %arg3[%c6_436, %c0_437, %c0_438] : memref<16x16x128xf32, #tpu.memory_space<vmem>>, vector<1x16x128xf32>
    %816 = vector.shape_cast %815 : vector<1x16x128xf32> to vector<16x128xf32>
    %817 = vector.shape_cast %814 : vector<16x128xf32> to vector<1x16x128xf32>
    tpu.vector_store %arg3[%c6_436, %c0_437, %c0_438], %817 {strides = array<i32>} : memref<16x16x128xf32, #tpu.memory_space<vmem>>, vector<1x16x128xf32>,
    %c0_439 = arith.constant 0 : index
    %c0_440 = arith.constant 0 : index
    %c0_441 = arith.constant 0 : index
    %818 = vector.load %arg4[%c0_439, %c0_440, %c0_441] : memref<16x16x128xf32, #tpu.memory_space<vmem>>, vector<1x16x128xf32>
    %819 = vector.shape_cast %818 : vector<1x16x128xf32> to vector<16x128xf32>
    %820 = vector.extract_strided_slice %819 {offsets = [7, 0], sizes = [1, 128], strides = [1, 1]} : vector<16x128xf32> to vector<1x128xf32>
    %821 = vector.broadcast %820 : vector<1x128xf32> to vector<16x128xf32>
    %822 = arith.mulf %821, %819 : vector<16x128xf32>
    %c1_442 = arith.constant 1 : index
    %c0_443 = arith.constant 0 : index
    %c0_444 = arith.constant 0 : index
    %823 = vector.load %arg4[%c1_442, %c0_443, %c0_444] : memref<16x16x128xf32, #tpu.memory_space<vmem>>, vector<1x16x128xf32>
    %824 = vector.shape_cast %823 : vector<1x16x128xf32> to vector<16x128xf32>
    %825 = vector.extract_strided_slice %824 {offsets = [7, 0], sizes = [1, 128], strides = [1, 1]} : vector<16x128xf32> to vector<1x128xf32>
    %826 = vector.broadcast %825 : vector<1x128xf32> to vector<16x128xf32>
    %827 = arith.mulf %826, %824 : vector<16x128xf32>
    %828 = arith.addf %822, %827 : vector<16x128xf32>
    %c2_445 = arith.constant 2 : index
    %c0_446 = arith.constant 0 : index
    %c0_447 = arith.constant 0 : index
    %829 = vector.load %arg4[%c2_445, %c0_446, %c0_447] : memref<16x16x128xf32, #tpu.memory_space<vmem>>, vector<1x16x128xf32>
    %830 = vector.shape_cast %829 : vector<1x16x128xf32> to vector<16x128xf32>
    %831 = vector.extract_strided_slice %830 {offsets = [7, 0], sizes = [1, 128], strides = [1, 1]} : vector<16x128xf32> to vector<1x128xf32>
    %832 = vector.broadcast %831 : vector<1x128xf32> to vector<16x128xf32>
    %833 = arith.mulf %832, %830 : vector<16x128xf32>
    %834 = arith.addf %828, %833 : vector<16x128xf32>
    %c3_448 = arith.constant 3 : index
    %c0_449 = arith.constant 0 : index
    %c0_450 = arith.constant 0 : index
    %835 = vector.load %arg4[%c3_448, %c0_449, %c0_450] : memref<16x16x128xf32, #tpu.memory_space<vmem>>, vector<1x16x128xf32>
    %836 = vector.shape_cast %835 : vector<1x16x128xf32> to vector<16x128xf32>
    %837 = vector.extract_strided_slice %836 {offsets = [7, 0], sizes = [1, 128], strides = [1, 1]} : vector<16x128xf32> to vector<1x128xf32>
    %838 = vector.broadcast %837 : vector<1x128xf32> to vector<16x128xf32>
    %839 = arith.mulf %838, %836 : vector<16x128xf32>
    %840 = arith.addf %834, %839 : vector<16x128xf32>
    %c4_451 = arith.constant 4 : index
    %c0_452 = arith.constant 0 : index
    %c0_453 = arith.constant 0 : index
    %841 = vector.load %arg4[%c4_451, %c0_452, %c0_453] : memref<16x16x128xf32, #tpu.memory_space<vmem>>, vector<1x16x128xf32>
    %842 = vector.shape_cast %841 : vector<1x16x128xf32> to vector<16x128xf32>
    %843 = vector.extract_strided_slice %842 {offsets = [7, 0], sizes = [1, 128], strides = [1, 1]} : vector<16x128xf32> to vector<1x128xf32>
    %844 = vector.broadcast %843 : vector<1x128xf32> to vector<16x128xf32>
    %845 = arith.mulf %844, %842 : vector<16x128xf32>
    %846 = arith.addf %840, %845 : vector<16x128xf32>
    %c5_454 = arith.constant 5 : index
    %c0_455 = arith.constant 0 : index
    %c0_456 = arith.constant 0 : index
    %847 = vector.load %arg4[%c5_454, %c0_455, %c0_456] : memref<16x16x128xf32, #tpu.memory_space<vmem>>, vector<1x16x128xf32>
    %848 = vector.shape_cast %847 : vector<1x16x128xf32> to vector<16x128xf32>
    %849 = vector.extract_strided_slice %848 {offsets = [7, 0], sizes = [1, 128], strides = [1, 1]} : vector<16x128xf32> to vector<1x128xf32>
    %850 = vector.broadcast %849 : vector<1x128xf32> to vector<16x128xf32>
    %851 = arith.mulf %850, %848 : vector<16x128xf32>
    %852 = arith.addf %846, %851 : vector<16x128xf32>
    %c6_457 = arith.constant 6 : index
    %c0_458 = arith.constant 0 : index
    %c0_459 = arith.constant 0 : index
    %853 = vector.load %arg4[%c6_457, %c0_458, %c0_459] : memref<16x16x128xf32, #tpu.memory_space<vmem>>, vector<1x16x128xf32>
    %854 = vector.shape_cast %853 : vector<1x16x128xf32> to vector<16x128xf32>
    %855 = vector.extract_strided_slice %854 {offsets = [7, 0], sizes = [1, 128], strides = [1, 1]} : vector<16x128xf32> to vector<1x128xf32>
    %856 = vector.broadcast %855 : vector<1x128xf32> to vector<16x128xf32>
    %857 = arith.mulf %856, %854 : vector<16x128xf32>
    %858 = arith.addf %852, %857 : vector<16x128xf32>
    %c7_460 = arith.constant 7 : index
    %c0_461 = arith.constant 0 : index
    %c0_462 = arith.constant 0 : index
    %859 = vector.load %arg4[%c7_460, %c0_461, %c0_462] : memref<16x16x128xf32, #tpu.memory_space<vmem>>, vector<1x16x128xf32>
    %860 = vector.shape_cast %859 : vector<1x16x128xf32> to vector<16x128xf32>
    %861 = vector.extract_strided_slice %860 {offsets = [7, 0], sizes = [1, 128], strides = [1, 1]} : vector<16x128xf32> to vector<1x128xf32>
    %862 = vector.broadcast %861 : vector<1x128xf32> to vector<16x128xf32>
    %863 = arith.mulf %862, %860 : vector<16x128xf32>
    %864 = arith.addf %858, %863 : vector<16x128xf32>
    %c8_463 = arith.constant 8 : index
    %c0_464 = arith.constant 0 : index
    %c0_465 = arith.constant 0 : index
    %865 = vector.load %arg4[%c8_463, %c0_464, %c0_465] : memref<16x16x128xf32, #tpu.memory_space<vmem>>, vector<1x16x128xf32>
    %866 = vector.shape_cast %865 : vector<1x16x128xf32> to vector<16x128xf32>
    %867 = vector.extract_strided_slice %866 {offsets = [7, 0], sizes = [1, 128], strides = [1, 1]} : vector<16x128xf32> to vector<1x128xf32>
    %868 = vector.broadcast %867 : vector<1x128xf32> to vector<16x128xf32>
    %869 = arith.mulf %868, %866 : vector<16x128xf32>
    %870 = arith.addf %864, %869 : vector<16x128xf32>
    %c9_466 = arith.constant 9 : index
    %c0_467 = arith.constant 0 : index
    %c0_468 = arith.constant 0 : index
    %871 = vector.load %arg4[%c9_466, %c0_467, %c0_468] : memref<16x16x128xf32, #tpu.memory_space<vmem>>, vector<1x16x128xf32>
    %872 = vector.shape_cast %871 : vector<1x16x128xf32> to vector<16x128xf32>
    %873 = vector.extract_strided_slice %872 {offsets = [7, 0], sizes = [1, 128], strides = [1, 1]} : vector<16x128xf32> to vector<1x128xf32>
    %874 = vector.broadcast %873 : vector<1x128xf32> to vector<16x128xf32>
    %875 = arith.mulf %874, %872 : vector<16x128xf32>
    %876 = arith.addf %870, %875 : vector<16x128xf32>
    %c10_469 = arith.constant 10 : index
    %c0_470 = arith.constant 0 : index
    %c0_471 = arith.constant 0 : index
    %877 = vector.load %arg4[%c10_469, %c0_470, %c0_471] : memref<16x16x128xf32, #tpu.memory_space<vmem>>, vector<1x16x128xf32>
    %878 = vector.shape_cast %877 : vector<1x16x128xf32> to vector<16x128xf32>
    %879 = vector.extract_strided_slice %878 {offsets = [7, 0], sizes = [1, 128], strides = [1, 1]} : vector<16x128xf32> to vector<1x128xf32>
    %880 = vector.broadcast %879 : vector<1x128xf32> to vector<16x128xf32>
    %881 = arith.mulf %880, %878 : vector<16x128xf32>
    %882 = arith.addf %876, %881 : vector<16x128xf32>
    %c11_472 = arith.constant 11 : index
    %c0_473 = arith.constant 0 : index
    %c0_474 = arith.constant 0 : index
    %883 = vector.load %arg4[%c11_472, %c0_473, %c0_474] : memref<16x16x128xf32, #tpu.memory_space<vmem>>, vector<1x16x128xf32>
    %884 = vector.shape_cast %883 : vector<1x16x128xf32> to vector<16x128xf32>
    %885 = vector.extract_strided_slice %884 {offsets = [7, 0], sizes = [1, 128], strides = [1, 1]} : vector<16x128xf32> to vector<1x128xf32>
    %886 = vector.broadcast %885 : vector<1x128xf32> to vector<16x128xf32>
    %887 = arith.mulf %886, %884 : vector<16x128xf32>
    %888 = arith.addf %882, %887 : vector<16x128xf32>
    %c12_475 = arith.constant 12 : index
    %c0_476 = arith.constant 0 : index
    %c0_477 = arith.constant 0 : index
    %889 = vector.load %arg4[%c12_475, %c0_476, %c0_477] : memref<16x16x128xf32, #tpu.memory_space<vmem>>, vector<1x16x128xf32>
    %890 = vector.shape_cast %889 : vector<1x16x128xf32> to vector<16x128xf32>
    %891 = vector.extract_strided_slice %890 {offsets = [7, 0], sizes = [1, 128], strides = [1, 1]} : vector<16x128xf32> to vector<1x128xf32>
    %892 = vector.broadcast %891 : vector<1x128xf32> to vector<16x128xf32>
    %893 = arith.mulf %892, %890 : vector<16x128xf32>
    %894 = arith.addf %888, %893 : vector<16x128xf32>
    %c13_478 = arith.constant 13 : index
    %c0_479 = arith.constant 0 : index
    %c0_480 = arith.constant 0 : index
    %895 = vector.load %arg4[%c13_478, %c0_479, %c0_480] : memref<16x16x128xf32, #tpu.memory_space<vmem>>, vector<1x16x128xf32>
    %896 = vector.shape_cast %895 : vector<1x16x128xf32> to vector<16x128xf32>
    %897 = vector.extract_strided_slice %896 {offsets = [7, 0], sizes = [1, 128], strides = [1, 1]} : vector<16x128xf32> to vector<1x128xf32>
    %898 = vector.broadcast %897 : vector<1x128xf32> to vector<16x128xf32>
    %899 = arith.mulf %898, %896 : vector<16x128xf32>
    %900 = arith.addf %894, %899 : vector<16x128xf32>
    %c14_481 = arith.constant 14 : index
    %c0_482 = arith.constant 0 : index
    %c0_483 = arith.constant 0 : index
    %901 = vector.load %arg4[%c14_481, %c0_482, %c0_483] : memref<16x16x128xf32, #tpu.memory_space<vmem>>, vector<1x16x128xf32>
    %902 = vector.shape_cast %901 : vector<1x16x128xf32> to vector<16x128xf32>
    %903 = vector.extract_strided_slice %902 {offsets = [7, 0], sizes = [1, 128], strides = [1, 1]} : vector<16x128xf32> to vector<1x128xf32>
    %904 = vector.broadcast %903 : vector<1x128xf32> to vector<16x128xf32>
    %905 = arith.mulf %904, %902 : vector<16x128xf32>
    %906 = arith.addf %900, %905 : vector<16x128xf32>
    %c15_484 = arith.constant 15 : index
    %c0_485 = arith.constant 0 : index
    %c0_486 = arith.constant 0 : index
    %907 = vector.load %arg4[%c15_484, %c0_485, %c0_486] : memref<16x16x128xf32, #tpu.memory_space<vmem>>, vector<1x16x128xf32>
    %908 = vector.shape_cast %907 : vector<1x16x128xf32> to vector<16x128xf32>
    %909 = vector.extract_strided_slice %908 {offsets = [7, 0], sizes = [1, 128], strides = [1, 1]} : vector<16x128xf32> to vector<1x128xf32>
    %910 = vector.broadcast %909 : vector<1x128xf32> to vector<16x128xf32>
    %911 = arith.mulf %910, %908 : vector<16x128xf32>
    %912 = arith.addf %906, %911 : vector<16x128xf32>
    %c7_487 = arith.constant 7 : index
    %c0_488 = arith.constant 0 : index
    %c0_489 = arith.constant 0 : index
    %913 = vector.load %arg3[%c7_487, %c0_488, %c0_489] : memref<16x16x128xf32, #tpu.memory_space<vmem>>, vector<1x16x128xf32>
    %914 = vector.shape_cast %913 : vector<1x16x128xf32> to vector<16x128xf32>
    %915 = vector.shape_cast %912 : vector<16x128xf32> to vector<1x16x128xf32>
    tpu.vector_store %arg3[%c7_487, %c0_488, %c0_489], %915 {strides = array<i32>} : memref<16x16x128xf32, #tpu.memory_space<vmem>>, vector<1x16x128xf32>,
    %c0_490 = arith.constant 0 : index
    %c0_491 = arith.constant 0 : index
    %c0_492 = arith.constant 0 : index
    %916 = vector.load %arg4[%c0_490, %c0_491, %c0_492] : memref<16x16x128xf32, #tpu.memory_space<vmem>>, vector<1x16x128xf32>
    %917 = vector.shape_cast %916 : vector<1x16x128xf32> to vector<16x128xf32>
    %918 = vector.extract_strided_slice %917 {offsets = [8, 0], sizes = [1, 128], strides = [1, 1]} : vector<16x128xf32> to vector<1x128xf32>
    %919 = vector.broadcast %918 : vector<1x128xf32> to vector<16x128xf32>
    %920 = arith.mulf %919, %917 : vector<16x128xf32>
    %c1_493 = arith.constant 1 : index
    %c0_494 = arith.constant 0 : index
    %c0_495 = arith.constant 0 : index
    %921 = vector.load %arg4[%c1_493, %c0_494, %c0_495] : memref<16x16x128xf32, #tpu.memory_space<vmem>>, vector<1x16x128xf32>
    %922 = vector.shape_cast %921 : vector<1x16x128xf32> to vector<16x128xf32>
    %923 = vector.extract_strided_slice %922 {offsets = [8, 0], sizes = [1, 128], strides = [1, 1]} : vector<16x128xf32> to vector<1x128xf32>
    %924 = vector.broadcast %923 : vector<1x128xf32> to vector<16x128xf32>
    %925 = arith.mulf %924, %922 : vector<16x128xf32>
    %926 = arith.addf %920, %925 : vector<16x128xf32>
    %c2_496 = arith.constant 2 : index
    %c0_497 = arith.constant 0 : index
    %c0_498 = arith.constant 0 : index
    %927 = vector.load %arg4[%c2_496, %c0_497, %c0_498] : memref<16x16x128xf32, #tpu.memory_space<vmem>>, vector<1x16x128xf32>
    %928 = vector.shape_cast %927 : vector<1x16x128xf32> to vector<16x128xf32>
    %929 = vector.extract_strided_slice %928 {offsets = [8, 0], sizes = [1, 128], strides = [1, 1]} : vector<16x128xf32> to vector<1x128xf32>
    %930 = vector.broadcast %929 : vector<1x128xf32> to vector<16x128xf32>
    %931 = arith.mulf %930, %928 : vector<16x128xf32>
    %932 = arith.addf %926, %931 : vector<16x128xf32>
    %c3_499 = arith.constant 3 : index
    %c0_500 = arith.constant 0 : index
    %c0_501 = arith.constant 0 : index
    %933 = vector.load %arg4[%c3_499, %c0_500, %c0_501] : memref<16x16x128xf32, #tpu.memory_space<vmem>>, vector<1x16x128xf32>
    %934 = vector.shape_cast %933 : vector<1x16x128xf32> to vector<16x128xf32>
    %935 = vector.extract_strided_slice %934 {offsets = [8, 0], sizes = [1, 128], strides = [1, 1]} : vector<16x128xf32> to vector<1x128xf32>
    %936 = vector.broadcast %935 : vector<1x128xf32> to vector<16x128xf32>
    %937 = arith.mulf %936, %934 : vector<16x128xf32>
    %938 = arith.addf %932, %937 : vector<16x128xf32>
    %c4_502 = arith.constant 4 : index
    %c0_503 = arith.constant 0 : index
    %c0_504 = arith.constant 0 : index
    %939 = vector.load %arg4[%c4_502, %c0_503, %c0_504] : memref<16x16x128xf32, #tpu.memory_space<vmem>>, vector<1x16x128xf32>
    %940 = vector.shape_cast %939 : vector<1x16x128xf32> to vector<16x128xf32>
    %941 = vector.extract_strided_slice %940 {offsets = [8, 0], sizes = [1, 128], strides = [1, 1]} : vector<16x128xf32> to vector<1x128xf32>
    %942 = vector.broadcast %941 : vector<1x128xf32> to vector<16x128xf32>
    %943 = arith.mulf %942, %940 : vector<16x128xf32>
    %944 = arith.addf %938, %943 : vector<16x128xf32>
    %c5_505 = arith.constant 5 : index
    %c0_506 = arith.constant 0 : index
    %c0_507 = arith.constant 0 : index
    %945 = vector.load %arg4[%c5_505, %c0_506, %c0_507] : memref<16x16x128xf32, #tpu.memory_space<vmem>>, vector<1x16x128xf32>
    %946 = vector.shape_cast %945 : vector<1x16x128xf32> to vector<16x128xf32>
    %947 = vector.extract_strided_slice %946 {offsets = [8, 0], sizes = [1, 128], strides = [1, 1]} : vector<16x128xf32> to vector<1x128xf32>
    %948 = vector.broadcast %947 : vector<1x128xf32> to vector<16x128xf32>
    %949 = arith.mulf %948, %946 : vector<16x128xf32>
    %950 = arith.addf %944, %949 : vector<16x128xf32>
    %c6_508 = arith.constant 6 : index
    %c0_509 = arith.constant 0 : index
    %c0_510 = arith.constant 0 : index
    %951 = vector.load %arg4[%c6_508, %c0_509, %c0_510] : memref<16x16x128xf32, #tpu.memory_space<vmem>>, vector<1x16x128xf32>
    %952 = vector.shape_cast %951 : vector<1x16x128xf32> to vector<16x128xf32>
    %953 = vector.extract_strided_slice %952 {offsets = [8, 0], sizes = [1, 128], strides = [1, 1]} : vector<16x128xf32> to vector<1x128xf32>
    %954 = vector.broadcast %953 : vector<1x128xf32> to vector<16x128xf32>
    %955 = arith.mulf %954, %952 : vector<16x128xf32>
    %956 = arith.addf %950, %955 : vector<16x128xf32>
    %c7_511 = arith.constant 7 : index
    %c0_512 = arith.constant 0 : index
    %c0_513 = arith.constant 0 : index
    %957 = vector.load %arg4[%c7_511, %c0_512, %c0_513] : memref<16x16x128xf32, #tpu.memory_space<vmem>>, vector<1x16x128xf32>
    %958 = vector.shape_cast %957 : vector<1x16x128xf32> to vector<16x128xf32>
    %959 = vector.extract_strided_slice %958 {offsets = [8, 0], sizes = [1, 128], strides = [1, 1]} : vector<16x128xf32> to vector<1x128xf32>
    %960 = vector.broadcast %959 : vector<1x128xf32> to vector<16x128xf32>
    %961 = arith.mulf %960, %958 : vector<16x128xf32>
    %962 = arith.addf %956, %961 : vector<16x128xf32>
    %c8_514 = arith.constant 8 : index
    %c0_515 = arith.constant 0 : index
    %c0_516 = arith.constant 0 : index
    %963 = vector.load %arg4[%c8_514, %c0_515, %c0_516] : memref<16x16x128xf32, #tpu.memory_space<vmem>>, vector<1x16x128xf32>
    %964 = vector.shape_cast %963 : vector<1x16x128xf32> to vector<16x128xf32>
    %965 = vector.extract_strided_slice %964 {offsets = [8, 0], sizes = [1, 128], strides = [1, 1]} : vector<16x128xf32> to vector<1x128xf32>
    %966 = vector.broadcast %965 : vector<1x128xf32> to vector<16x128xf32>
    %967 = arith.mulf %966, %964 : vector<16x128xf32>
    %968 = arith.addf %962, %967 : vector<16x128xf32>
    %c9_517 = arith.constant 9 : index
    %c0_518 = arith.constant 0 : index
    %c0_519 = arith.constant 0 : index
    %969 = vector.load %arg4[%c9_517, %c0_518, %c0_519] : memref<16x16x128xf32, #tpu.memory_space<vmem>>, vector<1x16x128xf32>
    %970 = vector.shape_cast %969 : vector<1x16x128xf32> to vector<16x128xf32>
    %971 = vector.extract_strided_slice %970 {offsets = [8, 0], sizes = [1, 128], strides = [1, 1]} : vector<16x128xf32> to vector<1x128xf32>
    %972 = vector.broadcast %971 : vector<1x128xf32> to vector<16x128xf32>
    %973 = arith.mulf %972, %970 : vector<16x128xf32>
    %974 = arith.addf %968, %973 : vector<16x128xf32>
    %c10_520 = arith.constant 10 : index
    %c0_521 = arith.constant 0 : index
    %c0_522 = arith.constant 0 : index
    %975 = vector.load %arg4[%c10_520, %c0_521, %c0_522] : memref<16x16x128xf32, #tpu.memory_space<vmem>>, vector<1x16x128xf32>
    %976 = vector.shape_cast %975 : vector<1x16x128xf32> to vector<16x128xf32>
    %977 = vector.extract_strided_slice %976 {offsets = [8, 0], sizes = [1, 128], strides = [1, 1]} : vector<16x128xf32> to vector<1x128xf32>
    %978 = vector.broadcast %977 : vector<1x128xf32> to vector<16x128xf32>
    %979 = arith.mulf %978, %976 : vector<16x128xf32>
    %980 = arith.addf %974, %979 : vector<16x128xf32>
    %c11_523 = arith.constant 11 : index
    %c0_524 = arith.constant 0 : index
    %c0_525 = arith.constant 0 : index
    %981 = vector.load %arg4[%c11_523, %c0_524, %c0_525] : memref<16x16x128xf32, #tpu.memory_space<vmem>>, vector<1x16x128xf32>
    %982 = vector.shape_cast %981 : vector<1x16x128xf32> to vector<16x128xf32>
    %983 = vector.extract_strided_slice %982 {offsets = [8, 0], sizes = [1, 128], strides = [1, 1]} : vector<16x128xf32> to vector<1x128xf32>
    %984 = vector.broadcast %983 : vector<1x128xf32> to vector<16x128xf32>
    %985 = arith.mulf %984, %982 : vector<16x128xf32>
    %986 = arith.addf %980, %985 : vector<16x128xf32>
    %c12_526 = arith.constant 12 : index
    %c0_527 = arith.constant 0 : index
    %c0_528 = arith.constant 0 : index
    %987 = vector.load %arg4[%c12_526, %c0_527, %c0_528] : memref<16x16x128xf32, #tpu.memory_space<vmem>>, vector<1x16x128xf32>
    %988 = vector.shape_cast %987 : vector<1x16x128xf32> to vector<16x128xf32>
    %989 = vector.extract_strided_slice %988 {offsets = [8, 0], sizes = [1, 128], strides = [1, 1]} : vector<16x128xf32> to vector<1x128xf32>
    %990 = vector.broadcast %989 : vector<1x128xf32> to vector<16x128xf32>
    %991 = arith.mulf %990, %988 : vector<16x128xf32>
    %992 = arith.addf %986, %991 : vector<16x128xf32>
    %c13_529 = arith.constant 13 : index
    %c0_530 = arith.constant 0 : index
    %c0_531 = arith.constant 0 : index
    %993 = vector.load %arg4[%c13_529, %c0_530, %c0_531] : memref<16x16x128xf32, #tpu.memory_space<vmem>>, vector<1x16x128xf32>
    %994 = vector.shape_cast %993 : vector<1x16x128xf32> to vector<16x128xf32>
    %995 = vector.extract_strided_slice %994 {offsets = [8, 0], sizes = [1, 128], strides = [1, 1]} : vector<16x128xf32> to vector<1x128xf32>
    %996 = vector.broadcast %995 : vector<1x128xf32> to vector<16x128xf32>
    %997 = arith.mulf %996, %994 : vector<16x128xf32>
    %998 = arith.addf %992, %997 : vector<16x128xf32>
    %c14_532 = arith.constant 14 : index
    %c0_533 = arith.constant 0 : index
    %c0_534 = arith.constant 0 : index
    %999 = vector.load %arg4[%c14_532, %c0_533, %c0_534] : memref<16x16x128xf32, #tpu.memory_space<vmem>>, vector<1x16x128xf32>
    %1000 = vector.shape_cast %999 : vector<1x16x128xf32> to vector<16x128xf32>
    %1001 = vector.extract_strided_slice %1000 {offsets = [8, 0], sizes = [1, 128], strides = [1, 1]} : vector<16x128xf32> to vector<1x128xf32>
    %1002 = vector.broadcast %1001 : vector<1x128xf32> to vector<16x128xf32>
    %1003 = arith.mulf %1002, %1000 : vector<16x128xf32>
    %1004 = arith.addf %998, %1003 : vector<16x128xf32>
    %c15_535 = arith.constant 15 : index
    %c0_536 = arith.constant 0 : index
    %c0_537 = arith.constant 0 : index
    %1005 = vector.load %arg4[%c15_535, %c0_536, %c0_537] : memref<16x16x128xf32, #tpu.memory_space<vmem>>, vector<1x16x128xf32>
    %1006 = vector.shape_cast %1005 : vector<1x16x128xf32> to vector<16x128xf32>
    %1007 = vector.extract_strided_slice %1006 {offsets = [8, 0], sizes = [1, 128], strides = [1, 1]} : vector<16x128xf32> to vector<1x128xf32>
    %1008 = vector.broadcast %1007 : vector<1x128xf32> to vector<16x128xf32>
    %1009 = arith.mulf %1008, %1006 : vector<16x128xf32>
    %1010 = arith.addf %1004, %1009 : vector<16x128xf32>
    %c8_538 = arith.constant 8 : index
    %c0_539 = arith.constant 0 : index
    %c0_540 = arith.constant 0 : index
    %1011 = vector.load %arg3[%c8_538, %c0_539, %c0_540] : memref<16x16x128xf32, #tpu.memory_space<vmem>>, vector<1x16x128xf32>
    %1012 = vector.shape_cast %1011 : vector<1x16x128xf32> to vector<16x128xf32>
    %1013 = vector.shape_cast %1010 : vector<16x128xf32> to vector<1x16x128xf32>
    tpu.vector_store %arg3[%c8_538, %c0_539, %c0_540], %1013 {strides = array<i32>} : memref<16x16x128xf32, #tpu.memory_space<vmem>>, vector<1x16x128xf32>,
    %c0_541 = arith.constant 0 : index
    %c0_542 = arith.constant 0 : index
    %c0_543 = arith.constant 0 : index
    %1014 = vector.load %arg4[%c0_541, %c0_542, %c0_543] : memref<16x16x128xf32, #tpu.memory_space<vmem>>, vector<1x16x128xf32>
    %1015 = vector.shape_cast %1014 : vector<1x16x128xf32> to vector<16x128xf32>
    %1016 = vector.extract_strided_slice %1015 {offsets = [9, 0], sizes = [1, 128], strides = [1, 1]} : vector<16x128xf32> to vector<1x128xf32>
    %1017 = vector.broadcast %1016 : vector<1x128xf32> to vector<16x128xf32>
    %1018 = arith.mulf %1017, %1015 : vector<16x128xf32>
    %c1_544 = arith.constant 1 : index
    %c0_545 = arith.constant 0 : index
    %c0_546 = arith.constant 0 : index
    %1019 = vector.load %arg4[%c1_544, %c0_545, %c0_546] : memref<16x16x128xf32, #tpu.memory_space<vmem>>, vector<1x16x128xf32>
    %1020 = vector.shape_cast %1019 : vector<1x16x128xf32> to vector<16x128xf32>
    %1021 = vector.extract_strided_slice %1020 {offsets = [9, 0], sizes = [1, 128], strides = [1, 1]} : vector<16x128xf32> to vector<1x128xf32>
    %1022 = vector.broadcast %1021 : vector<1x128xf32> to vector<16x128xf32>
    %1023 = arith.mulf %1022, %1020 : vector<16x128xf32>
    %1024 = arith.addf %1018, %1023 : vector<16x128xf32>
    %c2_547 = arith.constant 2 : index
    %c0_548 = arith.constant 0 : index
    %c0_549 = arith.constant 0 : index
    %1025 = vector.load %arg4[%c2_547, %c0_548, %c0_549] : memref<16x16x128xf32, #tpu.memory_space<vmem>>, vector<1x16x128xf32>
    %1026 = vector.shape_cast %1025 : vector<1x16x128xf32> to vector<16x128xf32>
    %1027 = vector.extract_strided_slice %1026 {offsets = [9, 0], sizes = [1, 128], strides = [1, 1]} : vector<16x128xf32> to vector<1x128xf32>
    %1028 = vector.broadcast %1027 : vector<1x128xf32> to vector<16x128xf32>
    %1029 = arith.mulf %1028, %1026 : vector<16x128xf32>
    %1030 = arith.addf %1024, %1029 : vector<16x128xf32>
    %c3_550 = arith.constant 3 : index
    %c0_551 = arith.constant 0 : index
    %c0_552 = arith.constant 0 : index
    %1031 = vector.load %arg4[%c3_550, %c0_551, %c0_552] : memref<16x16x128xf32, #tpu.memory_space<vmem>>, vector<1x16x128xf32>
    %1032 = vector.shape_cast %1031 : vector<1x16x128xf32> to vector<16x128xf32>
    %1033 = vector.extract_strided_slice %1032 {offsets = [9, 0], sizes = [1, 128], strides = [1, 1]} : vector<16x128xf32> to vector<1x128xf32>
    %1034 = vector.broadcast %1033 : vector<1x128xf32> to vector<16x128xf32>
    %1035 = arith.mulf %1034, %1032 : vector<16x128xf32>
    %1036 = arith.addf %1030, %1035 : vector<16x128xf32>
    %c4_553 = arith.constant 4 : index
    %c0_554 = arith.constant 0 : index
    %c0_555 = arith.constant 0 : index
    %1037 = vector.load %arg4[%c4_553, %c0_554, %c0_555] : memref<16x16x128xf32, #tpu.memory_space<vmem>>, vector<1x16x128xf32>
    %1038 = vector.shape_cast %1037 : vector<1x16x128xf32> to vector<16x128xf32>
    %1039 = vector.extract_strided_slice %1038 {offsets = [9, 0], sizes = [1, 128], strides = [1, 1]} : vector<16x128xf32> to vector<1x128xf32>
    %1040 = vector.broadcast %1039 : vector<1x128xf32> to vector<16x128xf32>
    %1041 = arith.mulf %1040, %1038 : vector<16x128xf32>
    %1042 = arith.addf %1036, %1041 : vector<16x128xf32>
    %c5_556 = arith.constant 5 : index
    %c0_557 = arith.constant 0 : index
    %c0_558 = arith.constant 0 : index
    %1043 = vector.load %arg4[%c5_556, %c0_557, %c0_558] : memref<16x16x128xf32, #tpu.memory_space<vmem>>, vector<1x16x128xf32>
    %1044 = vector.shape_cast %1043 : vector<1x16x128xf32> to vector<16x128xf32>
    %1045 = vector.extract_strided_slice %1044 {offsets = [9, 0], sizes = [1, 128], strides = [1, 1]} : vector<16x128xf32> to vector<1x128xf32>
    %1046 = vector.broadcast %1045 : vector<1x128xf32> to vector<16x128xf32>
    %1047 = arith.mulf %1046, %1044 : vector<16x128xf32>
    %1048 = arith.addf %1042, %1047 : vector<16x128xf32>
    %c6_559 = arith.constant 6 : index
    %c0_560 = arith.constant 0 : index
    %c0_561 = arith.constant 0 : index
    %1049 = vector.load %arg4[%c6_559, %c0_560, %c0_561] : memref<16x16x128xf32, #tpu.memory_space<vmem>>, vector<1x16x128xf32>
    %1050 = vector.shape_cast %1049 : vector<1x16x128xf32> to vector<16x128xf32>
    %1051 = vector.extract_strided_slice %1050 {offsets = [9, 0], sizes = [1, 128], strides = [1, 1]} : vector<16x128xf32> to vector<1x128xf32>
    %1052 = vector.broadcast %1051 : vector<1x128xf32> to vector<16x128xf32>
    %1053 = arith.mulf %1052, %1050 : vector<16x128xf32>
    %1054 = arith.addf %1048, %1053 : vector<16x128xf32>
    %c7_562 = arith.constant 7 : index
    %c0_563 = arith.constant 0 : index
    %c0_564 = arith.constant 0 : index
    %1055 = vector.load %arg4[%c7_562, %c0_563, %c0_564] : memref<16x16x128xf32, #tpu.memory_space<vmem>>, vector<1x16x128xf32>
    %1056 = vector.shape_cast %1055 : vector<1x16x128xf32> to vector<16x128xf32>
    %1057 = vector.extract_strided_slice %1056 {offsets = [9, 0], sizes = [1, 128], strides = [1, 1]} : vector<16x128xf32> to vector<1x128xf32>
    %1058 = vector.broadcast %1057 : vector<1x128xf32> to vector<16x128xf32>
    %1059 = arith.mulf %1058, %1056 : vector<16x128xf32>
    %1060 = arith.addf %1054, %1059 : vector<16x128xf32>
    %c8_565 = arith.constant 8 : index
    %c0_566 = arith.constant 0 : index
    %c0_567 = arith.constant 0 : index
    %1061 = vector.load %arg4[%c8_565, %c0_566, %c0_567] : memref<16x16x128xf32, #tpu.memory_space<vmem>>, vector<1x16x128xf32>
    %1062 = vector.shape_cast %1061 : vector<1x16x128xf32> to vector<16x128xf32>
    %1063 = vector.extract_strided_slice %1062 {offsets = [9, 0], sizes = [1, 128], strides = [1, 1]} : vector<16x128xf32> to vector<1x128xf32>
    %1064 = vector.broadcast %1063 : vector<1x128xf32> to vector<16x128xf32>
    %1065 = arith.mulf %1064, %1062 : vector<16x128xf32>
    %1066 = arith.addf %1060, %1065 : vector<16x128xf32>
    %c9_568 = arith.constant 9 : index
    %c0_569 = arith.constant 0 : index
    %c0_570 = arith.constant 0 : index
    %1067 = vector.load %arg4[%c9_568, %c0_569, %c0_570] : memref<16x16x128xf32, #tpu.memory_space<vmem>>, vector<1x16x128xf32>
    %1068 = vector.shape_cast %1067 : vector<1x16x128xf32> to vector<16x128xf32>
    %1069 = vector.extract_strided_slice %1068 {offsets = [9, 0], sizes = [1, 128], strides = [1, 1]} : vector<16x128xf32> to vector<1x128xf32>
    %1070 = vector.broadcast %1069 : vector<1x128xf32> to vector<16x128xf32>
    %1071 = arith.mulf %1070, %1068 : vector<16x128xf32>
    %1072 = arith.addf %1066, %1071 : vector<16x128xf32>
    %c10_571 = arith.constant 10 : index
    %c0_572 = arith.constant 0 : index
    %c0_573 = arith.constant 0 : index
    %1073 = vector.load %arg4[%c10_571, %c0_572, %c0_573] : memref<16x16x128xf32, #tpu.memory_space<vmem>>, vector<1x16x128xf32>
    %1074 = vector.shape_cast %1073 : vector<1x16x128xf32> to vector<16x128xf32>
    %1075 = vector.extract_strided_slice %1074 {offsets = [9, 0], sizes = [1, 128], strides = [1, 1]} : vector<16x128xf32> to vector<1x128xf32>
    %1076 = vector.broadcast %1075 : vector<1x128xf32> to vector<16x128xf32>
    %1077 = arith.mulf %1076, %1074 : vector<16x128xf32>
    %1078 = arith.addf %1072, %1077 : vector<16x128xf32>
    %c11_574 = arith.constant 11 : index
    %c0_575 = arith.constant 0 : index
    %c0_576 = arith.constant 0 : index
    %1079 = vector.load %arg4[%c11_574, %c0_575, %c0_576] : memref<16x16x128xf32, #tpu.memory_space<vmem>>, vector<1x16x128xf32>
    %1080 = vector.shape_cast %1079 : vector<1x16x128xf32> to vector<16x128xf32>
    %1081 = vector.extract_strided_slice %1080 {offsets = [9, 0], sizes = [1, 128], strides = [1, 1]} : vector<16x128xf32> to vector<1x128xf32>
    %1082 = vector.broadcast %1081 : vector<1x128xf32> to vector<16x128xf32>
    %1083 = arith.mulf %1082, %1080 : vector<16x128xf32>
    %1084 = arith.addf %1078, %1083 : vector<16x128xf32>
    %c12_577 = arith.constant 12 : index
    %c0_578 = arith.constant 0 : index
    %c0_579 = arith.constant 0 : index
    %1085 = vector.load %arg4[%c12_577, %c0_578, %c0_579] : memref<16x16x128xf32, #tpu.memory_space<vmem>>, vector<1x16x128xf32>
    %1086 = vector.shape_cast %1085 : vector<1x16x128xf32> to vector<16x128xf32>
    %1087 = vector.extract_strided_slice %1086 {offsets = [9, 0], sizes = [1, 128], strides = [1, 1]} : vector<16x128xf32> to vector<1x128xf32>
    %1088 = vector.broadcast %1087 : vector<1x128xf32> to vector<16x128xf32>
    %1089 = arith.mulf %1088, %1086 : vector<16x128xf32>
    %1090 = arith.addf %1084, %1089 : vector<16x128xf32>
    %c13_580 = arith.constant 13 : index
    %c0_581 = arith.constant 0 : index
    %c0_582 = arith.constant 0 : index
    %1091 = vector.load %arg4[%c13_580, %c0_581, %c0_582] : memref<16x16x128xf32, #tpu.memory_space<vmem>>, vector<1x16x128xf32>
    %1092 = vector.shape_cast %1091 : vector<1x16x128xf32> to vector<16x128xf32>
    %1093 = vector.extract_strided_slice %1092 {offsets = [9, 0], sizes = [1, 128], strides = [1, 1]} : vector<16x128xf32> to vector<1x128xf32>
    %1094 = vector.broadcast %1093 : vector<1x128xf32> to vector<16x128xf32>
    %1095 = arith.mulf %1094, %1092 : vector<16x128xf32>
    %1096 = arith.addf %1090, %1095 : vector<16x128xf32>
    %c14_583 = arith.constant 14 : index
    %c0_584 = arith.constant 0 : index
    %c0_585 = arith.constant 0 : index
    %1097 = vector.load %arg4[%c14_583, %c0_584, %c0_585] : memref<16x16x128xf32, #tpu.memory_space<vmem>>, vector<1x16x128xf32>
    %1098 = vector.shape_cast %1097 : vector<1x16x128xf32> to vector<16x128xf32>
    %1099 = vector.extract_strided_slice %1098 {offsets = [9, 0], sizes = [1, 128], strides = [1, 1]} : vector<16x128xf32> to vector<1x128xf32>
    %1100 = vector.broadcast %1099 : vector<1x128xf32> to vector<16x128xf32>
    %1101 = arith.mulf %1100, %1098 : vector<16x128xf32>
    %1102 = arith.addf %1096, %1101 : vector<16x128xf32>
    %c15_586 = arith.constant 15 : index
    %c0_587 = arith.constant 0 : index
    %c0_588 = arith.constant 0 : index
    %1103 = vector.load %arg4[%c15_586, %c0_587, %c0_588] : memref<16x16x128xf32, #tpu.memory_space<vmem>>, vector<1x16x128xf32>
    %1104 = vector.shape_cast %1103 : vector<1x16x128xf32> to vector<16x128xf32>
    %1105 = vector.extract_strided_slice %1104 {offsets = [9, 0], sizes = [1, 128], strides = [1, 1]} : vector<16x128xf32> to vector<1x128xf32>
    %1106 = vector.broadcast %1105 : vector<1x128xf32> to vector<16x128xf32>
    %1107 = arith.mulf %1106, %1104 : vector<16x128xf32>
    %1108 = arith.addf %1102, %1107 : vector<16x128xf32>
    %c9_589 = arith.constant 9 : index
    %c0_590 = arith.constant 0 : index
    %c0_591 = arith.constant 0 : index
    %1109 = vector.load %arg3[%c9_589, %c0_590, %c0_591] : memref<16x16x128xf32, #tpu.memory_space<vmem>>, vector<1x16x128xf32>
    %1110 = vector.shape_cast %1109 : vector<1x16x128xf32> to vector<16x128xf32>
    %1111 = vector.shape_cast %1108 : vector<16x128xf32> to vector<1x16x128xf32>
    tpu.vector_store %arg3[%c9_589, %c0_590, %c0_591], %1111 {strides = array<i32>} : memref<16x16x128xf32, #tpu.memory_space<vmem>>, vector<1x16x128xf32>,
    %c0_592 = arith.constant 0 : index
    %c0_593 = arith.constant 0 : index
    %c0_594 = arith.constant 0 : index
    %1112 = vector.load %arg4[%c0_592, %c0_593, %c0_594] : memref<16x16x128xf32, #tpu.memory_space<vmem>>, vector<1x16x128xf32>
    %1113 = vector.shape_cast %1112 : vector<1x16x128xf32> to vector<16x128xf32>
    %1114 = vector.extract_strided_slice %1113 {offsets = [10, 0], sizes = [1, 128], strides = [1, 1]} : vector<16x128xf32> to vector<1x128xf32>
    %1115 = vector.broadcast %1114 : vector<1x128xf32> to vector<16x128xf32>
    %1116 = arith.mulf %1115, %1113 : vector<16x128xf32>
    %c1_595 = arith.constant 1 : index
    %c0_596 = arith.constant 0 : index
    %c0_597 = arith.constant 0 : index
    %1117 = vector.load %arg4[%c1_595, %c0_596, %c0_597] : memref<16x16x128xf32, #tpu.memory_space<vmem>>, vector<1x16x128xf32>
    %1118 = vector.shape_cast %1117 : vector<1x16x128xf32> to vector<16x128xf32>
    %1119 = vector.extract_strided_slice %1118 {offsets = [10, 0], sizes = [1, 128], strides = [1, 1]} : vector<16x128xf32> to vector<1x128xf32>
    %1120 = vector.broadcast %1119 : vector<1x128xf32> to vector<16x128xf32>
    %1121 = arith.mulf %1120, %1118 : vector<16x128xf32>
    %1122 = arith.addf %1116, %1121 : vector<16x128xf32>
    %c2_598 = arith.constant 2 : index
    %c0_599 = arith.constant 0 : index
    %c0_600 = arith.constant 0 : index
    %1123 = vector.load %arg4[%c2_598, %c0_599, %c0_600] : memref<16x16x128xf32, #tpu.memory_space<vmem>>, vector<1x16x128xf32>
    %1124 = vector.shape_cast %1123 : vector<1x16x128xf32> to vector<16x128xf32>
    %1125 = vector.extract_strided_slice %1124 {offsets = [10, 0], sizes = [1, 128], strides = [1, 1]} : vector<16x128xf32> to vector<1x128xf32>
    %1126 = vector.broadcast %1125 : vector<1x128xf32> to vector<16x128xf32>
    %1127 = arith.mulf %1126, %1124 : vector<16x128xf32>
    %1128 = arith.addf %1122, %1127 : vector<16x128xf32>
    %c3_601 = arith.constant 3 : index
    %c0_602 = arith.constant 0 : index
    %c0_603 = arith.constant 0 : index
    %1129 = vector.load %arg4[%c3_601, %c0_602, %c0_603] : memref<16x16x128xf32, #tpu.memory_space<vmem>>, vector<1x16x128xf32>
    %1130 = vector.shape_cast %1129 : vector<1x16x128xf32> to vector<16x128xf32>
    %1131 = vector.extract_strided_slice %1130 {offsets = [10, 0], sizes = [1, 128], strides = [1, 1]} : vector<16x128xf32> to vector<1x128xf32>
    %1132 = vector.broadcast %1131 : vector<1x128xf32> to vector<16x128xf32>
    %1133 = arith.mulf %1132, %1130 : vector<16x128xf32>
    %1134 = arith.addf %1128, %1133 : vector<16x128xf32>
    %c4_604 = arith.constant 4 : index
    %c0_605 = arith.constant 0 : index
    %c0_606 = arith.constant 0 : index
    %1135 = vector.load %arg4[%c4_604, %c0_605, %c0_606] : memref<16x16x128xf32, #tpu.memory_space<vmem>>, vector<1x16x128xf32>
    %1136 = vector.shape_cast %1135 : vector<1x16x128xf32> to vector<16x128xf32>
    %1137 = vector.extract_strided_slice %1136 {offsets = [10, 0], sizes = [1, 128], strides = [1, 1]} : vector<16x128xf32> to vector<1x128xf32>
    %1138 = vector.broadcast %1137 : vector<1x128xf32> to vector<16x128xf32>
    %1139 = arith.mulf %1138, %1136 : vector<16x128xf32>
    %1140 = arith.addf %1134, %1139 : vector<16x128xf32>
    %c5_607 = arith.constant 5 : index
    %c0_608 = arith.constant 0 : index
    %c0_609 = arith.constant 0 : index
    %1141 = vector.load %arg4[%c5_607, %c0_608, %c0_609] : memref<16x16x128xf32, #tpu.memory_space<vmem>>, vector<1x16x128xf32>
    %1142 = vector.shape_cast %1141 : vector<1x16x128xf32> to vector<16x128xf32>
    %1143 = vector.extract_strided_slice %1142 {offsets = [10, 0], sizes = [1, 128], strides = [1, 1]} : vector<16x128xf32> to vector<1x128xf32>
    %1144 = vector.broadcast %1143 : vector<1x128xf32> to vector<16x128xf32>
    %1145 = arith.mulf %1144, %1142 : vector<16x128xf32>
    %1146 = arith.addf %1140, %1145 : vector<16x128xf32>
    %c6_610 = arith.constant 6 : index
    %c0_611 = arith.constant 0 : index
    %c0_612 = arith.constant 0 : index
    %1147 = vector.load %arg4[%c6_610, %c0_611, %c0_612] : memref<16x16x128xf32, #tpu.memory_space<vmem>>, vector<1x16x128xf32>
    %1148 = vector.shape_cast %1147 : vector<1x16x128xf32> to vector<16x128xf32>
    %1149 = vector.extract_strided_slice %1148 {offsets = [10, 0], sizes = [1, 128], strides = [1, 1]} : vector<16x128xf32> to vector<1x128xf32>
    %1150 = vector.broadcast %1149 : vector<1x128xf32> to vector<16x128xf32>
    %1151 = arith.mulf %1150, %1148 : vector<16x128xf32>
    %1152 = arith.addf %1146, %1151 : vector<16x128xf32>
    %c7_613 = arith.constant 7 : index
    %c0_614 = arith.constant 0 : index
    %c0_615 = arith.constant 0 : index
    %1153 = vector.load %arg4[%c7_613, %c0_614, %c0_615] : memref<16x16x128xf32, #tpu.memory_space<vmem>>, vector<1x16x128xf32>
    %1154 = vector.shape_cast %1153 : vector<1x16x128xf32> to vector<16x128xf32>
    %1155 = vector.extract_strided_slice %1154 {offsets = [10, 0], sizes = [1, 128], strides = [1, 1]} : vector<16x128xf32> to vector<1x128xf32>
    %1156 = vector.broadcast %1155 : vector<1x128xf32> to vector<16x128xf32>
    %1157 = arith.mulf %1156, %1154 : vector<16x128xf32>
    %1158 = arith.addf %1152, %1157 : vector<16x128xf32>
    %c8_616 = arith.constant 8 : index
    %c0_617 = arith.constant 0 : index
    %c0_618 = arith.constant 0 : index
    %1159 = vector.load %arg4[%c8_616, %c0_617, %c0_618] : memref<16x16x128xf32, #tpu.memory_space<vmem>>, vector<1x16x128xf32>
    %1160 = vector.shape_cast %1159 : vector<1x16x128xf32> to vector<16x128xf32>
    %1161 = vector.extract_strided_slice %1160 {offsets = [10, 0], sizes = [1, 128], strides = [1, 1]} : vector<16x128xf32> to vector<1x128xf32>
    %1162 = vector.broadcast %1161 : vector<1x128xf32> to vector<16x128xf32>
    %1163 = arith.mulf %1162, %1160 : vector<16x128xf32>
    %1164 = arith.addf %1158, %1163 : vector<16x128xf32>
    %c9_619 = arith.constant 9 : index
    %c0_620 = arith.constant 0 : index
    %c0_621 = arith.constant 0 : index
    %1165 = vector.load %arg4[%c9_619, %c0_620, %c0_621] : memref<16x16x128xf32, #tpu.memory_space<vmem>>, vector<1x16x128xf32>
    %1166 = vector.shape_cast %1165 : vector<1x16x128xf32> to vector<16x128xf32>
    %1167 = vector.extract_strided_slice %1166 {offsets = [10, 0], sizes = [1, 128], strides = [1, 1]} : vector<16x128xf32> to vector<1x128xf32>
    %1168 = vector.broadcast %1167 : vector<1x128xf32> to vector<16x128xf32>
    %1169 = arith.mulf %1168, %1166 : vector<16x128xf32>
    %1170 = arith.addf %1164, %1169 : vector<16x128xf32>
    %c10_622 = arith.constant 10 : index
    %c0_623 = arith.constant 0 : index
    %c0_624 = arith.constant 0 : index
    %1171 = vector.load %arg4[%c10_622, %c0_623, %c0_624] : memref<16x16x128xf32, #tpu.memory_space<vmem>>, vector<1x16x128xf32>
    %1172 = vector.shape_cast %1171 : vector<1x16x128xf32> to vector<16x128xf32>
    %1173 = vector.extract_strided_slice %1172 {offsets = [10, 0], sizes = [1, 128], strides = [1, 1]} : vector<16x128xf32> to vector<1x128xf32>
    %1174 = vector.broadcast %1173 : vector<1x128xf32> to vector<16x128xf32>
    %1175 = arith.mulf %1174, %1172 : vector<16x128xf32>
    %1176 = arith.addf %1170, %1175 : vector<16x128xf32>
    %c11_625 = arith.constant 11 : index
    %c0_626 = arith.constant 0 : index
    %c0_627 = arith.constant 0 : index
    %1177 = vector.load %arg4[%c11_625, %c0_626, %c0_627] : memref<16x16x128xf32, #tpu.memory_space<vmem>>, vector<1x16x128xf32>
    %1178 = vector.shape_cast %1177 : vector<1x16x128xf32> to vector<16x128xf32>
    %1179 = vector.extract_strided_slice %1178 {offsets = [10, 0], sizes = [1, 128], strides = [1, 1]} : vector<16x128xf32> to vector<1x128xf32>
    %1180 = vector.broadcast %1179 : vector<1x128xf32> to vector<16x128xf32>
    %1181 = arith.mulf %1180, %1178 : vector<16x128xf32>
    %1182 = arith.addf %1176, %1181 : vector<16x128xf32>
    %c12_628 = arith.constant 12 : index
    %c0_629 = arith.constant 0 : index
    %c0_630 = arith.constant 0 : index
    %1183 = vector.load %arg4[%c12_628, %c0_629, %c0_630] : memref<16x16x128xf32, #tpu.memory_space<vmem>>, vector<1x16x128xf32>
    %1184 = vector.shape_cast %1183 : vector<1x16x128xf32> to vector<16x128xf32>
    %1185 = vector.extract_strided_slice %1184 {offsets = [10, 0], sizes = [1, 128], strides = [1, 1]} : vector<16x128xf32> to vector<1x128xf32>
    %1186 = vector.broadcast %1185 : vector<1x128xf32> to vector<16x128xf32>
    %1187 = arith.mulf %1186, %1184 : vector<16x128xf32>
    %1188 = arith.addf %1182, %1187 : vector<16x128xf32>
    %c13_631 = arith.constant 13 : index
    %c0_632 = arith.constant 0 : index
    %c0_633 = arith.constant 0 : index
    %1189 = vector.load %arg4[%c13_631, %c0_632, %c0_633] : memref<16x16x128xf32, #tpu.memory_space<vmem>>, vector<1x16x128xf32>
    %1190 = vector.shape_cast %1189 : vector<1x16x128xf32> to vector<16x128xf32>
    %1191 = vector.extract_strided_slice %1190 {offsets = [10, 0], sizes = [1, 128], strides = [1, 1]} : vector<16x128xf32> to vector<1x128xf32>
    %1192 = vector.broadcast %1191 : vector<1x128xf32> to vector<16x128xf32>
    %1193 = arith.mulf %1192, %1190 : vector<16x128xf32>
    %1194 = arith.addf %1188, %1193 : vector<16x128xf32>
    %c14_634 = arith.constant 14 : index
    %c0_635 = arith.constant 0 : index
    %c0_636 = arith.constant 0 : index
    %1195 = vector.load %arg4[%c14_634, %c0_635, %c0_636] : memref<16x16x128xf32, #tpu.memory_space<vmem>>, vector<1x16x128xf32>
    %1196 = vector.shape_cast %1195 : vector<1x16x128xf32> to vector<16x128xf32>
    %1197 = vector.extract_strided_slice %1196 {offsets = [10, 0], sizes = [1, 128], strides = [1, 1]} : vector<16x128xf32> to vector<1x128xf32>
    %1198 = vector.broadcast %1197 : vector<1x128xf32> to vector<16x128xf32>
    %1199 = arith.mulf %1198, %1196 : vector<16x128xf32>
    %1200 = arith.addf %1194, %1199 : vector<16x128xf32>
    %c15_637 = arith.constant 15 : index
    %c0_638 = arith.constant 0 : index
    %c0_639 = arith.constant 0 : index
    %1201 = vector.load %arg4[%c15_637, %c0_638, %c0_639] : memref<16x16x128xf32, #tpu.memory_space<vmem>>, vector<1x16x128xf32>
    %1202 = vector.shape_cast %1201 : vector<1x16x128xf32> to vector<16x128xf32>
    %1203 = vector.extract_strided_slice %1202 {offsets = [10, 0], sizes = [1, 128], strides = [1, 1]} : vector<16x128xf32> to vector<1x128xf32>
    %1204 = vector.broadcast %1203 : vector<1x128xf32> to vector<16x128xf32>
    %1205 = arith.mulf %1204, %1202 : vector<16x128xf32>
    %1206 = arith.addf %1200, %1205 : vector<16x128xf32>
    %c10_640 = arith.constant 10 : index
    %c0_641 = arith.constant 0 : index
    %c0_642 = arith.constant 0 : index
    %1207 = vector.load %arg3[%c10_640, %c0_641, %c0_642] : memref<16x16x128xf32, #tpu.memory_space<vmem>>, vector<1x16x128xf32>
    %1208 = vector.shape_cast %1207 : vector<1x16x128xf32> to vector<16x128xf32>
    %1209 = vector.shape_cast %1206 : vector<16x128xf32> to vector<1x16x128xf32>
    tpu.vector_store %arg3[%c10_640, %c0_641, %c0_642], %1209 {strides = array<i32>} : memref<16x16x128xf32, #tpu.memory_space<vmem>>, vector<1x16x128xf32>,
    %c0_643 = arith.constant 0 : index
    %c0_644 = arith.constant 0 : index
    %c0_645 = arith.constant 0 : index
    %1210 = vector.load %arg4[%c0_643, %c0_644, %c0_645] : memref<16x16x128xf32, #tpu.memory_space<vmem>>, vector<1x16x128xf32>
    %1211 = vector.shape_cast %1210 : vector<1x16x128xf32> to vector<16x128xf32>
    %1212 = vector.extract_strided_slice %1211 {offsets = [11, 0], sizes = [1, 128], strides = [1, 1]} : vector<16x128xf32> to vector<1x128xf32>
    %1213 = vector.broadcast %1212 : vector<1x128xf32> to vector<16x128xf32>
    %1214 = arith.mulf %1213, %1211 : vector<16x128xf32>
    %c1_646 = arith.constant 1 : index
    %c0_647 = arith.constant 0 : index
    %c0_648 = arith.constant 0 : index
    %1215 = vector.load %arg4[%c1_646, %c0_647, %c0_648] : memref<16x16x128xf32, #tpu.memory_space<vmem>>, vector<1x16x128xf32>
    %1216 = vector.shape_cast %1215 : vector<1x16x128xf32> to vector<16x128xf32>
    %1217 = vector.extract_strided_slice %1216 {offsets = [11, 0], sizes = [1, 128], strides = [1, 1]} : vector<16x128xf32> to vector<1x128xf32>
    %1218 = vector.broadcast %1217 : vector<1x128xf32> to vector<16x128xf32>
    %1219 = arith.mulf %1218, %1216 : vector<16x128xf32>
    %1220 = arith.addf %1214, %1219 : vector<16x128xf32>
    %c2_649 = arith.constant 2 : index
    %c0_650 = arith.constant 0 : index
    %c0_651 = arith.constant 0 : index
    %1221 = vector.load %arg4[%c2_649, %c0_650, %c0_651] : memref<16x16x128xf32, #tpu.memory_space<vmem>>, vector<1x16x128xf32>
    %1222 = vector.shape_cast %1221 : vector<1x16x128xf32> to vector<16x128xf32>
    %1223 = vector.extract_strided_slice %1222 {offsets = [11, 0], sizes = [1, 128], strides = [1, 1]} : vector<16x128xf32> to vector<1x128xf32>
    %1224 = vector.broadcast %1223 : vector<1x128xf32> to vector<16x128xf32>
    %1225 = arith.mulf %1224, %1222 : vector<16x128xf32>
    %1226 = arith.addf %1220, %1225 : vector<16x128xf32>
    %c3_652 = arith.constant 3 : index
    %c0_653 = arith.constant 0 : index
    %c0_654 = arith.constant 0 : index
    %1227 = vector.load %arg4[%c3_652, %c0_653, %c0_654] : memref<16x16x128xf32, #tpu.memory_space<vmem>>, vector<1x16x128xf32>
    %1228 = vector.shape_cast %1227 : vector<1x16x128xf32> to vector<16x128xf32>
    %1229 = vector.extract_strided_slice %1228 {offsets = [11, 0], sizes = [1, 128], strides = [1, 1]} : vector<16x128xf32> to vector<1x128xf32>
    %1230 = vector.broadcast %1229 : vector<1x128xf32> to vector<16x128xf32>
    %1231 = arith.mulf %1230, %1228 : vector<16x128xf32>
    %1232 = arith.addf %1226, %1231 : vector<16x128xf32>
    %c4_655 = arith.constant 4 : index
    %c0_656 = arith.constant 0 : index
    %c0_657 = arith.constant 0 : index
    %1233 = vector.load %arg4[%c4_655, %c0_656, %c0_657] : memref<16x16x128xf32, #tpu.memory_space<vmem>>, vector<1x16x128xf32>
    %1234 = vector.shape_cast %1233 : vector<1x16x128xf32> to vector<16x128xf32>
    %1235 = vector.extract_strided_slice %1234 {offsets = [11, 0], sizes = [1, 128], strides = [1, 1]} : vector<16x128xf32> to vector<1x128xf32>
    %1236 = vector.broadcast %1235 : vector<1x128xf32> to vector<16x128xf32>
    %1237 = arith.mulf %1236, %1234 : vector<16x128xf32>
    %1238 = arith.addf %1232, %1237 : vector<16x128xf32>
    %c5_658 = arith.constant 5 : index
    %c0_659 = arith.constant 0 : index
    %c0_660 = arith.constant 0 : index
    %1239 = vector.load %arg4[%c5_658, %c0_659, %c0_660] : memref<16x16x128xf32, #tpu.memory_space<vmem>>, vector<1x16x128xf32>
    %1240 = vector.shape_cast %1239 : vector<1x16x128xf32> to vector<16x128xf32>
    %1241 = vector.extract_strided_slice %1240 {offsets = [11, 0], sizes = [1, 128], strides = [1, 1]} : vector<16x128xf32> to vector<1x128xf32>
    %1242 = vector.broadcast %1241 : vector<1x128xf32> to vector<16x128xf32>
    %1243 = arith.mulf %1242, %1240 : vector<16x128xf32>
    %1244 = arith.addf %1238, %1243 : vector<16x128xf32>
    %c6_661 = arith.constant 6 : index
    %c0_662 = arith.constant 0 : index
    %c0_663 = arith.constant 0 : index
    %1245 = vector.load %arg4[%c6_661, %c0_662, %c0_663] : memref<16x16x128xf32, #tpu.memory_space<vmem>>, vector<1x16x128xf32>
    %1246 = vector.shape_cast %1245 : vector<1x16x128xf32> to vector<16x128xf32>
    %1247 = vector.extract_strided_slice %1246 {offsets = [11, 0], sizes = [1, 128], strides = [1, 1]} : vector<16x128xf32> to vector<1x128xf32>
    %1248 = vector.broadcast %1247 : vector<1x128xf32> to vector<16x128xf32>
    %1249 = arith.mulf %1248, %1246 : vector<16x128xf32>
    %1250 = arith.addf %1244, %1249 : vector<16x128xf32>
    %c7_664 = arith.constant 7 : index
    %c0_665 = arith.constant 0 : index
    %c0_666 = arith.constant 0 : index
    %1251 = vector.load %arg4[%c7_664, %c0_665, %c0_666] : memref<16x16x128xf32, #tpu.memory_space<vmem>>, vector<1x16x128xf32>
    %1252 = vector.shape_cast %1251 : vector<1x16x128xf32> to vector<16x128xf32>
    %1253 = vector.extract_strided_slice %1252 {offsets = [11, 0], sizes = [1, 128], strides = [1, 1]} : vector<16x128xf32> to vector<1x128xf32>
    %1254 = vector.broadcast %1253 : vector<1x128xf32> to vector<16x128xf32>
    %1255 = arith.mulf %1254, %1252 : vector<16x128xf32>
    %1256 = arith.addf %1250, %1255 : vector<16x128xf32>
    %c8_667 = arith.constant 8 : index
    %c0_668 = arith.constant 0 : index
    %c0_669 = arith.constant 0 : index
    %1257 = vector.load %arg4[%c8_667, %c0_668, %c0_669] : memref<16x16x128xf32, #tpu.memory_space<vmem>>, vector<1x16x128xf32>
    %1258 = vector.shape_cast %1257 : vector<1x16x128xf32> to vector<16x128xf32>
    %1259 = vector.extract_strided_slice %1258 {offsets = [11, 0], sizes = [1, 128], strides = [1, 1]} : vector<16x128xf32> to vector<1x128xf32>
    %1260 = vector.broadcast %1259 : vector<1x128xf32> to vector<16x128xf32>
    %1261 = arith.mulf %1260, %1258 : vector<16x128xf32>
    %1262 = arith.addf %1256, %1261 : vector<16x128xf32>
    %c9_670 = arith.constant 9 : index
    %c0_671 = arith.constant 0 : index
    %c0_672 = arith.constant 0 : index
    %1263 = vector.load %arg4[%c9_670, %c0_671, %c0_672] : memref<16x16x128xf32, #tpu.memory_space<vmem>>, vector<1x16x128xf32>
    %1264 = vector.shape_cast %1263 : vector<1x16x128xf32> to vector<16x128xf32>
    %1265 = vector.extract_strided_slice %1264 {offsets = [11, 0], sizes = [1, 128], strides = [1, 1]} : vector<16x128xf32> to vector<1x128xf32>
    %1266 = vector.broadcast %1265 : vector<1x128xf32> to vector<16x128xf32>
    %1267 = arith.mulf %1266, %1264 : vector<16x128xf32>
    %1268 = arith.addf %1262, %1267 : vector<16x128xf32>
    %c10_673 = arith.constant 10 : index
    %c0_674 = arith.constant 0 : index
    %c0_675 = arith.constant 0 : index
    %1269 = vector.load %arg4[%c10_673, %c0_674, %c0_675] : memref<16x16x128xf32, #tpu.memory_space<vmem>>, vector<1x16x128xf32>
    %1270 = vector.shape_cast %1269 : vector<1x16x128xf32> to vector<16x128xf32>
    %1271 = vector.extract_strided_slice %1270 {offsets = [11, 0], sizes = [1, 128], strides = [1, 1]} : vector<16x128xf32> to vector<1x128xf32>
    %1272 = vector.broadcast %1271 : vector<1x128xf32> to vector<16x128xf32>
    %1273 = arith.mulf %1272, %1270 : vector<16x128xf32>
    %1274 = arith.addf %1268, %1273 : vector<16x128xf32>
    %c11_676 = arith.constant 11 : index
    %c0_677 = arith.constant 0 : index
    %c0_678 = arith.constant 0 : index
    %1275 = vector.load %arg4[%c11_676, %c0_677, %c0_678] : memref<16x16x128xf32, #tpu.memory_space<vmem>>, vector<1x16x128xf32>
    %1276 = vector.shape_cast %1275 : vector<1x16x128xf32> to vector<16x128xf32>
    %1277 = vector.extract_strided_slice %1276 {offsets = [11, 0], sizes = [1, 128], strides = [1, 1]} : vector<16x128xf32> to vector<1x128xf32>
    %1278 = vector.broadcast %1277 : vector<1x128xf32> to vector<16x128xf32>
    %1279 = arith.mulf %1278, %1276 : vector<16x128xf32>
    %1280 = arith.addf %1274, %1279 : vector<16x128xf32>
    %c12_679 = arith.constant 12 : index
    %c0_680 = arith.constant 0 : index
    %c0_681 = arith.constant 0 : index
    %1281 = vector.load %arg4[%c12_679, %c0_680, %c0_681] : memref<16x16x128xf32, #tpu.memory_space<vmem>>, vector<1x16x128xf32>
    %1282 = vector.shape_cast %1281 : vector<1x16x128xf32> to vector<16x128xf32>
    %1283 = vector.extract_strided_slice %1282 {offsets = [11, 0], sizes = [1, 128], strides = [1, 1]} : vector<16x128xf32> to vector<1x128xf32>
    %1284 = vector.broadcast %1283 : vector<1x128xf32> to vector<16x128xf32>
    %1285 = arith.mulf %1284, %1282 : vector<16x128xf32>
    %1286 = arith.addf %1280, %1285 : vector<16x128xf32>
    %c13_682 = arith.constant 13 : index
    %c0_683 = arith.constant 0 : index
    %c0_684 = arith.constant 0 : index
    %1287 = vector.load %arg4[%c13_682, %c0_683, %c0_684] : memref<16x16x128xf32, #tpu.memory_space<vmem>>, vector<1x16x128xf32>
    %1288 = vector.shape_cast %1287 : vector<1x16x128xf32> to vector<16x128xf32>
    %1289 = vector.extract_strided_slice %1288 {offsets = [11, 0], sizes = [1, 128], strides = [1, 1]} : vector<16x128xf32> to vector<1x128xf32>
    %1290 = vector.broadcast %1289 : vector<1x128xf32> to vector<16x128xf32>
    %1291 = arith.mulf %1290, %1288 : vector<16x128xf32>
    %1292 = arith.addf %1286, %1291 : vector<16x128xf32>
    %c14_685 = arith.constant 14 : index
    %c0_686 = arith.constant 0 : index
    %c0_687 = arith.constant 0 : index
    %1293 = vector.load %arg4[%c14_685, %c0_686, %c0_687] : memref<16x16x128xf32, #tpu.memory_space<vmem>>, vector<1x16x128xf32>
    %1294 = vector.shape_cast %1293 : vector<1x16x128xf32> to vector<16x128xf32>
    %1295 = vector.extract_strided_slice %1294 {offsets = [11, 0], sizes = [1, 128], strides = [1, 1]} : vector<16x128xf32> to vector<1x128xf32>
    %1296 = vector.broadcast %1295 : vector<1x128xf32> to vector<16x128xf32>
    %1297 = arith.mulf %1296, %1294 : vector<16x128xf32>
    %1298 = arith.addf %1292, %1297 : vector<16x128xf32>
    %c15_688 = arith.constant 15 : index
    %c0_689 = arith.constant 0 : index
    %c0_690 = arith.constant 0 : index
    %1299 = vector.load %arg4[%c15_688, %c0_689, %c0_690] : memref<16x16x128xf32, #tpu.memory_space<vmem>>, vector<1x16x128xf32>
    %1300 = vector.shape_cast %1299 : vector<1x16x128xf32> to vector<16x128xf32>
    %1301 = vector.extract_strided_slice %1300 {offsets = [11, 0], sizes = [1, 128], strides = [1, 1]} : vector<16x128xf32> to vector<1x128xf32>
    %1302 = vector.broadcast %1301 : vector<1x128xf32> to vector<16x128xf32>
    %1303 = arith.mulf %1302, %1300 : vector<16x128xf32>
    %1304 = arith.addf %1298, %1303 : vector<16x128xf32>
    %c11_691 = arith.constant 11 : index
    %c0_692 = arith.constant 0 : index
    %c0_693 = arith.constant 0 : index
    %1305 = vector.load %arg3[%c11_691, %c0_692, %c0_693] : memref<16x16x128xf32, #tpu.memory_space<vmem>>, vector<1x16x128xf32>
    %1306 = vector.shape_cast %1305 : vector<1x16x128xf32> to vector<16x128xf32>
    %1307 = vector.shape_cast %1304 : vector<16x128xf32> to vector<1x16x128xf32>
    tpu.vector_store %arg3[%c11_691, %c0_692, %c0_693], %1307 {strides = array<i32>} : memref<16x16x128xf32, #tpu.memory_space<vmem>>, vector<1x16x128xf32>,
    %c0_694 = arith.constant 0 : index
    %c0_695 = arith.constant 0 : index
    %c0_696 = arith.constant 0 : index
    %1308 = vector.load %arg4[%c0_694, %c0_695, %c0_696] : memref<16x16x128xf32, #tpu.memory_space<vmem>>, vector<1x16x128xf32>
    %1309 = vector.shape_cast %1308 : vector<1x16x128xf32> to vector<16x128xf32>
    %1310 = vector.extract_strided_slice %1309 {offsets = [12, 0], sizes = [1, 128], strides = [1, 1]} : vector<16x128xf32> to vector<1x128xf32>
    %1311 = vector.broadcast %1310 : vector<1x128xf32> to vector<16x128xf32>
    %1312 = arith.mulf %1311, %1309 : vector<16x128xf32>
    %c1_697 = arith.constant 1 : index
    %c0_698 = arith.constant 0 : index
    %c0_699 = arith.constant 0 : index
    %1313 = vector.load %arg4[%c1_697, %c0_698, %c0_699] : memref<16x16x128xf32, #tpu.memory_space<vmem>>, vector<1x16x128xf32>
    %1314 = vector.shape_cast %1313 : vector<1x16x128xf32> to vector<16x128xf32>
    %1315 = vector.extract_strided_slice %1314 {offsets = [12, 0], sizes = [1, 128], strides = [1, 1]} : vector<16x128xf32> to vector<1x128xf32>
    %1316 = vector.broadcast %1315 : vector<1x128xf32> to vector<16x128xf32>
    %1317 = arith.mulf %1316, %1314 : vector<16x128xf32>
    %1318 = arith.addf %1312, %1317 : vector<16x128xf32>
    %c2_700 = arith.constant 2 : index
    %c0_701 = arith.constant 0 : index
    %c0_702 = arith.constant 0 : index
    %1319 = vector.load %arg4[%c2_700, %c0_701, %c0_702] : memref<16x16x128xf32, #tpu.memory_space<vmem>>, vector<1x16x128xf32>
    %1320 = vector.shape_cast %1319 : vector<1x16x128xf32> to vector<16x128xf32>
    %1321 = vector.extract_strided_slice %1320 {offsets = [12, 0], sizes = [1, 128], strides = [1, 1]} : vector<16x128xf32> to vector<1x128xf32>
    %1322 = vector.broadcast %1321 : vector<1x128xf32> to vector<16x128xf32>
    %1323 = arith.mulf %1322, %1320 : vector<16x128xf32>
    %1324 = arith.addf %1318, %1323 : vector<16x128xf32>
    %c3_703 = arith.constant 3 : index
    %c0_704 = arith.constant 0 : index
    %c0_705 = arith.constant 0 : index
    %1325 = vector.load %arg4[%c3_703, %c0_704, %c0_705] : memref<16x16x128xf32, #tpu.memory_space<vmem>>, vector<1x16x128xf32>
    %1326 = vector.shape_cast %1325 : vector<1x16x128xf32> to vector<16x128xf32>
    %1327 = vector.extract_strided_slice %1326 {offsets = [12, 0], sizes = [1, 128], strides = [1, 1]} : vector<16x128xf32> to vector<1x128xf32>
    %1328 = vector.broadcast %1327 : vector<1x128xf32> to vector<16x128xf32>
    %1329 = arith.mulf %1328, %1326 : vector<16x128xf32>
    %1330 = arith.addf %1324, %1329 : vector<16x128xf32>
    %c4_706 = arith.constant 4 : index
    %c0_707 = arith.constant 0 : index
    %c0_708 = arith.constant 0 : index
    %1331 = vector.load %arg4[%c4_706, %c0_707, %c0_708] : memref<16x16x128xf32, #tpu.memory_space<vmem>>, vector<1x16x128xf32>
    %1332 = vector.shape_cast %1331 : vector<1x16x128xf32> to vector<16x128xf32>
    %1333 = vector.extract_strided_slice %1332 {offsets = [12, 0], sizes = [1, 128], strides = [1, 1]} : vector<16x128xf32> to vector<1x128xf32>
    %1334 = vector.broadcast %1333 : vector<1x128xf32> to vector<16x128xf32>
    %1335 = arith.mulf %1334, %1332 : vector<16x128xf32>
    %1336 = arith.addf %1330, %1335 : vector<16x128xf32>
    %c5_709 = arith.constant 5 : index
    %c0_710 = arith.constant 0 : index
    %c0_711 = arith.constant 0 : index
    %1337 = vector.load %arg4[%c5_709, %c0_710, %c0_711] : memref<16x16x128xf32, #tpu.memory_space<vmem>>, vector<1x16x128xf32>
    %1338 = vector.shape_cast %1337 : vector<1x16x128xf32> to vector<16x128xf32>
    %1339 = vector.extract_strided_slice %1338 {offsets = [12, 0], sizes = [1, 128], strides = [1, 1]} : vector<16x128xf32> to vector<1x128xf32>
    %1340 = vector.broadcast %1339 : vector<1x128xf32> to vector<16x128xf32>
    %1341 = arith.mulf %1340, %1338 : vector<16x128xf32>
    %1342 = arith.addf %1336, %1341 : vector<16x128xf32>
    %c6_712 = arith.constant 6 : index
    %c0_713 = arith.constant 0 : index
    %c0_714 = arith.constant 0 : index
    %1343 = vector.load %arg4[%c6_712, %c0_713, %c0_714] : memref<16x16x128xf32, #tpu.memory_space<vmem>>, vector<1x16x128xf32>
    %1344 = vector.shape_cast %1343 : vector<1x16x128xf32> to vector<16x128xf32>
    %1345 = vector.extract_strided_slice %1344 {offsets = [12, 0], sizes = [1, 128], strides = [1, 1]} : vector<16x128xf32> to vector<1x128xf32>
    %1346 = vector.broadcast %1345 : vector<1x128xf32> to vector<16x128xf32>
    %1347 = arith.mulf %1346, %1344 : vector<16x128xf32>
    %1348 = arith.addf %1342, %1347 : vector<16x128xf32>
    %c7_715 = arith.constant 7 : index
    %c0_716 = arith.constant 0 : index
    %c0_717 = arith.constant 0 : index
    %1349 = vector.load %arg4[%c7_715, %c0_716, %c0_717] : memref<16x16x128xf32, #tpu.memory_space<vmem>>, vector<1x16x128xf32>
    %1350 = vector.shape_cast %1349 : vector<1x16x128xf32> to vector<16x128xf32>
    %1351 = vector.extract_strided_slice %1350 {offsets = [12, 0], sizes = [1, 128], strides = [1, 1]} : vector<16x128xf32> to vector<1x128xf32>
    %1352 = vector.broadcast %1351 : vector<1x128xf32> to vector<16x128xf32>
    %1353 = arith.mulf %1352, %1350 : vector<16x128xf32>
    %1354 = arith.addf %1348, %1353 : vector<16x128xf32>
    %c8_718 = arith.constant 8 : index
    %c0_719 = arith.constant 0 : index
    %c0_720 = arith.constant 0 : index
    %1355 = vector.load %arg4[%c8_718, %c0_719, %c0_720] : memref<16x16x128xf32, #tpu.memory_space<vmem>>, vector<1x16x128xf32>
    %1356 = vector.shape_cast %1355 : vector<1x16x128xf32> to vector<16x128xf32>
    %1357 = vector.extract_strided_slice %1356 {offsets = [12, 0], sizes = [1, 128], strides = [1, 1]} : vector<16x128xf32> to vector<1x128xf32>
    %1358 = vector.broadcast %1357 : vector<1x128xf32> to vector<16x128xf32>
    %1359 = arith.mulf %1358, %1356 : vector<16x128xf32>
    %1360 = arith.addf %1354, %1359 : vector<16x128xf32>
    %c9_721 = arith.constant 9 : index
    %c0_722 = arith.constant 0 : index
    %c0_723 = arith.constant 0 : index
    %1361 = vector.load %arg4[%c9_721, %c0_722, %c0_723] : memref<16x16x128xf32, #tpu.memory_space<vmem>>, vector<1x16x128xf32>
    %1362 = vector.shape_cast %1361 : vector<1x16x128xf32> to vector<16x128xf32>
    %1363 = vector.extract_strided_slice %1362 {offsets = [12, 0], sizes = [1, 128], strides = [1, 1]} : vector<16x128xf32> to vector<1x128xf32>
    %1364 = vector.broadcast %1363 : vector<1x128xf32> to vector<16x128xf32>
    %1365 = arith.mulf %1364, %1362 : vector<16x128xf32>
    %1366 = arith.addf %1360, %1365 : vector<16x128xf32>
    %c10_724 = arith.constant 10 : index
    %c0_725 = arith.constant 0 : index
    %c0_726 = arith.constant 0 : index
    %1367 = vector.load %arg4[%c10_724, %c0_725, %c0_726] : memref<16x16x128xf32, #tpu.memory_space<vmem>>, vector<1x16x128xf32>
    %1368 = vector.shape_cast %1367 : vector<1x16x128xf32> to vector<16x128xf32>
    %1369 = vector.extract_strided_slice %1368 {offsets = [12, 0], sizes = [1, 128], strides = [1, 1]} : vector<16x128xf32> to vector<1x128xf32>
    %1370 = vector.broadcast %1369 : vector<1x128xf32> to vector<16x128xf32>
    %1371 = arith.mulf %1370, %1368 : vector<16x128xf32>
    %1372 = arith.addf %1366, %1371 : vector<16x128xf32>
    %c11_727 = arith.constant 11 : index
    %c0_728 = arith.constant 0 : index
    %c0_729 = arith.constant 0 : index
    %1373 = vector.load %arg4[%c11_727, %c0_728, %c0_729] : memref<16x16x128xf32, #tpu.memory_space<vmem>>, vector<1x16x128xf32>
    %1374 = vector.shape_cast %1373 : vector<1x16x128xf32> to vector<16x128xf32>
    %1375 = vector.extract_strided_slice %1374 {offsets = [12, 0], sizes = [1, 128], strides = [1, 1]} : vector<16x128xf32> to vector<1x128xf32>
    %1376 = vector.broadcast %1375 : vector<1x128xf32> to vector<16x128xf32>
    %1377 = arith.mulf %1376, %1374 : vector<16x128xf32>
    %1378 = arith.addf %1372, %1377 : vector<16x128xf32>
    %c12_730 = arith.constant 12 : index
    %c0_731 = arith.constant 0 : index
    %c0_732 = arith.constant 0 : index
    %1379 = vector.load %arg4[%c12_730, %c0_731, %c0_732] : memref<16x16x128xf32, #tpu.memory_space<vmem>>, vector<1x16x128xf32>
    %1380 = vector.shape_cast %1379 : vector<1x16x128xf32> to vector<16x128xf32>
    %1381 = vector.extract_strided_slice %1380 {offsets = [12, 0], sizes = [1, 128], strides = [1, 1]} : vector<16x128xf32> to vector<1x128xf32>
    %1382 = vector.broadcast %1381 : vector<1x128xf32> to vector<16x128xf32>
    %1383 = arith.mulf %1382, %1380 : vector<16x128xf32>
    %1384 = arith.addf %1378, %1383 : vector<16x128xf32>
    %c13_733 = arith.constant 13 : index
    %c0_734 = arith.constant 0 : index
    %c0_735 = arith.constant 0 : index
    %1385 = vector.load %arg4[%c13_733, %c0_734, %c0_735] : memref<16x16x128xf32, #tpu.memory_space<vmem>>, vector<1x16x128xf32>
    %1386 = vector.shape_cast %1385 : vector<1x16x128xf32> to vector<16x128xf32>
    %1387 = vector.extract_strided_slice %1386 {offsets = [12, 0], sizes = [1, 128], strides = [1, 1]} : vector<16x128xf32> to vector<1x128xf32>
    %1388 = vector.broadcast %1387 : vector<1x128xf32> to vector<16x128xf32>
    %1389 = arith.mulf %1388, %1386 : vector<16x128xf32>
    %1390 = arith.addf %1384, %1389 : vector<16x128xf32>
    %c14_736 = arith.constant 14 : index
    %c0_737 = arith.constant 0 : index
    %c0_738 = arith.constant 0 : index
    %1391 = vector.load %arg4[%c14_736, %c0_737, %c0_738] : memref<16x16x128xf32, #tpu.memory_space<vmem>>, vector<1x16x128xf32>
    %1392 = vector.shape_cast %1391 : vector<1x16x128xf32> to vector<16x128xf32>
    %1393 = vector.extract_strided_slice %1392 {offsets = [12, 0], sizes = [1, 128], strides = [1, 1]} : vector<16x128xf32> to vector<1x128xf32>
    %1394 = vector.broadcast %1393 : vector<1x128xf32> to vector<16x128xf32>
    %1395 = arith.mulf %1394, %1392 : vector<16x128xf32>
    %1396 = arith.addf %1390, %1395 : vector<16x128xf32>
    %c15_739 = arith.constant 15 : index
    %c0_740 = arith.constant 0 : index
    %c0_741 = arith.constant 0 : index
    %1397 = vector.load %arg4[%c15_739, %c0_740, %c0_741] : memref<16x16x128xf32, #tpu.memory_space<vmem>>, vector<1x16x128xf32>
    %1398 = vector.shape_cast %1397 : vector<1x16x128xf32> to vector<16x128xf32>
    %1399 = vector.extract_strided_slice %1398 {offsets = [12, 0], sizes = [1, 128], strides = [1, 1]} : vector<16x128xf32> to vector<1x128xf32>
    %1400 = vector.broadcast %1399 : vector<1x128xf32> to vector<16x128xf32>
    %1401 = arith.mulf %1400, %1398 : vector<16x128xf32>
    %1402 = arith.addf %1396, %1401 : vector<16x128xf32>
    %c12_742 = arith.constant 12 : index
    %c0_743 = arith.constant 0 : index
    %c0_744 = arith.constant 0 : index
    %1403 = vector.load %arg3[%c12_742, %c0_743, %c0_744] : memref<16x16x128xf32, #tpu.memory_space<vmem>>, vector<1x16x128xf32>
    %1404 = vector.shape_cast %1403 : vector<1x16x128xf32> to vector<16x128xf32>
    %1405 = vector.shape_cast %1402 : vector<16x128xf32> to vector<1x16x128xf32>
    tpu.vector_store %arg3[%c12_742, %c0_743, %c0_744], %1405 {strides = array<i32>} : memref<16x16x128xf32, #tpu.memory_space<vmem>>, vector<1x16x128xf32>,
    %c0_745 = arith.constant 0 : index
    %c0_746 = arith.constant 0 : index
    %c0_747 = arith.constant 0 : index
    %1406 = vector.load %arg4[%c0_745, %c0_746, %c0_747] : memref<16x16x128xf32, #tpu.memory_space<vmem>>, vector<1x16x128xf32>
    %1407 = vector.shape_cast %1406 : vector<1x16x128xf32> to vector<16x128xf32>
    %1408 = vector.extract_strided_slice %1407 {offsets = [13, 0], sizes = [1, 128], strides = [1, 1]} : vector<16x128xf32> to vector<1x128xf32>
    %1409 = vector.broadcast %1408 : vector<1x128xf32> to vector<16x128xf32>
    %1410 = arith.mulf %1409, %1407 : vector<16x128xf32>
    %c1_748 = arith.constant 1 : index
    %c0_749 = arith.constant 0 : index
    %c0_750 = arith.constant 0 : index
    %1411 = vector.load %arg4[%c1_748, %c0_749, %c0_750] : memref<16x16x128xf32, #tpu.memory_space<vmem>>, vector<1x16x128xf32>
    %1412 = vector.shape_cast %1411 : vector<1x16x128xf32> to vector<16x128xf32>
    %1413 = vector.extract_strided_slice %1412 {offsets = [13, 0], sizes = [1, 128], strides = [1, 1]} : vector<16x128xf32> to vector<1x128xf32>
    %1414 = vector.broadcast %1413 : vector<1x128xf32> to vector<16x128xf32>
    %1415 = arith.mulf %1414, %1412 : vector<16x128xf32>
    %1416 = arith.addf %1410, %1415 : vector<16x128xf32>
    %c2_751 = arith.constant 2 : index
    %c0_752 = arith.constant 0 : index
    %c0_753 = arith.constant 0 : index
    %1417 = vector.load %arg4[%c2_751, %c0_752, %c0_753] : memref<16x16x128xf32, #tpu.memory_space<vmem>>, vector<1x16x128xf32>
    %1418 = vector.shape_cast %1417 : vector<1x16x128xf32> to vector<16x128xf32>
    %1419 = vector.extract_strided_slice %1418 {offsets = [13, 0], sizes = [1, 128], strides = [1, 1]} : vector<16x128xf32> to vector<1x128xf32>
    %1420 = vector.broadcast %1419 : vector<1x128xf32> to vector<16x128xf32>
    %1421 = arith.mulf %1420, %1418 : vector<16x128xf32>
    %1422 = arith.addf %1416, %1421 : vector<16x128xf32>
    %c3_754 = arith.constant 3 : index
    %c0_755 = arith.constant 0 : index
    %c0_756 = arith.constant 0 : index
    %1423 = vector.load %arg4[%c3_754, %c0_755, %c0_756] : memref<16x16x128xf32, #tpu.memory_space<vmem>>, vector<1x16x128xf32>
    %1424 = vector.shape_cast %1423 : vector<1x16x128xf32> to vector<16x128xf32>
    %1425 = vector.extract_strided_slice %1424 {offsets = [13, 0], sizes = [1, 128], strides = [1, 1]} : vector<16x128xf32> to vector<1x128xf32>
    %1426 = vector.broadcast %1425 : vector<1x128xf32> to vector<16x128xf32>
    %1427 = arith.mulf %1426, %1424 : vector<16x128xf32>
    %1428 = arith.addf %1422, %1427 : vector<16x128xf32>
    %c4_757 = arith.constant 4 : index
    %c0_758 = arith.constant 0 : index
    %c0_759 = arith.constant 0 : index
    %1429 = vector.load %arg4[%c4_757, %c0_758, %c0_759] : memref<16x16x128xf32, #tpu.memory_space<vmem>>, vector<1x16x128xf32>
    %1430 = vector.shape_cast %1429 : vector<1x16x128xf32> to vector<16x128xf32>
    %1431 = vector.extract_strided_slice %1430 {offsets = [13, 0], sizes = [1, 128], strides = [1, 1]} : vector<16x128xf32> to vector<1x128xf32>
    %1432 = vector.broadcast %1431 : vector<1x128xf32> to vector<16x128xf32>
    %1433 = arith.mulf %1432, %1430 : vector<16x128xf32>
    %1434 = arith.addf %1428, %1433 : vector<16x128xf32>
    %c5_760 = arith.constant 5 : index
    %c0_761 = arith.constant 0 : index
    %c0_762 = arith.constant 0 : index
    %1435 = vector.load %arg4[%c5_760, %c0_761, %c0_762] : memref<16x16x128xf32, #tpu.memory_space<vmem>>, vector<1x16x128xf32>
    %1436 = vector.shape_cast %1435 : vector<1x16x128xf32> to vector<16x128xf32>
    %1437 = vector.extract_strided_slice %1436 {offsets = [13, 0], sizes = [1, 128], strides = [1, 1]} : vector<16x128xf32> to vector<1x128xf32>
    %1438 = vector.broadcast %1437 : vector<1x128xf32> to vector<16x128xf32>
    %1439 = arith.mulf %1438, %1436 : vector<16x128xf32>
    %1440 = arith.addf %1434, %1439 : vector<16x128xf32>
    %c6_763 = arith.constant 6 : index
    %c0_764 = arith.constant 0 : index
    %c0_765 = arith.constant 0 : index
    %1441 = vector.load %arg4[%c6_763, %c0_764, %c0_765] : memref<16x16x128xf32, #tpu.memory_space<vmem>>, vector<1x16x128xf32>
    %1442 = vector.shape_cast %1441 : vector<1x16x128xf32> to vector<16x128xf32>
    %1443 = vector.extract_strided_slice %1442 {offsets = [13, 0], sizes = [1, 128], strides = [1, 1]} : vector<16x128xf32> to vector<1x128xf32>
    %1444 = vector.broadcast %1443 : vector<1x128xf32> to vector<16x128xf32>
    %1445 = arith.mulf %1444, %1442 : vector<16x128xf32>
    %1446 = arith.addf %1440, %1445 : vector<16x128xf32>
    %c7_766 = arith.constant 7 : index
    %c0_767 = arith.constant 0 : index
    %c0_768 = arith.constant 0 : index
    %1447 = vector.load %arg4[%c7_766, %c0_767, %c0_768] : memref<16x16x128xf32, #tpu.memory_space<vmem>>, vector<1x16x128xf32>
    %1448 = vector.shape_cast %1447 : vector<1x16x128xf32> to vector<16x128xf32>
    %1449 = vector.extract_strided_slice %1448 {offsets = [13, 0], sizes = [1, 128], strides = [1, 1]} : vector<16x128xf32> to vector<1x128xf32>
    %1450 = vector.broadcast %1449 : vector<1x128xf32> to vector<16x128xf32>
    %1451 = arith.mulf %1450, %1448 : vector<16x128xf32>
    %1452 = arith.addf %1446, %1451 : vector<16x128xf32>
    %c8_769 = arith.constant 8 : index
    %c0_770 = arith.constant 0 : index
    %c0_771 = arith.constant 0 : index
    %1453 = vector.load %arg4[%c8_769, %c0_770, %c0_771] : memref<16x16x128xf32, #tpu.memory_space<vmem>>, vector<1x16x128xf32>
    %1454 = vector.shape_cast %1453 : vector<1x16x128xf32> to vector<16x128xf32>
    %1455 = vector.extract_strided_slice %1454 {offsets = [13, 0], sizes = [1, 128], strides = [1, 1]} : vector<16x128xf32> to vector<1x128xf32>
    %1456 = vector.broadcast %1455 : vector<1x128xf32> to vector<16x128xf32>
    %1457 = arith.mulf %1456, %1454 : vector<16x128xf32>
    %1458 = arith.addf %1452, %1457 : vector<16x128xf32>
    %c9_772 = arith.constant 9 : index
    %c0_773 = arith.constant 0 : index
    %c0_774 = arith.constant 0 : index
    %1459 = vector.load %arg4[%c9_772, %c0_773, %c0_774] : memref<16x16x128xf32, #tpu.memory_space<vmem>>, vector<1x16x128xf32>
    %1460 = vector.shape_cast %1459 : vector<1x16x128xf32> to vector<16x128xf32>
    %1461 = vector.extract_strided_slice %1460 {offsets = [13, 0], sizes = [1, 128], strides = [1, 1]} : vector<16x128xf32> to vector<1x128xf32>
    %1462 = vector.broadcast %1461 : vector<1x128xf32> to vector<16x128xf32>
    %1463 = arith.mulf %1462, %1460 : vector<16x128xf32>
    %1464 = arith.addf %1458, %1463 : vector<16x128xf32>
    %c10_775 = arith.constant 10 : index
    %c0_776 = arith.constant 0 : index
    %c0_777 = arith.constant 0 : index
    %1465 = vector.load %arg4[%c10_775, %c0_776, %c0_777] : memref<16x16x128xf32, #tpu.memory_space<vmem>>, vector<1x16x128xf32>
    %1466 = vector.shape_cast %1465 : vector<1x16x128xf32> to vector<16x128xf32>
    %1467 = vector.extract_strided_slice %1466 {offsets = [13, 0], sizes = [1, 128], strides = [1, 1]} : vector<16x128xf32> to vector<1x128xf32>
    %1468 = vector.broadcast %1467 : vector<1x128xf32> to vector<16x128xf32>
    %1469 = arith.mulf %1468, %1466 : vector<16x128xf32>
    %1470 = arith.addf %1464, %1469 : vector<16x128xf32>
    %c11_778 = arith.constant 11 : index
    %c0_779 = arith.constant 0 : index
    %c0_780 = arith.constant 0 : index
    %1471 = vector.load %arg4[%c11_778, %c0_779, %c0_780] : memref<16x16x128xf32, #tpu.memory_space<vmem>>, vector<1x16x128xf32>
    %1472 = vector.shape_cast %1471 : vector<1x16x128xf32> to vector<16x128xf32>
    %1473 = vector.extract_strided_slice %1472 {offsets = [13, 0], sizes = [1, 128], strides = [1, 1]} : vector<16x128xf32> to vector<1x128xf32>
    %1474 = vector.broadcast %1473 : vector<1x128xf32> to vector<16x128xf32>
    %1475 = arith.mulf %1474, %1472 : vector<16x128xf32>
    %1476 = arith.addf %1470, %1475 : vector<16x128xf32>
    %c12_781 = arith.constant 12 : index
    %c0_782 = arith.constant 0 : index
    %c0_783 = arith.constant 0 : index
    %1477 = vector.load %arg4[%c12_781, %c0_782, %c0_783] : memref<16x16x128xf32, #tpu.memory_space<vmem>>, vector<1x16x128xf32>
    %1478 = vector.shape_cast %1477 : vector<1x16x128xf32> to vector<16x128xf32>
    %1479 = vector.extract_strided_slice %1478 {offsets = [13, 0], sizes = [1, 128], strides = [1, 1]} : vector<16x128xf32> to vector<1x128xf32>
    %1480 = vector.broadcast %1479 : vector<1x128xf32> to vector<16x128xf32>
    %1481 = arith.mulf %1480, %1478 : vector<16x128xf32>
    %1482 = arith.addf %1476, %1481 : vector<16x128xf32>
    %c13_784 = arith.constant 13 : index
    %c0_785 = arith.constant 0 : index
    %c0_786 = arith.constant 0 : index
    %1483 = vector.load %arg4[%c13_784, %c0_785, %c0_786] : memref<16x16x128xf32, #tpu.memory_space<vmem>>, vector<1x16x128xf32>
    %1484 = vector.shape_cast %1483 : vector<1x16x128xf32> to vector<16x128xf32>
    %1485 = vector.extract_strided_slice %1484 {offsets = [13, 0], sizes = [1, 128], strides = [1, 1]} : vector<16x128xf32> to vector<1x128xf32>
    %1486 = vector.broadcast %1485 : vector<1x128xf32> to vector<16x128xf32>
    %1487 = arith.mulf %1486, %1484 : vector<16x128xf32>
    %1488 = arith.addf %1482, %1487 : vector<16x128xf32>
    %c14_787 = arith.constant 14 : index
    %c0_788 = arith.constant 0 : index
    %c0_789 = arith.constant 0 : index
    %1489 = vector.load %arg4[%c14_787, %c0_788, %c0_789] : memref<16x16x128xf32, #tpu.memory_space<vmem>>, vector<1x16x128xf32>
    %1490 = vector.shape_cast %1489 : vector<1x16x128xf32> to vector<16x128xf32>
    %1491 = vector.extract_strided_slice %1490 {offsets = [13, 0], sizes = [1, 128], strides = [1, 1]} : vector<16x128xf32> to vector<1x128xf32>
    %1492 = vector.broadcast %1491 : vector<1x128xf32> to vector<16x128xf32>
    %1493 = arith.mulf %1492, %1490 : vector<16x128xf32>
    %1494 = arith.addf %1488, %1493 : vector<16x128xf32>
    %c15_790 = arith.constant 15 : index
    %c0_791 = arith.constant 0 : index
    %c0_792 = arith.constant 0 : index
    %1495 = vector.load %arg4[%c15_790, %c0_791, %c0_792] : memref<16x16x128xf32, #tpu.memory_space<vmem>>, vector<1x16x128xf32>
    %1496 = vector.shape_cast %1495 : vector<1x16x128xf32> to vector<16x128xf32>
    %1497 = vector.extract_strided_slice %1496 {offsets = [13, 0], sizes = [1, 128], strides = [1, 1]} : vector<16x128xf32> to vector<1x128xf32>
    %1498 = vector.broadcast %1497 : vector<1x128xf32> to vector<16x128xf32>
    %1499 = arith.mulf %1498, %1496 : vector<16x128xf32>
    %1500 = arith.addf %1494, %1499 : vector<16x128xf32>
    %c13_793 = arith.constant 13 : index
    %c0_794 = arith.constant 0 : index
    %c0_795 = arith.constant 0 : index
    %1501 = vector.load %arg3[%c13_793, %c0_794, %c0_795] : memref<16x16x128xf32, #tpu.memory_space<vmem>>, vector<1x16x128xf32>
    %1502 = vector.shape_cast %1501 : vector<1x16x128xf32> to vector<16x128xf32>
    %1503 = vector.shape_cast %1500 : vector<16x128xf32> to vector<1x16x128xf32>
    tpu.vector_store %arg3[%c13_793, %c0_794, %c0_795], %1503 {strides = array<i32>} : memref<16x16x128xf32, #tpu.memory_space<vmem>>, vector<1x16x128xf32>,
    %c0_796 = arith.constant 0 : index
    %c0_797 = arith.constant 0 : index
    %c0_798 = arith.constant 0 : index
    %1504 = vector.load %arg4[%c0_796, %c0_797, %c0_798] : memref<16x16x128xf32, #tpu.memory_space<vmem>>, vector<1x16x128xf32>
    %1505 = vector.shape_cast %1504 : vector<1x16x128xf32> to vector<16x128xf32>
    %1506 = vector.extract_strided_slice %1505 {offsets = [14, 0], sizes = [1, 128], strides = [1, 1]} : vector<16x128xf32> to vector<1x128xf32>
    %1507 = vector.broadcast %1506 : vector<1x128xf32> to vector<16x128xf32>
    %1508 = arith.mulf %1507, %1505 : vector<16x128xf32>
    %c1_799 = arith.constant 1 : index
    %c0_800 = arith.constant 0 : index
    %c0_801 = arith.constant 0 : index
    %1509 = vector.load %arg4[%c1_799, %c0_800, %c0_801] : memref<16x16x128xf32, #tpu.memory_space<vmem>>, vector<1x16x128xf32>
    %1510 = vector.shape_cast %1509 : vector<1x16x128xf32> to vector<16x128xf32>
    %1511 = vector.extract_strided_slice %1510 {offsets = [14, 0], sizes = [1, 128], strides = [1, 1]} : vector<16x128xf32> to vector<1x128xf32>
    %1512 = vector.broadcast %1511 : vector<1x128xf32> to vector<16x128xf32>
    %1513 = arith.mulf %1512, %1510 : vector<16x128xf32>
    %1514 = arith.addf %1508, %1513 : vector<16x128xf32>
    %c2_802 = arith.constant 2 : index
    %c0_803 = arith.constant 0 : index
    %c0_804 = arith.constant 0 : index
    %1515 = vector.load %arg4[%c2_802, %c0_803, %c0_804] : memref<16x16x128xf32, #tpu.memory_space<vmem>>, vector<1x16x128xf32>
    %1516 = vector.shape_cast %1515 : vector<1x16x128xf32> to vector<16x128xf32>
    %1517 = vector.extract_strided_slice %1516 {offsets = [14, 0], sizes = [1, 128], strides = [1, 1]} : vector<16x128xf32> to vector<1x128xf32>
    %1518 = vector.broadcast %1517 : vector<1x128xf32> to vector<16x128xf32>
    %1519 = arith.mulf %1518, %1516 : vector<16x128xf32>
    %1520 = arith.addf %1514, %1519 : vector<16x128xf32>
    %c3_805 = arith.constant 3 : index
    %c0_806 = arith.constant 0 : index
    %c0_807 = arith.constant 0 : index
    %1521 = vector.load %arg4[%c3_805, %c0_806, %c0_807] : memref<16x16x128xf32, #tpu.memory_space<vmem>>, vector<1x16x128xf32>
    %1522 = vector.shape_cast %1521 : vector<1x16x128xf32> to vector<16x128xf32>
    %1523 = vector.extract_strided_slice %1522 {offsets = [14, 0], sizes = [1, 128], strides = [1, 1]} : vector<16x128xf32> to vector<1x128xf32>
    %1524 = vector.broadcast %1523 : vector<1x128xf32> to vector<16x128xf32>
    %1525 = arith.mulf %1524, %1522 : vector<16x128xf32>
    %1526 = arith.addf %1520, %1525 : vector<16x128xf32>
    %c4_808 = arith.constant 4 : index
    %c0_809 = arith.constant 0 : index
    %c0_810 = arith.constant 0 : index
    %1527 = vector.load %arg4[%c4_808, %c0_809, %c0_810] : memref<16x16x128xf32, #tpu.memory_space<vmem>>, vector<1x16x128xf32>
    %1528 = vector.shape_cast %1527 : vector<1x16x128xf32> to vector<16x128xf32>
    %1529 = vector.extract_strided_slice %1528 {offsets = [14, 0], sizes = [1, 128], strides = [1, 1]} : vector<16x128xf32> to vector<1x128xf32>
    %1530 = vector.broadcast %1529 : vector<1x128xf32> to vector<16x128xf32>
    %1531 = arith.mulf %1530, %1528 : vector<16x128xf32>
    %1532 = arith.addf %1526, %1531 : vector<16x128xf32>
    %c5_811 = arith.constant 5 : index
    %c0_812 = arith.constant 0 : index
    %c0_813 = arith.constant 0 : index
    %1533 = vector.load %arg4[%c5_811, %c0_812, %c0_813] : memref<16x16x128xf32, #tpu.memory_space<vmem>>, vector<1x16x128xf32>
    %1534 = vector.shape_cast %1533 : vector<1x16x128xf32> to vector<16x128xf32>
    %1535 = vector.extract_strided_slice %1534 {offsets = [14, 0], sizes = [1, 128], strides = [1, 1]} : vector<16x128xf32> to vector<1x128xf32>
    %1536 = vector.broadcast %1535 : vector<1x128xf32> to vector<16x128xf32>
    %1537 = arith.mulf %1536, %1534 : vector<16x128xf32>
    %1538 = arith.addf %1532, %1537 : vector<16x128xf32>
    %c6_814 = arith.constant 6 : index
    %c0_815 = arith.constant 0 : index
    %c0_816 = arith.constant 0 : index
    %1539 = vector.load %arg4[%c6_814, %c0_815, %c0_816] : memref<16x16x128xf32, #tpu.memory_space<vmem>>, vector<1x16x128xf32>
    %1540 = vector.shape_cast %1539 : vector<1x16x128xf32> to vector<16x128xf32>
    %1541 = vector.extract_strided_slice %1540 {offsets = [14, 0], sizes = [1, 128], strides = [1, 1]} : vector<16x128xf32> to vector<1x128xf32>
    %1542 = vector.broadcast %1541 : vector<1x128xf32> to vector<16x128xf32>
    %1543 = arith.mulf %1542, %1540 : vector<16x128xf32>
    %1544 = arith.addf %1538, %1543 : vector<16x128xf32>
    %c7_817 = arith.constant 7 : index
    %c0_818 = arith.constant 0 : index
    %c0_819 = arith.constant 0 : index
    %1545 = vector.load %arg4[%c7_817, %c0_818, %c0_819] : memref<16x16x128xf32, #tpu.memory_space<vmem>>, vector<1x16x128xf32>
    %1546 = vector.shape_cast %1545 : vector<1x16x128xf32> to vector<16x128xf32>
    %1547 = vector.extract_strided_slice %1546 {offsets = [14, 0], sizes = [1, 128], strides = [1, 1]} : vector<16x128xf32> to vector<1x128xf32>
    %1548 = vector.broadcast %1547 : vector<1x128xf32> to vector<16x128xf32>
    %1549 = arith.mulf %1548, %1546 : vector<16x128xf32>
    %1550 = arith.addf %1544, %1549 : vector<16x128xf32>
    %c8_820 = arith.constant 8 : index
    %c0_821 = arith.constant 0 : index
    %c0_822 = arith.constant 0 : index
    %1551 = vector.load %arg4[%c8_820, %c0_821, %c0_822] : memref<16x16x128xf32, #tpu.memory_space<vmem>>, vector<1x16x128xf32>
    %1552 = vector.shape_cast %1551 : vector<1x16x128xf32> to vector<16x128xf32>
    %1553 = vector.extract_strided_slice %1552 {offsets = [14, 0], sizes = [1, 128], strides = [1, 1]} : vector<16x128xf32> to vector<1x128xf32>
    %1554 = vector.broadcast %1553 : vector<1x128xf32> to vector<16x128xf32>
    %1555 = arith.mulf %1554, %1552 : vector<16x128xf32>
    %1556 = arith.addf %1550, %1555 : vector<16x128xf32>
    %c9_823 = arith.constant 9 : index
    %c0_824 = arith.constant 0 : index
    %c0_825 = arith.constant 0 : index
    %1557 = vector.load %arg4[%c9_823, %c0_824, %c0_825] : memref<16x16x128xf32, #tpu.memory_space<vmem>>, vector<1x16x128xf32>
    %1558 = vector.shape_cast %1557 : vector<1x16x128xf32> to vector<16x128xf32>
    %1559 = vector.extract_strided_slice %1558 {offsets = [14, 0], sizes = [1, 128], strides = [1, 1]} : vector<16x128xf32> to vector<1x128xf32>
    %1560 = vector.broadcast %1559 : vector<1x128xf32> to vector<16x128xf32>
    %1561 = arith.mulf %1560, %1558 : vector<16x128xf32>
    %1562 = arith.addf %1556, %1561 : vector<16x128xf32>
    %c10_826 = arith.constant 10 : index
    %c0_827 = arith.constant 0 : index
    %c0_828 = arith.constant 0 : index
    %1563 = vector.load %arg4[%c10_826, %c0_827, %c0_828] : memref<16x16x128xf32, #tpu.memory_space<vmem>>, vector<1x16x128xf32>
    %1564 = vector.shape_cast %1563 : vector<1x16x128xf32> to vector<16x128xf32>
    %1565 = vector.extract_strided_slice %1564 {offsets = [14, 0], sizes = [1, 128], strides = [1, 1]} : vector<16x128xf32> to vector<1x128xf32>
    %1566 = vector.broadcast %1565 : vector<1x128xf32> to vector<16x128xf32>
    %1567 = arith.mulf %1566, %1564 : vector<16x128xf32>
    %1568 = arith.addf %1562, %1567 : vector<16x128xf32>
    %c11_829 = arith.constant 11 : index
    %c0_830 = arith.constant 0 : index
    %c0_831 = arith.constant 0 : index
    %1569 = vector.load %arg4[%c11_829, %c0_830, %c0_831] : memref<16x16x128xf32, #tpu.memory_space<vmem>>, vector<1x16x128xf32>
    %1570 = vector.shape_cast %1569 : vector<1x16x128xf32> to vector<16x128xf32>
    %1571 = vector.extract_strided_slice %1570 {offsets = [14, 0], sizes = [1, 128], strides = [1, 1]} : vector<16x128xf32> to vector<1x128xf32>
    %1572 = vector.broadcast %1571 : vector<1x128xf32> to vector<16x128xf32>
    %1573 = arith.mulf %1572, %1570 : vector<16x128xf32>
    %1574 = arith.addf %1568, %1573 : vector<16x128xf32>
    %c12_832 = arith.constant 12 : index
    %c0_833 = arith.constant 0 : index
    %c0_834 = arith.constant 0 : index
    %1575 = vector.load %arg4[%c12_832, %c0_833, %c0_834] : memref<16x16x128xf32, #tpu.memory_space<vmem>>, vector<1x16x128xf32>
    %1576 = vector.shape_cast %1575 : vector<1x16x128xf32> to vector<16x128xf32>
    %1577 = vector.extract_strided_slice %1576 {offsets = [14, 0], sizes = [1, 128], strides = [1, 1]} : vector<16x128xf32> to vector<1x128xf32>
    %1578 = vector.broadcast %1577 : vector<1x128xf32> to vector<16x128xf32>
    %1579 = arith.mulf %1578, %1576 : vector<16x128xf32>
    %1580 = arith.addf %1574, %1579 : vector<16x128xf32>
    %c13_835 = arith.constant 13 : index
    %c0_836 = arith.constant 0 : index
    %c0_837 = arith.constant 0 : index
    %1581 = vector.load %arg4[%c13_835, %c0_836, %c0_837] : memref<16x16x128xf32, #tpu.memory_space<vmem>>, vector<1x16x128xf32>
    %1582 = vector.shape_cast %1581 : vector<1x16x128xf32> to vector<16x128xf32>
    %1583 = vector.extract_strided_slice %1582 {offsets = [14, 0], sizes = [1, 128], strides = [1, 1]} : vector<16x128xf32> to vector<1x128xf32>
    %1584 = vector.broadcast %1583 : vector<1x128xf32> to vector<16x128xf32>
    %1585 = arith.mulf %1584, %1582 : vector<16x128xf32>
    %1586 = arith.addf %1580, %1585 : vector<16x128xf32>
    %c14_838 = arith.constant 14 : index
    %c0_839 = arith.constant 0 : index
    %c0_840 = arith.constant 0 : index
    %1587 = vector.load %arg4[%c14_838, %c0_839, %c0_840] : memref<16x16x128xf32, #tpu.memory_space<vmem>>, vector<1x16x128xf32>
    %1588 = vector.shape_cast %1587 : vector<1x16x128xf32> to vector<16x128xf32>
    %1589 = vector.extract_strided_slice %1588 {offsets = [14, 0], sizes = [1, 128], strides = [1, 1]} : vector<16x128xf32> to vector<1x128xf32>
    %1590 = vector.broadcast %1589 : vector<1x128xf32> to vector<16x128xf32>
    %1591 = arith.mulf %1590, %1588 : vector<16x128xf32>
    %1592 = arith.addf %1586, %1591 : vector<16x128xf32>
    %c15_841 = arith.constant 15 : index
    %c0_842 = arith.constant 0 : index
    %c0_843 = arith.constant 0 : index
    %1593 = vector.load %arg4[%c15_841, %c0_842, %c0_843] : memref<16x16x128xf32, #tpu.memory_space<vmem>>, vector<1x16x128xf32>
    %1594 = vector.shape_cast %1593 : vector<1x16x128xf32> to vector<16x128xf32>
    %1595 = vector.extract_strided_slice %1594 {offsets = [14, 0], sizes = [1, 128], strides = [1, 1]} : vector<16x128xf32> to vector<1x128xf32>
    %1596 = vector.broadcast %1595 : vector<1x128xf32> to vector<16x128xf32>
    %1597 = arith.mulf %1596, %1594 : vector<16x128xf32>
    %1598 = arith.addf %1592, %1597 : vector<16x128xf32>
    %c14_844 = arith.constant 14 : index
    %c0_845 = arith.constant 0 : index
    %c0_846 = arith.constant 0 : index
    %1599 = vector.load %arg3[%c14_844, %c0_845, %c0_846] : memref<16x16x128xf32, #tpu.memory_space<vmem>>, vector<1x16x128xf32>
    %1600 = vector.shape_cast %1599 : vector<1x16x128xf32> to vector<16x128xf32>
    %1601 = vector.shape_cast %1598 : vector<16x128xf32> to vector<1x16x128xf32>
    tpu.vector_store %arg3[%c14_844, %c0_845, %c0_846], %1601 {strides = array<i32>} : memref<16x16x128xf32, #tpu.memory_space<vmem>>, vector<1x16x128xf32>,
    %c0_847 = arith.constant 0 : index
    %c0_848 = arith.constant 0 : index
    %c0_849 = arith.constant 0 : index
    %1602 = vector.load %arg4[%c0_847, %c0_848, %c0_849] : memref<16x16x128xf32, #tpu.memory_space<vmem>>, vector<1x16x128xf32>
    %1603 = vector.shape_cast %1602 : vector<1x16x128xf32> to vector<16x128xf32>
    %1604 = vector.extract_strided_slice %1603 {offsets = [15, 0], sizes = [1, 128], strides = [1, 1]} : vector<16x128xf32> to vector<1x128xf32>
    %1605 = vector.broadcast %1604 : vector<1x128xf32> to vector<16x128xf32>
    %1606 = arith.mulf %1605, %1603 : vector<16x128xf32>
    %c1_850 = arith.constant 1 : index
    %c0_851 = arith.constant 0 : index
    %c0_852 = arith.constant 0 : index
    %1607 = vector.load %arg4[%c1_850, %c0_851, %c0_852] : memref<16x16x128xf32, #tpu.memory_space<vmem>>, vector<1x16x128xf32>
    %1608 = vector.shape_cast %1607 : vector<1x16x128xf32> to vector<16x128xf32>
    %1609 = vector.extract_strided_slice %1608 {offsets = [15, 0], sizes = [1, 128], strides = [1, 1]} : vector<16x128xf32> to vector<1x128xf32>
    %1610 = vector.broadcast %1609 : vector<1x128xf32> to vector<16x128xf32>
    %1611 = arith.mulf %1610, %1608 : vector<16x128xf32>
    %1612 = arith.addf %1606, %1611 : vector<16x128xf32>
    %c2_853 = arith.constant 2 : index
    %c0_854 = arith.constant 0 : index
    %c0_855 = arith.constant 0 : index
    %1613 = vector.load %arg4[%c2_853, %c0_854, %c0_855] : memref<16x16x128xf32, #tpu.memory_space<vmem>>, vector<1x16x128xf32>
    %1614 = vector.shape_cast %1613 : vector<1x16x128xf32> to vector<16x128xf32>
    %1615 = vector.extract_strided_slice %1614 {offsets = [15, 0], sizes = [1, 128], strides = [1, 1]} : vector<16x128xf32> to vector<1x128xf32>
    %1616 = vector.broadcast %1615 : vector<1x128xf32> to vector<16x128xf32>
    %1617 = arith.mulf %1616, %1614 : vector<16x128xf32>
    %1618 = arith.addf %1612, %1617 : vector<16x128xf32>
    %c3_856 = arith.constant 3 : index
    %c0_857 = arith.constant 0 : index
    %c0_858 = arith.constant 0 : index
    %1619 = vector.load %arg4[%c3_856, %c0_857, %c0_858] : memref<16x16x128xf32, #tpu.memory_space<vmem>>, vector<1x16x128xf32>
    %1620 = vector.shape_cast %1619 : vector<1x16x128xf32> to vector<16x128xf32>
    %1621 = vector.extract_strided_slice %1620 {offsets = [15, 0], sizes = [1, 128], strides = [1, 1]} : vector<16x128xf32> to vector<1x128xf32>
    %1622 = vector.broadcast %1621 : vector<1x128xf32> to vector<16x128xf32>
    %1623 = arith.mulf %1622, %1620 : vector<16x128xf32>
    %1624 = arith.addf %1618, %1623 : vector<16x128xf32>
    %c4_859 = arith.constant 4 : index
    %c0_860 = arith.constant 0 : index
    %c0_861 = arith.constant 0 : index
    %1625 = vector.load %arg4[%c4_859, %c0_860, %c0_861] : memref<16x16x128xf32, #tpu.memory_space<vmem>>, vector<1x16x128xf32>
    %1626 = vector.shape_cast %1625 : vector<1x16x128xf32> to vector<16x128xf32>
    %1627 = vector.extract_strided_slice %1626 {offsets = [15, 0], sizes = [1, 128], strides = [1, 1]} : vector<16x128xf32> to vector<1x128xf32>
    %1628 = vector.broadcast %1627 : vector<1x128xf32> to vector<16x128xf32>
    %1629 = arith.mulf %1628, %1626 : vector<16x128xf32>
    %1630 = arith.addf %1624, %1629 : vector<16x128xf32>
    %c5_862 = arith.constant 5 : index
    %c0_863 = arith.constant 0 : index
    %c0_864 = arith.constant 0 : index
    %1631 = vector.load %arg4[%c5_862, %c0_863, %c0_864] : memref<16x16x128xf32, #tpu.memory_space<vmem>>, vector<1x16x128xf32>
    %1632 = vector.shape_cast %1631 : vector<1x16x128xf32> to vector<16x128xf32>
    %1633 = vector.extract_strided_slice %1632 {offsets = [15, 0], sizes = [1, 128], strides = [1, 1]} : vector<16x128xf32> to vector<1x128xf32>
    %1634 = vector.broadcast %1633 : vector<1x128xf32> to vector<16x128xf32>
    %1635 = arith.mulf %1634, %1632 : vector<16x128xf32>
    %1636 = arith.addf %1630, %1635 : vector<16x128xf32>
    %c6_865 = arith.constant 6 : index
    %c0_866 = arith.constant 0 : index
    %c0_867 = arith.constant 0 : index
    %1637 = vector.load %arg4[%c6_865, %c0_866, %c0_867] : memref<16x16x128xf32, #tpu.memory_space<vmem>>, vector<1x16x128xf32>
    %1638 = vector.shape_cast %1637 : vector<1x16x128xf32> to vector<16x128xf32>
    %1639 = vector.extract_strided_slice %1638 {offsets = [15, 0], sizes = [1, 128], strides = [1, 1]} : vector<16x128xf32> to vector<1x128xf32>
    %1640 = vector.broadcast %1639 : vector<1x128xf32> to vector<16x128xf32>
    %1641 = arith.mulf %1640, %1638 : vector<16x128xf32>
    %1642 = arith.addf %1636, %1641 : vector<16x128xf32>
    %c7_868 = arith.constant 7 : index
    %c0_869 = arith.constant 0 : index
    %c0_870 = arith.constant 0 : index
    %1643 = vector.load %arg4[%c7_868, %c0_869, %c0_870] : memref<16x16x128xf32, #tpu.memory_space<vmem>>, vector<1x16x128xf32>
    %1644 = vector.shape_cast %1643 : vector<1x16x128xf32> to vector<16x128xf32>
    %1645 = vector.extract_strided_slice %1644 {offsets = [15, 0], sizes = [1, 128], strides = [1, 1]} : vector<16x128xf32> to vector<1x128xf32>
    %1646 = vector.broadcast %1645 : vector<1x128xf32> to vector<16x128xf32>
    %1647 = arith.mulf %1646, %1644 : vector<16x128xf32>
    %1648 = arith.addf %1642, %1647 : vector<16x128xf32>
    %c8_871 = arith.constant 8 : index
    %c0_872 = arith.constant 0 : index
    %c0_873 = arith.constant 0 : index
    %1649 = vector.load %arg4[%c8_871, %c0_872, %c0_873] : memref<16x16x128xf32, #tpu.memory_space<vmem>>, vector<1x16x128xf32>
    %1650 = vector.shape_cast %1649 : vector<1x16x128xf32> to vector<16x128xf32>
    %1651 = vector.extract_strided_slice %1650 {offsets = [15, 0], sizes = [1, 128], strides = [1, 1]} : vector<16x128xf32> to vector<1x128xf32>
    %1652 = vector.broadcast %1651 : vector<1x128xf32> to vector<16x128xf32>
    %1653 = arith.mulf %1652, %1650 : vector<16x128xf32>
    %1654 = arith.addf %1648, %1653 : vector<16x128xf32>
    %c9_874 = arith.constant 9 : index
    %c0_875 = arith.constant 0 : index
    %c0_876 = arith.constant 0 : index
    %1655 = vector.load %arg4[%c9_874, %c0_875, %c0_876] : memref<16x16x128xf32, #tpu.memory_space<vmem>>, vector<1x16x128xf32>
    %1656 = vector.shape_cast %1655 : vector<1x16x128xf32> to vector<16x128xf32>
    %1657 = vector.extract_strided_slice %1656 {offsets = [15, 0], sizes = [1, 128], strides = [1, 1]} : vector<16x128xf32> to vector<1x128xf32>
    %1658 = vector.broadcast %1657 : vector<1x128xf32> to vector<16x128xf32>
    %1659 = arith.mulf %1658, %1656 : vector<16x128xf32>
    %1660 = arith.addf %1654, %1659 : vector<16x128xf32>
    %c10_877 = arith.constant 10 : index
    %c0_878 = arith.constant 0 : index
    %c0_879 = arith.constant 0 : index
    %1661 = vector.load %arg4[%c10_877, %c0_878, %c0_879] : memref<16x16x128xf32, #tpu.memory_space<vmem>>, vector<1x16x128xf32>
    %1662 = vector.shape_cast %1661 : vector<1x16x128xf32> to vector<16x128xf32>
    %1663 = vector.extract_strided_slice %1662 {offsets = [15, 0], sizes = [1, 128], strides = [1, 1]} : vector<16x128xf32> to vector<1x128xf32>
    %1664 = vector.broadcast %1663 : vector<1x128xf32> to vector<16x128xf32>
    %1665 = arith.mulf %1664, %1662 : vector<16x128xf32>
    %1666 = arith.addf %1660, %1665 : vector<16x128xf32>
    %c11_880 = arith.constant 11 : index
    %c0_881 = arith.constant 0 : index
    %c0_882 = arith.constant 0 : index
    %1667 = vector.load %arg4[%c11_880, %c0_881, %c0_882] : memref<16x16x128xf32, #tpu.memory_space<vmem>>, vector<1x16x128xf32>
    %1668 = vector.shape_cast %1667 : vector<1x16x128xf32> to vector<16x128xf32>
    %1669 = vector.extract_strided_slice %1668 {offsets = [15, 0], sizes = [1, 128], strides = [1, 1]} : vector<16x128xf32> to vector<1x128xf32>
    %1670 = vector.broadcast %1669 : vector<1x128xf32> to vector<16x128xf32>
    %1671 = arith.mulf %1670, %1668 : vector<16x128xf32>
    %1672 = arith.addf %1666, %1671 : vector<16x128xf32>
    %c12_883 = arith.constant 12 : index
    %c0_884 = arith.constant 0 : index
    %c0_885 = arith.constant 0 : index
    %1673 = vector.load %arg4[%c12_883, %c0_884, %c0_885] : memref<16x16x128xf32, #tpu.memory_space<vmem>>, vector<1x16x128xf32>
    %1674 = vector.shape_cast %1673 : vector<1x16x128xf32> to vector<16x128xf32>
    %1675 = vector.extract_strided_slice %1674 {offsets = [15, 0], sizes = [1, 128], strides = [1, 1]} : vector<16x128xf32> to vector<1x128xf32>
    %1676 = vector.broadcast %1675 : vector<1x128xf32> to vector<16x128xf32>
    %1677 = arith.mulf %1676, %1674 : vector<16x128xf32>
    %1678 = arith.addf %1672, %1677 : vector<16x128xf32>
    %c13_886 = arith.constant 13 : index
    %c0_887 = arith.constant 0 : index
    %c0_888 = arith.constant 0 : index
    %1679 = vector.load %arg4[%c13_886, %c0_887, %c0_888] : memref<16x16x128xf32, #tpu.memory_space<vmem>>, vector<1x16x128xf32>
    %1680 = vector.shape_cast %1679 : vector<1x16x128xf32> to vector<16x128xf32>
    %1681 = vector.extract_strided_slice %1680 {offsets = [15, 0], sizes = [1, 128], strides = [1, 1]} : vector<16x128xf32> to vector<1x128xf32>
    %1682 = vector.broadcast %1681 : vector<1x128xf32> to vector<16x128xf32>
    %1683 = arith.mulf %1682, %1680 : vector<16x128xf32>
    %1684 = arith.addf %1678, %1683 : vector<16x128xf32>
    %c14_889 = arith.constant 14 : index
    %c0_890 = arith.constant 0 : index
    %c0_891 = arith.constant 0 : index
    %1685 = vector.load %arg4[%c14_889, %c0_890, %c0_891] : memref<16x16x128xf32, #tpu.memory_space<vmem>>, vector<1x16x128xf32>
    %1686 = vector.shape_cast %1685 : vector<1x16x128xf32> to vector<16x128xf32>
    %1687 = vector.extract_strided_slice %1686 {offsets = [15, 0], sizes = [1, 128], strides = [1, 1]} : vector<16x128xf32> to vector<1x128xf32>
    %1688 = vector.broadcast %1687 : vector<1x128xf32> to vector<16x128xf32>
    %1689 = arith.mulf %1688, %1686 : vector<16x128xf32>
    %1690 = arith.addf %1684, %1689 : vector<16x128xf32>
    %c15_892 = arith.constant 15 : index
    %c0_893 = arith.constant 0 : index
    %c0_894 = arith.constant 0 : index
    %1691 = vector.load %arg4[%c15_892, %c0_893, %c0_894] : memref<16x16x128xf32, #tpu.memory_space<vmem>>, vector<1x16x128xf32>
    %1692 = vector.shape_cast %1691 : vector<1x16x128xf32> to vector<16x128xf32>
    %1693 = vector.extract_strided_slice %1692 {offsets = [15, 0], sizes = [1, 128], strides = [1, 1]} : vector<16x128xf32> to vector<1x128xf32>
    %1694 = vector.broadcast %1693 : vector<1x128xf32> to vector<16x128xf32>
    %1695 = arith.mulf %1694, %1692 : vector<16x128xf32>
    %1696 = arith.addf %1690, %1695 : vector<16x128xf32>
    %c15_895 = arith.constant 15 : index
    %c0_896 = arith.constant 0 : index
    %c0_897 = arith.constant 0 : index
    %1697 = vector.load %arg3[%c15_895, %c0_896, %c0_897] : memref<16x16x128xf32, #tpu.memory_space<vmem>>, vector<1x16x128xf32>
    %1698 = vector.shape_cast %1697 : vector<1x16x128xf32> to vector<16x128xf32>
    %1699 = vector.shape_cast %1696 : vector<16x128xf32> to vector<1x16x128xf32>
    tpu.vector_store %arg3[%c15_895, %c0_896, %c0_897], %1699 {strides = array<i32>} : memref<16x16x128xf32, #tpu.memory_space<vmem>>, vector<1x16x128xf32>,
    return
  }
  func.func @transform_0(%arg0: i32) -> (i32, i32, i32) {
    %c0_i32 = arith.constant 0 : i32
    %c0_i32_0 = arith.constant 0 : i32
    %c0_i32_1 = arith.constant 0 : i32
    return %c0_i32, %c0_i32_0, %arg0 : i32, i32, i32
  }
  func.func @transform_1(%arg0: i32) -> (i32, i32) {
    %c0_i32 = arith.constant 0 : i32
    %c0_i32_0 = arith.constant 0 : i32
    return %c0_i32, %arg0 : i32, i32
  }
  func.func @transform_2(%arg0: i32) -> (i32, i32, i32) {
    %c0_i32 = arith.constant 0 : i32
    %c0_i32_0 = arith.constant 0 : i32
    %c0_i32_1 = arith.constant 0 : i32
    return %c0_i32, %c0_i32_0, %arg0 : i32, i32, i32
  }
}

</mosaic_0001>

<bundles_post_ra>
// kernel: tpu_custom_call.1
= control target key start
LH: loop header
LB: loop body
LE: loop exit
PB: predicated region body
PF: predicated region fallthrough
CT: control target
= control target key end

     0   :  { %7 = vsyncpa [#allocation4], 0  ;;  %s5239_s0 = inlined_call_operand.hbm [shape: f32[16,16,256], index: 0, kind: input, shape index: {}]   ;;  %s5240_s1 = inlined_call_operand.hbm [shape: f32[16,256], index: 1, kind: input, shape index: {}]   ;;  %s5241_s2 = inlined_call_operand.hbm [shape: f32[16,16,256], index: 2, kind: output, shape index: {}]  }
   0x1   :  { %9 = vsyncpa [#allocation4 + $0x1], 0 }
   0x2   :  { %10 = vsyncpa [#allocation7], 0 }
   0x3   :  { %12 = vsyncpa [#allocation7 + $0x1], 0 }
   0x4   :  { %13 = vsyncpa [#allocation5], 0 }
   0x5   :  { %15 = vsyncpa [#allocation5 + $0x1], 0  ;;  %s3384_s9 = smov 0   ;;  %s3386_s10 = smov 0  }
   0x6   :  { %s3388_s11 = smov 0   ;;  %s3390_s12 = smov 0  }
   0x7 LB: > { %s3405_s13 = sadd.s32 4294967295, %s3358_s12   ;;  %s3092_s14 = sadd.s32 4294967294, %s3358_s12   ;;  %s3358_s12 = sphi %s3390_s12, %s5509_s12   ;;  %s3354_s11 = sphi %s3388_s11, %s5508_s11   ;;  %s3350_s10 = sphi %s3386_s10, %s5507_s10   ;;  %s3346_s9 = sphi %s3384_s9, %s5506_s9  }
   0x8   : > { %s3409_s15 = sadd.s32 1, %s3358_s12   ;;  %s28_s16 = sadd.s32 1, %s3354_s11 }
   0x9   : > { %s25_s17 = ssub.s32 %s3358_s12, %s3409_s15  ;;  %p35_p0 = scmp.ne.s32.totalorder %s3354_s11, %s3350_s10 }
   0xa   : > { %p26_p1 = scmp.eq.s32.totalorder %s25_s17, 0  ;;  %p36_p2 = scmp.eq.s32.totalorder %s3358_s12, 0 }
   0xb   : > { %p41_p3 = scmp.ne.s32.totalorder %s3350_s10, %s3346_s9  ;;  %p42_p4 = scmp.eq.s32.totalorder %s3405_s13, 0 }
   0xc   : > { %s3421_s18 = scalar_select %p26_p1, %s3354_s11, %s28_s16  }
   0xd   : > { %p3423_p5 = por %p36_p2, %p35_p0  ;;  %p3427_p6 = por %p42_p4, %p41_p3 }
   0xe   : > { %p91_p7 = scmp.eq.s32.totalorder %s3405_s13, 1  ;;  %p97_p8 = scmp.eq.s32.totalorder %s3092_s14, 1 }
   0xf   : > { %s5351_s20 = scalar_select %p3427_p6, 1, 0 }
  0x10   : > { %p3184_p10 = scmp.lt.s32.totalorder %s3358_s12, 2  ;;  %p3434_p11 = por %p91_p7, %p35_p0 }
  0x11   : > { %p3438_p12 = por %p97_p8, %p41_p3  ;;  %s3443_s23 = sand.u32 1, %s3354_s11  }
  0x12   : > { %s5352_s21 = scalar_select %p3434_p11, 1, 0 }
  0x13   : > { %s5353_s22 = scalar_select %p3438_p12, 1, 0 }
  0x14   : > { %s3096_s24 = sshll.u32 %s3358_s12, 7  ;;  %s3095_s25 = sshll.u32 %s3443_s23, 8 }
  0x15   : > { %s3452_s28 = scalar_lea.hbm %s5239_s0, %s3096_s24  ;;  %s121_s29 = scalar_lea.vmem [#allocation3], %s3095_s25 }
  0x16   : > { %s127_s30 = sshll.u32 %s121_s29, 4  ;;  %p3456_p13 = pnand %p3184_p10, %p3423_p5  ;;  %s3460_s30 = int_to_ptr.vmem [resolvable:$true] %s127_s30 }
  0x17   : > { %s118_s4 = scalar_lea.sflag [#allocation4], %s3443_s23  ;;  %s3228_s5 = scalar_lea.hbm %s3452_s28, 4096 }
  0x18   : > { %p3229_p1 = scmp.ne.s32.totalorder %s3452_s28, %s3228_s5  ;;  %p3230_p2 = pneg %p3456_p13 }
  0x19   : > { %s3233_s8 = scalar_lea.hbm %s5239_s0, 8192  ;;  %p3234_p5 = scmp.lt.u32.totalorder %s3452_s28, %s5239_s0 }
  0x1a   : > { %p3231_p3 = pnand %p3230_p2, %p3229_p1  ;;  %p3235_p7 = scmp.lt.u32.totalorder %s3233_s8, %s3228_s5 }
  0x1b   : > { %p3237_p10 = scmp.lt.u32.totalorder %s3228_s5, %s3452_s28 }
  0x1c   : > { %p3232_p4 = pneg %p3231_p3  ;;  %p3236_p8 = por %p3235_p7, %p3234_p5 }
  0x1e   : > { %p3238_p9 = por %p3237_p10, %p3236_p8 }
  0x20   : > { %p3239_p0 = pnand %p3238_p9, %p3232_p4 }
  0x22   : > { %3242 = shalt.err (!%p3239_p0)
}
  0x23   : > { %s3243_s17 = scalar_lea.vmem %s3460_s30, 4096  ;;  %s3360_s19 = smov [#allocation3]  }
  0x24   : > { %p3244_p1 = scmp.ne.s32.totalorder %s3460_s30, %s3243_s17  ;;  %s3248_s25 = sshll.u32 %s3360_s19, 4  ;;  %s3249_s25 = int_to_ptr.vmem [resolvable:$false] %s3248_s25 }
  0x25   : > { %s3250_s26 = scalar_lea.vmem %s3249_s25, 8192  ;;  %p3251_p11 = scmp.lt.s32.totalorder %s3460_s30, %s3249_s25 }
  0x26   : > { %p3246_p3 = pnand %p3244_p1, %p3230_p2  ;;  %p3252_p5 = scmp.lt.s32.totalorder %s3250_s26, %s3243_s17 }
  0x28   : > { %p3247_p12 = pneg %p3246_p3  ;;  %p3253_p7 = por %p3252_p5, %p3251_p11 }
  0x2a   : > { %p3254_p8 = pnand %p3253_p7, %p3247_p12 }
  0x2c   : > { %3257 = shalt.err (!%p3254_p8)
}
  0x2d   : > { %s3361_s27 = smov 256   ;;  %s3362_s29 = smov 128  }
  0x2e   : > { %s3363_s5 = smov 8   ;;  %p155_p9 = scmp.lt.s32.totalorder %s3358_s12, 3 }
  0x2f   : > { %3176 = dma.hbm_to_vmem [thread:$0]  (!%p3456_p13), %s3452_s28, 4096, %s3460_s30, %s118_s4, %s3361_s27, %s3362_s29, %s3363_s5  }
  0x30   : > { %s3097_s6 = sshll.u32 %s3443_s23, 4  ;;  %s3501_s14 = scalar_lea.hbm %s5240_s1, %s3096_s24 }
  0x31   : > { %p5355_p11 = scmp.ge.s32.totalorder %s3358_s12, 1  ;;  %s141_s17 = scalar_lea.vmem [#allocation6], %s3097_s6 }
  0x32   : > { %s147_s19 = sshll.u32 %s141_s17, 4  ;;  %s138_s28 = scalar_lea.sflag [#allocation7], %s3443_s23  ;;  %s3509_s19 = int_to_ptr.vmem [resolvable:$true] %s147_s19 }
  0x33   : > { %p3505_p12 = pnand %p5355_p11, %p155_p9  ;;  %s3258_s30 = scalar_lea.hbm %s3501_s14, 256 }
  0x34   : > { %p3259_p0 = scmp.ne.s32.totalorder %s3501_s14, %s3258_s30  ;;  %s3263_s25 = scalar_lea.hbm %s5240_s1, 512 }
  0x35   : > { %p3264_p1 = scmp.lt.u32.totalorder %s3501_s14, %s5240_s1  ;;  %p3265_p3 = scmp.lt.u32.totalorder %s3263_s25, %s3258_s30 }
  0x36   : > { %p3261_p4 = pnand %p3259_p0, %p3230_p2  ;;  %p3267_p7 = scmp.lt.u32.totalorder %s3258_s30, %s3501_s14 }
  0x37   : > { %p3266_p5 = por %p3265_p3, %p3264_p1 }
  0x38   : > { %p3262_p10 = pneg %p3261_p4 }
  0x39   : > { %p3268_p8 = por %p3267_p7, %p3266_p5 }
  0x3b   : > { %p3269_p9 = pnand %p3268_p8, %p3262_p10 }
  0x3d   : > { %3272 = shalt.err (!%p3269_p9)
}
  0x3e   : > { %s3273_s6 = scalar_lea.vmem %s3509_s19, 256  ;;  %s3364_s8 = smov [#allocation6]  }
  0x3f   : > { %p3274_p11 = scmp.ne.s32.totalorder %s3509_s19, %s3273_s6  ;;  %s3278_s17 = sshll.u32 %s3364_s8, 4  ;;  %s3279_s17 = int_to_ptr.vmem [resolvable:$false] %s3278_s17 }
  0x40   : > { %s3280_s24 = scalar_lea.vmem %s3279_s17, 512  ;;  %p3281_p6 = scmp.lt.s32.totalorder %s3509_s19, %s3279_s17 }
  0x41   : > { %p3276_p0 = pnand %p3274_p11, %p3230_p2  ;;  %p3282_p1 = scmp.lt.s32.totalorder %s3280_s24, %s3273_s6 }
  0x43   : > { %p3277_p4 = pneg %p3276_p0  ;;  %p3283_p3 = por %p3282_p1, %p3281_p6 }
  0x45   : > { %p3284_p5 = pnand %p3283_p3, %p3277_p4 }
  0x47   : > { %3287 = shalt.err (!%p3284_p5)
}
  0x48   : > { %3179 = dma.hbm_to_vmem [thread:$0]  (!%p3456_p13), %s3501_s14, 256, %s3509_s19, %s138_s28, %s3361_s27, %s3362_s29, %s3363_s5  }
  0x49   : > { %159 = sbr.rel (%p3505_p12) target bundleno = 463 (0x1cf), region = 28 }
  0x50   : > { %s3543_s30 = sand.u32 1, %s3350_s10   ;;  %p5357_p6 = scmp.ne.s32.totalorder %s5351_s20, 0 }
  0x51   : > { %s3100_s4 = sshll.u32 %s3543_s30, 8  ;;  %s162_s3 = scalar_lea.sflag [#allocation4], %s3543_s30 }
  0x52   : > { %s3549_s25 = scalar_lea.vmem [#allocation3], %s3100_s4 }
  0x53   : > { %3333 = dma.done.wait (%p5357_p6), %s162_s3, 4096  }
  0x54   : > { %3335 = vsyncadd (%p5357_p6), %s162_s3, 4294963200  ;;  %s3101_s23 = sshll.u32 %s3543_s30, 4  ;;  %s171_s27 = scalar_lea.sflag [#allocation7], %s3543_s30 }
  0x55   : > { %s174_s29 = scalar_lea.vmem [#allocation6], %s3101_s23 }
  0x56   : > { %3337 = dma.done.wait (%p5357_p6), %s171_s27, 256  }
  0x57   : > { %3339 = vsyncadd (%p5357_p6), %s171_s27, 4294967040  ;;  %v200_v0 = vld [vmem:[%s174_s29] sm:$0xff]  ;;  %v201_v1 = vld [vmem:[%s174_s29 + $0x8] sm:$0xff]  ;;  %v220_v4 = vlaneseq  ;;  %s3937_s20 = scalar_lea.vmem [#allocation8], %s3100_s4  ;;  %s3164_s5 = sshll.u32 %s3405_s13, 7 }
  0x58   : > { %v202_v2 = vmax.f32 %v200_v0, 0.0001  ;;  %v203_v3 = vmax.f32 %v201_v1, 0.0001  ;;  %v218_v27 = vld [vmem:[%s3549_s25] sm:$0xff]  ;;  %v3103_v28 = vld [vmem:[%s3549_s25 + $0x10] sm:$0xff]  ;;  %s5192_s28 = scalar_lea.hbm %s5241_s2, %s3164_s5 }
  0x59   : > { %v221_v5 = vshrl.u32 %v220_v4, 7  ;;  %v3105_v29 = vld [vmem:[%s3549_s25 + $0x20] sm:$0xff]  ;;  %v3107_v31 = vld [vmem:[%s3549_s25 + $0x30] sm:$0xff]  ;;  %s2996_s14 = sshll.u32 %s3937_s20, 4  ;;  %s2984_s26 = scalar_lea.sflag [#allocation5], %s3543_s30  ;;  %s5194_s14 = int_to_ptr.vmem [resolvable:$true] %s2996_s14 }
  0x5a   : > { %3224 = vrsqrt.f32 %v202_v2  ;;  %vm206_vm0 = vcmp.eq.f32.partialorder %v202_v2, inf  ;;  %v209_v7 = vand.u32 2147483648, %v202_v2  ;;  %vm208_vm1 = vcmp.eq.f32.partialorder %v202_v2, 0.0  ;;  %v3109_v32 = vld [vmem:[%s3549_s25 + $0x40] sm:$0xff]  ;;  %v3111_v37 = vld [vmem:[%s3549_s25 + $0x50] sm:$0xff]  ;;  %s3288_s7 = scalar_lea.vmem %s5194_s14, 4096 }
  0x5b   : > { %3226 = vrsqrt.f32 %v203_v3  ;;  %v3561_v8 = vsub.s32 0, %v221_v5  ;;  %v3563_v9 = vsub.s32 1, %v221_v5  ;;  %vm213_vm2 = vcmp.eq.f32.partialorder %v203_v3, inf  ;;  %v3113_v38 = vld [vmem:[%s3549_s25 + $0x60] sm:$0xff]  ;;  %v3115_v39 = vld [vmem:[%s3549_s25 + $0x70] sm:$0xff]  ;;  %p3289_p13 = scmp.ne.s32.totalorder %s5194_s14, %s3288_s7  ;;  %p5503_p2 = scmp.ne.s32.totalorder %s5352_s21, 0 }
  0x5c   : > { %v3565_v12 = vsub.s32 2, %v221_v5  ;;  %v216_v14 = vand.u32 2147483648, %v203_v3  ;;  %v3567_v15 = vsub.s32 3, %v221_v5  ;;  %vm215_vm3 = vcmp.eq.f32.partialorder %v203_v3, 0.0  ;;  %v3117_v45 = vld [vmem:[%s3549_s25 + $0x80] sm:$0xff]  ;;  %v3119_v52 = vld [vmem:[%s3549_s25 + $0x90] sm:$0xff] }
  0x5d   : > { %5358 = vst [vmem:[#allocation12_spill] sm:$0xff] %v3561_v8  ;;  %5359 = vst [vmem:[#allocation13_spill] sm:$0xff] %v3563_v9  ;;  %v3569_v17 = vsub.s32 4, %v221_v5  ;;  %v3571_v20 = vsub.s32 5, %v221_v5  ;;  %v3573_v21 = vsub.s32 6, %v221_v5  ;;  %v3584_v25 = vsub.s32 7, %v221_v5  ;;  %p3290_p12 = pnand %p3289_p13, %p5503_p2 }
  0x5e   : > { %5360 = vst [vmem:[#allocation14_spill] sm:$0xff] %v3565_v12  ;;  %5361 = vst [vmem:[#allocation15_spill] sm:$0xff] %v3567_v15  ;;  %v3121_v53 = vld [vmem:[%s3549_s25 + $0xa0] sm:$0xff]  ;;  %v3123_v59 = vld [vmem:[%s3549_s25 + $0xb0] sm:$0xff]  ;;  %s3365_s13 = smov [#allocation8]  }
  0x5f   : > { %5362 = vst [vmem:[#allocation16_spill] sm:$0xff] %v3569_v17  ;;  %5363 = vst [vmem:[#allocation17_spill] sm:$0xff] %v3571_v20  ;;  %v3125_v60 = vld [vmem:[%s3549_s25 + $0xc0] sm:$0xff]  ;;  %v3127_v61 = vld [vmem:[%s3549_s25 + $0xd0] sm:$0xff]  ;;  %p3291_p10 = pneg %p3290_p12  ;;  %s3292_s6 = sshll.u32 %s3365_s13, 4  ;;  %s3293_s6 = int_to_ptr.vmem [resolvable:$false] %s3292_s6 }
  0x60   : > { %5364 = vst [vmem:[#allocation18_spill] sm:$0xff] %v3573_v21  ;;  %5365 = vst [vmem:[#allocation19_spill] sm:$0xff] %v3584_v25  ;;  %s3294_s8 = scalar_lea.vmem %s3293_s6, 8192  ;;  %p3295_p7 = scmp.lt.s32.totalorder %s5194_s14, %s3293_s6 }
  0x61   : > { %p3296_p8 = scmp.lt.s32.totalorder %s3294_s8, %s3288_s7 }
  0x63   : > { %p3297_p9 = por %p3296_p8, %p3295_p7 }
  0x64   : > { %v3225_v6 = vpop.eup %3224 }
  0x65   : > { %v3227_v10 = vpop.eup %3226  ;;  %v205_v11 = vmul.f32 %v3225_v6, %v202_v2  ;;  %v3131_v6 = vld [vmem:[%s3549_s25 + $0xf0] sm:$0xff]  ;;  %p3298_p11 = pnand %p3297_p9, %p3291_p10 }
  0x66   : > { %v212_v13 = vmul.f32 %v3227_v10, %v203_v3 }
  0x67   : > { %v207_v16 = vsel %vm206_vm0, %v202_v2, %v205_v11 }
  0x68   : > { %v210_v18 = vsel %vm208_vm1, %v209_v7, %v207_v16  ;;  %v214_v19 = vsel %vm213_vm2, %v203_v3, %v212_v13  ;;  %v3129_v3 = vld [vmem:[%s3549_s25 + $0xe0] sm:$0xff] }
  0x69   : > { %v3576_v22 = vrot.slane %v210_v18, %v3561_v8  ;;  %v3579_v23 = vrot.slane %v210_v18, %v3563_v9  ;;  %v3582_v24 = vrot.slane %v210_v18, %v3565_v12  ;;  %v217_v26 = vsel %vm215_vm3, %v216_v14, %v214_v19 }
  0x6a   : > { %v3590_v30 = vrot.slane %v210_v18, %v3567_v15  ;;  %v3595_v33 = vrot.slane %v210_v18, %v3569_v17  ;;  %v3598_v34 = vrot.slane %v210_v18, %v3571_v20  ;;  %v3601_v35 = vrot.slane %v210_v18, %v3573_v21 }
  0x6b   : > { %v3604_v36 = vrot.slane %v210_v18, %v3584_v25  ;;  %v3610_v40 = vmul.f32 %v3576_v22, %v218_v27  ;;  %v3613_v41 = vmul.f32 %v3103_v28, %v3579_v23  ;;  %v3616_v42 = vmul.f32 %v3105_v29, %v3582_v24 }
  0x6c   : > { %v3619_v43 = vrot.slane %v217_v26, %v3561_v8  ;;  %v3622_v44 = vmul.f32 %v3107_v31, %v3590_v30  ;;  %v3626_v46 = vrot.slane %v217_v26, %v3563_v9  ;;  %v3629_v47 = vrot.slane %v217_v26, %v3565_v12  ;;  %v3110_v12 = vld [vmem:[%s3549_s25 + $0x48] sm:$0xff] }
  0x6d   : > { %5366 = vst [vmem:[#allocation20_spill] sm:$0xff] %v3610_v40  ;;  %5367 = vst [vmem:[#allocation21_spill] sm:$0xff] %v3613_v41  ;;  %v3632_v48 = vmul.f32 %v3109_v32, %v3595_v33  ;;  %v3635_v49 = vmul.f32 %v3111_v37, %v3598_v34  ;;  %v3638_v50 = vmul.f32 %v3113_v38, %v3601_v35 }
  0x6e   : > { %5368 = vst [vmem:[#allocation22_spill] sm:$0xff] %v3616_v42  ;;  %5369 = vst [vmem:[#allocation23_spill] sm:$0xff] %v3622_v44  ;;  %v3641_v51 = vmul.f32 %v3115_v39, %v3604_v36  ;;  %v3646_v54 = vrot.slane %v217_v26, %v3567_v15  ;;  %v3649_v55 = vrot.slane %v217_v26, %v3569_v17  ;;  %v3108_v15 = vld [vmem:[%s3549_s25 + $0x38] sm:$0xff] }
  0x6f   : > { %v3652_v56 = vrot.slane %v217_v26, %v3571_v20  ;;  %v3655_v57 = vrot.slane %v217_v26, %v3573_v21  ;;  %v3658_v58 = vmul.f32 %v3117_v45, %v3619_v43  ;;  %v413_v62 = vrot.slane %v3610_v40, %v3561_v8 }
  0x70   : > { %5370 = vst [vmem:[#allocation24_spill] sm:$0xff] %v3641_v51  ;;  %v421_v63 = vrot.slane %v3613_v41, %v3561_v8  ;;  %v3669_v0 = vrot.slane %v3616_v42, %v3561_v8  ;;  %v3672_v1 = vmul.f32 %v3119_v52, %v3626_v46  ;;  %v3675_v2 = vmul.f32 %v3121_v53, %v3629_v47 }
  0x71   : > { %5371 = vst [vmem:[#allocation25_spill] sm:$0xff] %v3658_v58  ;;  %v3679_v4 = vrot.slane %v217_v26, %v3584_v25  ;;  %v3683_v5 = vrot.slane %v3622_v44, %v3561_v8  ;;  %v414_v7 = vmul.f32 %v413_v62, %v3610_v40  ;;  %v3692_v13 = vrot.slane %v3632_v48, %v3561_v8 }
  0x72   : > { %5372 = vst [vmem:[#allocation26_spill] sm:$0xff] %v3672_v1  ;;  %5373 = vst [vmem:[#allocation27_spill] sm:$0xff] %v3675_v2  ;;  %v422_v10 = vmul.f32 %v421_v63, %v3613_v41  ;;  %v432_v11 = vmul.f32 %v3669_v0, %v3616_v42  ;;  %v3695_v14 = vmul.f32 %v3123_v59, %v3646_v54 }
  0x73   : > { %v3698_v16 = vmul.f32 %v3125_v60, %v3649_v55  ;;  %v3701_v18 = vmul.f32 %v3127_v61, %v3652_v56  ;;  %v3704_v19 = vmul.f32 %v3129_v3, %v3655_v57  ;;  %v442_v27 = vmul.f32 %v3683_v5, %v3622_v44 }
  0x74   : > { %5374 = vst [vmem:[#allocation28_spill] sm:$0xff] %v3695_v14  ;;  %v424_v26 = vadd.f32 %v422_v10, %v414_v7  ;;  %v3710_v28 = vrot.slane %v3635_v49, %v3561_v8  ;;  %v3713_v29 = vmul.f32 %v3131_v6, %v3679_v4  ;;  %v3717_v31 = vrot.slane %v3638_v50, %v3561_v8  ;;  %v219_v7 = vld [vmem:[%s3549_s25 + $0x8] sm:$0xff]  ;;  %v3104_v10 = vld [vmem:[%s3549_s25 + $0x18] sm:$0xff] }
  0x75   : > { %5375 = vst [vmem:[#allocation29_spill] sm:$0xff] %v3698_v16  ;;  %5376 = vst [vmem:[#allocation30_spill] sm:$0xff] %v3701_v18  ;;  %v3721_v32 = vrot.slane %v3641_v51, %v3561_v8  ;;  %v3725_v37 = vrot.slane %v3658_v58, %v3561_v8  ;;  %v452_v39 = vmul.f32 %v3692_v13, %v3632_v48 }
  0x76   : > { %5377 = vst [vmem:[#allocation31_spill] sm:$0xff] %v3704_v19  ;;  %5378 = vst [vmem:[#allocation32_spill] sm:$0xff] %v3713_v29  ;;  %v434_v38 = vadd.f32 %v432_v11, %v424_v26  ;;  %v3731_v45 = vrot.slane %v3672_v1, %v3561_v8  ;;  %v3735_v52 = vrot.slane %v3675_v2, %v3561_v8 }
  0x77   : > { %v3739_v53 = vrot.slane %v3695_v14, %v3561_v8  ;;  %v3743_v59 = vrot.slane %v3698_v16, %v3561_v8  ;;  %v462_v61 = vmul.f32 %v3710_v28, %v3635_v49  ;;  %v3749_v3 = vrot.slane %v3701_v18, %v3561_v8 }
  0x78   : > { %v444_v60 = vadd.f32 %v442_v27, %v434_v38  ;;  %v3753_v6 = vrot.slane %v3704_v19, %v3561_v8  ;;  %v472_v11 = vmul.f32 %v3717_v31, %v3638_v50  ;;  %v482_v26 = vmul.f32 %v3721_v32, %v3641_v51  ;;  %v3106_v38 = vld [vmem:[%s3549_s25 + $0x28] sm:$0xff] }
  0x79   : > { %v492_v27 = vmul.f32 %v3725_v37, %v3658_v58  ;;  %v502_v21 = vmul.f32 %v3731_v45, %v3672_v1  ;;  %v512_v20 = vmul.f32 %v3735_v52, %v3675_v2  ;;  %v3770_v17 = vrot.slane %v3713_v29, %v3561_v8  ;;  %v3112_v8 = vld [vmem:[%s3549_s25 + $0x58] sm:$0xff] }
  0x7a   : > { %v454_v25 = vadd.f32 %v452_v39, %v444_v60  ;;  %v3776_v58 = vmul.f32 %v3739_v53, %v3695_v14  ;;  %v3780_v39 = vmul.f32 %v3743_v59, %v3698_v16  ;;  %v3783_v60 = vmul.f32 %v3576_v22, %v219_v7  ;;  %v3114_v22 = vld [vmem:[%s3549_s25 + $0x68] sm:$0xff]  ;;  %v3116_v7 = vld [vmem:[%s3549_s25 + $0x78] sm:$0xff] }
  0x7b   : > { %v3786_v2 = vmul.f32 %v3104_v10, %v3579_v23  ;;  %v3791_v51 = vmul.f32 %v3749_v3, %v3701_v18  ;;  %v3795_v14 = vmul.f32 %v3753_v6, %v3704_v19  ;;  %v3798_v16 = vmul.f32 %v3106_v38, %v3582_v24  ;;  %v3120_v10 = vld [vmem:[%s3549_s25 + $0x98] sm:$0xff]  ;;  %v3122_v18 = vld [vmem:[%s3549_s25 + $0xa8] sm:$0xff] }
  0x7c   : > { %v464_v1 = vadd.f32 %v462_v61, %v454_v25  ;;  %v3803_v23 = vmul.f32 %v3108_v15, %v3590_v30  ;;  %v3806_v25 = vmul.f32 %v3110_v12, %v3595_v33  ;;  %v3118_v61 = vld [vmem:[%s3549_s25 + $0x88] sm:$0xff]  ;;  %v3815_v24 = vmul.f32 %v3770_v17, %v3713_v29  ;;  %v3124_v15 = vld [vmem:[%s3549_s25 + $0xb8] sm:$0xff] }
  0x7d   : > { %5379 = vst [vmem:[#allocation33_spill] sm:$0xff] %v3786_v2  ;;  %5380 = vst [vmem:[#allocation34_spill] sm:$0xff] %v3791_v51  ;;  %v415_v51 = vmul.f32 %v413_v62, %v3783_v60  ;;  %v423_v19 = vmul.f32 %v421_v63, %v3786_v2  ;;  %v3818_v38 = vmul.f32 %v3112_v8, %v3598_v34  ;;  %v3126_v30 = vld [vmem:[%s3549_s25 + $0xc8] sm:$0xff]  ;;  %v3128_v63 = vld [vmem:[%s3549_s25 + $0xd8] sm:$0xff] }
  0x7e   : > { %5381 = vst [vmem:[#allocation35_spill] sm:$0xff] %v3795_v14  ;;  %5382 = vst [vmem:[#allocation36_spill] sm:$0xff] %v3798_v16  ;;  %v474_v14 = vadd.f32 %v472_v11, %v464_v1  ;;  %v433_v12 = vmul.f32 %v3669_v0, %v3798_v16  ;;  %v3825_v33 = vmul.f32 %v3114_v22, %v3601_v35 }
  0x7f   : > { %5383 = vst [vmem:[#allocation37_spill] sm:$0xff] %v3803_v23  ;;  %5384 = vst [vmem:[#allocation38_spill] sm:$0xff] %v3806_v25  ;;  %v3828_v62 = vmul.f32 %v3116_v7, %v3604_v36  ;;  %v425_v1 = vadd.f32 %v423_v19, %v415_v51  ;;  %v443_v11 = vmul.f32 %v3683_v5, %v3803_v23  ;;  %v3130_v51 = vld [vmem:[%s3549_s25 + $0xe8] sm:$0xff] }
  0x80   : > { %5385 = vst [vmem:[#allocation39_spill] sm:$0xff] %v3818_v38  ;;  %5386 = vst [vmem:[#allocation40_spill] sm:$0xff] %v3825_v33  ;;  %v484_v29 = vadd.f32 %v482_v26, %v474_v14  ;;  %v3834_v8 = vmul.f32 %v3118_v61, %v3619_v43  ;;  %v3837_v34 = vmul.f32 %v3120_v10, %v3626_v46 }
  0x81   : > { %v3840_v0 = vmul.f32 %v3122_v18, %v3629_v47  ;;  %v3843_v35 = vmul.f32 %v3124_v15, %v3646_v54  ;;  %v3846_v36 = vmul.f32 %v3126_v30, %v3649_v55  ;;  %v435_v19 = vadd.f32 %v433_v12, %v425_v1  ;;  %v3132_v54 = vld [vmem:[%s3549_s25 + $0xf8] sm:$0xff] }
  0x82   : > { %v453_v5 = vmul.f32 %v3692_v13, %v3806_v25  ;;  %v494_v14 = vadd.f32 %v492_v27, %v484_v29  ;;  %v3852_v43 = vmul.f32 %v3128_v63, %v3652_v56  ;;  %v463_v46 = vmul.f32 %v3710_v28, %v3818_v38 }
  0x83   : > { %5387 = vst [vmem:[#allocation41_spill] sm:$0xff] %v3843_v35  ;;  %5388 = vst [vmem:[#allocation42_spill] sm:$0xff] %v3846_v36  ;;  %v573_v47 = vrot.slane %v3610_v40, %v3563_v9  ;;  %v445_v18 = vadd.f32 %v443_v11, %v435_v19  ;;  %v581_v55 = vrot.slane %v3613_v41, %v3563_v9 }
  0x84   : > { %5389 = vst [vmem:[#allocation43_spill] sm:$0xff] %v3852_v43  ;;  %v591_v26 = vrot.slane %v3616_v42, %v3563_v9  ;;  %v601_v13 = vrot.slane %v3622_v44, %v3563_v9  ;;  %v504_v29 = vadd.f32 %v502_v21, %v494_v14  ;;  %v3866_v56 = vmul.f32 %v3130_v51, %v3655_v57 }
  0x85   : > { %v473_v28 = vmul.f32 %v3717_v31, %v3825_v33  ;;  %v574_v27 = vmul.f32 %v573_v47, %v3610_v40  ;;  %v455_v22 = vadd.f32 %v453_v5, %v445_v18  ;;  %v582_v7 = vmul.f32 %v581_v55, %v3613_v41 }
  0x86   : > { %5390 = vst [vmem:[#allocation44_spill] sm:$0xff] %v3866_v56  ;;  %v592_v61 = vmul.f32 %v591_v26, %v3616_v42  ;;  %v611_v10 = vrot.slane %v3632_v48, %v3563_v9  ;;  %v514_v15 = vadd.f32 %v512_v20, %v504_v29  ;;  %v3876_v30 = vmul.f32 %v3132_v54, %v3679_v4 }
  0x87   : > { %v483_v21 = vmul.f32 %v3721_v32, %v3828_v62  ;;  %v493_v57 = vmul.f32 %v3725_v37, %v3834_v8  ;;  %v465_v31 = vadd.f32 %v463_v46, %v455_v22  ;;  %v584_v12 = vadd.f32 %v582_v7, %v574_v27  ;;  %v5394_v22 = vld [vmem:[#allocation25_spill] sm:$0xff] }
  0x88   : > { %5391 = vst [vmem:[#allocation45_spill] sm:$0xff] %v3876_v30  ;;  %v602_v63 = vmul.f32 %v601_v13, %v3622_v44  ;;  %v621_v1 = vrot.slane %v3635_v49, %v3563_v9  ;;  %v524_v11 = vadd.f32 %v3776_v58, %v514_v15  ;;  %v503_v20 = vmul.f32 %v3731_v45, %v3837_v34  ;;  %v5395_v15 = vld [vmem:[#allocation26_spill] sm:$0xff] }
  0x89   : > { %v513_v4 = vmul.f32 %v3735_v52, %v3840_v0  ;;  %v631_v32 = vrot.slane %v3638_v50, %v3563_v9  ;;  %v475_v51 = vadd.f32 %v473_v28, %v465_v31  ;;  %v523_v37 = vmul.f32 %v3739_v53, %v3843_v35  ;;  %v5392_v52 = vld [vmem:[#allocation24_spill] sm:$0xff]  ;;  %v5393_v28 = vld [vmem:[#allocation34_spill] sm:$0xff] }
  0x8a   : > { %v594_v19 = vadd.f32 %v592_v61, %v584_v12  ;;  %v612_v5 = vmul.f32 %v611_v10, %v3632_v48  ;;  %v534_v14 = vadd.f32 %v3780_v39, %v524_v11  ;;  %v533_v58 = vmul.f32 %v3743_v59, %v3846_v36  ;;  %v5397_v12 = vld [vmem:[#allocation35_spill] sm:$0xff]  ;;  %v5398_v11 = vld [vmem:[#allocation28_spill] sm:$0xff] }
  0x8b   : > { %v543_v45 = vmul.f32 %v3749_v3, %v3852_v43  ;;  %v641_v46 = vrot.slane %v5392_v52, %v3563_v9  ;;  %v485_v54 = vadd.f32 %v483_v21, %v475_v51  ;;  %v553_v18 = vmul.f32 %v3753_v6, %v3866_v56  ;;  %v5396_v6 = vld [vmem:[#allocation27_spill] sm:$0xff] }
  0x8c   : > { %v604_v29 = vadd.f32 %v602_v63, %v594_v19  ;;  %v622_v53 = vmul.f32 %v621_v1, %v3635_v49  ;;  %v544_v27 = vadd.f32 %v5393_v28, %v534_v14  ;;  %v563_v39 = vmul.f32 %v3770_v17, %v3876_v30  ;;  %v5400_v30 = vld [vmem:[#allocation30_spill] sm:$0xff] }
  0x8d   : > { %v632_v59 = vmul.f32 %v631_v32, %v3638_v50  ;;  %v651_v3 = vrot.slane %v5394_v22, %v3563_v9  ;;  %v495_v7 = vadd.f32 %v493_v57, %v485_v54  ;;  %v3913_v21 = vrot.slane %v5395_v15, %v3563_v9 }
  0x8e   : > { %v614_v61 = vadd.f32 %v612_v5, %v604_v29  ;;  %v3917_v31 = vrot.slane %v5396_v6, %v3563_v9  ;;  %v554_v63 = vadd.f32 %v5397_v12, %v544_v27  ;;  %v642_v17 = vmul.f32 %v641_v46, %v5392_v52  ;;  %v5399_v27 = vld [vmem:[#allocation29_spill] sm:$0xff] }
  0x8f   : > { %v3923_v51 = vrot.slane %v5398_v11, %v3563_v9  ;;  %v575_v57 = vmul.f32 %v573_v47, %v3783_v60  ;;  %v505_v19 = vadd.f32 %v503_v20, %v495_v7  ;;  %v583_v14 = vmul.f32 %v581_v55, %v3786_v2  ;;  %v5401_v20 = vld [vmem:[#allocation31_spill] sm:$0xff] }
  0x90   : > { %v624_v5 = vadd.f32 %v622_v53, %v614_v61  ;;  %v593_v54 = vmul.f32 %v591_v26, %v3798_v16  ;;  %v564_v29 = vadd.f32 %v3815_v24, %v554_v63  ;;  %v652_v28 = vmul.f32 %v651_v3, %v5394_v22 }
  0x91   : > { %v691_v12 = vrot.slane %v5399_v27, %v3563_v9  ;;  %v701_v56 = vrot.slane %v5400_v30, %v3563_v9  ;;  %v515_v43 = vadd.f32 %v513_v4, %v505_v19  ;;  %v585_v35 = vadd.f32 %v583_v14, %v575_v57  ;;  %v5402_v57 = vld [vmem:[#allocation32_spill] sm:$0xff] }
  0x92   : > { %v634_v36 = vadd.f32 %v632_v59, %v624_v5  ;;  %v603_v47 = vmul.f32 %v601_v13, %v3803_v23  ;;  %566 = vst [vmem:[%s3937_s20] sm:$0xff] %v564_v29  ;;  %v662_v24 = vmul.f32 %v3913_v21, %v5395_v15  ;;  %v672_v55 = vmul.f32 %v3917_v31, %v5396_v6 }
  0x93   : > { %v682_v26 = vmul.f32 %v3923_v51, %v5398_v11  ;;  %v711_v4 = vrot.slane %v5401_v20, %v3563_v9  ;;  %v525_v53 = vadd.f32 %v523_v37, %v515_v43  ;;  %v595_v13 = vadd.f32 %v593_v54, %v585_v35  ;;  %v5403_v11 = vld [vmem:[#allocation14_spill] sm:$0xff] }
  0x94   : > { %v644_v59 = vadd.f32 %v642_v17, %v634_v36  ;;  %v613_v7 = vmul.f32 %v611_v10, %v3806_v25  ;;  %v692_v61 = vmul.f32 %v691_v12, %v5399_v27  ;;  %v702_v63 = vmul.f32 %v701_v56, %v5400_v30 }
  0x95   : > { %v3953_v19 = vrot.slane %v5402_v57, %v3563_v9  ;;  %v623_v5 = vmul.f32 %v621_v1, %v3818_v38  ;;  %v535_v14 = vadd.f32 %v533_v58, %v525_v53  ;;  %v605_v23 = vadd.f32 %v603_v47, %v595_v13 }
  0x96   : > { %v654_v29 = vadd.f32 %v652_v28, %v644_v59  ;;  %v734_v43 = vrot.slane %v3610_v40, %v5403_v11  ;;  %v633_v35 = vmul.f32 %v631_v32, %v3825_v33  ;;  %v742_v36 = vrot.slane %v3613_v41, %v5403_v11 }
  0x97   : > { %v752_v10 = vrot.slane %v3616_v42, %v5403_v11  ;;  %v762_v37 = vrot.slane %v3622_v44, %v5403_v11  ;;  %v545_v17 = vadd.f32 %v543_v45, %v535_v14  ;;  %v615_v1 = vadd.f32 %v613_v7, %v605_v23 }
  0x98   : > { %v664_v54 = vadd.f32 %v662_v24, %v654_v29  ;;  %v735_v58 = vmul.f32 %v734_v43, %v3610_v40  ;;  %v712_v28 = vmul.f32 %v711_v4, %v5401_v20  ;;  %v743_v47 = vmul.f32 %v742_v36, %v3613_v41 }
  0x99   : > { %v753_v32 = vmul.f32 %v752_v10, %v3616_v42  ;;  %v772_v53 = vrot.slane %v3632_v48, %v5403_v11  ;;  %v555_v59 = vadd.f32 %v553_v18, %v545_v17  ;;  %v625_v9 = vadd.f32 %v623_v5, %v615_v1 }
  0x9a   : > { %v674_v13 = vadd.f32 %v672_v55, %v664_v54  ;;  %v643_v33 = vmul.f32 %v641_v46, %v3828_v62  ;;  %v722_v23 = vmul.f32 %v3953_v19, %v5402_v57  ;;  %v745_v45 = vadd.f32 %v743_v47, %v735_v58 }
  0x9b   : > { %v763_v24 = vmul.f32 %v762_v37, %v3622_v44  ;;  %v782_v7 = vrot.slane %v3635_v49, %v5403_v11  ;;  %v565_v14 = vadd.f32 %v563_v39, %v555_v59  ;;  %v635_v42 = vadd.f32 %v633_v35, %v625_v9  ;;  %v5405_v35 = vld [vmem:[#allocation42_spill] sm:$0xff] }
  0x9c   : > { %v684_v29 = vadd.f32 %v682_v26, %v674_v13  ;;  %v653_v41 = vmul.f32 %v651_v3, %v3834_v8  ;;  %v755_v18 = vadd.f32 %v753_v32, %v745_v45  ;;  %v773_v55 = vmul.f32 %v772_v53, %v3632_v48  ;;  %v5404_v3 = vld [vmem:[#allocation41_spill] sm:$0xff]  ;;  %v5406_v13 = vld [vmem:[#allocation43_spill] sm:$0xff] }
  0x9d   : > { %v792_v46 = vrot.slane %v3638_v50, %v5403_v11  ;;  %v3983_v5 = vrot.slane %v5392_v52, %v5403_v11  ;;  %567 = vst [vmem:[%s3937_s20 + $0x8] sm:$0xff] %v565_v14  ;;  %v645_v54 = vadd.f32 %v643_v33, %v635_v42  ;;  %v663_v39 = vmul.f32 %v3913_v21, %v3837_v34 }
  0x9e   : > { %v694_v17 = vadd.f32 %v692_v61, %v684_v29  ;;  %v673_v9 = vmul.f32 %v3917_v31, %v3840_v0  ;;  %v683_v26 = vmul.f32 %v3923_v51, %v5404_v3  ;;  %v693_v1 = vmul.f32 %v691_v12, %v5405_v35  ;;  %v5407_v61 = vld [vmem:[#allocation44_spill] sm:$0xff] }
  0x9f   : > { %v765_v58 = vadd.f32 %v763_v24, %v755_v18  ;;  %v783_v47 = vmul.f32 %v782_v7, %v3635_v49  ;;  %v655_v59 = vadd.f32 %v653_v41, %v645_v54  ;;  %v703_v45 = vmul.f32 %v701_v56, %v5406_v13 }
  0xa0   : > { %v704_v32 = vadd.f32 %v702_v63, %v694_v17  ;;  %v713_v42 = vmul.f32 %v711_v4, %v5407_v61  ;;  %v793_v21 = vmul.f32 %v792_v46, %v3638_v50  ;;  %v803_v31 = vmul.f32 %v3983_v5, %v5392_v52 }
  0xa1   : > { %v775_v33 = vadd.f32 %v773_v55, %v765_v58  ;;  %v812_v51 = vrot.slane %v5394_v22, %v5403_v11  ;;  %v665_v12 = vadd.f32 %v663_v39, %v655_v59  ;;  %v4003_v63 = vrot.slane %v5395_v15, %v5403_v11  ;;  %v5410_v59 = vld [vmem:[#allocation45_spill] sm:$0xff] }
  0xa2   : > { %v714_v14 = vadd.f32 %v712_v28, %v704_v32  ;;  %v4007_v41 = vrot.slane %v5396_v6, %v5403_v11  ;;  %v736_v4 = vmul.f32 %v734_v43, %v3783_v60  ;;  %v744_v24 = vmul.f32 %v742_v36, %v3786_v2  ;;  %v5408_v28 = vld [vmem:[#allocation28_spill] sm:$0xff]  ;;  %v5409_v32 = vld [vmem:[#allocation37_spill] sm:$0xff] }
  0xa3   : > { %v785_v56 = vadd.f32 %v783_v47, %v775_v33  ;;  %v754_v29 = vmul.f32 %v752_v10, %v3798_v16  ;;  %v675_v55 = vadd.f32 %v673_v9, %v665_v12  ;;  %v4014_v17 = vrot.slane %v5408_v28, %v5403_v11 }
  0xa4   : > { %v724_v18 = vadd.f32 %v722_v23, %v714_v14  ;;  %v4018_v54 = vrot.slane %v5399_v27, %v5403_v11  ;;  %v813_v58 = vmul.f32 %v812_v51, %v5394_v22  ;;  %v746_v47 = vadd.f32 %v744_v24, %v736_v4 }
  0xa5   : > { %v795_v39 = vadd.f32 %v793_v21, %v785_v56  ;;  %v764_v43 = vmul.f32 %v762_v37, %v5409_v32  ;;  %v685_v36 = vadd.f32 %v683_v26, %v675_v55  ;;  %v723_v10 = vmul.f32 %v3953_v19, %v5410_v59  ;;  %v5412_v55 = vld [vmem:[#allocation15_spill] sm:$0xff] }
  0xa6   : > { %3133 = vst [vmem:[%s3937_s20 + $0x10] sm:$0xff] %v724_v18  ;;  %v823_v23 = vmul.f32 %v4003_v63, %v5395_v15  ;;  %v862_v9 = vrot.slane %v5400_v30, %v5403_v11  ;;  %v833_v21 = vmul.f32 %v4007_v41, %v5396_v6  ;;  %v756_v14 = vadd.f32 %v754_v29, %v746_v47  ;;  %v5413_v47 = vld [vmem:[#allocation21_spill] sm:$0xff] }
  0xa7   : > { %v805_v33 = vadd.f32 %v803_v31, %v795_v39  ;;  %v774_v12 = vmul.f32 %v772_v53, %v3806_v25  ;;  %v695_v56 = vadd.f32 %v693_v1, %v685_v36  ;;  %v843_v37 = vmul.f32 %v4014_v17, %v5408_v28  ;;  %v5411_v53 = vld [vmem:[#allocation40_spill] sm:$0xff] }
  0xa8   : > { %v853_v19 = vmul.f32 %v4018_v54, %v5399_v27  ;;  %v872_v26 = vrot.slane %v5401_v20, %v5403_v11  ;;  %v4040_v31 = vrot.slane %v5402_v57, %v5403_v11  ;;  %v766_v24 = vadd.f32 %v764_v43, %v756_v14 }
  0xa9   : > { %v815_v4 = vadd.f32 %v813_v58, %v805_v33  ;;  %v784_v29 = vmul.f32 %v782_v7, %v3818_v38  ;;  %v705_v18 = vadd.f32 %v703_v45, %v695_v56  ;;  %v794_v1 = vmul.f32 %v792_v46, %v5411_v53  ;;  %v5414_v58 = vld [vmem:[#allocation22_spill] sm:$0xff] }
  0xaa   : > { %v895_v39 = vrot.slane %v3610_v40, %v5412_v55  ;;  %v903_v36 = vrot.slane %v5413_v47, %v5412_v55  ;;  %v776_v32 = vadd.f32 %v774_v12, %v766_v24  ;;  %v913_v33 = vrot.slane %v5414_v58, %v5412_v55 }
  0xab   : > { %v825_v25 = vadd.f32 %v823_v23, %v815_v4  ;;  %v923_v11 = vrot.slane %v3622_v44, %v5412_v55  ;;  %v715_v43 = vadd.f32 %v713_v42, %v705_v18  ;;  %v933_v45 = vrot.slane %v3632_v48, %v5412_v55 }
  0xac   : > { %v896_v7 = vmul.f32 %v895_v39, %v3610_v40  ;;  %v904_v46 = vmul.f32 %v903_v36, %v5413_v47  ;;  %v786_v56 = vadd.f32 %v784_v29, %v776_v32  ;;  %v804_v23 = vmul.f32 %v3983_v5, %v3828_v62 }
  0xad   : > { %v835_v14 = vadd.f32 %v833_v21, %v825_v25  ;;  %v914_v12 = vmul.f32 %v913_v33, %v5414_v58  ;;  %v725_v4 = vadd.f32 %v723_v10, %v715_v43  ;;  %v924_v53 = vmul.f32 %v923_v11, %v3622_v44 }
  0xae   : > { %v906_v24 = vadd.f32 %v904_v46, %v896_v7  ;;  %v943_v42 = vrot.slane %v3635_v49, %v5412_v55  ;;  %v863_v47 = vmul.f32 %v862_v9, %v5400_v30  ;;  %v796_v40 = vadd.f32 %v794_v1, %v786_v56 }
  0xaf   : > { %v845_v18 = vadd.f32 %v843_v37, %v835_v14  ;;  %v814_v38 = vmul.f32 %v812_v51, %v3834_v8  ;;  %3134 = vst [vmem:[%s3937_s20 + $0x18] sm:$0xff] %v725_v4  ;;  %v873_v25 = vmul.f32 %v872_v26, %v5401_v20  ;;  %v934_v5 = vmul.f32 %v933_v45, %v3632_v48 }
  0xb0   : > { %v916_v32 = vadd.f32 %v914_v12, %v906_v24  ;;  %v953_v10 = vrot.slane %v3638_v50, %v5412_v55  ;;  %v883_v29 = vmul.f32 %v4040_v31, %v5402_v57  ;;  %v806_v43 = vadd.f32 %v804_v23, %v796_v40 }
  0xb1   : > { %v855_v21 = vadd.f32 %v853_v19, %v845_v18  ;;  %v824_v37 = vmul.f32 %v4003_v63, %v3837_v34  ;;  %v944_v51 = vmul.f32 %v943_v42, %v3635_v49  ;;  %v963_v7 = vrot.slane %v5392_v52, %v5412_v55 }
  0xb2   : > { %v926_v1 = vadd.f32 %v924_v53, %v916_v32  ;;  %v4078_v46 = vrot.slane %v5394_v22, %v5412_v55  ;;  %v816_v56 = vadd.f32 %v814_v38, %v806_v43  ;;  %v834_v19 = vmul.f32 %v4007_v41, %v3840_v0 }
  0xb3   : > { %v865_v14 = vadd.f32 %v863_v47, %v855_v21  ;;  %v844_v40 = vmul.f32 %v4014_v17, %v5404_v3  ;;  %v854_v63 = vmul.f32 %v4018_v54, %v5405_v35  ;;  %v864_v53 = vmul.f32 %v862_v9, %v5406_v13 }
  0xb4   : > { %v936_v23 = vadd.f32 %v934_v5, %v926_v1  ;;  %v954_v12 = vmul.f32 %v953_v10, %v3638_v50  ;;  %v826_v24 = vadd.f32 %v824_v37, %v816_v56  ;;  %v874_v47 = vmul.f32 %v872_v26, %v5407_v61 }
  0xb5   : > { %v875_v4 = vadd.f32 %v873_v25, %v865_v14  ;;  %v4091_v38 = vrot.slane %v5395_v15, %v5412_v55  ;;  %v964_v17 = vmul.f32 %v963_v7, %v5392_v52  ;;  %v974_v54 = vmul.f32 %v4078_v46, %v5394_v22  ;;  %v5415_v14 = vld [vmem:[#allocation37_spill] sm:$0xff] }
  0xb6   : > { %v946_v41 = vadd.f32 %v944_v51, %v936_v23  ;;  %v993_v9 = vrot.slane %v5396_v6, %v5412_v55  ;;  %v836_v32 = vadd.f32 %v834_v19, %v826_v24  ;;  %v897_v25 = vmul.f32 %v895_v39, %v3783_v60 }
  0xb7   : > { %v885_v18 = vadd.f32 %v883_v29, %v875_v4  ;;  %v905_v5 = vmul.f32 %v903_v36, %v3786_v2  ;;  %v1003_v21 = vrot.slane %v5408_v28, %v5412_v55  ;;  %v1013_v43 = vrot.slane %v5399_v27, %v5412_v55  ;;  %v5416_v4 = vld [vmem:[#allocation38_spill] sm:$0xff] }
  0xb8   : > { %v956_v26 = vadd.f32 %v954_v12, %v946_v41  ;;  %v915_v37 = vmul.f32 %v913_v33, %v3798_v16  ;;  %v846_v1 = vadd.f32 %v844_v40, %v836_v32  ;;  %v884_v51 = vmul.f32 %v4040_v31, %v5410_v59 }
  0xb9   : > { %3135 = vst [vmem:[%s3937_s20 + $0x20] sm:$0xff] %v885_v18  ;;  %v907_v29 = vadd.f32 %v905_v5, %v897_v25  ;;  %v925_v56 = vmul.f32 %v923_v11, %v5415_v14  ;;  %v984_v36 = vmul.f32 %v4091_v38, %v5395_v15  ;;  %v994_v19 = vmul.f32 %v993_v9, %v5396_v6  ;;  %v5417_v25 = vld [vmem:[#allocation39_spill] sm:$0xff]  ;;  %v5419_v14 = vld [vmem:[#allocation16_spill] sm:$0xff] }
  0xba   : > { %v966_v39 = vadd.f32 %v964_v17, %v956_v26  ;;  %v1023_v23 = vrot.slane %v5400_v30, %v5412_v55  ;;  %v856_v12 = vadd.f32 %v854_v63, %v846_v1  ;;  %v1033_v33 = vrot.slane %v5401_v20, %v5412_v55  ;;  %v5418_v63 = vld [vmem:[#allocation40_spill] sm:$0xff] }
  0xbb   : > { %v917_v40 = vadd.f32 %v915_v37, %v907_v29  ;;  %v935_v24 = vmul.f32 %v933_v45, %v5416_v4  ;;  %v1004_v41 = vmul.f32 %v1003_v21, %v5408_v28  ;;  %v1014_v11 = vmul.f32 %v1013_v43, %v5399_v27  ;;  %v5420_v37 = vld [vmem:[#allocation20_spill] sm:$0xff]  ;;  %v5421_v45 = vld [vmem:[#allocation21_spill] sm:$0xff] }
  0xbc   : > { %v976_v31 = vadd.f32 %v974_v54, %v966_v39  ;;  %v4121_v17 = vrot.slane %v5402_v57, %v5412_v55  ;;  %v866_v18 = vadd.f32 %v864_v53, %v856_v12  ;;  %v945_v5 = vmul.f32 %v943_v42, %v5417_v25 }
  0xbd   : > { %v927_v32 = vadd.f32 %v925_v56, %v917_v40  ;;  %v955_v26 = vmul.f32 %v953_v10, %v5418_v63  ;;  %v1056_v29 = vrot.slane %v5420_v37, %v5419_v14  ;;  %v1064_v54 = vrot.slane %v5421_v45, %v5419_v14 }
  0xbe   : > { %v986_v1 = vadd.f32 %v984_v36, %v976_v31  ;;  %v1074_v39 = vrot.slane %v5414_v58, %v5419_v14  ;;  %v876_v4 = vadd.f32 %v874_v47, %v866_v18  ;;  %v1084_v53 = vrot.slane %v3622_v44, %v5419_v14 }
  0xbf   : > { %v937_v55 = vadd.f32 %v935_v24, %v927_v32  ;;  %v4135_v42 = vrot.slane %v3632_v48, %v5419_v14  ;;  %v1057_v56 = vmul.f32 %v1056_v29, %v5420_v37  ;;  %v1065_v36 = vmul.f32 %v1064_v54, %v5421_v45 }
  0xc0   : > { %v996_v10 = vadd.f32 %v994_v19, %v986_v1  ;;  %v1075_v12 = vmul.f32 %v1074_v39, %v5414_v58  ;;  %v886_v40 = vadd.f32 %v884_v51, %v876_v4  ;;  %v1024_v31 = vmul.f32 %v1023_v23, %v5400_v30 }
  0xc1   : > { %v947_v47 = vadd.f32 %v945_v5, %v937_v55  ;;  %v965_v24 = vmul.f32 %v963_v7, %v3828_v62  ;;  %v1067_v32 = vadd.f32 %v1065_v36, %v1057_v56  ;;  %v1085_v63 = vmul.f32 %v1084_v53, %v3622_v44 }
  0xc2   : > { %v1006_v18 = vadd.f32 %v1004_v41, %v996_v10  ;;  %v1104_v25 = vrot.slane %v3635_v49, %v5419_v14  ;;  %3136 = vst [vmem:[%s3937_s20 + $0x28] sm:$0xff] %v886_v40  ;;  %v1034_v19 = vmul.f32 %v1033_v33, %v5401_v20  ;;  %v1044_v1 = vmul.f32 %v4121_v17, %v5402_v57 }
  0xc3   : > { %v957_v58 = vadd.f32 %v955_v26, %v947_v47  ;;  %v975_v51 = vmul.f32 %v4078_v46, %v3834_v8  ;;  %v1077_v4 = vadd.f32 %v1075_v12, %v1067_v32  ;;  %v1095_v7 = vmul.f32 %v4135_v42, %v3632_v48 }
  0xc4   : > { %v1016_v55 = vadd.f32 %v1014_v11, %v1006_v18  ;;  %v1114_v41 = vrot.slane %v3638_v50, %v5419_v14  ;;  %v985_v10 = vmul.f32 %v4091_v38, %v3837_v34  ;;  %v995_v56 = vmul.f32 %v993_v9, %v3840_v0 }
  0xc5   : > { %v967_v5 = vadd.f32 %v965_v24, %v957_v58  ;;  %v1124_v26 = vrot.slane %v5392_v52, %v5419_v14  ;;  %v1005_v46 = vmul.f32 %v1003_v21, %v5404_v3  ;;  %v1087_v11 = vadd.f32 %v1085_v63, %v1077_v4 }
  0xc6   : > { %v1026_v36 = vadd.f32 %v1024_v31, %v1016_v55  ;;  %v1105_v12 = vmul.f32 %v1104_v25, %v3635_v49  ;;  %v1015_v47 = vmul.f32 %v1013_v43, %v5405_v35  ;;  %v1025_v18 = vmul.f32 %v1023_v23, %v5406_v13 }
  0xc7   : > { %v977_v40 = vadd.f32 %v975_v51, %v967_v5  ;;  %v1134_v58 = vrot.slane %v5394_v22, %v5419_v14  ;;  %v1097_v9 = vadd.f32 %v1095_v7, %v1087_v11  ;;  %v1115_v24 = vmul.f32 %v1114_v41, %v3638_v50 }
  0xc8   : > { %v1036_v38 = vadd.f32 %v1034_v19, %v1026_v36  ;;  %v4169_v31 = vrot.slane %v5395_v15, %v5419_v14  ;;  %v1035_v63 = vmul.f32 %v1033_v33, %v5407_v61  ;;  %v1125_v32 = vmul.f32 %v1124_v26, %v5392_v52 }
  0xc9   : > { %v987_v21 = vadd.f32 %v985_v10, %v977_v40  ;;  %v4175_v43 = vrot.slane %v5396_v6, %v5419_v14  ;;  %v1107_v51 = vadd.f32 %v1105_v12, %v1097_v9  ;;  %v4179_v19 = vrot.slane %v5408_v28, %v5419_v14  ;;  %v5422_v40 = vld [vmem:[#allocation37_spill] sm:$0xff] }
  0xca   : > { %v1046_v23 = vadd.f32 %v1044_v1, %v1036_v38  ;;  %v1058_v55 = vmul.f32 %v1056_v29, %v3783_v60  ;;  %v4184_v7 = vrot.slane %v5399_v27, %v5419_v14  ;;  %v1066_v33 = vmul.f32 %v1064_v54, %v3786_v2 }
  0xcb   : > { %v997_v4 = vadd.f32 %v995_v56, %v987_v21  ;;  %v1076_v5 = vmul.f32 %v1074_v39, %v3798_v16  ;;  %v1045_v1 = vmul.f32 %v4121_v17, %v5410_v59  ;;  %v1117_v10 = vadd.f32 %v1115_v24, %v1107_v51  ;;  %v5426_v16 = vld [vmem:[#allocation17_spill] sm:$0xff] }
  0xcc   : > { %3137 = vst [vmem:[%s3937_s20 + $0x30] sm:$0xff] %v1046_v23  ;;  %v1135_v36 = vmul.f32 %v1134_v58, %v5394_v22  ;;  %v1145_v11 = vmul.f32 %v4169_v31, %v5395_v15  ;;  %v1184_v56 = vrot.slane %v5400_v30, %v5419_v14  ;;  %v1068_v12 = vadd.f32 %v1066_v33, %v1058_v55  ;;  %v5423_v23 = vld [vmem:[#allocation38_spill] sm:$0xff]  ;;  %v5425_v33 = vld [vmem:[#allocation40_spill] sm:$0xff] }
  0xcd   : > { %v1007_v29 = vadd.f32 %v1005_v46, %v997_v4  ;;  %v1086_v38 = vmul.f32 %v1084_v53, %v5422_v40  ;;  %v1127_v54 = vadd.f32 %v1125_v32, %v1117_v10  ;;  %v1155_v39 = vmul.f32 %v4175_v43, %v5396_v6  ;;  %v5424_v32 = vld [vmem:[#allocation39_spill] sm:$0xff] }
  0xce   : > { %v1165_v17 = vmul.f32 %v4179_v19, %v5408_v28  ;;  %v1194_v9 = vrot.slane %v5401_v20, %v5419_v14  ;;  %v1175_v46 = vmul.f32 %v4184_v7, %v5399_v27  ;;  %v1078_v21 = vadd.f32 %v1076_v5, %v1068_v12 }
  0xcf   : > { %v1017_v24 = vadd.f32 %v1015_v47, %v1007_v29  ;;  %v1096_v51 = vmul.f32 %v4135_v42, %v5423_v23  ;;  %v1137_v55 = vadd.f32 %v1135_v36, %v1127_v54  ;;  %v4209_v53 = vrot.slane %v5402_v57, %v5419_v14  ;;  %v5427_v42 = vld [vmem:[#allocation22_spill] sm:$0xff] }
  0xd0   : > { %v1106_v4 = vmul.f32 %v1104_v25, %v5424_v32  ;;  %v1116_v10 = vmul.f32 %v1114_v41, %v5425_v33  ;;  %v1088_v59 = vadd.f32 %v1086_v38, %v1078_v21  ;;  %v1217_v47 = vrot.slane %v5420_v37, %v5426_v16 }
  0xd1   : > { %v1027_v40 = vadd.f32 %v1025_v18, %v1017_v24  ;;  %v1225_v5 = vrot.slane %v5421_v45, %v5426_v16  ;;  %v1147_v29 = vadd.f32 %v1145_v11, %v1137_v55  ;;  %v1235_v36 = vrot.slane %v5427_v42, %v5426_v16 }
  0xd2   : > { %v1245_v12 = vrot.slane %v3622_v44, %v5426_v16  ;;  %v4223_v25 = vrot.slane %v3632_v48, %v5426_v16  ;;  %v1098_v18 = vadd.f32 %v1096_v51, %v1088_v59  ;;  %v1218_v38 = vmul.f32 %v1217_v47, %v5420_v37 }
  0xd3   : > { %v1037_v41 = vadd.f32 %v1035_v63, %v1027_v40  ;;  %v1226_v54 = vmul.f32 %v1225_v5, %v5421_v45  ;;  %v1157_v24 = vadd.f32 %v1155_v39, %v1147_v29  ;;  %v1126_v11 = vmul.f32 %v1124_v26, %v3828_v62 }
  0xd4   : > { %v1236_v21 = vmul.f32 %v1235_v36, %v5427_v42  ;;  %v1246_v55 = vmul.f32 %v1245_v12, %v3622_v44  ;;  %v1108_v33 = vadd.f32 %v1106_v4, %v1098_v18  ;;  %v1265_v23 = vrot.slane %v3635_v49, %v5426_v16 }
  0xd5   : > { %v1047_v14 = vadd.f32 %v1045_v1, %v1037_v41  ;;  %v1228_v32 = vadd.f32 %v1226_v54, %v1218_v38  ;;  %v1167_v63 = vadd.f32 %v1165_v17, %v1157_v24  ;;  %v1185_v59 = vmul.f32 %v1184_v56, %v5400_v30 }
  0xd6   : > { %v1195_v40 = vmul.f32 %v1194_v9, %v5401_v20  ;;  %v1136_v51 = vmul.f32 %v1134_v58, %v3834_v8  ;;  %v1118_v39 = vadd.f32 %v1116_v10, %v1108_v33  ;;  %v1256_v29 = vmul.f32 %v4223_v25, %v3632_v48 }
  0xd7   : > { %3138 = vst [vmem:[%s3937_s20 + $0x38] sm:$0xff] %v1047_v14  ;;  %v1238_v26 = vadd.f32 %v1236_v21, %v1228_v32  ;;  %v1275_v1 = vrot.slane %v3638_v50, %v5426_v16  ;;  %v1177_v4 = vadd.f32 %v1175_v46, %v1167_v63  ;;  %v1205_v41 = vmul.f32 %v4209_v53, %v5402_v57 }
  0xd8   : > { %v1146_v17 = vmul.f32 %v4169_v31, %v3837_v34  ;;  %v4246_v18 = vrot.slane %v5392_v52, %v5426_v16  ;;  %v1128_v14 = vadd.f32 %v1126_v11, %v1118_v39  ;;  %v1156_v58 = vmul.f32 %v4175_v43, %v3840_v0 }
  0xd9   : > { %v1248_v32 = vadd.f32 %v1246_v55, %v1238_v26  ;;  %v1266_v33 = vmul.f32 %v1265_v23, %v3635_v49  ;;  %v1187_v10 = vadd.f32 %v1185_v59, %v1177_v4  ;;  %v1166_v46 = vmul.f32 %v4179_v19, %v5404_v3  ;;  %v5428_v26 = vld [vmem:[#allocation36_spill] sm:$0xff] }
  0xda   : > { %v1176_v38 = vmul.f32 %v4184_v7, %v5405_v35  ;;  %v1186_v31 = vmul.f32 %v1184_v56, %v5406_v13  ;;  %v1138_v54 = vadd.f32 %v1136_v51, %v1128_v14  ;;  %v1276_v21 = vmul.f32 %v1275_v1, %v3638_v50 }
  0xdb   : > { %v1258_v24 = vadd.f32 %v1256_v29, %v1248_v32  ;;  %v1295_v11 = vrot.slane %v5394_v22, %v5426_v16  ;;  %v1197_v43 = vadd.f32 %v1195_v40, %v1187_v10  ;;  %v1196_v55 = vmul.f32 %v1194_v9, %v5407_v61 }
  0xdc   : > { %v1286_v63 = vmul.f32 %v4246_v18, %v5392_v52  ;;  %v4264_v19 = vrot.slane %v5395_v15, %v5426_v16  ;;  %v1148_v7 = vadd.f32 %v1146_v17, %v1138_v54  ;;  %v1315_v59 = vrot.slane %v5396_v6, %v5426_v16 }
  0xdd   : > { %v1268_v56 = vadd.f32 %v1266_v33, %v1258_v24  ;;  %v4270_v51 = vrot.slane %v5408_v28, %v5426_v16  ;;  %v1207_v40 = vadd.f32 %v1205_v41, %v1197_v43  ;;  %v1219_v39 = vmul.f32 %v1217_v47, %v3783_v60  ;;  %v5429_v33 = vld [vmem:[#allocation45_spill] sm:$0xff] }
  0xde   : > { %v1227_v9 = vmul.f32 %v1225_v5, %v3786_v2  ;;  %v1237_v29 = vmul.f32 %v1235_v36, %v5428_v26  ;;  %v1158_v4 = vadd.f32 %v1156_v58, %v1148_v7  ;;  %v1296_v32 = vmul.f32 %v1295_v11, %v5394_v22  ;;  %v5430_v47 = vld [vmem:[#allocation37_spill] sm:$0xff]  ;;  %v5434_v26 = vld [vmem:[#allocation18_spill] sm:$0xff] }
  0xdf   : > { %v1278_v14 = vadd.f32 %v1276_v21, %v1268_v56  ;;  %v1335_v17 = vrot.slane %v5399_v27, %v5426_v16  ;;  %3139 = vst [vmem:[%s3937_s20 + $0x40] sm:$0xff] %v1207_v40  ;;  %v1206_v10 = vmul.f32 %v4209_v53, %v5429_v33  ;;  %v1306_v41 = vmul.f32 %v4264_v19, %v5395_v15  ;;  %v5431_v56 = vld [vmem:[#allocation38_spill] sm:$0xff] }
  0xe0   : > { %v1229_v54 = vadd.f32 %v1227_v9, %v1219_v39  ;;  %v1247_v24 = vmul.f32 %v1245_v12, %v5430_v47  ;;  %v1168_v5 = vadd.f32 %v1166_v46, %v1158_v4  ;;  %v1316_v36 = vmul.f32 %v1315_v59, %v5396_v6  ;;  %v5432_v4 = vld [vmem:[#allocation39_spill] sm:$0xff]  ;;  %v5433_v47 = vld [vmem:[#allocation40_spill] sm:$0xff] }
  0xe1   : > { %v1288_v43 = vadd.f32 %v1286_v63, %v1278_v14  ;;  %v1345_v58 = vrot.slane %v5400_v30, %v5426_v16  ;;  %v1326_v21 = vmul.f32 %v4270_v51, %v5408_v28  ;;  %v1355_v7 = vrot.slane %v5401_v20, %v5426_v16 }
  0xe2   : > { %v1239_v53 = vadd.f32 %v1237_v29, %v1229_v54  ;;  %v1257_v40 = vmul.f32 %v4223_v25, %v5431_v56  ;;  %v1178_v39 = vadd.f32 %v1176_v38, %v1168_v5  ;;  %v1336_v12 = vmul.f32 %v1335_v17, %v5399_v27 }
  0xe3   : > { %v1298_v9 = vadd.f32 %v1296_v32, %v1288_v43  ;;  %v4296_v46 = vrot.slane %v5402_v57, %v5426_v16  ;;  %v1267_v14 = vmul.f32 %v1265_v23, %v5432_v4  ;;  %v1277_v33 = vmul.f32 %v1275_v1, %v5433_v47 }
  0xe4   : > { %v1249_v63 = vadd.f32 %v1247_v24, %v1239_v53  ;;  %v1378_v2 = vrot.slane %v5420_v37, %v5434_v26  ;;  %v1188_v29 = vadd.f32 %v1186_v31, %v1178_v39  ;;  %v1386_v25 = vrot.slane %v5421_v45, %v5434_v26 }
  0xe5   : > { %v1308_v54 = vadd.f32 %v1306_v41, %v1298_v9  ;;  %v1396_v38 = vrot.slane %v5427_v42, %v5434_v26  ;;  %v1406_v24 = vrot.slane %v3622_v44, %v5434_v26  ;;  %v4311_v23 = vrot.slane %v3632_v48, %v5434_v26 }
  0xe6   : > { %v1259_v32 = vadd.f32 %v1257_v40, %v1249_v63  ;;  %v1379_v5 = vmul.f32 %v1378_v2, %v5420_v37  ;;  %v1198_v1 = vadd.f32 %v1196_v55, %v1188_v29  ;;  %v1387_v41 = vmul.f32 %v1386_v25, %v5421_v45 }
  0xe7   : > { %v1318_v31 = vadd.f32 %v1316_v36, %v1308_v54  ;;  %v1397_v43 = vmul.f32 %v1396_v38, %v5427_v42  ;;  %v1346_v53 = vmul.f32 %v1345_v58, %v5400_v30  ;;  %v1287_v40 = vmul.f32 %v4246_v18, %v3828_v62 }
  0xe8   : > { %v1269_v39 = vadd.f32 %v1267_v14, %v1259_v32  ;;  %v1407_v9 = vmul.f32 %v1406_v24, %v3622_v44  ;;  %v1208_v63 = vadd.f32 %v1206_v10, %v1198_v1  ;;  %v1389_v37 = vadd.f32 %v1387_v41, %v1379_v5 }
  0xe9   : > { %v1328_v16 = vadd.f32 %v1326_v21, %v1318_v31  ;;  %v1426_v55 = vrot.slane %v3635_v49, %v5434_v26  ;;  %v1356_v36 = vmul.f32 %v1355_v7, %v5401_v20  ;;  %v1366_v29 = vmul.f32 %v4296_v46, %v5402_v57 }
  0xea   : > { %v1279_v54 = vadd.f32 %v1277_v33, %v1269_v39  ;;  %v1297_v42 = vmul.f32 %v1295_v11, %v3834_v8  ;;  %3140 = vst [vmem:[%s3937_s20 + $0x48] sm:$0xff] %v1208_v63  ;;  %v1399_v32 = vadd.f32 %v1397_v43, %v1389_v37  ;;  %v1417_v18 = vmul.f32 %v4311_v23, %v3632_v48 }
  0xeb   : > { %v1338_v14 = vadd.f32 %v1336_v12, %v1328_v16  ;;  %v1436_v10 = vrot.slane %v3638_v50, %v5434_v26  ;;  %v1307_v5 = vmul.f32 %v4264_v19, %v3837_v34  ;;  %v1317_v1 = vmul.f32 %v1315_v59, %v3840_v0 }
  0xec   : > { %v1289_v21 = vadd.f32 %v1287_v40, %v1279_v54  ;;  %v1446_v33 = vrot.slane %v5392_v52, %v5434_v26  ;;  %v1327_v16 = vmul.f32 %v4270_v51, %v5404_v3  ;;  %v1409_v37 = vadd.f32 %v1407_v9, %v1399_v32 }
  0xed   : > { %v1348_v31 = vadd.f32 %v1346_v53, %v1338_v14  ;;  %v1427_v11 = vmul.f32 %v1426_v55, %v3635_v49  ;;  %v1337_v41 = vmul.f32 %v1335_v17, %v5405_v35  ;;  %v1347_v43 = vmul.f32 %v1345_v58, %v5406_v13 }
  0xee   : > { %v1299_v12 = vadd.f32 %v1297_v42, %v1289_v21  ;;  %v1456_v19 = vrot.slane %v5394_v22, %v5434_v26  ;;  %v1419_v59 = vadd.f32 %v1417_v18, %v1409_v37  ;;  %v1437_v40 = vmul.f32 %v1436_v10, %v3638_v50  ;;  %v5436_v21 = vld [vmem:[#allocation36_spill] sm:$0xff] }
  0xef   : > { %v1358_v39 = vadd.f32 %v1356_v36, %v1348_v31  ;;  %v4345_v53 = vrot.slane %v5395_v15, %v5434_v26  ;;  %v1357_v9 = vmul.f32 %v1355_v7, %v5407_v61  ;;  %v1447_v42 = vmul.f32 %v1446_v33, %v5392_v52  ;;  %v5435_v7 = vld [vmem:[#allocation33_spill] sm:$0xff] }
  0xf0   : > { %v1309_v51 = vadd.f32 %v1307_v5, %v1299_v12  ;;  %v4351_v17 = vrot.slane %v5396_v6, %v5434_v26  ;;  %v1429_v63 = vadd.f32 %v1427_v11, %v1419_v59  ;;  %v4355_v36 = vrot.slane %v5408_v28, %v5434_v26  ;;  %v5437_v31 = vld [vmem:[#allocation45_spill] sm:$0xff] }
  0xf1   : > { %v1368_v58 = vadd.f32 %v1366_v29, %v1358_v39  ;;  %v1380_v54 = vmul.f32 %v1378_v2, %v3783_v60  ;;  %v4360_v32 = vrot.slane %v5399_v27, %v5434_v26  ;;  %v1388_v18 = vmul.f32 %v1386_v25, %v5435_v7  ;;  %v5438_v59 = vld [vmem:[#allocation37_spill] sm:$0xff] }
  0xf2   : > { %v1319_v14 = vadd.f32 %v1317_v1, %v1309_v51  ;;  %v1398_v5 = vmul.f32 %v1396_v38, %v5436_v21  ;;  %v1367_v29 = vmul.f32 %v4296_v46, %v5437_v31  ;;  %v1439_v37 = vadd.f32 %v1437_v40, %v1429_v63  ;;  %v5439_v31 = vld [vmem:[#allocation19_spill] sm:$0xff] }
  0xf3   : > { %3141 = vst [vmem:[%s3937_s20 + $0x50] sm:$0xff] %v1368_v58  ;;  %v1457_v11 = vmul.f32 %v1456_v19, %v5394_v22  ;;  %v1467_v12 = vmul.f32 %v4345_v53, %v5395_v15  ;;  %v1477_v1 = vmul.f32 %v4351_v17, %v5396_v6  ;;  %v1390_v39 = vadd.f32 %v1388_v18, %v1380_v54 }
  0xf4   : > { %v1329_v2 = vadd.f32 %v1327_v16, %v1319_v14  ;;  %v1408_v51 = vmul.f32 %v1406_v24, %v5438_v59  ;;  %v1449_v25 = vadd.f32 %v1447_v42, %v1439_v37  ;;  %v1487_v38 = vmul.f32 %v4355_v36, %v5408_v28 }
  0xf5   : > { %v1506_v46 = vrot.slane %v5400_v30, %v5434_v26  ;;  %v1516_v40 = vrot.slane %v5401_v20, %v5434_v26  ;;  %v1497_v16 = vmul.f32 %v4360_v32, %v5399_v27  ;;  %v1400_v63 = vadd.f32 %v1398_v5, %v1390_v39 }
  0xf6   : > { %v1339_v58 = vadd.f32 %v1337_v41, %v1329_v2  ;;  %v1418_v54 = vmul.f32 %v4311_v23, %v5431_v56  ;;  %v1459_v14 = vadd.f32 %v1457_v11, %v1449_v25  ;;  %v4385_v24 = vrot.slane %v5402_v57, %v5434_v26  ;;  %v5440_v41 = vld [vmem:[#allocation20_spill] sm:$0xff]  ;;  %v5441_v23 = vld [vmem:[#allocation22_spill] sm:$0xff] }
  0xf7   : > { %v1428_v42 = vmul.f32 %v1426_v55, %v5432_v4  ;;  %v1438_v18 = vmul.f32 %v1436_v10, %v5433_v47  ;;  %v1410_v59 = vadd.f32 %v1408_v51, %v1400_v63  ;;  %v1539_v2 = vrot.slane %v5440_v41, %v5439_v31 }
  0xf8   : > { %v1349_v37 = vadd.f32 %v1347_v43, %v1339_v58  ;;  %v1547_v5 = vrot.slane %v5421_v45, %v5439_v31  ;;  %v1469_v39 = vadd.f32 %v1467_v12, %v1459_v14  ;;  %v1557_v11 = vrot.slane %v5441_v23, %v5439_v31 }
  0xf9   : > { %v1567_v25 = vrot.slane %v3622_v44, %v5439_v31  ;;  %v4399_v55 = vrot.slane %v3632_v48, %v5439_v31  ;;  %v1420_v43 = vadd.f32 %v1418_v54, %v1410_v59  ;;  %v1540_v51 = vmul.f32 %v1539_v2, %v5440_v41 }
  0xfa   : > { %v1359_v10 = vadd.f32 %v1357_v9, %v1349_v37  ;;  %v1548_v58 = vmul.f32 %v1547_v5, %v5421_v45  ;;  %v1479_v63 = vadd.f32 %v1477_v1, %v1469_v39  ;;  %v1448_v12 = vmul.f32 %v1446_v33, %v3828_v62 }
  0xfb   : > { %v1558_v14 = vmul.f32 %v1557_v11, %v5441_v23  ;;  %v1568_v26 = vmul.f32 %v1567_v25, %v3622_v44  ;;  %v1430_v4 = vadd.f32 %v1428_v42, %v1420_v43  ;;  %v1587_v27 = vrot.slane %v3635_v49, %v5439_v31 }
  0xfc   : > { %v1369_v47 = vadd.f32 %v1367_v29, %v1359_v10  ;;  %v1550_v56 = vadd.f32 %v1548_v58, %v1540_v51  ;;  %v1489_v9 = vadd.f32 %v1487_v38, %v1479_v63  ;;  %v1507_v59 = vmul.f32 %v1506_v46, %v5400_v30 }
  0xfd   : > { %v1517_v54 = vmul.f32 %v1516_v40, %v5401_v20  ;;  %v1458_v37 = vmul.f32 %v1456_v19, %v3834_v8  ;;  %v1440_v1 = vadd.f32 %v1438_v18, %v1430_v4  ;;  %v1578_v39 = vmul.f32 %v4399_v55, %v3632_v48 }
  0xfe   : > { %3142 = vst [vmem:[%s3937_s20 + $0x58] sm:$0xff] %v1369_v47  ;;  %v1560_v33 = vadd.f32 %v1558_v14, %v1550_v56  ;;  %v1597_v29 = vrot.slane %v3638_v50, %v5439_v31  ;;  %v1499_v42 = vadd.f32 %v1497_v16, %v1489_v9  ;;  %v1527_v10 = vmul.f32 %v4385_v24, %v5402_v57 }
  0xff   : > { %v1468_v38 = vmul.f32 %v4345_v53, %v3837_v34  ;;  %v4422_v43 = vrot.slane %v5392_v52, %v5439_v31  ;;  %v1450_v47 = vadd.f32 %v1448_v12, %v1440_v1  ;;  %v1478_v56 = vmul.f32 %v4351_v17, %v3840_v0 }
 0x100   : > { %v1570_v4 = vadd.f32 %v1568_v26, %v1560_v33  ;;  %v1588_v19 = vmul.f32 %v1587_v27, %v3635_v49  ;;  %v1509_v18 = vadd.f32 %v1507_v59, %v1499_v42  ;;  %v1488_v16 = vmul.f32 %v4355_v36, %v5404_v3 }
 0x101   : > { %v1498_v51 = vmul.f32 %v4360_v32, %v5405_v35  ;;  %v1508_v53 = vmul.f32 %v1506_v46, %v5406_v13  ;;  %v1460_v58 = vadd.f32 %v1458_v37, %v1450_v47  ;;  %v1598_v14 = vmul.f32 %v1597_v29, %v3638_v50 }
 0x102   : > { %v1580_v63 = vadd.f32 %v1578_v39, %v1570_v4  ;;  %v1617_v12 = vrot.slane %v5394_v22, %v5439_v31  ;;  %v1519_v17 = vadd.f32 %v1517_v54, %v1509_v18  ;;  %v1518_v26 = vmul.f32 %v1516_v40, %v5407_v61 }
 0x103   : > { %v1608_v9 = vmul.f32 %v4422_v43, %v5392_v52  ;;  %v4440_v36 = vrot.slane %v5395_v15, %v5439_v31  ;;  %v1470_v32 = vadd.f32 %v1468_v38, %v1460_v58  ;;  %v1637_v59 = vrot.slane %v5396_v6, %v5439_v31  ;;  %v5442_v38 = vld [vmem:[#allocation29_spill] sm:$0xff] }
 0x104   : > { %v1590_v46 = vadd.f32 %v1588_v19, %v1580_v63  ;;  %v4446_v37 = vrot.slane %v5408_v28, %v5439_v31  ;;  %v1529_v54 = vadd.f32 %v1527_v10, %v1519_v17  ;;  %v1541_v1 = vmul.f32 %v1539_v2, %v3783_v60  ;;  %v5443_v19 = vld [vmem:[#allocation45_spill] sm:$0xff] }
 0x105   : > { %v1549_v40 = vmul.f32 %v1547_v5, %v5435_v7  ;;  %v1559_v33 = vmul.f32 %v1557_v11, %v5436_v21  ;;  %v1480_v39 = vadd.f32 %v1478_v56, %v1470_v32  ;;  %v1618_v47 = vmul.f32 %v1617_v12, %v5394_v22  ;;  %v5444_v2 = vld [vmem:[#allocation37_spill] sm:$0xff] }
 0x106   : > { %v1600_v42 = vadd.f32 %v1598_v14, %v1590_v46  ;;  %v1657_v4 = vrot.slane %v5442_v38, %v5439_v31  ;;  %3143 = vst [vmem:[%s3937_s20 + $0x60] sm:$0xff] %v1529_v54  ;;  %v1528_v18 = vmul.f32 %v4385_v24, %v5443_v19  ;;  %v1628_v10 = vmul.f32 %v4440_v36, %v5395_v15  ;;  %v5445_v46 = vld [vmem:[#allocation38_spill] sm:$0xff]  ;;  %v5448_v15 = vld [vmem:[#allocation12_spill] sm:$0xff] }
 0x107   : > { %v1551_v58 = vadd.f32 %v1549_v40, %v1541_v1  ;;  %v1569_v63 = vmul.f32 %v1567_v25, %v5444_v2  ;;  %v1490_v5 = vadd.f32 %v1488_v16, %v1480_v39  ;;  %v1638_v11 = vmul.f32 %v1637_v59, %v5396_v6  ;;  %v5446_v39 = vld [vmem:[#allocation39_spill] sm:$0xff]  ;;  %v5447_v6 = vld [vmem:[#allocation40_spill] sm:$0xff] }
 0x108   : > { %v1610_v17 = vadd.f32 %v1608_v9, %v1600_v42  ;;  %v1667_v56 = vrot.slane %v5400_v30, %v5439_v31  ;;  %v1648_v14 = vmul.f32 %v4446_v37, %v5408_v28  ;;  %v1677_v32 = vrot.slane %v5401_v20, %v5439_v31 }
 0x109   : > { %v1561_v24 = vadd.f32 %v1559_v33, %v1551_v58  ;;  %v1579_v54 = vmul.f32 %v4399_v55, %v5445_v46  ;;  %v1500_v1 = vadd.f32 %v1498_v51, %v1490_v5  ;;  %v1658_v25 = vmul.f32 %v1657_v4, %v5442_v38 }
 0x10a   : > { %v1620_v40 = vadd.f32 %v1618_v47, %v1610_v17  ;;  %v4472_v16 = vrot.slane %v5402_v57, %v5439_v31  ;;  %v1589_v42 = vmul.f32 %v1587_v27, %v5446_v39  ;;  %v1599_v28 = vmul.f32 %v1597_v29, %v5447_v6 }
 0x10b   : > { %v1571_v9 = vadd.f32 %v1569_v63, %v1561_v24  ;;  %v1700_v22 = vrot.slane %v3783_v60, %v5448_v15  ;;  %v1510_v33 = vadd.f32 %v1508_v53, %v1500_v1  ;;  %v1708_v55 = vrot.slane %v5435_v7, %v5448_v15 }
 0x10c   : > { %v1630_v58 = vadd.f32 %v1628_v10, %v1620_v40  ;;  %v1718_v51 = vrot.slane %v5436_v21, %v5448_v15  ;;  %v1728_v63 = vrot.slane %v5444_v2, %v5448_v15  ;;  %v4487_v27 = vrot.slane %v5445_v46, %v5448_v15 }
 0x10d   : > { %v1581_v47 = vadd.f32 %v1579_v54, %v1571_v9  ;;  %v1701_v5 = vmul.f32 %v1700_v22, %v5440_v41  ;;  %v1520_v29 = vadd.f32 %v1518_v26, %v1510_v33  ;;  %v1709_v10 = vmul.f32 %v1708_v55, %v5421_v45 }
 0x10e   : > { %v1640_v53 = vadd.f32 %v1638_v11, %v1630_v58  ;;  %v1719_v17 = vmul.f32 %v1718_v51, %v5441_v23  ;;  %v1668_v24 = vmul.f32 %v1667_v56, %v5400_v30  ;;  %v1609_v54 = vmul.f32 %v4422_v43, %v3828_v62 }
 0x10f   : > { %v1591_v1 = vadd.f32 %v1589_v42, %v1581_v47  ;;  %v1729_v40 = vmul.f32 %v1728_v63, %v3622_v44  ;;  %v1530_v9 = vadd.f32 %v1528_v18, %v1520_v29  ;;  %v1711_v41 = vadd.f32 %v1709_v10, %v1701_v5 }
 0x110   : > { %v1650_v31 = vadd.f32 %v1648_v14, %v1640_v53  ;;  %v1748_v26 = vrot.slane %v5446_v39, %v5448_v15  ;;  %v1678_v11 = vmul.f32 %v1677_v32, %v5401_v20  ;;  %v1688_v33 = vmul.f32 %v4472_v16, %v5402_v57 }
 0x111   : > { %v1601_v58 = vadd.f32 %v1599_v28, %v1591_v1  ;;  %v1619_v30 = vmul.f32 %v1617_v12, %v3834_v8  ;;  %3144 = vst [vmem:[%s3937_s20 + $0x68] sm:$0xff] %v1530_v9  ;;  %v1721_v47 = vadd.f32 %v1719_v17, %v1711_v41  ;;  %v1739_v43 = vmul.f32 %v4487_v27, %v3632_v48 }
 0x112   : > { %v1660_v42 = vadd.f32 %v1658_v25, %v1650_v31  ;;  %v1758_v18 = vrot.slane %v5447_v6, %v5448_v15  ;;  %v1629_v5 = vmul.f32 %v4440_v36, %v3837_v34  ;;  %v1639_v29 = vmul.f32 %v1637_v59, %v3840_v0 }
 0x113   : > { %v1611_v14 = vadd.f32 %v1609_v54, %v1601_v58  ;;  %v1768_v28 = vrot.slane %v3828_v62, %v5448_v15  ;;  %v1649_v31 = vmul.f32 %v4446_v37, %v5404_v3  ;;  %v1731_v41 = vadd.f32 %v1729_v40, %v1721_v47 }
 0x114   : > { %v1670_v53 = vadd.f32 %v1668_v24, %v1660_v42  ;;  %v1749_v12 = vmul.f32 %v1748_v26, %v3635_v49  ;;  %v1659_v10 = vmul.f32 %v1657_v4, %v5405_v35  ;;  %v1669_v17 = vmul.f32 %v1667_v56, %v5406_v13 }
 0x115   : > { %v1621_v25 = vadd.f32 %v1619_v30, %v1611_v14  ;;  %v1778_v36 = vrot.slane %v3834_v8, %v5448_v15  ;;  %v1741_v59 = vadd.f32 %v1739_v43, %v1731_v41  ;;  %v1759_v54 = vmul.f32 %v1758_v18, %v3638_v50  ;;  %v5450_v41 = vld [vmem:[#allocation26_spill] sm:$0xff] }
 0x116   : > { %v1680_v1 = vadd.f32 %v1678_v11, %v1670_v53  ;;  %v4521_v24 = vrot.slane %v3837_v34, %v5448_v15  ;;  %v1679_v40 = vmul.f32 %v1677_v32, %v5407_v61  ;;  %v1769_v30 = vmul.f32 %v1768_v28, %v5392_v52 }
 0x117   : > { %v1631_v37 = vadd.f32 %v1629_v5, %v1621_v25  ;;  %v4527_v4 = vrot.slane %v3840_v0, %v5448_v15  ;;  %v1751_v9 = vadd.f32 %v1749_v12, %v1741_v59  ;;  %v4531_v11 = vrot.slane %v5404_v3, %v5448_v15  ;;  %v5449_v5 = vld [vmem:[#allocation25_spill] sm:$0xff] }
 0x118   : > { %v1690_v56 = vadd.f32 %v1688_v33, %v1680_v1  ;;  %v1702_v58 = vmul.f32 %v1700_v22, %v3783_v60  ;;  %v4536_v47 = vrot.slane %v5405_v35, %v5448_v15  ;;  %v1710_v32 = vmul.f32 %v1708_v55, %v5435_v7 }
 0x119   : > { %v1641_v42 = vadd.f32 %v1639_v29, %v1631_v37  ;;  %v1720_v43 = vmul.f32 %v1718_v51, %v5436_v21  ;;  %v1689_v33 = vmul.f32 %v4472_v16, %v5443_v19  ;;  %v1761_v14 = vadd.f32 %v1759_v54, %v1751_v9  ;;  %v5451_v29 = vld [vmem:[#allocation27_spill] sm:$0xff]  ;;  %v5452_v37 = vld [vmem:[#allocation28_spill] sm:$0xff] }
 0x11a   : > { %3145 = vst [vmem:[%s3937_s20 + $0x70] sm:$0xff] %v1690_v56  ;;  %v1779_v53 = vmul.f32 %v1778_v36, %v5449_v5  ;;  %v1789_v12 = vmul.f32 %v4521_v24, %v5450_v41  ;;  %v1799_v25 = vmul.f32 %v4527_v4, %v5451_v29  ;;  %v1712_v1 = vadd.f32 %v1710_v32, %v1702_v58  ;;  %v5453_v29 = vld [vmem:[#allocation13_spill] sm:$0xff] }
 0x11b   : > { %v1651_v22 = vadd.f32 %v1649_v31, %v1641_v42  ;;  %v1730_v59 = vmul.f32 %v1728_v63, %v5444_v2  ;;  %v1771_v55 = vadd.f32 %v1769_v30, %v1761_v14  ;;  %v1809_v51 = vmul.f32 %v4531_v11, %v5452_v37 }
 0x11c   : > { %v1828_v16 = vrot.slane %v5406_v13, %v5448_v15  ;;  %v1838_v54 = vrot.slane %v5407_v61, %v5448_v15  ;;  %v1819_v31 = vmul.f32 %v4536_v47, %v5442_v38  ;;  %v1722_v9 = vadd.f32 %v1720_v43, %v1712_v1 }
 0x11d   : > { %v1661_v56 = vadd.f32 %v1659_v10, %v1651_v22  ;;  %v1740_v58 = vmul.f32 %v4487_v27, %v5445_v46  ;;  %v1781_v42 = vadd.f32 %v1779_v53, %v1771_v55  ;;  %v4561_v63 = vrot.slane %v5443_v19, %v5448_v15  ;;  %v5454_v53 = vld [vmem:[#allocation20_spill] sm:$0xff] }
 0x11e   : > { %v1750_v30 = vmul.f32 %v1748_v26, %v5446_v39  ;;  %v1760_v32 = vmul.f32 %v1758_v18, %v5447_v6  ;;  %v1732_v37 = vadd.f32 %v1730_v59, %v1722_v9  ;;  %v1861_v10 = vrot.slane %v3783_v60, %v5453_v29 }
 0x11f   : > { %v1671_v14 = vadd.f32 %v1669_v17, %v1661_v56  ;;  %v1869_v43 = vrot.slane %v5435_v7, %v5453_v29  ;;  %v1791_v22 = vadd.f32 %v1789_v12, %v1781_v42  ;;  %v1879_v27 = vrot.slane %v5436_v21, %v5453_v29 }
 0x120   : > { %v1889_v15 = vrot.slane %v5444_v2, %v5453_v29  ;;  %v4575_v26 = vrot.slane %v5445_v46, %v5453_v29  ;;  %v1742_v17 = vadd.f32 %v1740_v58, %v1732_v37  ;;  %v1862_v1 = vmul.f32 %v1861_v10, %v5454_v53 }
 0x121   : > { %v1681_v18 = vadd.f32 %v1679_v40, %v1671_v14  ;;  %v1870_v59 = vmul.f32 %v1869_v43, %v5421_v45  ;;  %v1801_v55 = vadd.f32 %v1799_v25, %v1791_v22  ;;  %v1770_v12 = vmul.f32 %v1768_v28, %v3828_v62  ;;  %v5455_v14 = vld [vmem:[#allocation30_spill] sm:$0xff] }
 0x122   : > { %v1880_v56 = vmul.f32 %v1879_v27, %v5441_v23  ;;  %v1890_v9 = vmul.f32 %v1889_v15, %v3622_v44  ;;  %v1752_v38 = vadd.f32 %v1750_v30, %v1742_v17  ;;  %v1909_v46 = vrot.slane %v5446_v39, %v5453_v29 }
 0x123   : > { %v1691_v42 = vadd.f32 %v1689_v33, %v1681_v18  ;;  %v1872_v2 = vadd.f32 %v1870_v59, %v1862_v1  ;;  %v1811_v40 = vadd.f32 %v1809_v51, %v1801_v55  ;;  %v1829_v37 = vmul.f32 %v1828_v16, %v5455_v14 }
 0x124   : > { %v1839_v58 = vmul.f32 %v1838_v54, %v5401_v20  ;;  %v1780_v45 = vmul.f32 %v1778_v36, %v3834_v8  ;;  %v1762_v25 = vadd.f32 %v1760_v32, %v1752_v38  ;;  %v1900_v22 = vmul.f32 %v4575_v26, %v3632_v48 }
 0x125   : > { %3146 = vst [vmem:[%s3937_s20 + $0x78] sm:$0xff] %v1691_v42  ;;  %v1882_v28 = vadd.f32 %v1880_v56, %v1872_v2  ;;  %v1919_v33 = vrot.slane %v5447_v6, %v5453_v29  ;;  %v1821_v30 = vadd.f32 %v1819_v31, %v1811_v40  ;;  %v1849_v18 = vmul.f32 %v4561_v63, %v5402_v57 }
 0x126   : > { %v1790_v51 = vmul.f32 %v4521_v24, %v3837_v34  ;;  %v4598_v17 = vrot.slane %v3828_v62, %v5453_v29  ;;  %v1772_v36 = vadd.f32 %v1770_v12, %v1762_v25  ;;  %v1800_v38 = vmul.f32 %v4527_v4, %v3840_v0 }
 0x127   : > { %v1892_v2 = vadd.f32 %v1890_v9, %v1882_v28  ;;  %v1910_v32 = vmul.f32 %v1909_v46, %v3635_v49  ;;  %v1831_v1 = vadd.f32 %v1829_v37, %v1821_v30  ;;  %v1810_v31 = vmul.f32 %v4531_v11, %v5404_v3 }
 0x128   : > { %v1820_v59 = vmul.f32 %v4536_v47, %v5405_v35  ;;  %v1830_v24 = vmul.f32 %v1828_v16, %v5406_v13  ;;  %v1782_v55 = vadd.f32 %v1780_v45, %v1772_v36  ;;  %v1920_v42 = vmul.f32 %v1919_v33, %v3638_v50 }
 0x129   : > { %v1902_v56 = vadd.f32 %v1900_v22, %v1892_v2  ;;  %v1939_v12 = vrot.slane %v3834_v8, %v5453_v29  ;;  %v1841_v4 = vadd.f32 %v1839_v58, %v1831_v1  ;;  %v1840_v9 = vmul.f32 %v1838_v54, %v5407_v61 }
 0x12a   : > { %v1930_v40 = vmul.f32 %v4598_v17, %v5392_v52  ;;  %v4616_v11 = vrot.slane %v3837_v34, %v5453_v29  ;;  %v1792_v47 = vadd.f32 %v1790_v51, %v1782_v55  ;;  %v1959_v45 = vrot.slane %v3840_v0, %v5453_v29 }
 0x12b   : > { %v1912_v16 = vadd.f32 %v1910_v32, %v1902_v56  ;;  %v4622_v37 = vrot.slane %v5404_v3, %v5453_v29  ;;  %v1851_v58 = vadd.f32 %v1849_v18, %v1841_v4  ;;  %v1863_v25 = vmul.f32 %v1861_v10, %v3783_v60  ;;  %v5456_v10 = vld [vmem:[#allocation37_spill] sm:$0xff] }
 0x12c   : > { %v1871_v54 = vmul.f32 %v1869_v43, %v5435_v7  ;;  %v1881_v28 = vmul.f32 %v1879_v27, %v5436_v21  ;;  %v1802_v22 = vadd.f32 %v1800_v38, %v1792_v47  ;;  %v1940_v36 = vmul.f32 %v1939_v12, %v5449_v5  ;;  %v5457_v27 = vld [vmem:[#allocation27_spill] sm:$0xff] }
 0x12d   : > { %v1922_v30 = vadd.f32 %v1920_v42, %v1912_v16  ;;  %v1979_v51 = vrot.slane %v5405_v35, %v5453_v29  ;;  %3147 = vst [vmem:[%s3937_s20 + $0x80] sm:$0xff] %v1851_v58  ;;  %v1850_v2 = vmul.f32 %v4561_v63, %v5443_v19  ;;  %v1950_v18 = vmul.f32 %v4616_v11, %v5450_v41  ;;  %v5458_v42 = vld [vmem:[#allocation28_spill] sm:$0xff]  ;;  %v5459_v16 = vld [vmem:[#allocation38_spill] sm:$0xff] }
 0x12e   : > { %v1873_v32 = vadd.f32 %v1871_v54, %v1863_v25  ;;  %v1891_v1 = vmul.f32 %v1889_v15, %v5456_v10  ;;  %v1812_v43 = vadd.f32 %v1810_v31, %v1802_v22  ;;  %v1960_v38 = vmul.f32 %v1959_v45, %v5457_v27  ;;  %v5460_v15 = vld [vmem:[#allocation29_spill] sm:$0xff]  ;;  %v5461_v27 = vld [vmem:[#allocation14_spill] sm:$0xff] }
 0x12f   : > { %v1932_v55 = vadd.f32 %v1930_v40, %v1922_v30  ;;  %v1989_v56 = vrot.slane %v5406_v13, %v5453_v29  ;;  %v1970_v4 = vmul.f32 %v4622_v37, %v5458_v42  ;;  %v1999_v47 = vrot.slane %v5407_v61, %v5453_v29 }
 0x130   : > { %v1883_v63 = vadd.f32 %v1881_v28, %v1873_v32  ;;  %v1901_v58 = vmul.f32 %v4575_v26, %v5459_v16  ;;  %v1822_v25 = vadd.f32 %v1820_v59, %v1812_v43  ;;  %v1980_v31 = vmul.f32 %v1979_v51, %v5460_v15 }
 0x131   : > { %v1942_v54 = vadd.f32 %v1940_v36, %v1932_v55  ;;  %v4648_v40 = vrot.slane %v5443_v19, %v5453_v29  ;;  %v1911_v30 = vmul.f32 %v1909_v46, %v5446_v39  ;;  %v1921_v42 = vmul.f32 %v1919_v33, %v5447_v6 }
 0x132   : > { %v1893_v22 = vadd.f32 %v1891_v1, %v1883_v63  ;;  %v2022_v41 = vrot.slane %v3783_v60, %v5461_v27  ;;  %v1832_v28 = vadd.f32 %v1830_v24, %v1822_v25  ;;  %v2030_v26 = vrot.slane %v5435_v7, %v5461_v27 }
 0x133   : > { %v1952_v32 = vadd.f32 %v1950_v18, %v1942_v54  ;;  %v2040_v59 = vrot.slane %v5436_v21, %v5461_v27  ;;  %v2050_v1 = vrot.slane %v5456_v10, %v5461_v27  ;;  %v4663_v46 = vrot.slane %v5459_v16, %v5461_v27  ;;  %v5462_v18 = vld [vmem:[#allocation21_spill] sm:$0xff] }
 0x134   : > { %v1903_v36 = vadd.f32 %v1901_v58, %v1893_v22  ;;  %v2023_v29 = vmul.f32 %v2022_v41, %v5454_v53  ;;  %v1842_v33 = vadd.f32 %v1840_v9, %v1832_v28  ;;  %v2031_v43 = vmul.f32 %v2030_v26, %v5462_v18 }
 0x135   : > { %v1962_v24 = vadd.f32 %v1960_v38, %v1952_v32  ;;  %v2041_v55 = vmul.f32 %v2040_v59, %v5441_v23  ;;  %v1990_v63 = vmul.f32 %v1989_v56, %v5455_v14  ;;  %v1931_v58 = vmul.f32 %v4598_v17, %v3828_v62 }
 0x136   : > { %v1913_v25 = vadd.f32 %v1911_v30, %v1903_v36  ;;  %v2051_v54 = vmul.f32 %v2050_v1, %v3622_v44  ;;  %v1852_v22 = vadd.f32 %v1850_v2, %v1842_v33  ;;  %v2033_v15 = vadd.f32 %v2031_v43, %v2023_v29 }
 0x137   : > { %v1972_v53 = vadd.f32 %v1970_v4, %v1962_v24  ;;  %v2070_v9 = vrot.slane %v5446_v39, %v5461_v27  ;;  %v2000_v38 = vmul.f32 %v1999_v47, %v5401_v20  ;;  %v2010_v28 = vmul.f32 %v4648_v40, %v5402_v57 }
 0x138   : > { %v1923_v32 = vadd.f32 %v1921_v42, %v1913_v25  ;;  %v1941_v14 = vmul.f32 %v1939_v12, %v3834_v8  ;;  %3148 = vst [vmem:[%s3937_s20 + $0x88] sm:$0xff] %v1852_v22  ;;  %v2043_v36 = vadd.f32 %v2041_v55, %v2033_v15  ;;  %v2061_v17 = vmul.f32 %v4663_v46, %v3632_v48 }
 0x139   : > { %v1982_v30 = vadd.f32 %v1980_v31, %v1972_v53  ;;  %v2080_v2 = vrot.slane %v5447_v6, %v5461_v27  ;;  %v1951_v29 = vmul.f32 %v4616_v11, %v3837_v34  ;;  %v1961_v33 = vmul.f32 %v1959_v45, %v3840_v0 }
 0x13a   : > { %v1933_v4 = vadd.f32 %v1931_v58, %v1923_v32  ;;  %v2090_v42 = vrot.slane %v3828_v62, %v5461_v27  ;;  %v1971_v53 = vmul.f32 %v4622_v37, %v5404_v3  ;;  %v2053_v12 = vadd.f32 %v2051_v54, %v2043_v36 }
 0x13b   : > { %v1992_v24 = vadd.f32 %v1990_v63, %v1982_v30  ;;  %v2071_v15 = vmul.f32 %v2070_v9, %v3635_v49  ;;  %v1981_v43 = vmul.f32 %v1979_v51, %v5405_v35  ;;  %v1991_v55 = vmul.f32 %v1989_v56, %v5406_v13 }
 0x13c   : > { %v1943_v31 = vadd.f32 %v1941_v14, %v1933_v4  ;;  %v2100_v11 = vrot.slane %v3834_v8, %v5461_v27  ;;  %v2063_v45 = vadd.f32 %v2061_v17, %v2053_v12  ;;  %v2081_v58 = vmul.f32 %v2080_v2, %v3638_v50 }
 0x13d   : > { %v2002_v25 = vadd.f32 %v2000_v38, %v1992_v24  ;;  %v4697_v63 = vrot.slane %v3837_v34, %v5461_v27  ;;  %v2001_v54 = vmul.f32 %v1999_v47, %v5407_v61  ;;  %v2091_v14 = vmul.f32 %v2090_v42, %v5392_v52  ;;  %v5463_v24 = vld [vmem:[#allocation26_spill] sm:$0xff] }
 0x13e   : > { %v1953_v37 = vadd.f32 %v1951_v29, %v1943_v31  ;;  %v4703_v51 = vrot.slane %v3840_v0, %v5461_v27  ;;  %v2073_v22 = vadd.f32 %v2071_v15, %v2063_v45  ;;  %v4707_v38 = vrot.slane %v5404_v3, %v5461_v27  ;;  %v5465_v45 = vld [vmem:[#allocation28_spill] sm:$0xff] }
 0x13f   : > { %v2012_v56 = vadd.f32 %v2010_v28, %v2002_v25  ;;  %v2024_v32 = vmul.f32 %v2022_v41, %v3783_v60  ;;  %v4712_v36 = vrot.slane %v5405_v35, %v5461_v27  ;;  %v2032_v47 = vmul.f32 %v2030_v26, %v5435_v7 }
 0x140   : > { %v1963_v30 = vadd.f32 %v1961_v33, %v1953_v37  ;;  %v2042_v17 = vmul.f32 %v2040_v59, %v5436_v21  ;;  %v2011_v28 = vmul.f32 %v4648_v40, %v5443_v19  ;;  %v2083_v4 = vadd.f32 %v2081_v58, %v2073_v22  ;;  %v5464_v33 = vld [vmem:[#allocation27_spill] sm:$0xff] }
 0x141   : > { %3149 = vst [vmem:[%s3937_s20 + $0x90] sm:$0xff] %v2012_v56  ;;  %v2101_v29 = vmul.f32 %v2100_v11, %v5449_v5  ;;  %v2111_v12 = vmul.f32 %v4697_v63, %v5463_v24  ;;  %v2121_v15 = vmul.f32 %v4703_v51, %v5464_v33  ;;  %v2034_v31 = vadd.f32 %v2032_v47, %v2024_v32  ;;  %v5466_v56 = vld [vmem:[#allocation29_spill] sm:$0xff]  ;;  %v5467_v33 = vld [vmem:[#allocation15_spill] sm:$0xff] }
 0x142   : > { %v1973_v41 = vadd.f32 %v1971_v53, %v1963_v30  ;;  %v2052_v25 = vmul.f32 %v2050_v1, %v5456_v10  ;;  %v2093_v26 = vadd.f32 %v2091_v14, %v2083_v4  ;;  %v2131_v59 = vmul.f32 %v4707_v38, %v5465_v45 }
 0x143   : > { %v2150_v40 = vrot.slane %v5406_v13, %v5461_v27  ;;  %v2160_v58 = vrot.slane %v5407_v61, %v5461_v27  ;;  %v2141_v53 = vmul.f32 %v4712_v36, %v5466_v56  ;;  %v2044_v22 = vadd.f32 %v2042_v17, %v2034_v31 }
 0x144   : > { %v1983_v37 = vadd.f32 %v1981_v43, %v1973_v41  ;;  %v2062_v32 = vmul.f32 %v4663_v46, %v5459_v16  ;;  %v2103_v30 = vadd.f32 %v2101_v29, %v2093_v26  ;;  %v4737_v1 = vrot.slane %v5443_v19, %v5461_v27  ;;  %v5468_v29 = vld [vmem:[#allocation20_spill] sm:$0xff] }
 0x145   : > { %v2072_v14 = vmul.f32 %v2070_v9, %v5446_v39  ;;  %v2082_v47 = vmul.f32 %v2080_v2, %v5447_v6  ;;  %v2054_v45 = vadd.f32 %v2052_v25, %v2044_v22  ;;  %v2183_v43 = vrot.slane %v3783_v60, %v5467_v33 }
 0x146   : > { %v1993_v4 = vadd.f32 %v1991_v55, %v1983_v37  ;;  %v2191_v17 = vrot.slane %v5435_v7, %v5467_v33  ;;  %v2113_v41 = vadd.f32 %v2111_v12, %v2103_v30  ;;  %v2201_v46 = vrot.slane %v5436_v21, %v5467_v33 }
 0x147   : > { %v2211_v27 = vrot.slane %v5456_v10, %v5467_v33  ;;  %v4751_v9 = vrot.slane %v5459_v16, %v5467_v33  ;;  %v2064_v55 = vadd.f32 %v2062_v32, %v2054_v45  ;;  %v2184_v31 = vmul.f32 %v2183_v43, %v5468_v29 }
 0x148   : > { %v2003_v2 = vadd.f32 %v2001_v54, %v1993_v4  ;;  %v2192_v25 = vmul.f32 %v2191_v17, %v5462_v18  ;;  %v2123_v26 = vadd.f32 %v2121_v15, %v2113_v41  ;;  %v2092_v12 = vmul.f32 %v2090_v42, %v3828_v62  ;;  %v5469_v4 = vld [vmem:[#allocation30_spill] sm:$0xff] }
 0x149   : > { %v2202_v37 = vmul.f32 %v2201_v46, %v5441_v23  ;;  %v2212_v22 = vmul.f32 %v2211_v27, %v3622_v44  ;;  %v2074_v56 = vadd.f32 %v2072_v14, %v2064_v55  ;;  %v2231_v16 = vrot.slane %v5446_v39, %v5467_v33 }
 0x14a   : > { %v2013_v30 = vadd.f32 %v2011_v28, %v2003_v2  ;;  %v2194_v10 = vadd.f32 %v2192_v25, %v2184_v31  ;;  %v2133_v54 = vadd.f32 %v2131_v59, %v2123_v26  ;;  %v2151_v45 = vmul.f32 %v2150_v40, %v5469_v4 }
 0x14b   : > { %v2161_v32 = vmul.f32 %v2160_v58, %v5401_v20  ;;  %v2102_v18 = vmul.f32 %v2100_v11, %v3834_v8  ;;  %v2084_v15 = vadd.f32 %v2082_v47, %v2074_v56  ;;  %v2222_v41 = vmul.f32 %v4751_v9, %v3632_v48 }
 0x14c   : > { %3150 = vst [vmem:[%s3937_s20 + $0x98] sm:$0xff] %v2013_v30  ;;  %v2204_v42 = vadd.f32 %v2202_v37, %v2194_v10  ;;  %v2241_v28 = vrot.slane %v5447_v6, %v5467_v33  ;;  %v2143_v14 = vadd.f32 %v2141_v53, %v2133_v54  ;;  %v2171_v2 = vmul.f32 %v4737_v1, %v5402_v57 }
 0x14d   : > { %v2112_v59 = vmul.f32 %v4697_v63, %v3837_v34  ;;  %v4774_v55 = vrot.slane %v3828_v62, %v5467_v33  ;;  %v2094_v11 = vadd.f32 %v2092_v12, %v2084_v15  ;;  %v2122_v10 = vmul.f32 %v4703_v51, %v3840_v0 }
 0x14e   : > { %v2214_v56 = vadd.f32 %v2212_v22, %v2204_v42  ;;  %v2232_v47 = vmul.f32 %v2231_v16, %v3635_v49  ;;  %v2153_v31 = vadd.f32 %v2151_v45, %v2143_v14  ;;  %v2132_v53 = vmul.f32 %v4707_v38, %v5404_v3 }
 0x14f   : > { %v2142_v25 = vmul.f32 %v4712_v36, %v5405_v35  ;;  %v2152_v63 = vmul.f32 %v2150_v40, %v5406_v13  ;;  %v2104_v26 = vadd.f32 %v2102_v18, %v2094_v11  ;;  %v2242_v30 = vmul.f32 %v2241_v28, %v3638_v50 }
 0x150   : > { %v2224_v37 = vadd.f32 %v2222_v41, %v2214_v56  ;;  %v2261_v12 = vrot.slane %v3834_v8, %v5467_v33  ;;  %v2163_v51 = vadd.f32 %v2161_v32, %v2153_v31  ;;  %v2162_v22 = vmul.f32 %v2160_v58, %v5407_v61 }
 0x151   : > { %v2252_v54 = vmul.f32 %v4774_v55, %v5392_v52  ;;  %v4792_v38 = vrot.slane %v3837_v34, %v5467_v33  ;;  %v2114_v36 = vadd.f32 %v2112_v59, %v2104_v26  ;;  %v2281_v18 = vrot.slane %v3840_v0, %v5467_v33 }
 0x152   : > { %v2234_v40 = vadd.f32 %v2232_v47, %v2224_v37  ;;  %v4798_v45 = vrot.slane %v5404_v3, %v5467_v33  ;;  %v2173_v32 = vadd.f32 %v2171_v2, %v2163_v51  ;;  %v2185_v15 = vmul.f32 %v2183_v43, %v3783_v60  ;;  %v5470_v43 = vld [vmem:[#allocation37_spill] sm:$0xff] }
 0x153   : > { %v2193_v58 = vmul.f32 %v2191_v17, %v5435_v7  ;;  %v2203_v42 = vmul.f32 %v2201_v46, %v5436_v21  ;;  %v2124_v41 = vadd.f32 %v2122_v10, %v2114_v36  ;;  %v2262_v11 = vmul.f32 %v2261_v12, %v5449_v5  ;;  %v5471_v46 = vld [vmem:[#allocation27_spill] sm:$0xff] }
 0x154   : > { %v2244_v14 = vadd.f32 %v2242_v30, %v2234_v40  ;;  %v2301_v59 = vrot.slane %v5405_v35, %v5467_v33  ;;  %3151 = vst [vmem:[%s3937_s20 + $0xa0] sm:$0xff] %v2173_v32  ;;  %v2172_v56 = vmul.f32 %v4737_v1, %v5443_v19  ;;  %v2272_v2 = vmul.f32 %v4792_v38, %v5463_v24  ;;  %v5472_v30 = vld [vmem:[#allocation28_spill] sm:$0xff]  ;;  %v5473_v40 = vld [vmem:[#allocation38_spill] sm:$0xff] }
 0x155   : > { %v2195_v47 = vadd.f32 %v2193_v58, %v2185_v15  ;;  %v2213_v31 = vmul.f32 %v2211_v27, %v5470_v43  ;;  %v2134_v17 = vadd.f32 %v2132_v53, %v2124_v41  ;;  %v2282_v10 = vmul.f32 %v2281_v18, %v5471_v46  ;;  %v5474_v27 = vld [vmem:[#allocation29_spill] sm:$0xff]  ;;  %v5475_v46 = vld [vmem:[#allocation16_spill] sm:$0xff] }
 0x156   : > { %v2254_v26 = vadd.f32 %v2252_v54, %v2244_v14  ;;  %v2311_v37 = vrot.slane %v5406_v13, %v5467_v33  ;;  %v2292_v51 = vmul.f32 %v4798_v45, %v5472_v30  ;;  %v2321_v36 = vrot.slane %v5407_v61, %v5467_v33 }
 0x157   : > { %v2205_v1 = vadd.f32 %v2203_v42, %v2195_v47  ;;  %v2223_v32 = vmul.f32 %v4751_v9, %v5473_v40  ;;  %v2144_v15 = vadd.f32 %v2142_v25, %v2134_v17  ;;  %v2302_v53 = vmul.f32 %v2301_v59, %v5474_v27 }
 0x158   : > { %v2264_v58 = vadd.f32 %v2262_v11, %v2254_v26  ;;  %v4824_v54 = vrot.slane %v5443_v19, %v5467_v33  ;;  %v2233_v14 = vmul.f32 %v2231_v16, %v5446_v39  ;;  %v2243_v30 = vmul.f32 %v2241_v28, %v5447_v6 }
 0x159   : > { %v2215_v41 = vadd.f32 %v2213_v31, %v2205_v1  ;;  %v2344_v24 = vrot.slane %v3783_v60, %v5475_v46  ;;  %v2154_v42 = vadd.f32 %v2152_v63, %v2144_v15  ;;  %v2352_v9 = vrot.slane %v5435_v7, %v5475_v46 }
 0x15a   : > { %v2274_v47 = vadd.f32 %v2272_v2, %v2264_v58  ;;  %v2362_v25 = vrot.slane %v5436_v21, %v5475_v46  ;;  %v2372_v31 = vrot.slane %v5470_v43, %v5475_v46  ;;  %v4839_v16 = vrot.slane %v5473_v40, %v5475_v46  ;;  %v5476_v2 = vld [vmem:[#allocation21_spill] sm:$0xff] }
 0x15b   : > { %v2225_v11 = vadd.f32 %v2223_v32, %v2215_v41  ;;  %v2345_v33 = vmul.f32 %v2344_v24, %v5468_v29  ;;  %v2164_v28 = vadd.f32 %v2162_v22, %v2154_v42  ;;  %v2353_v17 = vmul.f32 %v2352_v9, %v5476_v2 }
 0x15c   : > { %v2284_v63 = vadd.f32 %v2282_v10, %v2274_v47  ;;  %v2363_v26 = vmul.f32 %v2362_v25, %v5441_v23  ;;  %v2312_v1 = vmul.f32 %v2311_v37, %v5469_v4  ;;  %v2253_v32 = vmul.f32 %v4774_v55, %v3828_v62 }
 0x15d   : > { %v2235_v15 = vadd.f32 %v2233_v14, %v2225_v11  ;;  %v2373_v58 = vmul.f32 %v2372_v31, %v3622_v44  ;;  %v2174_v41 = vadd.f32 %v2172_v56, %v2164_v28  ;;  %v2355_v27 = vadd.f32 %v2353_v17, %v2345_v33 }
 0x15e   : > { %v2294_v29 = vadd.f32 %v2292_v51, %v2284_v63  ;;  %v2392_v22 = vrot.slane %v5446_v39, %v5475_v46  ;;  %v2322_v10 = vmul.f32 %v2321_v36, %v5401_v20  ;;  %v2332_v42 = vmul.f32 %v4824_v54, %v5402_v57 }
 0x15f   : > { %v2245_v47 = vadd.f32 %v2243_v30, %v2235_v15  ;;  %v2263_v4 = vmul.f32 %v2261_v12, %v3834_v8  ;;  %3152 = vst [vmem:[%s3937_s20 + $0xa8] sm:$0xff] %v2174_v41  ;;  %v2365_v11 = vadd.f32 %v2363_v26, %v2355_v27  ;;  %v2383_v55 = vmul.f32 %v4839_v16, %v3632_v48 }
 0x160   : > { %v2304_v14 = vadd.f32 %v2302_v53, %v2294_v29  ;;  %v2402_v56 = vrot.slane %v5447_v6, %v5475_v46  ;;  %v2273_v33 = vmul.f32 %v4792_v38, %v3837_v34  ;;  %v2283_v28 = vmul.f32 %v2281_v18, %v3840_v0 }
 0x161   : > { %v2255_v51 = vadd.f32 %v2253_v32, %v2245_v47  ;;  %v2412_v30 = vrot.slane %v3828_v62, %v5475_v46  ;;  %v2293_v29 = vmul.f32 %v4798_v45, %v5404_v3  ;;  %v2375_v12 = vadd.f32 %v2373_v58, %v2365_v11 }
 0x162   : > { %v2314_v63 = vadd.f32 %v2312_v1, %v2304_v14  ;;  %v2393_v27 = vmul.f32 %v2392_v22, %v3635_v49  ;;  %v2303_v17 = vmul.f32 %v2301_v59, %v5405_v35  ;;  %v2313_v26 = vmul.f32 %v2311_v37, %v5406_v13 }
 0x163   : > { %v2265_v53 = vadd.f32 %v2263_v4, %v2255_v51  ;;  %v2422_v38 = vrot.slane %v3834_v8, %v5475_v46  ;;  %v2385_v18 = vadd.f32 %v2383_v55, %v2375_v12  ;;  %v2403_v32 = vmul.f32 %v2402_v56, %v3638_v50 }
 0x164   : > { %v2324_v15 = vadd.f32 %v2322_v10, %v2314_v63  ;;  %v4873_v1 = vrot.slane %v3837_v34, %v5475_v46  ;;  %v2323_v58 = vmul.f32 %v2321_v36, %v5407_v61  ;;  %v2413_v4 = vmul.f32 %v2412_v30, %v5392_v52  ;;  %v5477_v63 = vld [vmem:[#allocation26_spill] sm:$0xff] }
 0x165   : > { %v2275_v45 = vadd.f32 %v2273_v33, %v2265_v53  ;;  %v4879_v59 = vrot.slane %v3840_v0, %v5475_v46  ;;  %v2395_v41 = vadd.f32 %v2393_v27, %v2385_v18  ;;  %v4883_v10 = vrot.slane %v5404_v3, %v5475_v46  ;;  %v5479_v18 = vld [vmem:[#allocation28_spill] sm:$0xff] }
 0x166   : > { %v2334_v37 = vadd.f32 %v2332_v42, %v2324_v15  ;;  %v2346_v47 = vmul.f32 %v2344_v24, %v3783_v60  ;;  %v4888_v11 = vrot.slane %v5405_v35, %v5475_v46  ;;  %v2354_v36 = vmul.f32 %v2352_v9, %v5435_v7 }
 0x167   : > { %v2285_v14 = vadd.f32 %v2283_v28, %v2275_v45  ;;  %v2364_v55 = vmul.f32 %v2362_v25, %v5436_v21  ;;  %v2333_v42 = vmul.f32 %v4824_v54, %v5443_v19  ;;  %v2405_v51 = vadd.f32 %v2403_v32, %v2395_v41  ;;  %v5478_v28 = vld [vmem:[#allocation27_spill] sm:$0xff] }
 0x168   : > { %3153 = vst [vmem:[%s3937_s20 + $0xb0] sm:$0xff] %v2334_v37  ;;  %v2423_v33 = vmul.f32 %v2422_v38, %v5449_v5  ;;  %v2433_v12 = vmul.f32 %v4873_v1, %v5477_v63  ;;  %v2443_v27 = vmul.f32 %v4879_v59, %v5478_v28  ;;  %v2356_v53 = vadd.f32 %v2354_v36, %v2346_v47  ;;  %v5480_v37 = vld [vmem:[#allocation29_spill] sm:$0xff] }
 0x169   : > { %v2295_v24 = vadd.f32 %v2293_v29, %v2285_v14  ;;  %v2374_v15 = vmul.f32 %v2372_v31, %v5470_v43  ;;  %v2415_v9 = vadd.f32 %v2413_v4, %v2405_v51  ;;  %v2453_v25 = vmul.f32 %v4883_v10, %v5479_v18  ;;  %v5481_v28 = vld [vmem:[#allocation17_spill] sm:$0xff] }
 0x16a   : > { %v2472_v54 = vrot.slane %v5406_v13, %v5475_v46  ;;  %v4907_v32 = vrot.slane %v5407_v61, %v5475_v46  ;;  %v2463_v29 = vmul.f32 %v4888_v11, %v5480_v37  ;;  %v2366_v41 = vadd.f32 %v2364_v55, %v2356_v53 }
 0x16b   : > { %v2305_v45 = vadd.f32 %v2303_v17, %v2295_v24  ;;  %v2384_v47 = vmul.f32 %v4839_v16, %v5473_v40  ;;  %v2425_v31 = vadd.f32 %v2423_v33, %v2415_v9  ;;  %v4915_v4 = vrot.slane %v5443_v19, %v5475_v46  ;;  %v5482_v33 = vld [vmem:[#allocation20_spill] sm:$0xff] }
 0x16c   : > { %v2394_v14 = vmul.f32 %v2392_v22, %v5446_v39  ;;  %v2404_v36 = vmul.f32 %v2402_v56, %v5447_v6  ;;  %v2376_v18 = vadd.f32 %v2374_v15, %v2366_v41  ;;  %v2505_v17 = vrot.slane %v3783_v60, %v5481_v28 }
 0x16d   : > { %v2315_v51 = vadd.f32 %v2313_v26, %v2305_v45  ;;  %v2513_v55 = vrot.slane %v5435_v7, %v5481_v28  ;;  %v2435_v24 = vadd.f32 %v2433_v12, %v2425_v31  ;;  %v2523_v16 = vrot.slane %v5436_v21, %v5481_v28 }
 0x16e   : > { %v2533_v46 = vrot.slane %v5470_v43, %v5481_v28  ;;  %v4929_v22 = vrot.slane %v5473_v40, %v5481_v28  ;;  %v2386_v26 = vadd.f32 %v2384_v47, %v2376_v18  ;;  %v2506_v53 = vmul.f32 %v2505_v17, %v5482_v33 }
 0x16f   : > { %v2325_v56 = vadd.f32 %v2323_v58, %v2315_v51  ;;  %v2514_v15 = vmul.f32 %v2513_v55, %v5476_v2  ;;  %v2445_v9 = vadd.f32 %v2443_v27, %v2435_v24  ;;  %v2414_v12 = vmul.f32 %v2412_v30, %v3828_v62  ;;  %v5483_v51 = vld [vmem:[#allocation30_spill] sm:$0xff] }
 0x170   : > { %v2524_v45 = vmul.f32 %v2523_v16, %v5441_v23  ;;  %v2534_v41 = vmul.f32 %v2533_v46, %v3622_v44  ;;  %v2396_v37 = vadd.f32 %v2394_v14, %v2386_v26  ;;  %v2553_v40 = vrot.slane %v5446_v39, %v5481_v28 }
 0x171   : > { %v2335_v31 = vadd.f32 %v2333_v42, %v2325_v56  ;;  %v2516_v63 = vadd.f32 %v2514_v15, %v2506_v53  ;;  %v2455_v58 = vadd.f32 %v2453_v25, %v2445_v9  ;;  %v2473_v18 = vmul.f32 %v2472_v54, %v5483_v51 }
 0x172   : > { %v2483_v47 = vmul.f32 %v4907_v32, %v5401_v20  ;;  %v2424_v27 = vmul.f32 %v2422_v38, %v3834_v8  ;;  %v2406_v30 = vadd.f32 %v2404_v36, %v2396_v37  ;;  %v2544_v44 = vmul.f32 %v4929_v22, %v3632_v48 }
 0x173   : > { %3154 = vst [vmem:[%s3937_s20 + $0xb8] sm:$0xff] %v2335_v31  ;;  %v2526_v24 = vadd.f32 %v2524_v45, %v2516_v63  ;;  %v2563_v42 = vrot.slane %v5447_v6, %v5481_v28  ;;  %v2465_v14 = vadd.f32 %v2463_v29, %v2455_v58  ;;  %v2493_v25 = vmul.f32 %v4915_v4, %v5402_v57 }
 0x174   : > { %v4951_v56 = vrot.slane %v3828_v62, %v5481_v28  ;;  %v4955_v38 = vrot.slane %v3834_v8, %v5481_v28  ;;  %v2416_v37 = vadd.f32 %v2414_v12, %v2406_v30  ;;  %v2434_v63 = vmul.f32 %v4873_v1, %v3837_v34 }
 0x175   : > { %v2536_v36 = vadd.f32 %v2534_v41, %v2526_v24  ;;  %v2554_v26 = vmul.f32 %v2553_v40, %v3635_v49  ;;  %v2475_v53 = vadd.f32 %v2473_v18, %v2465_v14  ;;  %v2444_v29 = vmul.f32 %v4879_v59, %v3840_v0 }
 0x176   : > { %v2454_v15 = vmul.f32 %v4883_v10, %v5404_v3  ;;  %v2464_v9 = vmul.f32 %v4888_v11, %v5405_v35  ;;  %v2426_v45 = vadd.f32 %v2424_v27, %v2416_v37  ;;  %v2474_v31 = vmul.f32 %v2472_v54, %v5406_v13 }
 0x177   : > { %v2546_v12 = vadd.f32 %v2544_v44, %v2536_v36  ;;  %v2564_v58 = vmul.f32 %v2563_v42, %v3638_v50  ;;  %v2485_v1 = vadd.f32 %v2483_v47, %v2475_v53  ;;  %v2574_v41 = vmul.f32 %v4951_v56, %v5392_v52 }
 0x178   : > { %v2584_v59 = vmul.f32 %v4955_v38, %v5449_v5  ;;  %v4974_v10 = vrot.slane %v3837_v34, %v5481_v28  ;;  %v2436_v18 = vadd.f32 %v2434_v63, %v2426_v45  ;;  %v4978_v54 = vrot.slane %v3840_v0, %v5481_v28 }
 0x179   : > { %v2556_v11 = vadd.f32 %v2554_v26, %v2546_v12  ;;  %v4982_v44 = vrot.slane %v5404_v3, %v5481_v28  ;;  %v2495_v47 = vadd.f32 %v2493_v25, %v2485_v1  ;;  %v2507_v27 = vmul.f32 %v2505_v17, %v3783_v60  ;;  %v5485_v12 = vld [vmem:[#allocation27_spill] sm:$0xff]  ;;  %v5486_v1 = vld [vmem:[#allocation28_spill] sm:$0xff] }
 0x17a   : > { %v2515_v30 = vmul.f32 %v2513_v55, %v5435_v7  ;;  %v2525_v24 = vmul.f32 %v2523_v16, %v5436_v21  ;;  %v2446_v14 = vadd.f32 %v2444_v29, %v2436_v18  ;;  %v2623_v63 = vrot.slane %v5405_v35, %v5481_v28  ;;  %v5484_v29 = vld [vmem:[#allocation26_spill] sm:$0xff] }
 0x17b   : > { %v2566_v37 = vadd.f32 %v2564_v58, %v2556_v11  ;;  %v2633_v36 = vrot.slane %v5406_v13, %v5481_v28  ;;  %3155 = vst [vmem:[%s3937_s20 + $0xc0] sm:$0xff] %v2495_v47  ;;  %v2484_v26 = vmul.f32 %v4907_v32, %v5407_v61  ;;  %v2494_v25 = vmul.f32 %v4915_v4, %v5443_v19  ;;  %v5487_v4 = vld [vmem:[#allocation38_spill] sm:$0xff] }
 0x17c   : > { %v2517_v17 = vadd.f32 %v2515_v30, %v2507_v27  ;;  %v2535_v55 = vmul.f32 %v2533_v46, %v5470_v43  ;;  %v2456_v53 = vadd.f32 %v2454_v15, %v2446_v14  ;;  %v2594_v45 = vmul.f32 %v4974_v10, %v5484_v29 }
 0x17d   : > { %v2576_v16 = vadd.f32 %v2574_v41, %v2566_v37  ;;  %v2604_v58 = vmul.f32 %v4978_v54, %v5485_v12  ;;  %v2614_v18 = vmul.f32 %v4982_v44, %v5486_v1  ;;  %v5005_v32 = vrot.slane %v5407_v61, %v5481_v28  ;;  %v5488_v41 = vld [vmem:[#allocation29_spill] sm:$0xff]  ;;  %v5489_v1 = vld [vmem:[#allocation18_spill] sm:$0xff] }
 0x17e   : > { %v2527_v11 = vadd.f32 %v2525_v24, %v2517_v17  ;;  %v2545_v47 = vmul.f32 %v4929_v22, %v5487_v4  ;;  %v2466_v46 = vadd.f32 %v2464_v9, %v2456_v53  ;;  %v2624_v27 = vmul.f32 %v2623_v63, %v5488_v41 }
 0x17f   : > { %v2586_v15 = vadd.f32 %v2584_v59, %v2576_v16  ;;  %v2634_v30 = vmul.f32 %v2633_v36, %v5483_v51  ;;  %v2555_v37 = vmul.f32 %v2553_v40, %v5446_v39  ;;  %v2565_v12 = vmul.f32 %v2563_v42, %v5447_v6 }
 0x180   : > { %v2537_v14 = vadd.f32 %v2535_v55, %v2527_v11  ;;  %v2666_v29 = vrot.slane %v3783_v60, %v5489_v1  ;;  %v2476_v5 = vadd.f32 %v2474_v31, %v2466_v46  ;;  %v2674_v24 = vrot.slane %v5435_v7, %v5489_v1 }
 0x181   : > { %v2596_v61 = vadd.f32 %v2594_v45, %v2586_v15  ;;  %v2684_v22 = vrot.slane %v5436_v21, %v5489_v1  ;;  %v2694_v17 = vrot.slane %v5470_v43, %v5489_v1  ;;  %v5024_v40 = vrot.slane %v5487_v4, %v5489_v1 }
 0x182   : > { %v2547_v9 = vadd.f32 %v2545_v47, %v2537_v14  ;;  %v2667_v59 = vmul.f32 %v2666_v29, %v5482_v33  ;;  %v2486_v42 = vadd.f32 %v2484_v26, %v2476_v5  ;;  %v2675_v55 = vmul.f32 %v2674_v24, %v5476_v2  ;;  %v5490_v47 = vld [vmem:[#allocation23_spill] sm:$0xff] }
 0x183   : > { %v2606_v31 = vadd.f32 %v2604_v58, %v2596_v61  ;;  %v2685_v53 = vmul.f32 %v2684_v22, %v5441_v23  ;;  %v2653_v16 = vrot.slane %v5443_v19, %v5481_v28  ;;  %v2575_v11 = vmul.f32 %v4951_v56, %v3828_v62 }
 0x184   : > { %v2557_v45 = vadd.f32 %v2555_v37, %v2547_v9  ;;  %v2695_v46 = vmul.f32 %v2694_v17, %v5490_v47  ;;  %v2496_v15 = vadd.f32 %v2494_v25, %v2486_v42  ;;  %v2677_v51 = vadd.f32 %v2675_v55, %v2667_v59 }
 0x185   : > { %v2616_v14 = vadd.f32 %v2614_v18, %v2606_v31  ;;  %v2714_v5 = vrot.slane %v5446_v39, %v5489_v1  ;;  %v2644_v61 = vmul.f32 %v5005_v32, %v5401_v20  ;;  %v2585_v58 = vmul.f32 %v4955_v38, %v3834_v8 }
 0x186   : > { %v2567_v26 = vadd.f32 %v2565_v12, %v2557_v45  ;;  %3156 = vst [vmem:[%s3937_s20 + $0xc8] sm:$0xff] %v2496_v15  ;;  %v2687_v37 = vadd.f32 %v2685_v53, %v2677_v51  ;;  %v2705_v56 = vmul.f32 %v5024_v40, %v3632_v48  ;;  %v2724_v25 = vrot.slane %v5447_v6, %v5489_v1 }
 0x187   : > { %v2626_v28 = vadd.f32 %v2624_v27, %v2616_v14  ;;  %v2654_v18 = vmul.f32 %v2653_v16, %v5402_v57  ;;  %v2595_v59 = vmul.f32 %v4974_v10, %v3837_v34  ;;  %v2734_v12 = vrot.slane %v3828_v62, %v5489_v1 }
 0x188   : > { %v2577_v9 = vadd.f32 %v2575_v11, %v2567_v26  ;;  %v2605_v38 = vmul.f32 %v4978_v54, %v3840_v0  ;;  %v2697_v51 = vadd.f32 %v2695_v46, %v2687_v37  ;;  %v2715_v27 = vmul.f32 %v2714_v5, %v3635_v49 }
 0x189   : > { %v2636_v42 = vadd.f32 %v2634_v30, %v2626_v28  ;;  %v2615_v55 = vmul.f32 %v4982_v44, %v5404_v3  ;;  %v2625_v53 = vmul.f32 %v2623_v63, %v5405_v35  ;;  %v2635_v45 = vmul.f32 %v2633_v36, %v5406_v13  ;;  %v5491_v28 = vld [vmem:[#allocation44_spill] sm:$0xff] }
 0x18a   : > { %v2587_v31 = vadd.f32 %v2585_v58, %v2577_v9  ;;  %v2707_v10 = vadd.f32 %v2705_v56, %v2697_v51  ;;  %v2725_v15 = vmul.f32 %v2724_v25, %v3638_v50  ;;  %v2744_v30 = vrot.slane %v3834_v8, %v5489_v1 }
 0x18b   : > { %v2646_v11 = vadd.f32 %v2644_v61, %v2636_v42  ;;  %v2735_v46 = vmul.f32 %v2734_v12, %v5392_v52  ;;  %v2754_v14 = vrot.slane %v3837_v34, %v5489_v1  ;;  %v5064_v44 = vrot.slane %v3840_v0, %v5489_v1 }
 0x18c   : > { %v2597_v54 = vadd.f32 %v2595_v59, %v2587_v31  ;;  %v2717_v36 = vadd.f32 %v2715_v27, %v2707_v10  ;;  %v5068_v61 = vrot.slane %v5404_v3, %v5489_v1  ;;  %v2668_v26 = vmul.f32 %v2666_v29, %v3783_v60 }
 0x18d   : > { %v2656_v63 = vadd.f32 %v2654_v18, %v2646_v11  ;;  %v2645_v37 = vmul.f32 %v5005_v32, %v5491_v28  ;;  %v2676_v56 = vmul.f32 %v2674_v24, %v5435_v7  ;;  %v2686_v9 = vmul.f32 %v2684_v22, %v5436_v21  ;;  %v5492_v18 = vld [vmem:[#allocation25_spill] sm:$0xff]  ;;  %v5493_v11 = vld [vmem:[#allocation26_spill] sm:$0xff]  ;;  %v5495_v22 = vld [vmem:[#allocation28_spill] sm:$0xff] }
 0x18e   : > { %v2607_v58 = vadd.f32 %v2605_v38, %v2597_v54  ;;  %v2655_v59 = vmul.f32 %v2653_v16, %v5443_v19  ;;  %v2727_v42 = vadd.f32 %v2725_v15, %v2717_v36  ;;  %v2745_v51 = vmul.f32 %v2744_v30, %v5492_v18  ;;  %v5494_v54 = vld [vmem:[#allocation27_spill] sm:$0xff] }
 0x18f   : > { %3157 = vst [vmem:[%s3937_s20 + $0xd0] sm:$0xff] %v2656_v63  ;;  %v2784_v27 = vrot.slane %v5405_v35, %v5489_v1  ;;  %v2755_v29 = vmul.f32 %v2754_v14, %v5493_v11  ;;  %v2678_v38 = vadd.f32 %v2676_v56, %v2668_v26  ;;  %v2696_v10 = vmul.f32 %v2694_v17, %v5470_v43 }
 0x190   : > { %v2617_v31 = vadd.f32 %v2615_v55, %v2607_v58  ;;  %v2737_v32 = vadd.f32 %v2735_v46, %v2727_v42  ;;  %v2765_v24 = vmul.f32 %v5064_v44, %v5494_v54  ;;  %v2775_v63 = vmul.f32 %v5068_v61, %v5495_v22  ;;  %v5496_v54 = vld [vmem:[#allocation19_spill] sm:$0xff] }
 0x191   : > { %v5088_v16 = vrot.slane %v5406_v13, %v5489_v1  ;;  %v5092_v55 = vrot.slane %v5491_v28, %v5489_v1  ;;  %v2688_v36 = vadd.f32 %v2686_v9, %v2678_v38  ;;  %v2706_v17 = vmul.f32 %v5024_v40, %v5487_v4 }
 0x192   : > { %v2627_v15 = vadd.f32 %v2625_v53, %v2617_v31  ;;  %v2747_v46 = vadd.f32 %v2745_v51, %v2737_v32  ;;  %v2785_v26 = vmul.f32 %v2784_v27, %v5488_v41  ;;  %v2716_v58 = vmul.f32 %v2714_v5, %v5446_v39 }
 0x193   : > { %v2726_v56 = vmul.f32 %v2724_v25, %v5447_v6  ;;  %v2698_v22 = vadd.f32 %v2696_v10, %v2688_v36  ;;  %v2827_v53 = vrot.slane %v3783_v60, %v5496_v54  ;;  %v2835_v31 = vrot.slane %v5435_v7, %v5496_v54 }
 0x194   : > { %v2637_v42 = vadd.f32 %v2635_v45, %v2627_v15  ;;  %v2757_v28 = vadd.f32 %v2755_v29, %v2747_v46  ;;  %v2845_v9 = vrot.slane %v5436_v21, %v5496_v54  ;;  %v2855_v40 = vrot.slane %v5470_v43, %v5496_v54 }
 0x195   : > { %v2865_v5 = vrot.slane %v5487_v4, %v5496_v54  ;;  %v2708_v25 = vadd.f32 %v2706_v17, %v2698_v22  ;;  %v2828_v45 = vmul.f32 %v2827_v53, %v5482_v33  ;;  %v2836_v38 = vmul.f32 %v2835_v31, %v5476_v2 }
 0x196   : > { %v2647_v51 = vadd.f32 %v2645_v37, %v2637_v42  ;;  %v2767_v10 = vadd.f32 %v2765_v24, %v2757_v28  ;;  %v2736_v32 = vmul.f32 %v2734_v12, %v3828_v62  ;;  %v2846_v29 = vmul.f32 %v2845_v9, %v5441_v23  ;;  %v5497_v42 = vld [vmem:[#allocation30_spill] sm:$0xff] }
 0x197   : > { %v2856_v15 = vmul.f32 %v2855_v40, %v5490_v47  ;;  %v2718_v46 = vadd.f32 %v2716_v58, %v2708_v25  ;;  %v2838_v41 = vadd.f32 %v2836_v38, %v2828_v45  ;;  %v2875_v4 = vrot.slane %v5446_v39, %v5496_v54 }
 0x198   : > { %v2657_v36 = vadd.f32 %v2655_v59, %v2647_v51  ;;  %v2777_v37 = vadd.f32 %v2775_v63, %v2767_v10  ;;  %v2795_v22 = vmul.f32 %v5088_v16, %v5497_v42  ;;  %v2814_v2 = vrot.slane %v5443_v19, %v5489_v1 }
 0x199   : > { %v2746_v33 = vmul.f32 %v2744_v30, %v3834_v8  ;;  %v2728_v12 = vadd.f32 %v2726_v56, %v2718_v46  ;;  %v2848_v23 = vadd.f32 %v2846_v29, %v2838_v41  ;;  %v2866_v47 = vmul.f32 %v2865_v5, %v3632_v48 }
 0x19a   : > { %3158 = vst [vmem:[%s3937_s20 + $0xd8] sm:$0xff] %v2657_v36  ;;  %v2885_v28 = vrot.slane %v5447_v6, %v5496_v54  ;;  %v2787_v59 = vadd.f32 %v2785_v26, %v2777_v37  ;;  %v2805_v24 = vmul.f32 %v5092_v55, %v5401_v20  ;;  %v2756_v63 = vmul.f32 %v2754_v14, %v3837_v34 }
 0x19b   : > { %v2738_v17 = vadd.f32 %v2736_v32, %v2728_v12  ;;  %v2858_v58 = vadd.f32 %v2856_v15, %v2848_v23  ;;  %v2876_v1 = vmul.f32 %v2875_v4, %v3635_v49  ;;  %v2895_v30 = vrot.slane %v3828_v62, %v5496_v54 }
 0x19c   : > { %v2797_v56 = vadd.f32 %v2795_v22, %v2787_v59  ;;  %v2815_v41 = vmul.f32 %v2814_v2, %v5402_v57  ;;  %v2766_v48 = vmul.f32 %v5064_v44, %v3840_v0  ;;  %v2886_v25 = vmul.f32 %v2885_v28, %v3638_v50 }
 0x19d   : > { %v2748_v51 = vadd.f32 %v2746_v33, %v2738_v17  ;;  %v2868_v26 = vadd.f32 %v2866_v47, %v2858_v58  ;;  %v2905_v14 = vrot.slane %v3834_v8, %v5496_v54  ;;  %v2776_v49 = vmul.f32 %v5068_v61, %v5404_v3 }
 0x19e   : > { %v2807_v45 = vadd.f32 %v2805_v24, %v2797_v56  ;;  %v2786_v38 = vmul.f32 %v2784_v27, %v5405_v35  ;;  %v2896_v29 = vmul.f32 %v2895_v30, %v5392_v52  ;;  %v2915_v44 = vrot.slane %v3837_v34, %v5496_v54  ;;  %v5501_v56 = vld [vmem:[#allocation28_spill] sm:$0xff] }
 0x19f   : > { %v2758_v10 = vadd.f32 %v2756_v63, %v2748_v51  ;;  %v2878_v32 = vadd.f32 %v2876_v1, %v2868_v26  ;;  %v2829_v50 = vmul.f32 %v2827_v53, %v3783_v60  ;;  %v2837_v36 = vmul.f32 %v2835_v31, %v5435_v7  ;;  %v5498_v53 = vld [vmem:[#allocation44_spill] sm:$0xff]  ;;  %v5500_v63 = vld [vmem:[#allocation27_spill] sm:$0xff] }
 0x1a0   : > { %v2817_v15 = vadd.f32 %v2815_v41, %v2807_v45  ;;  %v2847_v46 = vmul.f32 %v2845_v9, %v5436_v21  ;;  %v2906_v61 = vmul.f32 %v2905_v14, %v5492_v18  ;;  %v2925_v27 = vrot.slane %v3840_v0, %v5496_v54  ;;  %v5499_v9 = vld [vmem:[#allocation38_spill] sm:$0xff] }
 0x1a1   : > { %v2768_v37 = vadd.f32 %v2766_v48, %v2758_v10  ;;  %v2888_v22 = vadd.f32 %v2886_v25, %v2878_v32  ;;  %v2796_v52 = vmul.f32 %v5088_v16, %v5406_v13  ;;  %v2839_v33 = vadd.f32 %v2837_v36, %v2829_v50  ;;  %v5502_v25 = vld [vmem:[#allocation29_spill] sm:$0xff] }
 0x1a2   : > { %3159 = vst [vmem:[%s3937_s20 + $0xe0] sm:$0xff] %v2817_v15  ;;  %v2857_v12 = vmul.f32 %v2855_v40, %v5470_v43  ;;  %v2916_v7 = vmul.f32 %v2915_v44, %v5493_v11  ;;  %v2935_v21 = vrot.slane %v5404_v3, %v5496_v54  ;;  %v2806_v18 = vmul.f32 %v5092_v55, %v5498_v53 }
 0x1a3   : > { %v2778_v23 = vadd.f32 %v2776_v49, %v2768_v37  ;;  %v2898_v60 = vadd.f32 %v2896_v29, %v2888_v22  ;;  %v2849_v31 = vadd.f32 %v2847_v46, %v2839_v33  ;;  %v2867_v47 = vmul.f32 %v2865_v5, %v5499_v9 }
 0x1a4   : > { %v2926_v16 = vmul.f32 %v2925_v27, %v5500_v63  ;;  %v2945_v43 = vrot.slane %v5405_v35, %v5496_v54  ;;  %v2816_v40 = vmul.f32 %v2814_v2, %v5443_v19  ;;  %v2877_v11 = vmul.f32 %v2875_v4, %v5446_v39 }
 0x1a5   : > { %v2788_v59 = vadd.f32 %v2786_v38, %v2778_v23  ;;  %v2908_v24 = vadd.f32 %v2906_v61, %v2898_v60  ;;  %v2859_v17 = vadd.f32 %v2857_v12, %v2849_v31  ;;  %v2936_v41 = vmul.f32 %v2935_v21, %v5501_v56 }
 0x1a6   : > { %v2955_v55 = vrot.slane %v5406_v13, %v5496_v54  ;;  %v2887_v48 = vmul.f32 %v2885_v28, %v5447_v6  ;;  %v2946_v45 = vmul.f32 %v2945_v43, %v5502_v25  ;;  %v2965_v2 = vrot.slane %v5498_v53, %v5496_v54 }
 0x1a7   : > { %v2798_v58 = vadd.f32 %v2796_v52, %v2788_v59  ;;  %v2918_v1 = vadd.f32 %v2916_v7, %v2908_v24  ;;  %v2869_v5 = vadd.f32 %v2867_v47, %v2859_v17  ;;  %v2897_v39 = vmul.f32 %v2895_v30, %v3828_v62 }
 0x1a8   : > { %v2956_v10 = vmul.f32 %v2955_v55, %v5497_v42  ;;  %v2975_v32 = vrot.slane %v5443_v19, %v5496_v54  ;;  %v2907_v6 = vmul.f32 %v2905_v14, %v3834_v8  ;;  %v2966_v15 = vmul.f32 %v2965_v2, %v5401_v20 }
 0x1a9   : > { %v2808_v51 = vadd.f32 %v2806_v18, %v2798_v58  ;;  %v2928_v26 = vadd.f32 %v2926_v16, %v2918_v1  ;;  %v2879_v49 = vadd.f32 %v2877_v11, %v2869_v5  ;;  %v2917_v36 = vmul.f32 %v2915_v44, %v3837_v34 }
 0x1aa   : > { %v2976_v30 = vmul.f32 %v2975_v32, %v5402_v57  ;;  %v2927_v42 = vmul.f32 %v2925_v27, %v3840_v0  ;;  %v2937_v8 = vmul.f32 %v2935_v21, %v5404_v3  ;;  %v2947_v20 = vmul.f32 %v2945_v43, %v5405_v35 }
 0x1ab   : > { %v2818_v4 = vadd.f32 %v2816_v40, %v2808_v51  ;;  %v2938_v38 = vadd.f32 %v2936_v41, %v2928_v26  ;;  %v2889_v29 = vadd.f32 %v2887_v48, %v2879_v49  ;;  %v2957_v44 = vmul.f32 %v2955_v55, %v5406_v13 }
 0x1ac   : > { %v2967_v61 = vmul.f32 %v2965_v2, %v5498_v53  ;;  %v2977_v27 = vmul.f32 %v2975_v32, %v5443_v19 }
 0x1ad   : > { %3160 = vst [vmem:[%s3937_s20 + $0xe8] sm:$0xff] %v2818_v4  ;;  %v2948_v28 = vadd.f32 %v2946_v45, %v2938_v38  ;;  %v2899_v50 = vadd.f32 %v2897_v39, %v2889_v29 }
 0x1af   : > { %v2958_v62 = vadd.f32 %v2956_v10, %v2948_v28  ;;  %v2909_v46 = vadd.f32 %v2907_v6, %v2899_v50 }
 0x1b1   : > { %v2968_v54 = vadd.f32 %v2966_v15, %v2958_v62  ;;  %v2919_v37 = vadd.f32 %v2917_v36, %v2909_v46 }
 0x1b3   : > { %v2978_v14 = vadd.f32 %v2976_v30, %v2968_v54  ;;  %v2929_v22 = vadd.f32 %v2927_v42, %v2919_v37 }
 0x1b5   : > { %3161 = vst [vmem:[%s3937_s20 + $0xf0] sm:$0xff] %v2978_v14  ;;  %v2939_v34 = vadd.f32 %v2937_v8, %v2929_v22 }
 0x1b7   : > { %v2949_v57 = vadd.f32 %v2947_v20, %v2939_v34 }
 0x1b9   : > { %v2959_v0 = vadd.f32 %v2957_v44, %v2949_v57 }
 0x1bb   : > { %v2969_v3 = vadd.f32 %v2967_v61, %v2959_v0 }
 0x1bd   : > { %v2979_v35 = vadd.f32 %v2977_v27, %v2969_v3 }
 0x1bf   : > { %3162 = vst [vmem:[%s3937_s20 + $0xf8] sm:$0xff] %v2979_v35 }
 0x1c0   : > { %3301 = shalt.err (!%p3298_p11)
}
 0x1c1   : > { %s3302_s17 = scalar_lea.hbm %s5192_s28, 4096  ;;  %s3306_s3 = scalar_lea.hbm %s5241_s2, 8192 }
 0x1c2   : > { %p3303_p0 = scmp.ne.s32.totalorder %s5192_s28, %s3302_s17  ;;  %p3307_p3 = scmp.lt.u32.totalorder %s5192_s28, %s5241_s2 }
 0x1c3   : > { %p3308_p5 = scmp.lt.u32.totalorder %s3306_s3, %s3302_s17  ;;  %p3310_p13 = scmp.lt.u32.totalorder %s3302_s17, %s5192_s28 }
 0x1c4   : > { %p3304_p4 = pnand %p3303_p0, %p5503_p2 }
 0x1c5   : > { %p3309_p6 = por %p3308_p5, %p3307_p3 }
 0x1c6   : > { %p3305_p1 = pneg %p3304_p4 }
 0x1c7   : > { %p3311_p12 = por %p3310_p13, %p3309_p6 }
 0x1c9   : > { %p3312_p10 = pnand %p3311_p12, %p3305_p1 }
 0x1cb   : > { %3315 = shalt.err (!%p3312_p10)
}
 0x1cc   : > { %s3366_s27 = smov 128   ;;  %s3367_s29 = smov 256  }
 0x1cd   : > { %s3368_s20 = smov 8  }
 0x1ce   : > { %3171 = dma.vmem_to_hbm [thread:$0]  (%p5503_p2), %s5194_s14, 4096, %s5192_s28, %s2984_s26, %s3366_s27, %s3367_s29, %s3368_s20  }
 0x1cf PF: > { %s3011_s5 = sand.u32 1, %s3346_s9   ;;  %p5504_p7 = scmp.ne.s32.totalorder %s5353_s22, 0 }
 0x1d0   : > { %p5505_p8 = scmp.ge.s32.totalorder %s3358_s12, 2  ;;  %s3012_s16 = scalar_lea.sflag [#allocation5], %s3011_s5 }
 0x1d2   : > { %p3181_p9 = pnand %p5505_p8, %p5504_p7 }
 0x1d4   : > { %3341 = dma.done.wait (!%p3181_p9), %s3012_s16, 4096  }
 0x1d5   : > { %3343 = vsyncadd (!%p3181_p9), %s3012_s16, 4294963200  ;;  %p18_p11 = scmp.ge.s32.totalorder %s3409_s15, 4   ;;  %s5506_s9 = smov %s3350_s10 }
 0x1d6   : > { %s5507_s10 = smov %s3354_s11  ;;  %s5508_s11 = smov %s3421_s18 }
 0x1d7   : > { %s5509_s12 = smov %s3409_s15  ;;  %20 = sbr.rel (!%p18_p11) target bundleno = 7 (0x7), region = 131 }
 0x1de   :  { %3017 = vsyncpa [#allocation4], 1 }
 0x1df   :  { %3019 = vsyncpa [#allocation4 + $0x1], 1 }
 0x1e0   :  { %3020 = vsyncpa [#allocation7], 1 }
 0x1e1   :  { %3022 = vsyncpa [#allocation7 + $0x1], 1 }
 0x1e2   :  { %3023 = vsyncpa [#allocation5], 1 }
 0x1e3   :  { %3025 = vsyncpa [#allocation5 + $0x1], 1 }

</bundles_post_ra>
